<compile_context>
chip_gen: v7x
topology: tpu7x:2x2x1
jax: 0.10.0
libtpu: 0.0.40
codegen_flags: <defaults>
</compile_context>

<pallas_src>
import functools

import jax
import jax.numpy as jnp
from jax import lax
from jax.experimental import pallas as pl
from jax.experimental.pallas import tpu as pltpu


T_READOUT = 24            # the module reads out[:, 24:25, :]
T_STEPS = T_READOUT + 1   # only the first 25 timesteps are ever needed


# -----------------------------------------------------------------------------
# Fused Pallas kernel: n_layer-deep LSTM over t_steps steps + Linear on h[t=24]
# -----------------------------------------------------------------------------
def _fused_lstm_fc_kernel(n_layer, hidden, t_steps, batch, *refs):
    """Ref layout:
         refs[0]                    x2d      (t_steps*B, Din)  time-major
         refs[1+3l : 4+3l]          (w_in_l, w_rec_l, b_l) for layer l
                                      layer 0 : w_in (Din, 4H) un-padded
                                      layer>0 : w_in (4H, 4H)  rows [H,4H) zero
                                      all     : w_rec (4H, 4H) rows [H,4H) zero
                                      b_l (1, 4H) = b_ih + b_hh
         refs[1+3L], refs[2+3L]     w_fc (4H, C) rows [H,4H) zero, b_fc (1, C)
         refs[3+3L]                 out_ref (B, C)
         refs[4+3L]                 gin_scr (t_steps*B, 4H)  VMEM scratch
    """
    H = hidden
    G = 4 * H
    B = batch
    f32 = jnp.float32

    x_ref = refs[0]
    layer_refs = [refs[1 + 3 * l: 4 + 3 * l] for l in range(n_layer)]
    wfc_ref = refs[1 + 3 * n_layer]
    bfc_ref = refs[2 + 3 * n_layer]
    out_ref = refs[3 + 3 * n_layer]
    gin_scr = refs[4 + 3 * n_layer]

    # ---- Hoisted layer-0 input projection (all timesteps, bias folded in). ----
    # One (t_steps*B, Din) x (Din, 4H) matmul replaces t_steps per-step matmuls
    # plus t_steps bias broadcasts on the serial recurrence path.
    w_in0_ref, _, b0_ref = layer_refs[0]
    gin_scr[...] = (
        jnp.dot(x_ref[...], w_in0_ref[...], preferred_element_type=f32)
        + b0_ref[...]
    )

    # ---- Hoisted bias broadcasts for layers >= 1 (JAX does not CSE
    #      broadcast_in_dim inside loops). ----
    biases = [None] + [
        jnp.broadcast_to(layer_refs[l][2][...], (B, G))
        for l in range(1, n_layer)
    ]

    # Recurrent state carried at (B, 4H) width: the real h/c live in lanes
    # [0, H); lanes [H, 4H) hold bounded don't-care values that are cancelled
    # by the zero rows of the padded weight matrices.
    h = [jnp.zeros((B, G), f32) for _ in range(n_layer)]
    c = [jnp.zeros((B, G), f32) for _ in range(n_layer)]

    def lstm_cell(gates, c_prev):
        # PyTorch gate order along the 4H axis: [ i | f | g | o ].
        # Full-vreg sigmoid/tanh (EUP), then align f/g/o onto lanes [0, H)
        # with XLU lane rotations.  pltpu.roll == jnp.roll: element at lane j
        # moves to lane (j + shift) mod 4H.
        sig = jax.nn.sigmoid(gates)             # i @ [0,H), f @ [H,2H), o @ [3H,4H)
        th = jnp.tanh(gates)                    # g @ [2H,3H)
        f_al = pltpu.roll(sig, 3 * H, axis=1)   # f -> lanes [0, H)
        g_al = pltpu.roll(th, 2 * H, axis=1)    # g -> lanes [0, H)
        o_al = pltpu.roll(sig, 1 * H, axis=1)   # o -> lanes [0, H)
        c_new = f_al * c_prev + sig * g_al      # lanes [0,H): f*c + i*g
        h_new = o_al * jnp.tanh(c_new)          # lanes [0,H): o*tanh(c_new)
        return h_new, c_new

    # ---- Fully unrolled recurrence over the t_steps (=25) needed steps.
    #      (Equivalent to lax.fori_loop(..., unroll=True); the Python loop
    #      keeps every index static so gin reads are static slices.) ----
    for t in range(t_steps):
        # Layer 0: input projection was precomputed above.
        gates = gin_scr[pl.ds(t * B, B), :] + jnp.dot(
            h[0], layer_refs[0][1][...], preferred_element_type=f32
        )
        h[0], c[0] = lstm_cell(gates, c[0])
        # Layers 1..L-1 consume the same-timestep output of the layer below.
        for l in range(1, n_layer):
            w_in_ref, w_rec_ref, _ = layer_refs[l]
            gates = (
                jnp.dot(h[l - 1], w_in_ref[...], preferred_element_type=f32)
                + jnp.dot(h[l], w_rec_ref[...], preferred_element_type=f32)
                + biases[l]
            )
            h[l], c[l] = lstm_cell(gates, c[l])

    # ---- Fused fc_1 on the t == 24 hidden state of the top layer. ----
    out_ref[...] = (
        jnp.dot(h[n_layer - 1], wfc_ref[...], preferred_element_type=f32)
        + bfc_ref[...]
    )


# -----------------------------------------------------------------------------
# Parameter construction / packing
# -----------------------------------------------------------------------------
def _pad_rows(w, total_rows):
    """Embed (rows, cols) into (total_rows, cols); the extra zero rows cancel
    the don't-care lanes [H, 4H) of the wide recurrent state."""
    out = jnp.zeros((total_rows, w.shape[1]), w.dtype)
    return out.at[: w.shape[0]].set(w)


def init_params(key, input_dim, hidden_dim, n_layer, ed_class):
    """Deterministic synthetic parameters (PyTorch-style uniform init)."""
    H = hidden_dim
    bound = 1.0 / jnp.sqrt(jnp.float32(H))
    layers = []
    for layer in range(n_layer):
        d_in = input_dim if layer == 0 else H
        key, k1, k2, k3, k4 = jax.random.split(key, 5)
        w_ih = jax.random.uniform(k1, (4 * H, d_in), jnp.float32, -bound, bound)
        w_hh = jax.random.uniform(k2, (4 * H, H), jnp.float32, -bound, bound)
        b_ih = jax.random.uniform(k3, (4 * H,), jnp.float32, -bound, bound)
        b_hh = jax.random.uniform(k4, (4 * H,), jnp.float32, -bound, bound)
        layers.append(
            dict(
                w_ih_t=w_ih.T,                    # (d_in, 4H)
                w_hh_t=w_hh.T,                    # (H,    4H)
                b=(b_ih + b_hh).reshape(1, -1),   # (1,    4H)
            )
        )
    key, k5, k6 = jax.random.split(key, 3)
    w_fc = jax.random.uniform(k5, (ed_class, H), jnp.float32, -bound, bound)
    b_fc = jax.random.uniform(k6, (ed_class,), jnp.float32, -bound, bound)
    return dict(lstm=layers, fc_w_t=w_fc.T, fc_b=b_fc.reshape(1, -1))


def pack_kernel_params(params, hidden_dim):
    """One-time repack of the parameters into the fused kernel's operand list."""
    G = 4 * hidden_dim
    ops = []
    for l, lp in enumerate(params["lstm"]):
        w_in = lp["w_ih_t"] if l == 0 else _pad_rows(lp["w_ih_t"], G)
        ops += [w_in, _pad_rows(lp["w_hh_t"], G), lp["b"]]
    ops += [_pad_rows(params["fc_w_t"], G), params["fc_b"]]
    return tuple(ops)


# -----------------------------------------------------------------------------
# Forward wrapper (single pallas_call)
# -----------------------------------------------------------------------------
@functools.partial(jax.jit, static_argnames=("hidden_dim", "n_layer", "t_steps"))
def rnn_common_lstm_forward(x, packed_params, hidden_dim, n_layer,
                            t_steps=T_STEPS):
    """x: (B, T, input_dim) batch-first, like the PyTorch module."""
    B, T, d_in = x.shape
    if T < t_steps:
        raise ValueError(f"sequence length {T} < {t_steps} (need time index 24)")
    G = 4 * hidden_dim
    n_class = packed_params[-1].shape[-1]

    # Only the first 25 timesteps are consumed downstream; batch-first ->
    # time-major, flattened so the in-kernel layer-0 input projection is one
    # batched matmul.  This is a tiny one-time copy fused into the jit.
    x2d = jnp.transpose(x[:, :t_steps, :], (1, 0, 2)).reshape(t_steps * B, d_in)

    kernel = functools.partial(
        _fused_lstm_fc_kernel, n_layer, hidden_dim, t_steps, B
    )
    vmem = pl.BlockSpec(memory_space=pltpu.MemorySpace.VMEM)
    operands = (x2d,) + tuple(packed_params)
    return pl.pallas_call(
        kernel,
        out_shape=jax.ShapeDtypeStruct((B, n_class), jnp.float32),
        in_specs=[vmem] * len(operands),
        out_specs=vmem,
        scratch_shapes=[pltpu.VMEM((t_steps * B, G), jnp.float32)],
    )(*operands)


# -----------------------------------------------------------------------------
# Pure-JAX reference (full-length stacked LSTM, then t = 24 readout + Linear)
# -----------------------------------------------------------------------------
def reference_forward(x, params, hidden_dim):
    h_seq = jnp.transpose(x, (1, 0, 2))          # (T, B, Din)
    H = hidden_dim
    for layer_p in params["lstm"]:
        B = h_seq.shape[1]

        def step(carry, x_t, lp=layer_p):
            h, c = carry
            gates = x_t @ lp["w_ih_t"] + h @ lp["w_hh_t"] + lp["b"]
            i = jax.nn.sigmoid(gates[:, 0 * H:1 * H])
            f = jax.nn.sigmoid(gates[:, 1 * H:2 * H])
            g = jnp.tanh(gates[:, 2 * H:3 * H])
            o = jax.nn.sigmoid(gates[:, 3 * H:4 * H])
            c = f * c + i * g
            h = o * jnp.tanh(c)
            return (h, c), h

        init = (jnp.zeros((B, H), jnp.float32), jnp.zeros((B, H), jnp.float32))
        _, h_seq = lax.scan(step, init, h_seq)
    return h_seq[T_READOUT] @ params["fc_w_t"] + params["fc_b"]


# -----------------------------------------------------------------------------
if __name__ == "__main__":
    # Module config (model_type='lstm'): seq length must cover time index 24.
    INPUT_DIM = 16
    HIDDEN_DIM = 32
    N_LAYER = 2
    ED_CLASS = 8
    BATCH = 2
    SEQ = 32

    key = jax.random.PRNGKey(0)
    key, kx = jax.random.split(key)
    x = jax.random.normal(kx, (BATCH, SEQ, INPUT_DIM), jnp.float32)

    params = init_params(key, INPUT_DIM, HIDDEN_DIM, N_LAYER, ED_CLASS)
    packed = pack_kernel_params(params, HIDDEN_DIM)

    out = rnn_common_lstm_forward(x, packed, HIDDEN_DIM, N_LAYER)
    out = jax.block_until_ready(out)

    ref = reference_forward(x, params, HIDDEN_DIM)
    assert out.shape == (BATCH, ED_CLASS), out.shape
    assert jnp.allclose(out, ref, atol=1e-4, rtol=1e-4), (out, ref)

    print("KERNEL_OK")
</pallas_src>

<mosaic_0001>
module attributes {stable_mosaic.version = 11 : i64} {
  func.func @_fused_lstm_fc_kernel(%arg0: memref<50x16xf32, #tpu.memory_space<vmem>>, %arg1: memref<16x128xf32, #tpu.memory_space<vmem>>, %arg2: memref<128x128xf32, #tpu.memory_space<vmem>>, %arg3: memref<1x128xf32, #tpu.memory_space<vmem>>, %arg4: memref<128x128xf32, #tpu.memory_space<vmem>>, %arg5: memref<128x128xf32, #tpu.memory_space<vmem>>, %arg6: memref<1x128xf32, #tpu.memory_space<vmem>>, %arg7: memref<128x8xf32, #tpu.memory_space<vmem>>, %arg8: memref<1x8xf32, #tpu.memory_space<vmem>>, %arg9: memref<2x8xf32, #tpu.memory_space<vmem>>, %arg10: memref<50x128xf32, #tpu.memory_space<vmem>>) attributes {dimension_semantics = [], scalar_prefetch = 0 : i64, scratch_operands = 1 : i64, tpu.core_type = #tpu.core_type<tc>} {
    %c0 = arith.constant 0 : index
    %c0_0 = arith.constant 0 : index
    %0 = vector.load %arg0[%c0, %c0_0] : memref<50x16xf32, #tpu.memory_space<vmem>>, vector<50x16xf32>
    %c0_1 = arith.constant 0 : index
    %c0_2 = arith.constant 0 : index
    %1 = vector.load %arg1[%c0_1, %c0_2] : memref<16x128xf32, #tpu.memory_space<vmem>>, vector<16x128xf32>
    %cst = arith.constant dense<0.000000e+00> : vector<50x128xf32>
    %2 = tpu.matmul %0, %1, %cst {dimension_numbers = #tpu.dot_dimension_numbers<[1], [0], [0], [1], [0, 0, 1, 1], [], []>} : vector<50x16xf32>, vector<16x128xf32>, vector<50x128xf32> -> vector<50x128xf32>
    %c0_3 = arith.constant 0 : index
    %c0_4 = arith.constant 0 : index
    %3 = vector.load %arg3[%c0_3, %c0_4] : memref<1x128xf32, #tpu.memory_space<vmem>>, vector<1x128xf32>
    %4 = vector.broadcast %3 : vector<1x128xf32> to vector<50x128xf32>
    %5 = arith.addf %2, %4 : vector<50x128xf32>
    %c0_5 = arith.constant 0 : index
    %c0_6 = arith.constant 0 : index
    %6 = vector.load %arg10[%c0_5, %c0_6] : memref<50x128xf32, #tpu.memory_space<vmem>>, vector<50x128xf32>
    tpu.vector_store %arg10[%c0_5, %c0_6], %5 {strides = array<i32>} : memref<50x128xf32, #tpu.memory_space<vmem>>, vector<50x128xf32>,
    %c0_7 = arith.constant 0 : index
    %c0_8 = arith.constant 0 : index
    %7 = vector.load %arg6[%c0_7, %c0_8] : memref<1x128xf32, #tpu.memory_space<vmem>>, vector<1x128xf32>
    %8 = vector.shape_cast %7 : vector<1x128xf32> to vector<1x128xf32>
    %9 = vector.broadcast %8 : vector<1x128xf32> to vector<2x128xf32>
    %cst_9 = arith.constant 0.000000e+00 : f32
    %10 = vector.broadcast %cst_9 : f32 to vector<2x128xf32>
    %cst_10 = arith.constant 0.000000e+00 : f32
    %11 = vector.broadcast %cst_10 : f32 to vector<2x128xf32>
    %cst_11 = arith.constant 0.000000e+00 : f32
    %12 = vector.broadcast %cst_11 : f32 to vector<2x128xf32>
    %cst_12 = arith.constant 0.000000e+00 : f32
    %13 = vector.broadcast %cst_12 : f32 to vector<2x128xf32>
    %c0_13 = arith.constant 0 : index
    %c0_14 = arith.constant 0 : index
    %14 = vector.load %arg10[%c0_13, %c0_14] : memref<50x128xf32, #tpu.memory_space<vmem>>, vector<2x128xf32>
    %c0_15 = arith.constant 0 : index
    %c0_16 = arith.constant 0 : index
    %15 = vector.load %arg2[%c0_15, %c0_16] : memref<128x128xf32, #tpu.memory_space<vmem>>, vector<128x128xf32>
    %cst_17 = arith.constant dense<0.000000e+00> : vector<2x128xf32>
    %16 = tpu.matmul %10, %15, %cst_17 {dimension_numbers = #tpu.dot_dimension_numbers<[1], [0], [0], [1], [0, 0, 1, 1], [], []>} : vector<2x128xf32>, vector<128x128xf32>, vector<2x128xf32> -> vector<2x128xf32>
    %17 = arith.addf %14, %16 : vector<2x128xf32>
    %18 = arith.negf %17 : vector<2x128xf32>
    %19 = math.exp %18 : vector<2x128xf32>
    %cst_18 = arith.constant 1.000000e+00 : f32
    %20 = vector.broadcast %cst_18 : f32 to vector<2x128xf32>
    %21 = arith.addf %20, %19 : vector<2x128xf32>
    %22 = arith.divf %20, %21 : vector<2x128xf32>
    %23 = math.tanh %17 : vector<2x128xf32>
    %c96_i32 = arith.constant 96 : i32
    %24 = tpu.dynamic_rotate %22 by %c96_i32 dim 1 : vector<2x128xf32>, i32 -> vector<2x128xf32>
    %c64_i32 = arith.constant 64 : i32
    %25 = tpu.dynamic_rotate %23 by %c64_i32 dim 1 : vector<2x128xf32>, i32 -> vector<2x128xf32>
    %c32_i32 = arith.constant 32 : i32
    %26 = tpu.dynamic_rotate %22 by %c32_i32 dim 1 : vector<2x128xf32>, i32 -> vector<2x128xf32>
    %27 = arith.mulf %24, %12 : vector<2x128xf32>
    %28 = arith.mulf %22, %25 : vector<2x128xf32>
    %29 = arith.addf %27, %28 : vector<2x128xf32>
    %30 = math.tanh %29 : vector<2x128xf32>
    %31 = arith.mulf %26, %30 : vector<2x128xf32>
    %c0_19 = arith.constant 0 : index
    %c0_20 = arith.constant 0 : index
    %32 = vector.load %arg4[%c0_19, %c0_20] : memref<128x128xf32, #tpu.memory_space<vmem>>, vector<128x128xf32>
    %cst_21 = arith.constant dense<0.000000e+00> : vector<2x128xf32>
    %33 = tpu.matmul %31, %32, %cst_21 {dimension_numbers = #tpu.dot_dimension_numbers<[1], [0], [0], [1], [0, 0, 1, 1], [], []>} : vector<2x128xf32>, vector<128x128xf32>, vector<2x128xf32> -> vector<2x128xf32>
    %c0_22 = arith.constant 0 : index
    %c0_23 = arith.constant 0 : index
    %34 = vector.load %arg5[%c0_22, %c0_23] : memref<128x128xf32, #tpu.memory_space<vmem>>, vector<128x128xf32>
    %cst_24 = arith.constant dense<0.000000e+00> : vector<2x128xf32>
    %35 = tpu.matmul %11, %34, %cst_24 {dimension_numbers = #tpu.dot_dimension_numbers<[1], [0], [0], [1], [0, 0, 1, 1], [], []>} : vector<2x128xf32>, vector<128x128xf32>, vector<2x128xf32> -> vector<2x128xf32>
    %36 = arith.addf %33, %35 : vector<2x128xf32>
    %37 = arith.addf %36, %9 : vector<2x128xf32>
    %38 = arith.negf %37 : vector<2x128xf32>
    %39 = math.exp %38 : vector<2x128xf32>
    %cst_25 = arith.constant 1.000000e+00 : f32
    %40 = vector.broadcast %cst_25 : f32 to vector<2x128xf32>
    %41 = arith.addf %40, %39 : vector<2x128xf32>
    %42 = arith.divf %40, %41 : vector<2x128xf32>
    %43 = math.tanh %37 : vector<2x128xf32>
    %c96_i32_26 = arith.constant 96 : i32
    %44 = tpu.dynamic_rotate %42 by %c96_i32_26 dim 1 : vector<2x128xf32>, i32 -> vector<2x128xf32>
    %c64_i32_27 = arith.constant 64 : i32
    %45 = tpu.dynamic_rotate %43 by %c64_i32_27 dim 1 : vector<2x128xf32>, i32 -> vector<2x128xf32>
    %c32_i32_28 = arith.constant 32 : i32
    %46 = tpu.dynamic_rotate %42 by %c32_i32_28 dim 1 : vector<2x128xf32>, i32 -> vector<2x128xf32>
    %47 = arith.mulf %44, %13 : vector<2x128xf32>
    %48 = arith.mulf %42, %45 : vector<2x128xf32>
    %49 = arith.addf %47, %48 : vector<2x128xf32>
    %50 = math.tanh %49 : vector<2x128xf32>
    %51 = arith.mulf %46, %50 : vector<2x128xf32>
    %c2 = arith.constant 2 : index
    %c0_29 = arith.constant 0 : index
    %52 = vector.load %arg10[%c2, %c0_29] : memref<50x128xf32, #tpu.memory_space<vmem>>, vector<2x128xf32>
    %c0_30 = arith.constant 0 : index
    %c0_31 = arith.constant 0 : index
    %53 = vector.load %arg2[%c0_30, %c0_31] : memref<128x128xf32, #tpu.memory_space<vmem>>, vector<128x128xf32>
    %cst_32 = arith.constant dense<0.000000e+00> : vector<2x128xf32>
    %54 = tpu.matmul %31, %53, %cst_32 {dimension_numbers = #tpu.dot_dimension_numbers<[1], [0], [0], [1], [0, 0, 1, 1], [], []>} : vector<2x128xf32>, vector<128x128xf32>, vector<2x128xf32> -> vector<2x128xf32>
    %55 = arith.addf %52, %54 : vector<2x128xf32>
    %56 = arith.negf %55 : vector<2x128xf32>
    %57 = math.exp %56 : vector<2x128xf32>
    %cst_33 = arith.constant 1.000000e+00 : f32
    %58 = vector.broadcast %cst_33 : f32 to vector<2x128xf32>
    %59 = arith.addf %58, %57 : vector<2x128xf32>
    %60 = arith.divf %58, %59 : vector<2x128xf32>
    %61 = math.tanh %55 : vector<2x128xf32>
    %c96_i32_34 = arith.constant 96 : i32
    %62 = tpu.dynamic_rotate %60 by %c96_i32_34 dim 1 : vector<2x128xf32>, i32 -> vector<2x128xf32>
    %c64_i32_35 = arith.constant 64 : i32
    %63 = tpu.dynamic_rotate %61 by %c64_i32_35 dim 1 : vector<2x128xf32>, i32 -> vector<2x128xf32>
    %c32_i32_36 = arith.constant 32 : i32
    %64 = tpu.dynamic_rotate %60 by %c32_i32_36 dim 1 : vector<2x128xf32>, i32 -> vector<2x128xf32>
    %65 = arith.mulf %62, %29 : vector<2x128xf32>
    %66 = arith.mulf %60, %63 : vector<2x128xf32>
    %67 = arith.addf %65, %66 : vector<2x128xf32>
    %68 = math.tanh %67 : vector<2x128xf32>
    %69 = arith.mulf %64, %68 : vector<2x128xf32>
    %c0_37 = arith.constant 0 : index
    %c0_38 = arith.constant 0 : index
    %70 = vector.load %arg4[%c0_37, %c0_38] : memref<128x128xf32, #tpu.memory_space<vmem>>, vector<128x128xf32>
    %cst_39 = arith.constant dense<0.000000e+00> : vector<2x128xf32>
    %71 = tpu.matmul %69, %70, %cst_39 {dimension_numbers = #tpu.dot_dimension_numbers<[1], [0], [0], [1], [0, 0, 1, 1], [], []>} : vector<2x128xf32>, vector<128x128xf32>, vector<2x128xf32> -> vector<2x128xf32>
    %c0_40 = arith.constant 0 : index
    %c0_41 = arith.constant 0 : index
    %72 = vector.load %arg5[%c0_40, %c0_41] : memref<128x128xf32, #tpu.memory_space<vmem>>, vector<128x128xf32>
    %cst_42 = arith.constant dense<0.000000e+00> : vector<2x128xf32>
    %73 = tpu.matmul %51, %72, %cst_42 {dimension_numbers = #tpu.dot_dimension_numbers<[1], [0], [0], [1], [0, 0, 1, 1], [], []>} : vector<2x128xf32>, vector<128x128xf32>, vector<2x128xf32> -> vector<2x128xf32>
    %74 = arith.addf %71, %73 : vector<2x128xf32>
    %75 = arith.addf %74, %9 : vector<2x128xf32>
    %76 = arith.negf %75 : vector<2x128xf32>
    %77 = math.exp %76 : vector<2x128xf32>
    %cst_43 = arith.constant 1.000000e+00 : f32
    %78 = vector.broadcast %cst_43 : f32 to vector<2x128xf32>
    %79 = arith.addf %78, %77 : vector<2x128xf32>
    %80 = arith.divf %78, %79 : vector<2x128xf32>
    %81 = math.tanh %75 : vector<2x128xf32>
    %c96_i32_44 = arith.constant 96 : i32
    %82 = tpu.dynamic_rotate %80 by %c96_i32_44 dim 1 : vector<2x128xf32>, i32 -> vector<2x128xf32>
    %c64_i32_45 = arith.constant 64 : i32
    %83 = tpu.dynamic_rotate %81 by %c64_i32_45 dim 1 : vector<2x128xf32>, i32 -> vector<2x128xf32>
    %c32_i32_46 = arith.constant 32 : i32
    %84 = tpu.dynamic_rotate %80 by %c32_i32_46 dim 1 : vector<2x128xf32>, i32 -> vector<2x128xf32>
    %85 = arith.mulf %82, %49 : vector<2x128xf32>
    %86 = arith.mulf %80, %83 : vector<2x128xf32>
    %87 = arith.addf %85, %86 : vector<2x128xf32>
    %88 = math.tanh %87 : vector<2x128xf32>
    %89 = arith.mulf %84, %88 : vector<2x128xf32>
    %c4 = arith.constant 4 : index
    %c0_47 = arith.constant 0 : index
    %90 = vector.load %arg10[%c4, %c0_47] : memref<50x128xf32, #tpu.memory_space<vmem>>, vector<2x128xf32>
    %c0_48 = arith.constant 0 : index
    %c0_49 = arith.constant 0 : index
    %91 = vector.load %arg2[%c0_48, %c0_49] : memref<128x128xf32, #tpu.memory_space<vmem>>, vector<128x128xf32>
    %cst_50 = arith.constant dense<0.000000e+00> : vector<2x128xf32>
    %92 = tpu.matmul %69, %91, %cst_50 {dimension_numbers = #tpu.dot_dimension_numbers<[1], [0], [0], [1], [0, 0, 1, 1], [], []>} : vector<2x128xf32>, vector<128x128xf32>, vector<2x128xf32> -> vector<2x128xf32>
    %93 = arith.addf %90, %92 : vector<2x128xf32>
    %94 = arith.negf %93 : vector<2x128xf32>
    %95 = math.exp %94 : vector<2x128xf32>
    %cst_51 = arith.constant 1.000000e+00 : f32
    %96 = vector.broadcast %cst_51 : f32 to vector<2x128xf32>
    %97 = arith.addf %96, %95 : vector<2x128xf32>
    %98 = arith.divf %96, %97 : vector<2x128xf32>
    %99 = math.tanh %93 : vector<2x128xf32>
    %c96_i32_52 = arith.constant 96 : i32
    %100 = tpu.dynamic_rotate %98 by %c96_i32_52 dim 1 : vector<2x128xf32>, i32 -> vector<2x128xf32>
    %c64_i32_53 = arith.constant 64 : i32
    %101 = tpu.dynamic_rotate %99 by %c64_i32_53 dim 1 : vector<2x128xf32>, i32 -> vector<2x128xf32>
    %c32_i32_54 = arith.constant 32 : i32
    %102 = tpu.dynamic_rotate %98 by %c32_i32_54 dim 1 : vector<2x128xf32>, i32 -> vector<2x128xf32>
    %103 = arith.mulf %100, %67 : vector<2x128xf32>
    %104 = arith.mulf %98, %101 : vector<2x128xf32>
    %105 = arith.addf %103, %104 : vector<2x128xf32>
    %106 = math.tanh %105 : vector<2x128xf32>
    %107 = arith.mulf %102, %106 : vector<2x128xf32>
    %c0_55 = arith.constant 0 : index
    %c0_56 = arith.constant 0 : index
    %108 = vector.load %arg4[%c0_55, %c0_56] : memref<128x128xf32, #tpu.memory_space<vmem>>, vector<128x128xf32>
    %cst_57 = arith.constant dense<0.000000e+00> : vector<2x128xf32>
    %109 = tpu.matmul %107, %108, %cst_57 {dimension_numbers = #tpu.dot_dimension_numbers<[1], [0], [0], [1], [0, 0, 1, 1], [], []>} : vector<2x128xf32>, vector<128x128xf32>, vector<2x128xf32> -> vector<2x128xf32>
    %c0_58 = arith.constant 0 : index
    %c0_59 = arith.constant 0 : index
    %110 = vector.load %arg5[%c0_58, %c0_59] : memref<128x128xf32, #tpu.memory_space<vmem>>, vector<128x128xf32>
    %cst_60 = arith.constant dense<0.000000e+00> : vector<2x128xf32>
    %111 = tpu.matmul %89, %110, %cst_60 {dimension_numbers = #tpu.dot_dimension_numbers<[1], [0], [0], [1], [0, 0, 1, 1], [], []>} : vector<2x128xf32>, vector<128x128xf32>, vector<2x128xf32> -> vector<2x128xf32>
    %112 = arith.addf %109, %111 : vector<2x128xf32>
    %113 = arith.addf %112, %9 : vector<2x128xf32>
    %114 = arith.negf %113 : vector<2x128xf32>
    %115 = math.exp %114 : vector<2x128xf32>
    %cst_61 = arith.constant 1.000000e+00 : f32
    %116 = vector.broadcast %cst_61 : f32 to vector<2x128xf32>
    %117 = arith.addf %116, %115 : vector<2x128xf32>
    %118 = arith.divf %116, %117 : vector<2x128xf32>
    %119 = math.tanh %113 : vector<2x128xf32>
    %c96_i32_62 = arith.constant 96 : i32
    %120 = tpu.dynamic_rotate %118 by %c96_i32_62 dim 1 : vector<2x128xf32>, i32 -> vector<2x128xf32>
    %c64_i32_63 = arith.constant 64 : i32
    %121 = tpu.dynamic_rotate %119 by %c64_i32_63 dim 1 : vector<2x128xf32>, i32 -> vector<2x128xf32>
    %c32_i32_64 = arith.constant 32 : i32
    %122 = tpu.dynamic_rotate %118 by %c32_i32_64 dim 1 : vector<2x128xf32>, i32 -> vector<2x128xf32>
    %123 = arith.mulf %120, %87 : vector<2x128xf32>
    %124 = arith.mulf %118, %121 : vector<2x128xf32>
    %125 = arith.addf %123, %124 : vector<2x128xf32>
    %126 = math.tanh %125 : vector<2x128xf32>
    %127 = arith.mulf %122, %126 : vector<2x128xf32>
    %c6 = arith.constant 6 : index
    %c0_65 = arith.constant 0 : index
    %128 = vector.load %arg10[%c6, %c0_65] : memref<50x128xf32, #tpu.memory_space<vmem>>, vector<2x128xf32>
    %c0_66 = arith.constant 0 : index
    %c0_67 = arith.constant 0 : index
    %129 = vector.load %arg2[%c0_66, %c0_67] : memref<128x128xf32, #tpu.memory_space<vmem>>, vector<128x128xf32>
    %cst_68 = arith.constant dense<0.000000e+00> : vector<2x128xf32>
    %130 = tpu.matmul %107, %129, %cst_68 {dimension_numbers = #tpu.dot_dimension_numbers<[1], [0], [0], [1], [0, 0, 1, 1], [], []>} : vector<2x128xf32>, vector<128x128xf32>, vector<2x128xf32> -> vector<2x128xf32>
    %131 = arith.addf %128, %130 : vector<2x128xf32>
    %132 = arith.negf %131 : vector<2x128xf32>
    %133 = math.exp %132 : vector<2x128xf32>
    %cst_69 = arith.constant 1.000000e+00 : f32
    %134 = vector.broadcast %cst_69 : f32 to vector<2x128xf32>
    %135 = arith.addf %134, %133 : vector<2x128xf32>
    %136 = arith.divf %134, %135 : vector<2x128xf32>
    %137 = math.tanh %131 : vector<2x128xf32>
    %c96_i32_70 = arith.constant 96 : i32
    %138 = tpu.dynamic_rotate %136 by %c96_i32_70 dim 1 : vector<2x128xf32>, i32 -> vector<2x128xf32>
    %c64_i32_71 = arith.constant 64 : i32
    %139 = tpu.dynamic_rotate %137 by %c64_i32_71 dim 1 : vector<2x128xf32>, i32 -> vector<2x128xf32>
    %c32_i32_72 = arith.constant 32 : i32
    %140 = tpu.dynamic_rotate %136 by %c32_i32_72 dim 1 : vector<2x128xf32>, i32 -> vector<2x128xf32>
    %141 = arith.mulf %138, %105 : vector<2x128xf32>
    %142 = arith.mulf %136, %139 : vector<2x128xf32>
    %143 = arith.addf %141, %142 : vector<2x128xf32>
    %144 = math.tanh %143 : vector<2x128xf32>
    %145 = arith.mulf %140, %144 : vector<2x128xf32>
    %c0_73 = arith.constant 0 : index
    %c0_74 = arith.constant 0 : index
    %146 = vector.load %arg4[%c0_73, %c0_74] : memref<128x128xf32, #tpu.memory_space<vmem>>, vector<128x128xf32>
    %cst_75 = arith.constant dense<0.000000e+00> : vector<2x128xf32>
    %147 = tpu.matmul %145, %146, %cst_75 {dimension_numbers = #tpu.dot_dimension_numbers<[1], [0], [0], [1], [0, 0, 1, 1], [], []>} : vector<2x128xf32>, vector<128x128xf32>, vector<2x128xf32> -> vector<2x128xf32>
    %c0_76 = arith.constant 0 : index
    %c0_77 = arith.constant 0 : index
    %148 = vector.load %arg5[%c0_76, %c0_77] : memref<128x128xf32, #tpu.memory_space<vmem>>, vector<128x128xf32>
    %cst_78 = arith.constant dense<0.000000e+00> : vector<2x128xf32>
    %149 = tpu.matmul %127, %148, %cst_78 {dimension_numbers = #tpu.dot_dimension_numbers<[1], [0], [0], [1], [0, 0, 1, 1], [], []>} : vector<2x128xf32>, vector<128x128xf32>, vector<2x128xf32> -> vector<2x128xf32>
    %150 = arith.addf %147, %149 : vector<2x128xf32>
    %151 = arith.addf %150, %9 : vector<2x128xf32>
    %152 = arith.negf %151 : vector<2x128xf32>
    %153 = math.exp %152 : vector<2x128xf32>
    %cst_79 = arith.constant 1.000000e+00 : f32
    %154 = vector.broadcast %cst_79 : f32 to vector<2x128xf32>
    %155 = arith.addf %154, %153 : vector<2x128xf32>
    %156 = arith.divf %154, %155 : vector<2x128xf32>
    %157 = math.tanh %151 : vector<2x128xf32>
    %c96_i32_80 = arith.constant 96 : i32
    %158 = tpu.dynamic_rotate %156 by %c96_i32_80 dim 1 : vector<2x128xf32>, i32 -> vector<2x128xf32>
    %c64_i32_81 = arith.constant 64 : i32
    %159 = tpu.dynamic_rotate %157 by %c64_i32_81 dim 1 : vector<2x128xf32>, i32 -> vector<2x128xf32>
    %c32_i32_82 = arith.constant 32 : i32
    %160 = tpu.dynamic_rotate %156 by %c32_i32_82 dim 1 : vector<2x128xf32>, i32 -> vector<2x128xf32>
    %161 = arith.mulf %158, %125 : vector<2x128xf32>
    %162 = arith.mulf %156, %159 : vector<2x128xf32>
    %163 = arith.addf %161, %162 : vector<2x128xf32>
    %164 = math.tanh %163 : vector<2x128xf32>
    %165 = arith.mulf %160, %164 : vector<2x128xf32>
    %c8 = arith.constant 8 : index
    %c0_83 = arith.constant 0 : index
    %166 = vector.load %arg10[%c8, %c0_83] : memref<50x128xf32, #tpu.memory_space<vmem>>, vector<2x128xf32>
    %c0_84 = arith.constant 0 : index
    %c0_85 = arith.constant 0 : index
    %167 = vector.load %arg2[%c0_84, %c0_85] : memref<128x128xf32, #tpu.memory_space<vmem>>, vector<128x128xf32>
    %cst_86 = arith.constant dense<0.000000e+00> : vector<2x128xf32>
    %168 = tpu.matmul %145, %167, %cst_86 {dimension_numbers = #tpu.dot_dimension_numbers<[1], [0], [0], [1], [0, 0, 1, 1], [], []>} : vector<2x128xf32>, vector<128x128xf32>, vector<2x128xf32> -> vector<2x128xf32>
    %169 = arith.addf %166, %168 : vector<2x128xf32>
    %170 = arith.negf %169 : vector<2x128xf32>
    %171 = math.exp %170 : vector<2x128xf32>
    %cst_87 = arith.constant 1.000000e+00 : f32
    %172 = vector.broadcast %cst_87 : f32 to vector<2x128xf32>
    %173 = arith.addf %172, %171 : vector<2x128xf32>
    %174 = arith.divf %172, %173 : vector<2x128xf32>
    %175 = math.tanh %169 : vector<2x128xf32>
    %c96_i32_88 = arith.constant 96 : i32
    %176 = tpu.dynamic_rotate %174 by %c96_i32_88 dim 1 : vector<2x128xf32>, i32 -> vector<2x128xf32>
    %c64_i32_89 = arith.constant 64 : i32
    %177 = tpu.dynamic_rotate %175 by %c64_i32_89 dim 1 : vector<2x128xf32>, i32 -> vector<2x128xf32>
    %c32_i32_90 = arith.constant 32 : i32
    %178 = tpu.dynamic_rotate %174 by %c32_i32_90 dim 1 : vector<2x128xf32>, i32 -> vector<2x128xf32>
    %179 = arith.mulf %176, %143 : vector<2x128xf32>
    %180 = arith.mulf %174, %177 : vector<2x128xf32>
    %181 = arith.addf %179, %180 : vector<2x128xf32>
    %182 = math.tanh %181 : vector<2x128xf32>
    %183 = arith.mulf %178, %182 : vector<2x128xf32>
    %c0_91 = arith.constant 0 : index
    %c0_92 = arith.constant 0 : index
    %184 = vector.load %arg4[%c0_91, %c0_92] : memref<128x128xf32, #tpu.memory_space<vmem>>, vector<128x128xf32>
    %cst_93 = arith.constant dense<0.000000e+00> : vector<2x128xf32>
    %185 = tpu.matmul %183, %184, %cst_93 {dimension_numbers = #tpu.dot_dimension_numbers<[1], [0], [0], [1], [0, 0, 1, 1], [], []>} : vector<2x128xf32>, vector<128x128xf32>, vector<2x128xf32> -> vector<2x128xf32>
    %c0_94 = arith.constant 0 : index
    %c0_95 = arith.constant 0 : index
    %186 = vector.load %arg5[%c0_94, %c0_95] : memref<128x128xf32, #tpu.memory_space<vmem>>, vector<128x128xf32>
    %cst_96 = arith.constant dense<0.000000e+00> : vector<2x128xf32>
    %187 = tpu.matmul %165, %186, %cst_96 {dimension_numbers = #tpu.dot_dimension_numbers<[1], [0], [0], [1], [0, 0, 1, 1], [], []>} : vector<2x128xf32>, vector<128x128xf32>, vector<2x128xf32> -> vector<2x128xf32>
    %188 = arith.addf %185, %187 : vector<2x128xf32>
    %189 = arith.addf %188, %9 : vector<2x128xf32>
    %190 = arith.negf %189 : vector<2x128xf32>
    %191 = math.exp %190 : vector<2x128xf32>
    %cst_97 = arith.constant 1.000000e+00 : f32
    %192 = vector.broadcast %cst_97 : f32 to vector<2x128xf32>
    %193 = arith.addf %192, %191 : vector<2x128xf32>
    %194 = arith.divf %192, %193 : vector<2x128xf32>
    %195 = math.tanh %189 : vector<2x128xf32>
    %c96_i32_98 = arith.constant 96 : i32
    %196 = tpu.dynamic_rotate %194 by %c96_i32_98 dim 1 : vector<2x128xf32>, i32 -> vector<2x128xf32>
    %c64_i32_99 = arith.constant 64 : i32
    %197 = tpu.dynamic_rotate %195 by %c64_i32_99 dim 1 : vector<2x128xf32>, i32 -> vector<2x128xf32>
    %c32_i32_100 = arith.constant 32 : i32
    %198 = tpu.dynamic_rotate %194 by %c32_i32_100 dim 1 : vector<2x128xf32>, i32 -> vector<2x128xf32>
    %199 = arith.mulf %196, %163 : vector<2x128xf32>
    %200 = arith.mulf %194, %197 : vector<2x128xf32>
    %201 = arith.addf %199, %200 : vector<2x128xf32>
    %202 = math.tanh %201 : vector<2x128xf32>
    %203 = arith.mulf %198, %202 : vector<2x128xf32>
    %c10 = arith.constant 10 : index
    %c0_101 = arith.constant 0 : index
    %204 = vector.load %arg10[%c10, %c0_101] : memref<50x128xf32, #tpu.memory_space<vmem>>, vector<2x128xf32>
    %c0_102 = arith.constant 0 : index
    %c0_103 = arith.constant 0 : index
    %205 = vector.load %arg2[%c0_102, %c0_103] : memref<128x128xf32, #tpu.memory_space<vmem>>, vector<128x128xf32>
    %cst_104 = arith.constant dense<0.000000e+00> : vector<2x128xf32>
    %206 = tpu.matmul %183, %205, %cst_104 {dimension_numbers = #tpu.dot_dimension_numbers<[1], [0], [0], [1], [0, 0, 1, 1], [], []>} : vector<2x128xf32>, vector<128x128xf32>, vector<2x128xf32> -> vector<2x128xf32>
    %207 = arith.addf %204, %206 : vector<2x128xf32>
    %208 = arith.negf %207 : vector<2x128xf32>
    %209 = math.exp %208 : vector<2x128xf32>
    %cst_105 = arith.constant 1.000000e+00 : f32
    %210 = vector.broadcast %cst_105 : f32 to vector<2x128xf32>
    %211 = arith.addf %210, %209 : vector<2x128xf32>
    %212 = arith.divf %210, %211 : vector<2x128xf32>
    %213 = math.tanh %207 : vector<2x128xf32>
    %c96_i32_106 = arith.constant 96 : i32
    %214 = tpu.dynamic_rotate %212 by %c96_i32_106 dim 1 : vector<2x128xf32>, i32 -> vector<2x128xf32>
    %c64_i32_107 = arith.constant 64 : i32
    %215 = tpu.dynamic_rotate %213 by %c64_i32_107 dim 1 : vector<2x128xf32>, i32 -> vector<2x128xf32>
    %c32_i32_108 = arith.constant 32 : i32
    %216 = tpu.dynamic_rotate %212 by %c32_i32_108 dim 1 : vector<2x128xf32>, i32 -> vector<2x128xf32>
    %217 = arith.mulf %214, %181 : vector<2x128xf32>
    %218 = arith.mulf %212, %215 : vector<2x128xf32>
    %219 = arith.addf %217, %218 : vector<2x128xf32>
    %220 = math.tanh %219 : vector<2x128xf32>
    %221 = arith.mulf %216, %220 : vector<2x128xf32>
    %c0_109 = arith.constant 0 : index
    %c0_110 = arith.constant 0 : index
    %222 = vector.load %arg4[%c0_109, %c0_110] : memref<128x128xf32, #tpu.memory_space<vmem>>, vector<128x128xf32>
    %cst_111 = arith.constant dense<0.000000e+00> : vector<2x128xf32>
    %223 = tpu.matmul %221, %222, %cst_111 {dimension_numbers = #tpu.dot_dimension_numbers<[1], [0], [0], [1], [0, 0, 1, 1], [], []>} : vector<2x128xf32>, vector<128x128xf32>, vector<2x128xf32> -> vector<2x128xf32>
    %c0_112 = arith.constant 0 : index
    %c0_113 = arith.constant 0 : index
    %224 = vector.load %arg5[%c0_112, %c0_113] : memref<128x128xf32, #tpu.memory_space<vmem>>, vector<128x128xf32>
    %cst_114 = arith.constant dense<0.000000e+00> : vector<2x128xf32>
    %225 = tpu.matmul %203, %224, %cst_114 {dimension_numbers = #tpu.dot_dimension_numbers<[1], [0], [0], [1], [0, 0, 1, 1], [], []>} : vector<2x128xf32>, vector<128x128xf32>, vector<2x128xf32> -> vector<2x128xf32>
    %226 = arith.addf %223, %225 : vector<2x128xf32>
    %227 = arith.addf %226, %9 : vector<2x128xf32>
    %228 = arith.negf %227 : vector<2x128xf32>
    %229 = math.exp %228 : vector<2x128xf32>
    %cst_115 = arith.constant 1.000000e+00 : f32
    %230 = vector.broadcast %cst_115 : f32 to vector<2x128xf32>
    %231 = arith.addf %230, %229 : vector<2x128xf32>
    %232 = arith.divf %230, %231 : vector<2x128xf32>
    %233 = math.tanh %227 : vector<2x128xf32>
    %c96_i32_116 = arith.constant 96 : i32
    %234 = tpu.dynamic_rotate %232 by %c96_i32_116 dim 1 : vector<2x128xf32>, i32 -> vector<2x128xf32>
    %c64_i32_117 = arith.constant 64 : i32
    %235 = tpu.dynamic_rotate %233 by %c64_i32_117 dim 1 : vector<2x128xf32>, i32 -> vector<2x128xf32>
    %c32_i32_118 = arith.constant 32 : i32
    %236 = tpu.dynamic_rotate %232 by %c32_i32_118 dim 1 : vector<2x128xf32>, i32 -> vector<2x128xf32>
    %237 = arith.mulf %234, %201 : vector<2x128xf32>
    %238 = arith.mulf %232, %235 : vector<2x128xf32>
    %239 = arith.addf %237, %238 : vector<2x128xf32>
    %240 = math.tanh %239 : vector<2x128xf32>
    %241 = arith.mulf %236, %240 : vector<2x128xf32>
    %c12 = arith.constant 12 : index
    %c0_119 = arith.constant 0 : index
    %242 = vector.load %arg10[%c12, %c0_119] : memref<50x128xf32, #tpu.memory_space<vmem>>, vector<2x128xf32>
    %c0_120 = arith.constant 0 : index
    %c0_121 = arith.constant 0 : index
    %243 = vector.load %arg2[%c0_120, %c0_121] : memref<128x128xf32, #tpu.memory_space<vmem>>, vector<128x128xf32>
    %cst_122 = arith.constant dense<0.000000e+00> : vector<2x128xf32>
    %244 = tpu.matmul %221, %243, %cst_122 {dimension_numbers = #tpu.dot_dimension_numbers<[1], [0], [0], [1], [0, 0, 1, 1], [], []>} : vector<2x128xf32>, vector<128x128xf32>, vector<2x128xf32> -> vector<2x128xf32>
    %245 = arith.addf %242, %244 : vector<2x128xf32>
    %246 = arith.negf %245 : vector<2x128xf32>
    %247 = math.exp %246 : vector<2x128xf32>
    %cst_123 = arith.constant 1.000000e+00 : f32
    %248 = vector.broadcast %cst_123 : f32 to vector<2x128xf32>
    %249 = arith.addf %248, %247 : vector<2x128xf32>
    %250 = arith.divf %248, %249 : vector<2x128xf32>
    %251 = math.tanh %245 : vector<2x128xf32>
    %c96_i32_124 = arith.constant 96 : i32
    %252 = tpu.dynamic_rotate %250 by %c96_i32_124 dim 1 : vector<2x128xf32>, i32 -> vector<2x128xf32>
    %c64_i32_125 = arith.constant 64 : i32
    %253 = tpu.dynamic_rotate %251 by %c64_i32_125 dim 1 : vector<2x128xf32>, i32 -> vector<2x128xf32>
    %c32_i32_126 = arith.constant 32 : i32
    %254 = tpu.dynamic_rotate %250 by %c32_i32_126 dim 1 : vector<2x128xf32>, i32 -> vector<2x128xf32>
    %255 = arith.mulf %252, %219 : vector<2x128xf32>
    %256 = arith.mulf %250, %253 : vector<2x128xf32>
    %257 = arith.addf %255, %256 : vector<2x128xf32>
    %258 = math.tanh %257 : vector<2x128xf32>
    %259 = arith.mulf %254, %258 : vector<2x128xf32>
    %c0_127 = arith.constant 0 : index
    %c0_128 = arith.constant 0 : index
    %260 = vector.load %arg4[%c0_127, %c0_128] : memref<128x128xf32, #tpu.memory_space<vmem>>, vector<128x128xf32>
    %cst_129 = arith.constant dense<0.000000e+00> : vector<2x128xf32>
    %261 = tpu.matmul %259, %260, %cst_129 {dimension_numbers = #tpu.dot_dimension_numbers<[1], [0], [0], [1], [0, 0, 1, 1], [], []>} : vector<2x128xf32>, vector<128x128xf32>, vector<2x128xf32> -> vector<2x128xf32>
    %c0_130 = arith.constant 0 : index
    %c0_131 = arith.constant 0 : index
    %262 = vector.load %arg5[%c0_130, %c0_131] : memref<128x128xf32, #tpu.memory_space<vmem>>, vector<128x128xf32>
    %cst_132 = arith.constant dense<0.000000e+00> : vector<2x128xf32>
    %263 = tpu.matmul %241, %262, %cst_132 {dimension_numbers = #tpu.dot_dimension_numbers<[1], [0], [0], [1], [0, 0, 1, 1], [], []>} : vector<2x128xf32>, vector<128x128xf32>, vector<2x128xf32> -> vector<2x128xf32>
    %264 = arith.addf %261, %263 : vector<2x128xf32>
    %265 = arith.addf %264, %9 : vector<2x128xf32>
    %266 = arith.negf %265 : vector<2x128xf32>
    %267 = math.exp %266 : vector<2x128xf32>
    %cst_133 = arith.constant 1.000000e+00 : f32
    %268 = vector.broadcast %cst_133 : f32 to vector<2x128xf32>
    %269 = arith.addf %268, %267 : vector<2x128xf32>
    %270 = arith.divf %268, %269 : vector<2x128xf32>
    %271 = math.tanh %265 : vector<2x128xf32>
    %c96_i32_134 = arith.constant 96 : i32
    %272 = tpu.dynamic_rotate %270 by %c96_i32_134 dim 1 : vector<2x128xf32>, i32 -> vector<2x128xf32>
    %c64_i32_135 = arith.constant 64 : i32
    %273 = tpu.dynamic_rotate %271 by %c64_i32_135 dim 1 : vector<2x128xf32>, i32 -> vector<2x128xf32>
    %c32_i32_136 = arith.constant 32 : i32
    %274 = tpu.dynamic_rotate %270 by %c32_i32_136 dim 1 : vector<2x128xf32>, i32 -> vector<2x128xf32>
    %275 = arith.mulf %272, %239 : vector<2x128xf32>
    %276 = arith.mulf %270, %273 : vector<2x128xf32>
    %277 = arith.addf %275, %276 : vector<2x128xf32>
    %278 = math.tanh %277 : vector<2x128xf32>
    %279 = arith.mulf %274, %278 : vector<2x128xf32>
    %c14 = arith.constant 14 : index
    %c0_137 = arith.constant 0 : index
    %280 = vector.load %arg10[%c14, %c0_137] : memref<50x128xf32, #tpu.memory_space<vmem>>, vector<2x128xf32>
    %c0_138 = arith.constant 0 : index
    %c0_139 = arith.constant 0 : index
    %281 = vector.load %arg2[%c0_138, %c0_139] : memref<128x128xf32, #tpu.memory_space<vmem>>, vector<128x128xf32>
    %cst_140 = arith.constant dense<0.000000e+00> : vector<2x128xf32>
    %282 = tpu.matmul %259, %281, %cst_140 {dimension_numbers = #tpu.dot_dimension_numbers<[1], [0], [0], [1], [0, 0, 1, 1], [], []>} : vector<2x128xf32>, vector<128x128xf32>, vector<2x128xf32> -> vector<2x128xf32>
    %283 = arith.addf %280, %282 : vector<2x128xf32>
    %284 = arith.negf %283 : vector<2x128xf32>
    %285 = math.exp %284 : vector<2x128xf32>
    %cst_141 = arith.constant 1.000000e+00 : f32
    %286 = vector.broadcast %cst_141 : f32 to vector<2x128xf32>
    %287 = arith.addf %286, %285 : vector<2x128xf32>
    %288 = arith.divf %286, %287 : vector<2x128xf32>
    %289 = math.tanh %283 : vector<2x128xf32>
    %c96_i32_142 = arith.constant 96 : i32
    %290 = tpu.dynamic_rotate %288 by %c96_i32_142 dim 1 : vector<2x128xf32>, i32 -> vector<2x128xf32>
    %c64_i32_143 = arith.constant 64 : i32
    %291 = tpu.dynamic_rotate %289 by %c64_i32_143 dim 1 : vector<2x128xf32>, i32 -> vector<2x128xf32>
    %c32_i32_144 = arith.constant 32 : i32
    %292 = tpu.dynamic_rotate %288 by %c32_i32_144 dim 1 : vector<2x128xf32>, i32 -> vector<2x128xf32>
    %293 = arith.mulf %290, %257 : vector<2x128xf32>
    %294 = arith.mulf %288, %291 : vector<2x128xf32>
    %295 = arith.addf %293, %294 : vector<2x128xf32>
    %296 = math.tanh %295 : vector<2x128xf32>
    %297 = arith.mulf %292, %296 : vector<2x128xf32>
    %c0_145 = arith.constant 0 : index
    %c0_146 = arith.constant 0 : index
    %298 = vector.load %arg4[%c0_145, %c0_146] : memref<128x128xf32, #tpu.memory_space<vmem>>, vector<128x128xf32>
    %cst_147 = arith.constant dense<0.000000e+00> : vector<2x128xf32>
    %299 = tpu.matmul %297, %298, %cst_147 {dimension_numbers = #tpu.dot_dimension_numbers<[1], [0], [0], [1], [0, 0, 1, 1], [], []>} : vector<2x128xf32>, vector<128x128xf32>, vector<2x128xf32> -> vector<2x128xf32>
    %c0_148 = arith.constant 0 : index
    %c0_149 = arith.constant 0 : index
    %300 = vector.load %arg5[%c0_148, %c0_149] : memref<128x128xf32, #tpu.memory_space<vmem>>, vector<128x128xf32>
    %cst_150 = arith.constant dense<0.000000e+00> : vector<2x128xf32>
    %301 = tpu.matmul %279, %300, %cst_150 {dimension_numbers = #tpu.dot_dimension_numbers<[1], [0], [0], [1], [0, 0, 1, 1], [], []>} : vector<2x128xf32>, vector<128x128xf32>, vector<2x128xf32> -> vector<2x128xf32>
    %302 = arith.addf %299, %301 : vector<2x128xf32>
    %303 = arith.addf %302, %9 : vector<2x128xf32>
    %304 = arith.negf %303 : vector<2x128xf32>
    %305 = math.exp %304 : vector<2x128xf32>
    %cst_151 = arith.constant 1.000000e+00 : f32
    %306 = vector.broadcast %cst_151 : f32 to vector<2x128xf32>
    %307 = arith.addf %306, %305 : vector<2x128xf32>
    %308 = arith.divf %306, %307 : vector<2x128xf32>
    %309 = math.tanh %303 : vector<2x128xf32>
    %c96_i32_152 = arith.constant 96 : i32
    %310 = tpu.dynamic_rotate %308 by %c96_i32_152 dim 1 : vector<2x128xf32>, i32 -> vector<2x128xf32>
    %c64_i32_153 = arith.constant 64 : i32
    %311 = tpu.dynamic_rotate %309 by %c64_i32_153 dim 1 : vector<2x128xf32>, i32 -> vector<2x128xf32>
    %c32_i32_154 = arith.constant 32 : i32
    %312 = tpu.dynamic_rotate %308 by %c32_i32_154 dim 1 : vector<2x128xf32>, i32 -> vector<2x128xf32>
    %313 = arith.mulf %310, %277 : vector<2x128xf32>
    %314 = arith.mulf %308, %311 : vector<2x128xf32>
    %315 = arith.addf %313, %314 : vector<2x128xf32>
    %316 = math.tanh %315 : vector<2x128xf32>
    %317 = arith.mulf %312, %316 : vector<2x128xf32>
    %c16 = arith.constant 16 : index
    %c0_155 = arith.constant 0 : index
    %318 = vector.load %arg10[%c16, %c0_155] : memref<50x128xf32, #tpu.memory_space<vmem>>, vector<2x128xf32>
    %c0_156 = arith.constant 0 : index
    %c0_157 = arith.constant 0 : index
    %319 = vector.load %arg2[%c0_156, %c0_157] : memref<128x128xf32, #tpu.memory_space<vmem>>, vector<128x128xf32>
    %cst_158 = arith.constant dense<0.000000e+00> : vector<2x128xf32>
    %320 = tpu.matmul %297, %319, %cst_158 {dimension_numbers = #tpu.dot_dimension_numbers<[1], [0], [0], [1], [0, 0, 1, 1], [], []>} : vector<2x128xf32>, vector<128x128xf32>, vector<2x128xf32> -> vector<2x128xf32>
    %321 = arith.addf %318, %320 : vector<2x128xf32>
    %322 = arith.negf %321 : vector<2x128xf32>
    %323 = math.exp %322 : vector<2x128xf32>
    %cst_159 = arith.constant 1.000000e+00 : f32
    %324 = vector.broadcast %cst_159 : f32 to vector<2x128xf32>
    %325 = arith.addf %324, %323 : vector<2x128xf32>
    %326 = arith.divf %324, %325 : vector<2x128xf32>
    %327 = math.tanh %321 : vector<2x128xf32>
    %c96_i32_160 = arith.constant 96 : i32
    %328 = tpu.dynamic_rotate %326 by %c96_i32_160 dim 1 : vector<2x128xf32>, i32 -> vector<2x128xf32>
    %c64_i32_161 = arith.constant 64 : i32
    %329 = tpu.dynamic_rotate %327 by %c64_i32_161 dim 1 : vector<2x128xf32>, i32 -> vector<2x128xf32>
    %c32_i32_162 = arith.constant 32 : i32
    %330 = tpu.dynamic_rotate %326 by %c32_i32_162 dim 1 : vector<2x128xf32>, i32 -> vector<2x128xf32>
    %331 = arith.mulf %328, %295 : vector<2x128xf32>
    %332 = arith.mulf %326, %329 : vector<2x128xf32>
    %333 = arith.addf %331, %332 : vector<2x128xf32>
    %334 = math.tanh %333 : vector<2x128xf32>
    %335 = arith.mulf %330, %334 : vector<2x128xf32>
    %c0_163 = arith.constant 0 : index
    %c0_164 = arith.constant 0 : index
    %336 = vector.load %arg4[%c0_163, %c0_164] : memref<128x128xf32, #tpu.memory_space<vmem>>, vector<128x128xf32>
    %cst_165 = arith.constant dense<0.000000e+00> : vector<2x128xf32>
    %337 = tpu.matmul %335, %336, %cst_165 {dimension_numbers = #tpu.dot_dimension_numbers<[1], [0], [0], [1], [0, 0, 1, 1], [], []>} : vector<2x128xf32>, vector<128x128xf32>, vector<2x128xf32> -> vector<2x128xf32>
    %c0_166 = arith.constant 0 : index
    %c0_167 = arith.constant 0 : index
    %338 = vector.load %arg5[%c0_166, %c0_167] : memref<128x128xf32, #tpu.memory_space<vmem>>, vector<128x128xf32>
    %cst_168 = arith.constant dense<0.000000e+00> : vector<2x128xf32>
    %339 = tpu.matmul %317, %338, %cst_168 {dimension_numbers = #tpu.dot_dimension_numbers<[1], [0], [0], [1], [0, 0, 1, 1], [], []>} : vector<2x128xf32>, vector<128x128xf32>, vector<2x128xf32> -> vector<2x128xf32>
    %340 = arith.addf %337, %339 : vector<2x128xf32>
    %341 = arith.addf %340, %9 : vector<2x128xf32>
    %342 = arith.negf %341 : vector<2x128xf32>
    %343 = math.exp %342 : vector<2x128xf32>
    %cst_169 = arith.constant 1.000000e+00 : f32
    %344 = vector.broadcast %cst_169 : f32 to vector<2x128xf32>
    %345 = arith.addf %344, %343 : vector<2x128xf32>
    %346 = arith.divf %344, %345 : vector<2x128xf32>
    %347 = math.tanh %341 : vector<2x128xf32>
    %c96_i32_170 = arith.constant 96 : i32
    %348 = tpu.dynamic_rotate %346 by %c96_i32_170 dim 1 : vector<2x128xf32>, i32 -> vector<2x128xf32>
    %c64_i32_171 = arith.constant 64 : i32
    %349 = tpu.dynamic_rotate %347 by %c64_i32_171 dim 1 : vector<2x128xf32>, i32 -> vector<2x128xf32>
    %c32_i32_172 = arith.constant 32 : i32
    %350 = tpu.dynamic_rotate %346 by %c32_i32_172 dim 1 : vector<2x128xf32>, i32 -> vector<2x128xf32>
    %351 = arith.mulf %348, %315 : vector<2x128xf32>
    %352 = arith.mulf %346, %349 : vector<2x128xf32>
    %353 = arith.addf %351, %352 : vector<2x128xf32>
    %354 = math.tanh %353 : vector<2x128xf32>
    %355 = arith.mulf %350, %354 : vector<2x128xf32>
    %c18 = arith.constant 18 : index
    %c0_173 = arith.constant 0 : index
    %356 = vector.load %arg10[%c18, %c0_173] : memref<50x128xf32, #tpu.memory_space<vmem>>, vector<2x128xf32>
    %c0_174 = arith.constant 0 : index
    %c0_175 = arith.constant 0 : index
    %357 = vector.load %arg2[%c0_174, %c0_175] : memref<128x128xf32, #tpu.memory_space<vmem>>, vector<128x128xf32>
    %cst_176 = arith.constant dense<0.000000e+00> : vector<2x128xf32>
    %358 = tpu.matmul %335, %357, %cst_176 {dimension_numbers = #tpu.dot_dimension_numbers<[1], [0], [0], [1], [0, 0, 1, 1], [], []>} : vector<2x128xf32>, vector<128x128xf32>, vector<2x128xf32> -> vector<2x128xf32>
    %359 = arith.addf %356, %358 : vector<2x128xf32>
    %360 = arith.negf %359 : vector<2x128xf32>
    %361 = math.exp %360 : vector<2x128xf32>
    %cst_177 = arith.constant 1.000000e+00 : f32
    %362 = vector.broadcast %cst_177 : f32 to vector<2x128xf32>
    %363 = arith.addf %362, %361 : vector<2x128xf32>
    %364 = arith.divf %362, %363 : vector<2x128xf32>
    %365 = math.tanh %359 : vector<2x128xf32>
    %c96_i32_178 = arith.constant 96 : i32
    %366 = tpu.dynamic_rotate %364 by %c96_i32_178 dim 1 : vector<2x128xf32>, i32 -> vector<2x128xf32>
    %c64_i32_179 = arith.constant 64 : i32
    %367 = tpu.dynamic_rotate %365 by %c64_i32_179 dim 1 : vector<2x128xf32>, i32 -> vector<2x128xf32>
    %c32_i32_180 = arith.constant 32 : i32
    %368 = tpu.dynamic_rotate %364 by %c32_i32_180 dim 1 : vector<2x128xf32>, i32 -> vector<2x128xf32>
    %369 = arith.mulf %366, %333 : vector<2x128xf32>
    %370 = arith.mulf %364, %367 : vector<2x128xf32>
    %371 = arith.addf %369, %370 : vector<2x128xf32>
    %372 = math.tanh %371 : vector<2x128xf32>
    %373 = arith.mulf %368, %372 : vector<2x128xf32>
    %c0_181 = arith.constant 0 : index
    %c0_182 = arith.constant 0 : index
    %374 = vector.load %arg4[%c0_181, %c0_182] : memref<128x128xf32, #tpu.memory_space<vmem>>, vector<128x128xf32>
    %cst_183 = arith.constant dense<0.000000e+00> : vector<2x128xf32>
    %375 = tpu.matmul %373, %374, %cst_183 {dimension_numbers = #tpu.dot_dimension_numbers<[1], [0], [0], [1], [0, 0, 1, 1], [], []>} : vector<2x128xf32>, vector<128x128xf32>, vector<2x128xf32> -> vector<2x128xf32>
    %c0_184 = arith.constant 0 : index
    %c0_185 = arith.constant 0 : index
    %376 = vector.load %arg5[%c0_184, %c0_185] : memref<128x128xf32, #tpu.memory_space<vmem>>, vector<128x128xf32>
    %cst_186 = arith.constant dense<0.000000e+00> : vector<2x128xf32>
    %377 = tpu.matmul %355, %376, %cst_186 {dimension_numbers = #tpu.dot_dimension_numbers<[1], [0], [0], [1], [0, 0, 1, 1], [], []>} : vector<2x128xf32>, vector<128x128xf32>, vector<2x128xf32> -> vector<2x128xf32>
    %378 = arith.addf %375, %377 : vector<2x128xf32>
    %379 = arith.addf %378, %9 : vector<2x128xf32>
    %380 = arith.negf %379 : vector<2x128xf32>
    %381 = math.exp %380 : vector<2x128xf32>
    %cst_187 = arith.constant 1.000000e+00 : f32
    %382 = vector.broadcast %cst_187 : f32 to vector<2x128xf32>
    %383 = arith.addf %382, %381 : vector<2x128xf32>
    %384 = arith.divf %382, %383 : vector<2x128xf32>
    %385 = math.tanh %379 : vector<2x128xf32>
    %c96_i32_188 = arith.constant 96 : i32
    %386 = tpu.dynamic_rotate %384 by %c96_i32_188 dim 1 : vector<2x128xf32>, i32 -> vector<2x128xf32>
    %c64_i32_189 = arith.constant 64 : i32
    %387 = tpu.dynamic_rotate %385 by %c64_i32_189 dim 1 : vector<2x128xf32>, i32 -> vector<2x128xf32>
    %c32_i32_190 = arith.constant 32 : i32
    %388 = tpu.dynamic_rotate %384 by %c32_i32_190 dim 1 : vector<2x128xf32>, i32 -> vector<2x128xf32>
    %389 = arith.mulf %386, %353 : vector<2x128xf32>
    %390 = arith.mulf %384, %387 : vector<2x128xf32>
    %391 = arith.addf %389, %390 : vector<2x128xf32>
    %392 = math.tanh %391 : vector<2x128xf32>
    %393 = arith.mulf %388, %392 : vector<2x128xf32>
    %c20 = arith.constant 20 : index
    %c0_191 = arith.constant 0 : index
    %394 = vector.load %arg10[%c20, %c0_191] : memref<50x128xf32, #tpu.memory_space<vmem>>, vector<2x128xf32>
    %c0_192 = arith.constant 0 : index
    %c0_193 = arith.constant 0 : index
    %395 = vector.load %arg2[%c0_192, %c0_193] : memref<128x128xf32, #tpu.memory_space<vmem>>, vector<128x128xf32>
    %cst_194 = arith.constant dense<0.000000e+00> : vector<2x128xf32>
    %396 = tpu.matmul %373, %395, %cst_194 {dimension_numbers = #tpu.dot_dimension_numbers<[1], [0], [0], [1], [0, 0, 1, 1], [], []>} : vector<2x128xf32>, vector<128x128xf32>, vector<2x128xf32> -> vector<2x128xf32>
    %397 = arith.addf %394, %396 : vector<2x128xf32>
    %398 = arith.negf %397 : vector<2x128xf32>
    %399 = math.exp %398 : vector<2x128xf32>
    %cst_195 = arith.constant 1.000000e+00 : f32
    %400 = vector.broadcast %cst_195 : f32 to vector<2x128xf32>
    %401 = arith.addf %400, %399 : vector<2x128xf32>
    %402 = arith.divf %400, %401 : vector<2x128xf32>
    %403 = math.tanh %397 : vector<2x128xf32>
    %c96_i32_196 = arith.constant 96 : i32
    %404 = tpu.dynamic_rotate %402 by %c96_i32_196 dim 1 : vector<2x128xf32>, i32 -> vector<2x128xf32>
    %c64_i32_197 = arith.constant 64 : i32
    %405 = tpu.dynamic_rotate %403 by %c64_i32_197 dim 1 : vector<2x128xf32>, i32 -> vector<2x128xf32>
    %c32_i32_198 = arith.constant 32 : i32
    %406 = tpu.dynamic_rotate %402 by %c32_i32_198 dim 1 : vector<2x128xf32>, i32 -> vector<2x128xf32>
    %407 = arith.mulf %404, %371 : vector<2x128xf32>
    %408 = arith.mulf %402, %405 : vector<2x128xf32>
    %409 = arith.addf %407, %408 : vector<2x128xf32>
    %410 = math.tanh %409 : vector<2x128xf32>
    %411 = arith.mulf %406, %410 : vector<2x128xf32>
    %c0_199 = arith.constant 0 : index
    %c0_200 = arith.constant 0 : index
    %412 = vector.load %arg4[%c0_199, %c0_200] : memref<128x128xf32, #tpu.memory_space<vmem>>, vector<128x128xf32>
    %cst_201 = arith.constant dense<0.000000e+00> : vector<2x128xf32>
    %413 = tpu.matmul %411, %412, %cst_201 {dimension_numbers = #tpu.dot_dimension_numbers<[1], [0], [0], [1], [0, 0, 1, 1], [], []>} : vector<2x128xf32>, vector<128x128xf32>, vector<2x128xf32> -> vector<2x128xf32>
    %c0_202 = arith.constant 0 : index
    %c0_203 = arith.constant 0 : index
    %414 = vector.load %arg5[%c0_202, %c0_203] : memref<128x128xf32, #tpu.memory_space<vmem>>, vector<128x128xf32>
    %cst_204 = arith.constant dense<0.000000e+00> : vector<2x128xf32>
    %415 = tpu.matmul %393, %414, %cst_204 {dimension_numbers = #tpu.dot_dimension_numbers<[1], [0], [0], [1], [0, 0, 1, 1], [], []>} : vector<2x128xf32>, vector<128x128xf32>, vector<2x128xf32> -> vector<2x128xf32>
    %416 = arith.addf %413, %415 : vector<2x128xf32>
    %417 = arith.addf %416, %9 : vector<2x128xf32>
    %418 = arith.negf %417 : vector<2x128xf32>
    %419 = math.exp %418 : vector<2x128xf32>
    %cst_205 = arith.constant 1.000000e+00 : f32
    %420 = vector.broadcast %cst_205 : f32 to vector<2x128xf32>
    %421 = arith.addf %420, %419 : vector<2x128xf32>
    %422 = arith.divf %420, %421 : vector<2x128xf32>
    %423 = math.tanh %417 : vector<2x128xf32>
    %c96_i32_206 = arith.constant 96 : i32
    %424 = tpu.dynamic_rotate %422 by %c96_i32_206 dim 1 : vector<2x128xf32>, i32 -> vector<2x128xf32>
    %c64_i32_207 = arith.constant 64 : i32
    %425 = tpu.dynamic_rotate %423 by %c64_i32_207 dim 1 : vector<2x128xf32>, i32 -> vector<2x128xf32>
    %c32_i32_208 = arith.constant 32 : i32
    %426 = tpu.dynamic_rotate %422 by %c32_i32_208 dim 1 : vector<2x128xf32>, i32 -> vector<2x128xf32>
    %427 = arith.mulf %424, %391 : vector<2x128xf32>
    %428 = arith.mulf %422, %425 : vector<2x128xf32>
    %429 = arith.addf %427, %428 : vector<2x128xf32>
    %430 = math.tanh %429 : vector<2x128xf32>
    %431 = arith.mulf %426, %430 : vector<2x128xf32>
    %c22 = arith.constant 22 : index
    %c0_209 = arith.constant 0 : index
    %432 = vector.load %arg10[%c22, %c0_209] : memref<50x128xf32, #tpu.memory_space<vmem>>, vector<2x128xf32>
    %c0_210 = arith.constant 0 : index
    %c0_211 = arith.constant 0 : index
    %433 = vector.load %arg2[%c0_210, %c0_211] : memref<128x128xf32, #tpu.memory_space<vmem>>, vector<128x128xf32>
    %cst_212 = arith.constant dense<0.000000e+00> : vector<2x128xf32>
    %434 = tpu.matmul %411, %433, %cst_212 {dimension_numbers = #tpu.dot_dimension_numbers<[1], [0], [0], [1], [0, 0, 1, 1], [], []>} : vector<2x128xf32>, vector<128x128xf32>, vector<2x128xf32> -> vector<2x128xf32>
    %435 = arith.addf %432, %434 : vector<2x128xf32>
    %436 = arith.negf %435 : vector<2x128xf32>
    %437 = math.exp %436 : vector<2x128xf32>
    %cst_213 = arith.constant 1.000000e+00 : f32
    %438 = vector.broadcast %cst_213 : f32 to vector<2x128xf32>
    %439 = arith.addf %438, %437 : vector<2x128xf32>
    %440 = arith.divf %438, %439 : vector<2x128xf32>
    %441 = math.tanh %435 : vector<2x128xf32>
    %c96_i32_214 = arith.constant 96 : i32
    %442 = tpu.dynamic_rotate %440 by %c96_i32_214 dim 1 : vector<2x128xf32>, i32 -> vector<2x128xf32>
    %c64_i32_215 = arith.constant 64 : i32
    %443 = tpu.dynamic_rotate %441 by %c64_i32_215 dim 1 : vector<2x128xf32>, i32 -> vector<2x128xf32>
    %c32_i32_216 = arith.constant 32 : i32
    %444 = tpu.dynamic_rotate %440 by %c32_i32_216 dim 1 : vector<2x128xf32>, i32 -> vector<2x128xf32>
    %445 = arith.mulf %442, %409 : vector<2x128xf32>
    %446 = arith.mulf %440, %443 : vector<2x128xf32>
    %447 = arith.addf %445, %446 : vector<2x128xf32>
    %448 = math.tanh %447 : vector<2x128xf32>
    %449 = arith.mulf %444, %448 : vector<2x128xf32>
    %c0_217 = arith.constant 0 : index
    %c0_218 = arith.constant 0 : index
    %450 = vector.load %arg4[%c0_217, %c0_218] : memref<128x128xf32, #tpu.memory_space<vmem>>, vector<128x128xf32>
    %cst_219 = arith.constant dense<0.000000e+00> : vector<2x128xf32>
    %451 = tpu.matmul %449, %450, %cst_219 {dimension_numbers = #tpu.dot_dimension_numbers<[1], [0], [0], [1], [0, 0, 1, 1], [], []>} : vector<2x128xf32>, vector<128x128xf32>, vector<2x128xf32> -> vector<2x128xf32>
    %c0_220 = arith.constant 0 : index
    %c0_221 = arith.constant 0 : index
    %452 = vector.load %arg5[%c0_220, %c0_221] : memref<128x128xf32, #tpu.memory_space<vmem>>, vector<128x128xf32>
    %cst_222 = arith.constant dense<0.000000e+00> : vector<2x128xf32>
    %453 = tpu.matmul %431, %452, %cst_222 {dimension_numbers = #tpu.dot_dimension_numbers<[1], [0], [0], [1], [0, 0, 1, 1], [], []>} : vector<2x128xf32>, vector<128x128xf32>, vector<2x128xf32> -> vector<2x128xf32>
    %454 = arith.addf %451, %453 : vector<2x128xf32>
    %455 = arith.addf %454, %9 : vector<2x128xf32>
    %456 = arith.negf %455 : vector<2x128xf32>
    %457 = math.exp %456 : vector<2x128xf32>
    %cst_223 = arith.constant 1.000000e+00 : f32
    %458 = vector.broadcast %cst_223 : f32 to vector<2x128xf32>
    %459 = arith.addf %458, %457 : vector<2x128xf32>
    %460 = arith.divf %458, %459 : vector<2x128xf32>
    %461 = math.tanh %455 : vector<2x128xf32>
    %c96_i32_224 = arith.constant 96 : i32
    %462 = tpu.dynamic_rotate %460 by %c96_i32_224 dim 1 : vector<2x128xf32>, i32 -> vector<2x128xf32>
    %c64_i32_225 = arith.constant 64 : i32
    %463 = tpu.dynamic_rotate %461 by %c64_i32_225 dim 1 : vector<2x128xf32>, i32 -> vector<2x128xf32>
    %c32_i32_226 = arith.constant 32 : i32
    %464 = tpu.dynamic_rotate %460 by %c32_i32_226 dim 1 : vector<2x128xf32>, i32 -> vector<2x128xf32>
    %465 = arith.mulf %462, %429 : vector<2x128xf32>
    %466 = arith.mulf %460, %463 : vector<2x128xf32>
    %467 = arith.addf %465, %466 : vector<2x128xf32>
    %468 = math.tanh %467 : vector<2x128xf32>
    %469 = arith.mulf %464, %468 : vector<2x128xf32>
    %c24 = arith.constant 24 : index
    %c0_227 = arith.constant 0 : index
    %470 = vector.load %arg10[%c24, %c0_227] : memref<50x128xf32, #tpu.memory_space<vmem>>, vector<2x128xf32>
    %c0_228 = arith.constant 0 : index
    %c0_229 = arith.constant 0 : index
    %471 = vector.load %arg2[%c0_228, %c0_229] : memref<128x128xf32, #tpu.memory_space<vmem>>, vector<128x128xf32>
    %cst_230 = arith.constant dense<0.000000e+00> : vector<2x128xf32>
    %472 = tpu.matmul %449, %471, %cst_230 {dimension_numbers = #tpu.dot_dimension_numbers<[1], [0], [0], [1], [0, 0, 1, 1], [], []>} : vector<2x128xf32>, vector<128x128xf32>, vector<2x128xf32> -> vector<2x128xf32>
    %473 = arith.addf %470, %472 : vector<2x128xf32>
    %474 = arith.negf %473 : vector<2x128xf32>
    %475 = math.exp %474 : vector<2x128xf32>
    %cst_231 = arith.constant 1.000000e+00 : f32
    %476 = vector.broadcast %cst_231 : f32 to vector<2x128xf32>
    %477 = arith.addf %476, %475 : vector<2x128xf32>
    %478 = arith.divf %476, %477 : vector<2x128xf32>
    %479 = math.tanh %473 : vector<2x128xf32>
    %c96_i32_232 = arith.constant 96 : i32
    %480 = tpu.dynamic_rotate %478 by %c96_i32_232 dim 1 : vector<2x128xf32>, i32 -> vector<2x128xf32>
    %c64_i32_233 = arith.constant 64 : i32
    %481 = tpu.dynamic_rotate %479 by %c64_i32_233 dim 1 : vector<2x128xf32>, i32 -> vector<2x128xf32>
    %c32_i32_234 = arith.constant 32 : i32
    %482 = tpu.dynamic_rotate %478 by %c32_i32_234 dim 1 : vector<2x128xf32>, i32 -> vector<2x128xf32>
    %483 = arith.mulf %480, %447 : vector<2x128xf32>
    %484 = arith.mulf %478, %481 : vector<2x128xf32>
    %485 = arith.addf %483, %484 : vector<2x128xf32>
    %486 = math.tanh %485 : vector<2x128xf32>
    %487 = arith.mulf %482, %486 : vector<2x128xf32>
    %c0_235 = arith.constant 0 : index
    %c0_236 = arith.constant 0 : index
    %488 = vector.load %arg4[%c0_235, %c0_236] : memref<128x128xf32, #tpu.memory_space<vmem>>, vector<128x128xf32>
    %cst_237 = arith.constant dense<0.000000e+00> : vector<2x128xf32>
    %489 = tpu.matmul %487, %488, %cst_237 {dimension_numbers = #tpu.dot_dimension_numbers<[1], [0], [0], [1], [0, 0, 1, 1], [], []>} : vector<2x128xf32>, vector<128x128xf32>, vector<2x128xf32> -> vector<2x128xf32>
    %c0_238 = arith.constant 0 : index
    %c0_239 = arith.constant 0 : index
    %490 = vector.load %arg5[%c0_238, %c0_239] : memref<128x128xf32, #tpu.memory_space<vmem>>, vector<128x128xf32>
    %cst_240 = arith.constant dense<0.000000e+00> : vector<2x128xf32>
    %491 = tpu.matmul %469, %490, %cst_240 {dimension_numbers = #tpu.dot_dimension_numbers<[1], [0], [0], [1], [0, 0, 1, 1], [], []>} : vector<2x128xf32>, vector<128x128xf32>, vector<2x128xf32> -> vector<2x128xf32>
    %492 = arith.addf %489, %491 : vector<2x128xf32>
    %493 = arith.addf %492, %9 : vector<2x128xf32>
    %494 = arith.negf %493 : vector<2x128xf32>
    %495 = math.exp %494 : vector<2x128xf32>
    %cst_241 = arith.constant 1.000000e+00 : f32
    %496 = vector.broadcast %cst_241 : f32 to vector<2x128xf32>
    %497 = arith.addf %496, %495 : vector<2x128xf32>
    %498 = arith.divf %496, %497 : vector<2x128xf32>
    %499 = math.tanh %493 : vector<2x128xf32>
    %c96_i32_242 = arith.constant 96 : i32
    %500 = tpu.dynamic_rotate %498 by %c96_i32_242 dim 1 : vector<2x128xf32>, i32 -> vector<2x128xf32>
    %c64_i32_243 = arith.constant 64 : i32
    %501 = tpu.dynamic_rotate %499 by %c64_i32_243 dim 1 : vector<2x128xf32>, i32 -> vector<2x128xf32>
    %c32_i32_244 = arith.constant 32 : i32
    %502 = tpu.dynamic_rotate %498 by %c32_i32_244 dim 1 : vector<2x128xf32>, i32 -> vector<2x128xf32>
    %503 = arith.mulf %500, %467 : vector<2x128xf32>
    %504 = arith.mulf %498, %501 : vector<2x128xf32>
    %505 = arith.addf %503, %504 : vector<2x128xf32>
    %506 = math.tanh %505 : vector<2x128xf32>
    %507 = arith.mulf %502, %506 : vector<2x128xf32>
    %c26 = arith.constant 26 : index
    %c0_245 = arith.constant 0 : index
    %508 = vector.load %arg10[%c26, %c0_245] : memref<50x128xf32, #tpu.memory_space<vmem>>, vector<2x128xf32>
    %c0_246 = arith.constant 0 : index
    %c0_247 = arith.constant 0 : index
    %509 = vector.load %arg2[%c0_246, %c0_247] : memref<128x128xf32, #tpu.memory_space<vmem>>, vector<128x128xf32>
    %cst_248 = arith.constant dense<0.000000e+00> : vector<2x128xf32>
    %510 = tpu.matmul %487, %509, %cst_248 {dimension_numbers = #tpu.dot_dimension_numbers<[1], [0], [0], [1], [0, 0, 1, 1], [], []>} : vector<2x128xf32>, vector<128x128xf32>, vector<2x128xf32> -> vector<2x128xf32>
    %511 = arith.addf %508, %510 : vector<2x128xf32>
    %512 = arith.negf %511 : vector<2x128xf32>
    %513 = math.exp %512 : vector<2x128xf32>
    %cst_249 = arith.constant 1.000000e+00 : f32
    %514 = vector.broadcast %cst_249 : f32 to vector<2x128xf32>
    %515 = arith.addf %514, %513 : vector<2x128xf32>
    %516 = arith.divf %514, %515 : vector<2x128xf32>
    %517 = math.tanh %511 : vector<2x128xf32>
    %c96_i32_250 = arith.constant 96 : i32
    %518 = tpu.dynamic_rotate %516 by %c96_i32_250 dim 1 : vector<2x128xf32>, i32 -> vector<2x128xf32>
    %c64_i32_251 = arith.constant 64 : i32
    %519 = tpu.dynamic_rotate %517 by %c64_i32_251 dim 1 : vector<2x128xf32>, i32 -> vector<2x128xf32>
    %c32_i32_252 = arith.constant 32 : i32
    %520 = tpu.dynamic_rotate %516 by %c32_i32_252 dim 1 : vector<2x128xf32>, i32 -> vector<2x128xf32>
    %521 = arith.mulf %518, %485 : vector<2x128xf32>
    %522 = arith.mulf %516, %519 : vector<2x128xf32>
    %523 = arith.addf %521, %522 : vector<2x128xf32>
    %524 = math.tanh %523 : vector<2x128xf32>
    %525 = arith.mulf %520, %524 : vector<2x128xf32>
    %c0_253 = arith.constant 0 : index
    %c0_254 = arith.constant 0 : index
    %526 = vector.load %arg4[%c0_253, %c0_254] : memref<128x128xf32, #tpu.memory_space<vmem>>, vector<128x128xf32>
    %cst_255 = arith.constant dense<0.000000e+00> : vector<2x128xf32>
    %527 = tpu.matmul %525, %526, %cst_255 {dimension_numbers = #tpu.dot_dimension_numbers<[1], [0], [0], [1], [0, 0, 1, 1], [], []>} : vector<2x128xf32>, vector<128x128xf32>, vector<2x128xf32> -> vector<2x128xf32>
    %c0_256 = arith.constant 0 : index
    %c0_257 = arith.constant 0 : index
    %528 = vector.load %arg5[%c0_256, %c0_257] : memref<128x128xf32, #tpu.memory_space<vmem>>, vector<128x128xf32>
    %cst_258 = arith.constant dense<0.000000e+00> : vector<2x128xf32>
    %529 = tpu.matmul %507, %528, %cst_258 {dimension_numbers = #tpu.dot_dimension_numbers<[1], [0], [0], [1], [0, 0, 1, 1], [], []>} : vector<2x128xf32>, vector<128x128xf32>, vector<2x128xf32> -> vector<2x128xf32>
    %530 = arith.addf %527, %529 : vector<2x128xf32>
    %531 = arith.addf %530, %9 : vector<2x128xf32>
    %532 = arith.negf %531 : vector<2x128xf32>
    %533 = math.exp %532 : vector<2x128xf32>
    %cst_259 = arith.constant 1.000000e+00 : f32
    %534 = vector.broadcast %cst_259 : f32 to vector<2x128xf32>
    %535 = arith.addf %534, %533 : vector<2x128xf32>
    %536 = arith.divf %534, %535 : vector<2x128xf32>
    %537 = math.tanh %531 : vector<2x128xf32>
    %c96_i32_260 = arith.constant 96 : i32
    %538 = tpu.dynamic_rotate %536 by %c96_i32_260 dim 1 : vector<2x128xf32>, i32 -> vector<2x128xf32>
    %c64_i32_261 = arith.constant 64 : i32
    %539 = tpu.dynamic_rotate %537 by %c64_i32_261 dim 1 : vector<2x128xf32>, i32 -> vector<2x128xf32>
    %c32_i32_262 = arith.constant 32 : i32
    %540 = tpu.dynamic_rotate %536 by %c32_i32_262 dim 1 : vector<2x128xf32>, i32 -> vector<2x128xf32>
    %541 = arith.mulf %538, %505 : vector<2x128xf32>
    %542 = arith.mulf %536, %539 : vector<2x128xf32>
    %543 = arith.addf %541, %542 : vector<2x128xf32>
    %544 = math.tanh %543 : vector<2x128xf32>
    %545 = arith.mulf %540, %544 : vector<2x128xf32>
    %c28 = arith.constant 28 : index
    %c0_263 = arith.constant 0 : index
    %546 = vector.load %arg10[%c28, %c0_263] : memref<50x128xf32, #tpu.memory_space<vmem>>, vector<2x128xf32>
    %c0_264 = arith.constant 0 : index
    %c0_265 = arith.constant 0 : index
    %547 = vector.load %arg2[%c0_264, %c0_265] : memref<128x128xf32, #tpu.memory_space<vmem>>, vector<128x128xf32>
    %cst_266 = arith.constant dense<0.000000e+00> : vector<2x128xf32>
    %548 = tpu.matmul %525, %547, %cst_266 {dimension_numbers = #tpu.dot_dimension_numbers<[1], [0], [0], [1], [0, 0, 1, 1], [], []>} : vector<2x128xf32>, vector<128x128xf32>, vector<2x128xf32> -> vector<2x128xf32>
    %549 = arith.addf %546, %548 : vector<2x128xf32>
    %550 = arith.negf %549 : vector<2x128xf32>
    %551 = math.exp %550 : vector<2x128xf32>
    %cst_267 = arith.constant 1.000000e+00 : f32
    %552 = vector.broadcast %cst_267 : f32 to vector<2x128xf32>
    %553 = arith.addf %552, %551 : vector<2x128xf32>
    %554 = arith.divf %552, %553 : vector<2x128xf32>
    %555 = math.tanh %549 : vector<2x128xf32>
    %c96_i32_268 = arith.constant 96 : i32
    %556 = tpu.dynamic_rotate %554 by %c96_i32_268 dim 1 : vector<2x128xf32>, i32 -> vector<2x128xf32>
    %c64_i32_269 = arith.constant 64 : i32
    %557 = tpu.dynamic_rotate %555 by %c64_i32_269 dim 1 : vector<2x128xf32>, i32 -> vector<2x128xf32>
    %c32_i32_270 = arith.constant 32 : i32
    %558 = tpu.dynamic_rotate %554 by %c32_i32_270 dim 1 : vector<2x128xf32>, i32 -> vector<2x128xf32>
    %559 = arith.mulf %556, %523 : vector<2x128xf32>
    %560 = arith.mulf %554, %557 : vector<2x128xf32>
    %561 = arith.addf %559, %560 : vector<2x128xf32>
    %562 = math.tanh %561 : vector<2x128xf32>
    %563 = arith.mulf %558, %562 : vector<2x128xf32>
    %c0_271 = arith.constant 0 : index
    %c0_272 = arith.constant 0 : index
    %564 = vector.load %arg4[%c0_271, %c0_272] : memref<128x128xf32, #tpu.memory_space<vmem>>, vector<128x128xf32>
    %cst_273 = arith.constant dense<0.000000e+00> : vector<2x128xf32>
    %565 = tpu.matmul %563, %564, %cst_273 {dimension_numbers = #tpu.dot_dimension_numbers<[1], [0], [0], [1], [0, 0, 1, 1], [], []>} : vector<2x128xf32>, vector<128x128xf32>, vector<2x128xf32> -> vector<2x128xf32>
    %c0_274 = arith.constant 0 : index
    %c0_275 = arith.constant 0 : index
    %566 = vector.load %arg5[%c0_274, %c0_275] : memref<128x128xf32, #tpu.memory_space<vmem>>, vector<128x128xf32>
    %cst_276 = arith.constant dense<0.000000e+00> : vector<2x128xf32>
    %567 = tpu.matmul %545, %566, %cst_276 {dimension_numbers = #tpu.dot_dimension_numbers<[1], [0], [0], [1], [0, 0, 1, 1], [], []>} : vector<2x128xf32>, vector<128x128xf32>, vector<2x128xf32> -> vector<2x128xf32>
    %568 = arith.addf %565, %567 : vector<2x128xf32>
    %569 = arith.addf %568, %9 : vector<2x128xf32>
    %570 = arith.negf %569 : vector<2x128xf32>
    %571 = math.exp %570 : vector<2x128xf32>
    %cst_277 = arith.constant 1.000000e+00 : f32
    %572 = vector.broadcast %cst_277 : f32 to vector<2x128xf32>
    %573 = arith.addf %572, %571 : vector<2x128xf32>
    %574 = arith.divf %572, %573 : vector<2x128xf32>
    %575 = math.tanh %569 : vector<2x128xf32>
    %c96_i32_278 = arith.constant 96 : i32
    %576 = tpu.dynamic_rotate %574 by %c96_i32_278 dim 1 : vector<2x128xf32>, i32 -> vector<2x128xf32>
    %c64_i32_279 = arith.constant 64 : i32
    %577 = tpu.dynamic_rotate %575 by %c64_i32_279 dim 1 : vector<2x128xf32>, i32 -> vector<2x128xf32>
    %c32_i32_280 = arith.constant 32 : i32
    %578 = tpu.dynamic_rotate %574 by %c32_i32_280 dim 1 : vector<2x128xf32>, i32 -> vector<2x128xf32>
    %579 = arith.mulf %576, %543 : vector<2x128xf32>
    %580 = arith.mulf %574, %577 : vector<2x128xf32>
    %581 = arith.addf %579, %580 : vector<2x128xf32>
    %582 = math.tanh %581 : vector<2x128xf32>
    %583 = arith.mulf %578, %582 : vector<2x128xf32>
    %c30 = arith.constant 30 : index
    %c0_281 = arith.constant 0 : index
    %584 = vector.load %arg10[%c30, %c0_281] : memref<50x128xf32, #tpu.memory_space<vmem>>, vector<2x128xf32>
    %c0_282 = arith.constant 0 : index
    %c0_283 = arith.constant 0 : index
    %585 = vector.load %arg2[%c0_282, %c0_283] : memref<128x128xf32, #tpu.memory_space<vmem>>, vector<128x128xf32>
    %cst_284 = arith.constant dense<0.000000e+00> : vector<2x128xf32>
    %586 = tpu.matmul %563, %585, %cst_284 {dimension_numbers = #tpu.dot_dimension_numbers<[1], [0], [0], [1], [0, 0, 1, 1], [], []>} : vector<2x128xf32>, vector<128x128xf32>, vector<2x128xf32> -> vector<2x128xf32>
    %587 = arith.addf %584, %586 : vector<2x128xf32>
    %588 = arith.negf %587 : vector<2x128xf32>
    %589 = math.exp %588 : vector<2x128xf32>
    %cst_285 = arith.constant 1.000000e+00 : f32
    %590 = vector.broadcast %cst_285 : f32 to vector<2x128xf32>
    %591 = arith.addf %590, %589 : vector<2x128xf32>
    %592 = arith.divf %590, %591 : vector<2x128xf32>
    %593 = math.tanh %587 : vector<2x128xf32>
    %c96_i32_286 = arith.constant 96 : i32
    %594 = tpu.dynamic_rotate %592 by %c96_i32_286 dim 1 : vector<2x128xf32>, i32 -> vector<2x128xf32>
    %c64_i32_287 = arith.constant 64 : i32
    %595 = tpu.dynamic_rotate %593 by %c64_i32_287 dim 1 : vector<2x128xf32>, i32 -> vector<2x128xf32>
    %c32_i32_288 = arith.constant 32 : i32
    %596 = tpu.dynamic_rotate %592 by %c32_i32_288 dim 1 : vector<2x128xf32>, i32 -> vector<2x128xf32>
    %597 = arith.mulf %594, %561 : vector<2x128xf32>
    %598 = arith.mulf %592, %595 : vector<2x128xf32>
    %599 = arith.addf %597, %598 : vector<2x128xf32>
    %600 = math.tanh %599 : vector<2x128xf32>
    %601 = arith.mulf %596, %600 : vector<2x128xf32>
    %c0_289 = arith.constant 0 : index
    %c0_290 = arith.constant 0 : index
    %602 = vector.load %arg4[%c0_289, %c0_290] : memref<128x128xf32, #tpu.memory_space<vmem>>, vector<128x128xf32>
    %cst_291 = arith.constant dense<0.000000e+00> : vector<2x128xf32>
    %603 = tpu.matmul %601, %602, %cst_291 {dimension_numbers = #tpu.dot_dimension_numbers<[1], [0], [0], [1], [0, 0, 1, 1], [], []>} : vector<2x128xf32>, vector<128x128xf32>, vector<2x128xf32> -> vector<2x128xf32>
    %c0_292 = arith.constant 0 : index
    %c0_293 = arith.constant 0 : index
    %604 = vector.load %arg5[%c0_292, %c0_293] : memref<128x128xf32, #tpu.memory_space<vmem>>, vector<128x128xf32>
    %cst_294 = arith.constant dense<0.000000e+00> : vector<2x128xf32>
    %605 = tpu.matmul %583, %604, %cst_294 {dimension_numbers = #tpu.dot_dimension_numbers<[1], [0], [0], [1], [0, 0, 1, 1], [], []>} : vector<2x128xf32>, vector<128x128xf32>, vector<2x128xf32> -> vector<2x128xf32>
    %606 = arith.addf %603, %605 : vector<2x128xf32>
    %607 = arith.addf %606, %9 : vector<2x128xf32>
    %608 = arith.negf %607 : vector<2x128xf32>
    %609 = math.exp %608 : vector<2x128xf32>
    %cst_295 = arith.constant 1.000000e+00 : f32
    %610 = vector.broadcast %cst_295 : f32 to vector<2x128xf32>
    %611 = arith.addf %610, %609 : vector<2x128xf32>
    %612 = arith.divf %610, %611 : vector<2x128xf32>
    %613 = math.tanh %607 : vector<2x128xf32>
    %c96_i32_296 = arith.constant 96 : i32
    %614 = tpu.dynamic_rotate %612 by %c96_i32_296 dim 1 : vector<2x128xf32>, i32 -> vector<2x128xf32>
    %c64_i32_297 = arith.constant 64 : i32
    %615 = tpu.dynamic_rotate %613 by %c64_i32_297 dim 1 : vector<2x128xf32>, i32 -> vector<2x128xf32>
    %c32_i32_298 = arith.constant 32 : i32
    %616 = tpu.dynamic_rotate %612 by %c32_i32_298 dim 1 : vector<2x128xf32>, i32 -> vector<2x128xf32>
    %617 = arith.mulf %614, %581 : vector<2x128xf32>
    %618 = arith.mulf %612, %615 : vector<2x128xf32>
    %619 = arith.addf %617, %618 : vector<2x128xf32>
    %620 = math.tanh %619 : vector<2x128xf32>
    %621 = arith.mulf %616, %620 : vector<2x128xf32>
    %c32 = arith.constant 32 : index
    %c0_299 = arith.constant 0 : index
    %622 = vector.load %arg10[%c32, %c0_299] : memref<50x128xf32, #tpu.memory_space<vmem>>, vector<2x128xf32>
    %c0_300 = arith.constant 0 : index
    %c0_301 = arith.constant 0 : index
    %623 = vector.load %arg2[%c0_300, %c0_301] : memref<128x128xf32, #tpu.memory_space<vmem>>, vector<128x128xf32>
    %cst_302 = arith.constant dense<0.000000e+00> : vector<2x128xf32>
    %624 = tpu.matmul %601, %623, %cst_302 {dimension_numbers = #tpu.dot_dimension_numbers<[1], [0], [0], [1], [0, 0, 1, 1], [], []>} : vector<2x128xf32>, vector<128x128xf32>, vector<2x128xf32> -> vector<2x128xf32>
    %625 = arith.addf %622, %624 : vector<2x128xf32>
    %626 = arith.negf %625 : vector<2x128xf32>
    %627 = math.exp %626 : vector<2x128xf32>
    %cst_303 = arith.constant 1.000000e+00 : f32
    %628 = vector.broadcast %cst_303 : f32 to vector<2x128xf32>
    %629 = arith.addf %628, %627 : vector<2x128xf32>
    %630 = arith.divf %628, %629 : vector<2x128xf32>
    %631 = math.tanh %625 : vector<2x128xf32>
    %c96_i32_304 = arith.constant 96 : i32
    %632 = tpu.dynamic_rotate %630 by %c96_i32_304 dim 1 : vector<2x128xf32>, i32 -> vector<2x128xf32>
    %c64_i32_305 = arith.constant 64 : i32
    %633 = tpu.dynamic_rotate %631 by %c64_i32_305 dim 1 : vector<2x128xf32>, i32 -> vector<2x128xf32>
    %c32_i32_306 = arith.constant 32 : i32
    %634 = tpu.dynamic_rotate %630 by %c32_i32_306 dim 1 : vector<2x128xf32>, i32 -> vector<2x128xf32>
    %635 = arith.mulf %632, %599 : vector<2x128xf32>
    %636 = arith.mulf %630, %633 : vector<2x128xf32>
    %637 = arith.addf %635, %636 : vector<2x128xf32>
    %638 = math.tanh %637 : vector<2x128xf32>
    %639 = arith.mulf %634, %638 : vector<2x128xf32>
    %c0_307 = arith.constant 0 : index
    %c0_308 = arith.constant 0 : index
    %640 = vector.load %arg4[%c0_307, %c0_308] : memref<128x128xf32, #tpu.memory_space<vmem>>, vector<128x128xf32>
    %cst_309 = arith.constant dense<0.000000e+00> : vector<2x128xf32>
    %641 = tpu.matmul %639, %640, %cst_309 {dimension_numbers = #tpu.dot_dimension_numbers<[1], [0], [0], [1], [0, 0, 1, 1], [], []>} : vector<2x128xf32>, vector<128x128xf32>, vector<2x128xf32> -> vector<2x128xf32>
    %c0_310 = arith.constant 0 : index
    %c0_311 = arith.constant 0 : index
    %642 = vector.load %arg5[%c0_310, %c0_311] : memref<128x128xf32, #tpu.memory_space<vmem>>, vector<128x128xf32>
    %cst_312 = arith.constant dense<0.000000e+00> : vector<2x128xf32>
    %643 = tpu.matmul %621, %642, %cst_312 {dimension_numbers = #tpu.dot_dimension_numbers<[1], [0], [0], [1], [0, 0, 1, 1], [], []>} : vector<2x128xf32>, vector<128x128xf32>, vector<2x128xf32> -> vector<2x128xf32>
    %644 = arith.addf %641, %643 : vector<2x128xf32>
    %645 = arith.addf %644, %9 : vector<2x128xf32>
    %646 = arith.negf %645 : vector<2x128xf32>
    %647 = math.exp %646 : vector<2x128xf32>
    %cst_313 = arith.constant 1.000000e+00 : f32
    %648 = vector.broadcast %cst_313 : f32 to vector<2x128xf32>
    %649 = arith.addf %648, %647 : vector<2x128xf32>
    %650 = arith.divf %648, %649 : vector<2x128xf32>
    %651 = math.tanh %645 : vector<2x128xf32>
    %c96_i32_314 = arith.constant 96 : i32
    %652 = tpu.dynamic_rotate %650 by %c96_i32_314 dim 1 : vector<2x128xf32>, i32 -> vector<2x128xf32>
    %c64_i32_315 = arith.constant 64 : i32
    %653 = tpu.dynamic_rotate %651 by %c64_i32_315 dim 1 : vector<2x128xf32>, i32 -> vector<2x128xf32>
    %c32_i32_316 = arith.constant 32 : i32
    %654 = tpu.dynamic_rotate %650 by %c32_i32_316 dim 1 : vector<2x128xf32>, i32 -> vector<2x128xf32>
    %655 = arith.mulf %652, %619 : vector<2x128xf32>
    %656 = arith.mulf %650, %653 : vector<2x128xf32>
    %657 = arith.addf %655, %656 : vector<2x128xf32>
    %658 = math.tanh %657 : vector<2x128xf32>
    %659 = arith.mulf %654, %658 : vector<2x128xf32>
    %c34 = arith.constant 34 : index
    %c0_317 = arith.constant 0 : index
    %660 = vector.load %arg10[%c34, %c0_317] : memref<50x128xf32, #tpu.memory_space<vmem>>, vector<2x128xf32>
    %c0_318 = arith.constant 0 : index
    %c0_319 = arith.constant 0 : index
    %661 = vector.load %arg2[%c0_318, %c0_319] : memref<128x128xf32, #tpu.memory_space<vmem>>, vector<128x128xf32>
    %cst_320 = arith.constant dense<0.000000e+00> : vector<2x128xf32>
    %662 = tpu.matmul %639, %661, %cst_320 {dimension_numbers = #tpu.dot_dimension_numbers<[1], [0], [0], [1], [0, 0, 1, 1], [], []>} : vector<2x128xf32>, vector<128x128xf32>, vector<2x128xf32> -> vector<2x128xf32>
    %663 = arith.addf %660, %662 : vector<2x128xf32>
    %664 = arith.negf %663 : vector<2x128xf32>
    %665 = math.exp %664 : vector<2x128xf32>
    %cst_321 = arith.constant 1.000000e+00 : f32
    %666 = vector.broadcast %cst_321 : f32 to vector<2x128xf32>
    %667 = arith.addf %666, %665 : vector<2x128xf32>
    %668 = arith.divf %666, %667 : vector<2x128xf32>
    %669 = math.tanh %663 : vector<2x128xf32>
    %c96_i32_322 = arith.constant 96 : i32
    %670 = tpu.dynamic_rotate %668 by %c96_i32_322 dim 1 : vector<2x128xf32>, i32 -> vector<2x128xf32>
    %c64_i32_323 = arith.constant 64 : i32
    %671 = tpu.dynamic_rotate %669 by %c64_i32_323 dim 1 : vector<2x128xf32>, i32 -> vector<2x128xf32>
    %c32_i32_324 = arith.constant 32 : i32
    %672 = tpu.dynamic_rotate %668 by %c32_i32_324 dim 1 : vector<2x128xf32>, i32 -> vector<2x128xf32>
    %673 = arith.mulf %670, %637 : vector<2x128xf32>
    %674 = arith.mulf %668, %671 : vector<2x128xf32>
    %675 = arith.addf %673, %674 : vector<2x128xf32>
    %676 = math.tanh %675 : vector<2x128xf32>
    %677 = arith.mulf %672, %676 : vector<2x128xf32>
    %c0_325 = arith.constant 0 : index
    %c0_326 = arith.constant 0 : index
    %678 = vector.load %arg4[%c0_325, %c0_326] : memref<128x128xf32, #tpu.memory_space<vmem>>, vector<128x128xf32>
    %cst_327 = arith.constant dense<0.000000e+00> : vector<2x128xf32>
    %679 = tpu.matmul %677, %678, %cst_327 {dimension_numbers = #tpu.dot_dimension_numbers<[1], [0], [0], [1], [0, 0, 1, 1], [], []>} : vector<2x128xf32>, vector<128x128xf32>, vector<2x128xf32> -> vector<2x128xf32>
    %c0_328 = arith.constant 0 : index
    %c0_329 = arith.constant 0 : index
    %680 = vector.load %arg5[%c0_328, %c0_329] : memref<128x128xf32, #tpu.memory_space<vmem>>, vector<128x128xf32>
    %cst_330 = arith.constant dense<0.000000e+00> : vector<2x128xf32>
    %681 = tpu.matmul %659, %680, %cst_330 {dimension_numbers = #tpu.dot_dimension_numbers<[1], [0], [0], [1], [0, 0, 1, 1], [], []>} : vector<2x128xf32>, vector<128x128xf32>, vector<2x128xf32> -> vector<2x128xf32>
    %682 = arith.addf %679, %681 : vector<2x128xf32>
    %683 = arith.addf %682, %9 : vector<2x128xf32>
    %684 = arith.negf %683 : vector<2x128xf32>
    %685 = math.exp %684 : vector<2x128xf32>
    %cst_331 = arith.constant 1.000000e+00 : f32
    %686 = vector.broadcast %cst_331 : f32 to vector<2x128xf32>
    %687 = arith.addf %686, %685 : vector<2x128xf32>
    %688 = arith.divf %686, %687 : vector<2x128xf32>
    %689 = math.tanh %683 : vector<2x128xf32>
    %c96_i32_332 = arith.constant 96 : i32
    %690 = tpu.dynamic_rotate %688 by %c96_i32_332 dim 1 : vector<2x128xf32>, i32 -> vector<2x128xf32>
    %c64_i32_333 = arith.constant 64 : i32
    %691 = tpu.dynamic_rotate %689 by %c64_i32_333 dim 1 : vector<2x128xf32>, i32 -> vector<2x128xf32>
    %c32_i32_334 = arith.constant 32 : i32
    %692 = tpu.dynamic_rotate %688 by %c32_i32_334 dim 1 : vector<2x128xf32>, i32 -> vector<2x128xf32>
    %693 = arith.mulf %690, %657 : vector<2x128xf32>
    %694 = arith.mulf %688, %691 : vector<2x128xf32>
    %695 = arith.addf %693, %694 : vector<2x128xf32>
    %696 = math.tanh %695 : vector<2x128xf32>
    %697 = arith.mulf %692, %696 : vector<2x128xf32>
    %c36 = arith.constant 36 : index
    %c0_335 = arith.constant 0 : index
    %698 = vector.load %arg10[%c36, %c0_335] : memref<50x128xf32, #tpu.memory_space<vmem>>, vector<2x128xf32>
    %c0_336 = arith.constant 0 : index
    %c0_337 = arith.constant 0 : index
    %699 = vector.load %arg2[%c0_336, %c0_337] : memref<128x128xf32, #tpu.memory_space<vmem>>, vector<128x128xf32>
    %cst_338 = arith.constant dense<0.000000e+00> : vector<2x128xf32>
    %700 = tpu.matmul %677, %699, %cst_338 {dimension_numbers = #tpu.dot_dimension_numbers<[1], [0], [0], [1], [0, 0, 1, 1], [], []>} : vector<2x128xf32>, vector<128x128xf32>, vector<2x128xf32> -> vector<2x128xf32>
    %701 = arith.addf %698, %700 : vector<2x128xf32>
    %702 = arith.negf %701 : vector<2x128xf32>
    %703 = math.exp %702 : vector<2x128xf32>
    %cst_339 = arith.constant 1.000000e+00 : f32
    %704 = vector.broadcast %cst_339 : f32 to vector<2x128xf32>
    %705 = arith.addf %704, %703 : vector<2x128xf32>
    %706 = arith.divf %704, %705 : vector<2x128xf32>
    %707 = math.tanh %701 : vector<2x128xf32>
    %c96_i32_340 = arith.constant 96 : i32
    %708 = tpu.dynamic_rotate %706 by %c96_i32_340 dim 1 : vector<2x128xf32>, i32 -> vector<2x128xf32>
    %c64_i32_341 = arith.constant 64 : i32
    %709 = tpu.dynamic_rotate %707 by %c64_i32_341 dim 1 : vector<2x128xf32>, i32 -> vector<2x128xf32>
    %c32_i32_342 = arith.constant 32 : i32
    %710 = tpu.dynamic_rotate %706 by %c32_i32_342 dim 1 : vector<2x128xf32>, i32 -> vector<2x128xf32>
    %711 = arith.mulf %708, %675 : vector<2x128xf32>
    %712 = arith.mulf %706, %709 : vector<2x128xf32>
    %713 = arith.addf %711, %712 : vector<2x128xf32>
    %714 = math.tanh %713 : vector<2x128xf32>
    %715 = arith.mulf %710, %714 : vector<2x128xf32>
    %c0_343 = arith.constant 0 : index
    %c0_344 = arith.constant 0 : index
    %716 = vector.load %arg4[%c0_343, %c0_344] : memref<128x128xf32, #tpu.memory_space<vmem>>, vector<128x128xf32>
    %cst_345 = arith.constant dense<0.000000e+00> : vector<2x128xf32>
    %717 = tpu.matmul %715, %716, %cst_345 {dimension_numbers = #tpu.dot_dimension_numbers<[1], [0], [0], [1], [0, 0, 1, 1], [], []>} : vector<2x128xf32>, vector<128x128xf32>, vector<2x128xf32> -> vector<2x128xf32>
    %c0_346 = arith.constant 0 : index
    %c0_347 = arith.constant 0 : index
    %718 = vector.load %arg5[%c0_346, %c0_347] : memref<128x128xf32, #tpu.memory_space<vmem>>, vector<128x128xf32>
    %cst_348 = arith.constant dense<0.000000e+00> : vector<2x128xf32>
    %719 = tpu.matmul %697, %718, %cst_348 {dimension_numbers = #tpu.dot_dimension_numbers<[1], [0], [0], [1], [0, 0, 1, 1], [], []>} : vector<2x128xf32>, vector<128x128xf32>, vector<2x128xf32> -> vector<2x128xf32>
    %720 = arith.addf %717, %719 : vector<2x128xf32>
    %721 = arith.addf %720, %9 : vector<2x128xf32>
    %722 = arith.negf %721 : vector<2x128xf32>
    %723 = math.exp %722 : vector<2x128xf32>
    %cst_349 = arith.constant 1.000000e+00 : f32
    %724 = vector.broadcast %cst_349 : f32 to vector<2x128xf32>
    %725 = arith.addf %724, %723 : vector<2x128xf32>
    %726 = arith.divf %724, %725 : vector<2x128xf32>
    %727 = math.tanh %721 : vector<2x128xf32>
    %c96_i32_350 = arith.constant 96 : i32
    %728 = tpu.dynamic_rotate %726 by %c96_i32_350 dim 1 : vector<2x128xf32>, i32 -> vector<2x128xf32>
    %c64_i32_351 = arith.constant 64 : i32
    %729 = tpu.dynamic_rotate %727 by %c64_i32_351 dim 1 : vector<2x128xf32>, i32 -> vector<2x128xf32>
    %c32_i32_352 = arith.constant 32 : i32
    %730 = tpu.dynamic_rotate %726 by %c32_i32_352 dim 1 : vector<2x128xf32>, i32 -> vector<2x128xf32>
    %731 = arith.mulf %728, %695 : vector<2x128xf32>
    %732 = arith.mulf %726, %729 : vector<2x128xf32>
    %733 = arith.addf %731, %732 : vector<2x128xf32>
    %734 = math.tanh %733 : vector<2x128xf32>
    %735 = arith.mulf %730, %734 : vector<2x128xf32>
    %c38 = arith.constant 38 : index
    %c0_353 = arith.constant 0 : index
    %736 = vector.load %arg10[%c38, %c0_353] : memref<50x128xf32, #tpu.memory_space<vmem>>, vector<2x128xf32>
    %c0_354 = arith.constant 0 : index
    %c0_355 = arith.constant 0 : index
    %737 = vector.load %arg2[%c0_354, %c0_355] : memref<128x128xf32, #tpu.memory_space<vmem>>, vector<128x128xf32>
    %cst_356 = arith.constant dense<0.000000e+00> : vector<2x128xf32>
    %738 = tpu.matmul %715, %737, %cst_356 {dimension_numbers = #tpu.dot_dimension_numbers<[1], [0], [0], [1], [0, 0, 1, 1], [], []>} : vector<2x128xf32>, vector<128x128xf32>, vector<2x128xf32> -> vector<2x128xf32>
    %739 = arith.addf %736, %738 : vector<2x128xf32>
    %740 = arith.negf %739 : vector<2x128xf32>
    %741 = math.exp %740 : vector<2x128xf32>
    %cst_357 = arith.constant 1.000000e+00 : f32
    %742 = vector.broadcast %cst_357 : f32 to vector<2x128xf32>
    %743 = arith.addf %742, %741 : vector<2x128xf32>
    %744 = arith.divf %742, %743 : vector<2x128xf32>
    %745 = math.tanh %739 : vector<2x128xf32>
    %c96_i32_358 = arith.constant 96 : i32
    %746 = tpu.dynamic_rotate %744 by %c96_i32_358 dim 1 : vector<2x128xf32>, i32 -> vector<2x128xf32>
    %c64_i32_359 = arith.constant 64 : i32
    %747 = tpu.dynamic_rotate %745 by %c64_i32_359 dim 1 : vector<2x128xf32>, i32 -> vector<2x128xf32>
    %c32_i32_360 = arith.constant 32 : i32
    %748 = tpu.dynamic_rotate %744 by %c32_i32_360 dim 1 : vector<2x128xf32>, i32 -> vector<2x128xf32>
    %749 = arith.mulf %746, %713 : vector<2x128xf32>
    %750 = arith.mulf %744, %747 : vector<2x128xf32>
    %751 = arith.addf %749, %750 : vector<2x128xf32>
    %752 = math.tanh %751 : vector<2x128xf32>
    %753 = arith.mulf %748, %752 : vector<2x128xf32>
    %c0_361 = arith.constant 0 : index
    %c0_362 = arith.constant 0 : index
    %754 = vector.load %arg4[%c0_361, %c0_362] : memref<128x128xf32, #tpu.memory_space<vmem>>, vector<128x128xf32>
    %cst_363 = arith.constant dense<0.000000e+00> : vector<2x128xf32>
    %755 = tpu.matmul %753, %754, %cst_363 {dimension_numbers = #tpu.dot_dimension_numbers<[1], [0], [0], [1], [0, 0, 1, 1], [], []>} : vector<2x128xf32>, vector<128x128xf32>, vector<2x128xf32> -> vector<2x128xf32>
    %c0_364 = arith.constant 0 : index
    %c0_365 = arith.constant 0 : index
    %756 = vector.load %arg5[%c0_364, %c0_365] : memref<128x128xf32, #tpu.memory_space<vmem>>, vector<128x128xf32>
    %cst_366 = arith.constant dense<0.000000e+00> : vector<2x128xf32>
    %757 = tpu.matmul %735, %756, %cst_366 {dimension_numbers = #tpu.dot_dimension_numbers<[1], [0], [0], [1], [0, 0, 1, 1], [], []>} : vector<2x128xf32>, vector<128x128xf32>, vector<2x128xf32> -> vector<2x128xf32>
    %758 = arith.addf %755, %757 : vector<2x128xf32>
    %759 = arith.addf %758, %9 : vector<2x128xf32>
    %760 = arith.negf %759 : vector<2x128xf32>
    %761 = math.exp %760 : vector<2x128xf32>
    %cst_367 = arith.constant 1.000000e+00 : f32
    %762 = vector.broadcast %cst_367 : f32 to vector<2x128xf32>
    %763 = arith.addf %762, %761 : vector<2x128xf32>
    %764 = arith.divf %762, %763 : vector<2x128xf32>
    %765 = math.tanh %759 : vector<2x128xf32>
    %c96_i32_368 = arith.constant 96 : i32
    %766 = tpu.dynamic_rotate %764 by %c96_i32_368 dim 1 : vector<2x128xf32>, i32 -> vector<2x128xf32>
    %c64_i32_369 = arith.constant 64 : i32
    %767 = tpu.dynamic_rotate %765 by %c64_i32_369 dim 1 : vector<2x128xf32>, i32 -> vector<2x128xf32>
    %c32_i32_370 = arith.constant 32 : i32
    %768 = tpu.dynamic_rotate %764 by %c32_i32_370 dim 1 : vector<2x128xf32>, i32 -> vector<2x128xf32>
    %769 = arith.mulf %766, %733 : vector<2x128xf32>
    %770 = arith.mulf %764, %767 : vector<2x128xf32>
    %771 = arith.addf %769, %770 : vector<2x128xf32>
    %772 = math.tanh %771 : vector<2x128xf32>
    %773 = arith.mulf %768, %772 : vector<2x128xf32>
    %c40 = arith.constant 40 : index
    %c0_371 = arith.constant 0 : index
    %774 = vector.load %arg10[%c40, %c0_371] : memref<50x128xf32, #tpu.memory_space<vmem>>, vector<2x128xf32>
    %c0_372 = arith.constant 0 : index
    %c0_373 = arith.constant 0 : index
    %775 = vector.load %arg2[%c0_372, %c0_373] : memref<128x128xf32, #tpu.memory_space<vmem>>, vector<128x128xf32>
    %cst_374 = arith.constant dense<0.000000e+00> : vector<2x128xf32>
    %776 = tpu.matmul %753, %775, %cst_374 {dimension_numbers = #tpu.dot_dimension_numbers<[1], [0], [0], [1], [0, 0, 1, 1], [], []>} : vector<2x128xf32>, vector<128x128xf32>, vector<2x128xf32> -> vector<2x128xf32>
    %777 = arith.addf %774, %776 : vector<2x128xf32>
    %778 = arith.negf %777 : vector<2x128xf32>
    %779 = math.exp %778 : vector<2x128xf32>
    %cst_375 = arith.constant 1.000000e+00 : f32
    %780 = vector.broadcast %cst_375 : f32 to vector<2x128xf32>
    %781 = arith.addf %780, %779 : vector<2x128xf32>
    %782 = arith.divf %780, %781 : vector<2x128xf32>
    %783 = math.tanh %777 : vector<2x128xf32>
    %c96_i32_376 = arith.constant 96 : i32
    %784 = tpu.dynamic_rotate %782 by %c96_i32_376 dim 1 : vector<2x128xf32>, i32 -> vector<2x128xf32>
    %c64_i32_377 = arith.constant 64 : i32
    %785 = tpu.dynamic_rotate %783 by %c64_i32_377 dim 1 : vector<2x128xf32>, i32 -> vector<2x128xf32>
    %c32_i32_378 = arith.constant 32 : i32
    %786 = tpu.dynamic_rotate %782 by %c32_i32_378 dim 1 : vector<2x128xf32>, i32 -> vector<2x128xf32>
    %787 = arith.mulf %784, %751 : vector<2x128xf32>
    %788 = arith.mulf %782, %785 : vector<2x128xf32>
    %789 = arith.addf %787, %788 : vector<2x128xf32>
    %790 = math.tanh %789 : vector<2x128xf32>
    %791 = arith.mulf %786, %790 : vector<2x128xf32>
    %c0_379 = arith.constant 0 : index
    %c0_380 = arith.constant 0 : index
    %792 = vector.load %arg4[%c0_379, %c0_380] : memref<128x128xf32, #tpu.memory_space<vmem>>, vector<128x128xf32>
    %cst_381 = arith.constant dense<0.000000e+00> : vector<2x128xf32>
    %793 = tpu.matmul %791, %792, %cst_381 {dimension_numbers = #tpu.dot_dimension_numbers<[1], [0], [0], [1], [0, 0, 1, 1], [], []>} : vector<2x128xf32>, vector<128x128xf32>, vector<2x128xf32> -> vector<2x128xf32>
    %c0_382 = arith.constant 0 : index
    %c0_383 = arith.constant 0 : index
    %794 = vector.load %arg5[%c0_382, %c0_383] : memref<128x128xf32, #tpu.memory_space<vmem>>, vector<128x128xf32>
    %cst_384 = arith.constant dense<0.000000e+00> : vector<2x128xf32>
    %795 = tpu.matmul %773, %794, %cst_384 {dimension_numbers = #tpu.dot_dimension_numbers<[1], [0], [0], [1], [0, 0, 1, 1], [], []>} : vector<2x128xf32>, vector<128x128xf32>, vector<2x128xf32> -> vector<2x128xf32>
    %796 = arith.addf %793, %795 : vector<2x128xf32>
    %797 = arith.addf %796, %9 : vector<2x128xf32>
    %798 = arith.negf %797 : vector<2x128xf32>
    %799 = math.exp %798 : vector<2x128xf32>
    %cst_385 = arith.constant 1.000000e+00 : f32
    %800 = vector.broadcast %cst_385 : f32 to vector<2x128xf32>
    %801 = arith.addf %800, %799 : vector<2x128xf32>
    %802 = arith.divf %800, %801 : vector<2x128xf32>
    %803 = math.tanh %797 : vector<2x128xf32>
    %c96_i32_386 = arith.constant 96 : i32
    %804 = tpu.dynamic_rotate %802 by %c96_i32_386 dim 1 : vector<2x128xf32>, i32 -> vector<2x128xf32>
    %c64_i32_387 = arith.constant 64 : i32
    %805 = tpu.dynamic_rotate %803 by %c64_i32_387 dim 1 : vector<2x128xf32>, i32 -> vector<2x128xf32>
    %c32_i32_388 = arith.constant 32 : i32
    %806 = tpu.dynamic_rotate %802 by %c32_i32_388 dim 1 : vector<2x128xf32>, i32 -> vector<2x128xf32>
    %807 = arith.mulf %804, %771 : vector<2x128xf32>
    %808 = arith.mulf %802, %805 : vector<2x128xf32>
    %809 = arith.addf %807, %808 : vector<2x128xf32>
    %810 = math.tanh %809 : vector<2x128xf32>
    %811 = arith.mulf %806, %810 : vector<2x128xf32>
    %c42 = arith.constant 42 : index
    %c0_389 = arith.constant 0 : index
    %812 = vector.load %arg10[%c42, %c0_389] : memref<50x128xf32, #tpu.memory_space<vmem>>, vector<2x128xf32>
    %c0_390 = arith.constant 0 : index
    %c0_391 = arith.constant 0 : index
    %813 = vector.load %arg2[%c0_390, %c0_391] : memref<128x128xf32, #tpu.memory_space<vmem>>, vector<128x128xf32>
    %cst_392 = arith.constant dense<0.000000e+00> : vector<2x128xf32>
    %814 = tpu.matmul %791, %813, %cst_392 {dimension_numbers = #tpu.dot_dimension_numbers<[1], [0], [0], [1], [0, 0, 1, 1], [], []>} : vector<2x128xf32>, vector<128x128xf32>, vector<2x128xf32> -> vector<2x128xf32>
    %815 = arith.addf %812, %814 : vector<2x128xf32>
    %816 = arith.negf %815 : vector<2x128xf32>
    %817 = math.exp %816 : vector<2x128xf32>
    %cst_393 = arith.constant 1.000000e+00 : f32
    %818 = vector.broadcast %cst_393 : f32 to vector<2x128xf32>
    %819 = arith.addf %818, %817 : vector<2x128xf32>
    %820 = arith.divf %818, %819 : vector<2x128xf32>
    %821 = math.tanh %815 : vector<2x128xf32>
    %c96_i32_394 = arith.constant 96 : i32
    %822 = tpu.dynamic_rotate %820 by %c96_i32_394 dim 1 : vector<2x128xf32>, i32 -> vector<2x128xf32>
    %c64_i32_395 = arith.constant 64 : i32
    %823 = tpu.dynamic_rotate %821 by %c64_i32_395 dim 1 : vector<2x128xf32>, i32 -> vector<2x128xf32>
    %c32_i32_396 = arith.constant 32 : i32
    %824 = tpu.dynamic_rotate %820 by %c32_i32_396 dim 1 : vector<2x128xf32>, i32 -> vector<2x128xf32>
    %825 = arith.mulf %822, %789 : vector<2x128xf32>
    %826 = arith.mulf %820, %823 : vector<2x128xf32>
    %827 = arith.addf %825, %826 : vector<2x128xf32>
    %828 = math.tanh %827 : vector<2x128xf32>
    %829 = arith.mulf %824, %828 : vector<2x128xf32>
    %c0_397 = arith.constant 0 : index
    %c0_398 = arith.constant 0 : index
    %830 = vector.load %arg4[%c0_397, %c0_398] : memref<128x128xf32, #tpu.memory_space<vmem>>, vector<128x128xf32>
    %cst_399 = arith.constant dense<0.000000e+00> : vector<2x128xf32>
    %831 = tpu.matmul %829, %830, %cst_399 {dimension_numbers = #tpu.dot_dimension_numbers<[1], [0], [0], [1], [0, 0, 1, 1], [], []>} : vector<2x128xf32>, vector<128x128xf32>, vector<2x128xf32> -> vector<2x128xf32>
    %c0_400 = arith.constant 0 : index
    %c0_401 = arith.constant 0 : index
    %832 = vector.load %arg5[%c0_400, %c0_401] : memref<128x128xf32, #tpu.memory_space<vmem>>, vector<128x128xf32>
    %cst_402 = arith.constant dense<0.000000e+00> : vector<2x128xf32>
    %833 = tpu.matmul %811, %832, %cst_402 {dimension_numbers = #tpu.dot_dimension_numbers<[1], [0], [0], [1], [0, 0, 1, 1], [], []>} : vector<2x128xf32>, vector<128x128xf32>, vector<2x128xf32> -> vector<2x128xf32>
    %834 = arith.addf %831, %833 : vector<2x128xf32>
    %835 = arith.addf %834, %9 : vector<2x128xf32>
    %836 = arith.negf %835 : vector<2x128xf32>
    %837 = math.exp %836 : vector<2x128xf32>
    %cst_403 = arith.constant 1.000000e+00 : f32
    %838 = vector.broadcast %cst_403 : f32 to vector<2x128xf32>
    %839 = arith.addf %838, %837 : vector<2x128xf32>
    %840 = arith.divf %838, %839 : vector<2x128xf32>
    %841 = math.tanh %835 : vector<2x128xf32>
    %c96_i32_404 = arith.constant 96 : i32
    %842 = tpu.dynamic_rotate %840 by %c96_i32_404 dim 1 : vector<2x128xf32>, i32 -> vector<2x128xf32>
    %c64_i32_405 = arith.constant 64 : i32
    %843 = tpu.dynamic_rotate %841 by %c64_i32_405 dim 1 : vector<2x128xf32>, i32 -> vector<2x128xf32>
    %c32_i32_406 = arith.constant 32 : i32
    %844 = tpu.dynamic_rotate %840 by %c32_i32_406 dim 1 : vector<2x128xf32>, i32 -> vector<2x128xf32>
    %845 = arith.mulf %842, %809 : vector<2x128xf32>
    %846 = arith.mulf %840, %843 : vector<2x128xf32>
    %847 = arith.addf %845, %846 : vector<2x128xf32>
    %848 = math.tanh %847 : vector<2x128xf32>
    %849 = arith.mulf %844, %848 : vector<2x128xf32>
    %c44 = arith.constant 44 : index
    %c0_407 = arith.constant 0 : index
    %850 = vector.load %arg10[%c44, %c0_407] : memref<50x128xf32, #tpu.memory_space<vmem>>, vector<2x128xf32>
    %c0_408 = arith.constant 0 : index
    %c0_409 = arith.constant 0 : index
    %851 = vector.load %arg2[%c0_408, %c0_409] : memref<128x128xf32, #tpu.memory_space<vmem>>, vector<128x128xf32>
    %cst_410 = arith.constant dense<0.000000e+00> : vector<2x128xf32>
    %852 = tpu.matmul %829, %851, %cst_410 {dimension_numbers = #tpu.dot_dimension_numbers<[1], [0], [0], [1], [0, 0, 1, 1], [], []>} : vector<2x128xf32>, vector<128x128xf32>, vector<2x128xf32> -> vector<2x128xf32>
    %853 = arith.addf %850, %852 : vector<2x128xf32>
    %854 = arith.negf %853 : vector<2x128xf32>
    %855 = math.exp %854 : vector<2x128xf32>
    %cst_411 = arith.constant 1.000000e+00 : f32
    %856 = vector.broadcast %cst_411 : f32 to vector<2x128xf32>
    %857 = arith.addf %856, %855 : vector<2x128xf32>
    %858 = arith.divf %856, %857 : vector<2x128xf32>
    %859 = math.tanh %853 : vector<2x128xf32>
    %c96_i32_412 = arith.constant 96 : i32
    %860 = tpu.dynamic_rotate %858 by %c96_i32_412 dim 1 : vector<2x128xf32>, i32 -> vector<2x128xf32>
    %c64_i32_413 = arith.constant 64 : i32
    %861 = tpu.dynamic_rotate %859 by %c64_i32_413 dim 1 : vector<2x128xf32>, i32 -> vector<2x128xf32>
    %c32_i32_414 = arith.constant 32 : i32
    %862 = tpu.dynamic_rotate %858 by %c32_i32_414 dim 1 : vector<2x128xf32>, i32 -> vector<2x128xf32>
    %863 = arith.mulf %860, %827 : vector<2x128xf32>
    %864 = arith.mulf %858, %861 : vector<2x128xf32>
    %865 = arith.addf %863, %864 : vector<2x128xf32>
    %866 = math.tanh %865 : vector<2x128xf32>
    %867 = arith.mulf %862, %866 : vector<2x128xf32>
    %c0_415 = arith.constant 0 : index
    %c0_416 = arith.constant 0 : index
    %868 = vector.load %arg4[%c0_415, %c0_416] : memref<128x128xf32, #tpu.memory_space<vmem>>, vector<128x128xf32>
    %cst_417 = arith.constant dense<0.000000e+00> : vector<2x128xf32>
    %869 = tpu.matmul %867, %868, %cst_417 {dimension_numbers = #tpu.dot_dimension_numbers<[1], [0], [0], [1], [0, 0, 1, 1], [], []>} : vector<2x128xf32>, vector<128x128xf32>, vector<2x128xf32> -> vector<2x128xf32>
    %c0_418 = arith.constant 0 : index
    %c0_419 = arith.constant 0 : index
    %870 = vector.load %arg5[%c0_418, %c0_419] : memref<128x128xf32, #tpu.memory_space<vmem>>, vector<128x128xf32>
    %cst_420 = arith.constant dense<0.000000e+00> : vector<2x128xf32>
    %871 = tpu.matmul %849, %870, %cst_420 {dimension_numbers = #tpu.dot_dimension_numbers<[1], [0], [0], [1], [0, 0, 1, 1], [], []>} : vector<2x128xf32>, vector<128x128xf32>, vector<2x128xf32> -> vector<2x128xf32>
    %872 = arith.addf %869, %871 : vector<2x128xf32>
    %873 = arith.addf %872, %9 : vector<2x128xf32>
    %874 = arith.negf %873 : vector<2x128xf32>
    %875 = math.exp %874 : vector<2x128xf32>
    %cst_421 = arith.constant 1.000000e+00 : f32
    %876 = vector.broadcast %cst_421 : f32 to vector<2x128xf32>
    %877 = arith.addf %876, %875 : vector<2x128xf32>
    %878 = arith.divf %876, %877 : vector<2x128xf32>
    %879 = math.tanh %873 : vector<2x128xf32>
    %c96_i32_422 = arith.constant 96 : i32
    %880 = tpu.dynamic_rotate %878 by %c96_i32_422 dim 1 : vector<2x128xf32>, i32 -> vector<2x128xf32>
    %c64_i32_423 = arith.constant 64 : i32
    %881 = tpu.dynamic_rotate %879 by %c64_i32_423 dim 1 : vector<2x128xf32>, i32 -> vector<2x128xf32>
    %c32_i32_424 = arith.constant 32 : i32
    %882 = tpu.dynamic_rotate %878 by %c32_i32_424 dim 1 : vector<2x128xf32>, i32 -> vector<2x128xf32>
    %883 = arith.mulf %880, %847 : vector<2x128xf32>
    %884 = arith.mulf %878, %881 : vector<2x128xf32>
    %885 = arith.addf %883, %884 : vector<2x128xf32>
    %886 = math.tanh %885 : vector<2x128xf32>
    %887 = arith.mulf %882, %886 : vector<2x128xf32>
    %c46 = arith.constant 46 : index
    %c0_425 = arith.constant 0 : index
    %888 = vector.load %arg10[%c46, %c0_425] : memref<50x128xf32, #tpu.memory_space<vmem>>, vector<2x128xf32>
    %c0_426 = arith.constant 0 : index
    %c0_427 = arith.constant 0 : index
    %889 = vector.load %arg2[%c0_426, %c0_427] : memref<128x128xf32, #tpu.memory_space<vmem>>, vector<128x128xf32>
    %cst_428 = arith.constant dense<0.000000e+00> : vector<2x128xf32>
    %890 = tpu.matmul %867, %889, %cst_428 {dimension_numbers = #tpu.dot_dimension_numbers<[1], [0], [0], [1], [0, 0, 1, 1], [], []>} : vector<2x128xf32>, vector<128x128xf32>, vector<2x128xf32> -> vector<2x128xf32>
    %891 = arith.addf %888, %890 : vector<2x128xf32>
    %892 = arith.negf %891 : vector<2x128xf32>
    %893 = math.exp %892 : vector<2x128xf32>
    %cst_429 = arith.constant 1.000000e+00 : f32
    %894 = vector.broadcast %cst_429 : f32 to vector<2x128xf32>
    %895 = arith.addf %894, %893 : vector<2x128xf32>
    %896 = arith.divf %894, %895 : vector<2x128xf32>
    %897 = math.tanh %891 : vector<2x128xf32>
    %c96_i32_430 = arith.constant 96 : i32
    %898 = tpu.dynamic_rotate %896 by %c96_i32_430 dim 1 : vector<2x128xf32>, i32 -> vector<2x128xf32>
    %c64_i32_431 = arith.constant 64 : i32
    %899 = tpu.dynamic_rotate %897 by %c64_i32_431 dim 1 : vector<2x128xf32>, i32 -> vector<2x128xf32>
    %c32_i32_432 = arith.constant 32 : i32
    %900 = tpu.dynamic_rotate %896 by %c32_i32_432 dim 1 : vector<2x128xf32>, i32 -> vector<2x128xf32>
    %901 = arith.mulf %898, %865 : vector<2x128xf32>
    %902 = arith.mulf %896, %899 : vector<2x128xf32>
    %903 = arith.addf %901, %902 : vector<2x128xf32>
    %904 = math.tanh %903 : vector<2x128xf32>
    %905 = arith.mulf %900, %904 : vector<2x128xf32>
    %c0_433 = arith.constant 0 : index
    %c0_434 = arith.constant 0 : index
    %906 = vector.load %arg4[%c0_433, %c0_434] : memref<128x128xf32, #tpu.memory_space<vmem>>, vector<128x128xf32>
    %cst_435 = arith.constant dense<0.000000e+00> : vector<2x128xf32>
    %907 = tpu.matmul %905, %906, %cst_435 {dimension_numbers = #tpu.dot_dimension_numbers<[1], [0], [0], [1], [0, 0, 1, 1], [], []>} : vector<2x128xf32>, vector<128x128xf32>, vector<2x128xf32> -> vector<2x128xf32>
    %c0_436 = arith.constant 0 : index
    %c0_437 = arith.constant 0 : index
    %908 = vector.load %arg5[%c0_436, %c0_437] : memref<128x128xf32, #tpu.memory_space<vmem>>, vector<128x128xf32>
    %cst_438 = arith.constant dense<0.000000e+00> : vector<2x128xf32>
    %909 = tpu.matmul %887, %908, %cst_438 {dimension_numbers = #tpu.dot_dimension_numbers<[1], [0], [0], [1], [0, 0, 1, 1], [], []>} : vector<2x128xf32>, vector<128x128xf32>, vector<2x128xf32> -> vector<2x128xf32>
    %910 = arith.addf %907, %909 : vector<2x128xf32>
    %911 = arith.addf %910, %9 : vector<2x128xf32>
    %912 = arith.negf %911 : vector<2x128xf32>
    %913 = math.exp %912 : vector<2x128xf32>
    %cst_439 = arith.constant 1.000000e+00 : f32
    %914 = vector.broadcast %cst_439 : f32 to vector<2x128xf32>
    %915 = arith.addf %914, %913 : vector<2x128xf32>
    %916 = arith.divf %914, %915 : vector<2x128xf32>
    %917 = math.tanh %911 : vector<2x128xf32>
    %c96_i32_440 = arith.constant 96 : i32
    %918 = tpu.dynamic_rotate %916 by %c96_i32_440 dim 1 : vector<2x128xf32>, i32 -> vector<2x128xf32>
    %c64_i32_441 = arith.constant 64 : i32
    %919 = tpu.dynamic_rotate %917 by %c64_i32_441 dim 1 : vector<2x128xf32>, i32 -> vector<2x128xf32>
    %c32_i32_442 = arith.constant 32 : i32
    %920 = tpu.dynamic_rotate %916 by %c32_i32_442 dim 1 : vector<2x128xf32>, i32 -> vector<2x128xf32>
    %921 = arith.mulf %918, %885 : vector<2x128xf32>
    %922 = arith.mulf %916, %919 : vector<2x128xf32>
    %923 = arith.addf %921, %922 : vector<2x128xf32>
    %924 = math.tanh %923 : vector<2x128xf32>
    %925 = arith.mulf %920, %924 : vector<2x128xf32>
    %c48 = arith.constant 48 : index
    %c0_443 = arith.constant 0 : index
    %926 = vector.load %arg10[%c48, %c0_443] : memref<50x128xf32, #tpu.memory_space<vmem>>, vector<2x128xf32>
    %c0_444 = arith.constant 0 : index
    %c0_445 = arith.constant 0 : index
    %927 = vector.load %arg2[%c0_444, %c0_445] : memref<128x128xf32, #tpu.memory_space<vmem>>, vector<128x128xf32>
    %cst_446 = arith.constant dense<0.000000e+00> : vector<2x128xf32>
    %928 = tpu.matmul %905, %927, %cst_446 {dimension_numbers = #tpu.dot_dimension_numbers<[1], [0], [0], [1], [0, 0, 1, 1], [], []>} : vector<2x128xf32>, vector<128x128xf32>, vector<2x128xf32> -> vector<2x128xf32>
    %929 = arith.addf %926, %928 : vector<2x128xf32>
    %930 = arith.negf %929 : vector<2x128xf32>
    %931 = math.exp %930 : vector<2x128xf32>
    %cst_447 = arith.constant 1.000000e+00 : f32
    %932 = vector.broadcast %cst_447 : f32 to vector<2x128xf32>
    %933 = arith.addf %932, %931 : vector<2x128xf32>
    %934 = arith.divf %932, %933 : vector<2x128xf32>
    %935 = math.tanh %929 : vector<2x128xf32>
    %c96_i32_448 = arith.constant 96 : i32
    %936 = tpu.dynamic_rotate %934 by %c96_i32_448 dim 1 : vector<2x128xf32>, i32 -> vector<2x128xf32>
    %c64_i32_449 = arith.constant 64 : i32
    %937 = tpu.dynamic_rotate %935 by %c64_i32_449 dim 1 : vector<2x128xf32>, i32 -> vector<2x128xf32>
    %c32_i32_450 = arith.constant 32 : i32
    %938 = tpu.dynamic_rotate %934 by %c32_i32_450 dim 1 : vector<2x128xf32>, i32 -> vector<2x128xf32>
    %939 = arith.mulf %936, %903 : vector<2x128xf32>
    %940 = arith.mulf %934, %937 : vector<2x128xf32>
    %941 = arith.addf %939, %940 : vector<2x128xf32>
    %942 = math.tanh %941 : vector<2x128xf32>
    %943 = arith.mulf %938, %942 : vector<2x128xf32>
    %c0_451 = arith.constant 0 : index
    %c0_452 = arith.constant 0 : index
    %944 = vector.load %arg4[%c0_451, %c0_452] : memref<128x128xf32, #tpu.memory_space<vmem>>, vector<128x128xf32>
    %cst_453 = arith.constant dense<0.000000e+00> : vector<2x128xf32>
    %945 = tpu.matmul %943, %944, %cst_453 {dimension_numbers = #tpu.dot_dimension_numbers<[1], [0], [0], [1], [0, 0, 1, 1], [], []>} : vector<2x128xf32>, vector<128x128xf32>, vector<2x128xf32> -> vector<2x128xf32>
    %c0_454 = arith.constant 0 : index
    %c0_455 = arith.constant 0 : index
    %946 = vector.load %arg5[%c0_454, %c0_455] : memref<128x128xf32, #tpu.memory_space<vmem>>, vector<128x128xf32>
    %cst_456 = arith.constant dense<0.000000e+00> : vector<2x128xf32>
    %947 = tpu.matmul %925, %946, %cst_456 {dimension_numbers = #tpu.dot_dimension_numbers<[1], [0], [0], [1], [0, 0, 1, 1], [], []>} : vector<2x128xf32>, vector<128x128xf32>, vector<2x128xf32> -> vector<2x128xf32>
    %948 = arith.addf %945, %947 : vector<2x128xf32>
    %949 = arith.addf %948, %9 : vector<2x128xf32>
    %950 = arith.negf %949 : vector<2x128xf32>
    %951 = math.exp %950 : vector<2x128xf32>
    %cst_457 = arith.constant 1.000000e+00 : f32
    %952 = vector.broadcast %cst_457 : f32 to vector<2x128xf32>
    %953 = arith.addf %952, %951 : vector<2x128xf32>
    %954 = arith.divf %952, %953 : vector<2x128xf32>
    %955 = math.tanh %949 : vector<2x128xf32>
    %c96_i32_458 = arith.constant 96 : i32
    %956 = tpu.dynamic_rotate %954 by %c96_i32_458 dim 1 : vector<2x128xf32>, i32 -> vector<2x128xf32>
    %c64_i32_459 = arith.constant 64 : i32
    %957 = tpu.dynamic_rotate %955 by %c64_i32_459 dim 1 : vector<2x128xf32>, i32 -> vector<2x128xf32>
    %c32_i32_460 = arith.constant 32 : i32
    %958 = tpu.dynamic_rotate %954 by %c32_i32_460 dim 1 : vector<2x128xf32>, i32 -> vector<2x128xf32>
    %959 = arith.mulf %956, %923 : vector<2x128xf32>
    %960 = arith.mulf %954, %957 : vector<2x128xf32>
    %961 = arith.addf %959, %960 : vector<2x128xf32>
    %962 = math.tanh %961 : vector<2x128xf32>
    %963 = arith.mulf %958, %962 : vector<2x128xf32>
    %c0_461 = arith.constant 0 : index
    %c0_462 = arith.constant 0 : index
    %964 = vector.load %arg7[%c0_461, %c0_462] : memref<128x8xf32, #tpu.memory_space<vmem>>, vector<128x8xf32>
    %cst_463 = arith.constant dense<0.000000e+00> : vector<2x8xf32>
    %965 = tpu.matmul %963, %964, %cst_463 {dimension_numbers = #tpu.dot_dimension_numbers<[1], [0], [0], [1], [0, 0, 1, 1], [], []>} : vector<2x128xf32>, vector<128x8xf32>, vector<2x8xf32> -> vector<2x8xf32>
    %c0_464 = arith.constant 0 : index
    %c0_465 = arith.constant 0 : index
    %966 = vector.load %arg8[%c0_464, %c0_465] : memref<1x8xf32, #tpu.memory_space<vmem>>, vector<1x8xf32>
    %967 = vector.broadcast %966 : vector<1x8xf32> to vector<2x8xf32>
    %968 = arith.addf %965, %967 : vector<2x8xf32>
    %c0_466 = arith.constant 0 : index
    %c0_467 = arith.constant 0 : index
    %969 = vector.load %arg9[%c0_466, %c0_467] : memref<2x8xf32, #tpu.memory_space<vmem>>, vector<2x8xf32>
    tpu.vector_store %arg9[%c0_466, %c0_467], %968 {strides = array<i32>} : memref<2x8xf32, #tpu.memory_space<vmem>>, vector<2x8xf32>,
    return
  }
}

</mosaic_0001>

<bundles_post_ra>
// kernel: rnn_common_lstm_forward.1
= control target key start
LH: loop header
LB: loop body
LE: loop exit
PB: predicated region body
PF: predicated region fallthrough
CT: control target
= control target key end

     0   :  { %14 = vsyncpa [#allocation4], 0  ;;  %s15053_s0 = inlined_call_operand.vmem [shape: f32[50,16], index: 0, kind: input, shape index: {}]   ;;  %s15054_s1 = inlined_call_operand.hbm [shape: f32[16,128], index: 1, kind: input, shape index: {}]   ;;  %s15055_s2 = inlined_call_operand.vmem [shape: f32[128,128], index: 2, kind: input, shape index: {}]   ;;  %s15056_s3 = inlined_call_operand.vmem [shape: f32[1,128], index: 3, kind: input, shape index: {}]   ;;  %s15057_s4 = inlined_call_operand.vmem [shape: f32[128,128], index: 4, kind: input, shape index: {}]   ;;  %s15058_s5 = inlined_call_operand.vmem [shape: f32[128,128], index: 5, kind: input, shape index: {}]   ;;  %s15059_s6 = inlined_call_operand.vmem [shape: f32[1,128], index: 6, kind: input, shape index: {}]   ;;  %s15060_s7 = inlined_call_operand.vmem [shape: f32[128,8], index: 7, kind: input, shape index: {}]   ;;  %s15061_s8 = inlined_call_operand.vmem [shape: f32[1,8], index: 8, kind: input, shape index: {}]   ;;  %s15062_s9 = inlined_call_operand.hbm [shape: f32[2,8], index: 9, kind: output, shape index: {}]  }
   0x1   :  { %15 = vsyncpa [#allocation5], 0  ;;  %s12917_s30 = smov [#allocation3]   ;;  %s12869_s13 = scalar_lea.hbm %s15054_s1, 256 }
   0x2   :  { %s23_s10 = sshll.u32 %s12917_s30, 4  ;;  %p12870_p0 = scmp.ne.s32.totalorder %s15054_s1, %s12869_s13  ;;  %s24_s10 = int_to_ptr.vmem [resolvable:$true] %s23_s10 }
   0x3   :  { %p12873_p1 = scmp.lt.u32.totalorder %s12869_s13, %s15054_s1 }
   0x5   :  { %p12875_p2 = pnand %p12873_p1, %p12870_p0 }
   0x7   :  { %12878 = shalt.err (!%p12875_p2)
}
   0x8   :  { %s12879_s18 = scalar_lea.vmem %s24_s10, 256  ;;  %p12884_p4 = scmp.lt.s32.totalorder %s24_s10, %s24_s10 }
   0x9   :  { %p12880_p3 = scmp.ne.s32.totalorder %s24_s10, %s12879_s18  ;;  %p12885_p5 = scmp.lt.s32.totalorder %s12879_s18, %s12879_s18 }
   0xb   :  { %p12886_p6 = por %p12885_p5, %p12884_p4 }
   0xd   :  { %p12887_p7 = pnand %p12886_p6, %p12880_p3 }
   0xf   :  { %12890 = shalt.err (!%p12887_p7)
}
  0x10   :  { %s12918_s19 = smov 128   ;;  %s12919_s20 = smov 8  }
  0x11   :  { %29 = dma.hbm_to_vmem [thread:$0]  %s15054_s1, 256, %s24_s10, [#allocation4], %s12918_s19, %s12918_s19, %s12919_s20  }
  0x12   :  { %12913 = dma.done.wait [#allocation4], 256  }
  0x13   :  { %12914 = vsyncadd [#allocation4], 4294967040  ;;  %v12920_v0 = vmov 0.0|0.0   ;;  %vm12921_vm0 = vmmov 0   ;;  %v12922_v1 = vmov 0.0   ;;  %v200_v2 = vld [vmem:[%s15055_s2] sm:$0xff] }
  0x14   :  { %10631 = vmatprep.subr.bf16.mxu1 %v12920_v0  ;;  %10628 = vmatprep.subr.bf16.mxu0 %v12920_v0  ;;  %v201_v3 = vld [vmem:[%s15055_s2 + $0x8] sm:$0xff]  ;;  %v202_v4 = vld [vmem:[%s15055_s2 + $0x10] sm:$0xff]  ;;  %v203_v6 = vld [vmem:[%s15055_s2 + $0x18] sm:$0xff]  ;;  %vm63_vm1 = vcmask 130048   ;;  %s12924_s18 = smov 96   ;;  %s12925_s19 = smov 64  }
  0x15   :  { %7947 = vmatprep.mubr.msk.f32.mxu0 %vm12921_vm0, %v12922_v1  ;;  %8000 = vmatprep.mubr.msk.f32.mxu1 %vm12921_vm0, %v12922_v1  ;;  %v13004_v5 = vpack.c.bf16 %v201_v3, %v200_v2  ;;  %v13010_v7 = vpack.c.bf16 %v203_v6, %v202_v4  ;;  %v54_v8 = vld [vmem:[#allocation3] sm:$0xff]  ;;  %v55_v9 = vld [vmem:[#allocation3 + $0x8] sm:$0xff]  ;;  %v205_v11 = vld [vmem:[%s15055_s2 + $0x28] sm:$0xff]  ;;  %s12926_s11 = smov [#allocation6]   ;;  %vm6565_vm2 = vcmask 58368  }
  0x16   :  { %v204_v10 = vld [vmem:[%s15055_s2 + $0x20] sm:$0xff]  ;;  %v10629_v12 = vpack.c.bf16 %v55_v9, %v54_v8  ;;  %v206_v15 = vld [vmem:[%s15055_s2 + $0x30] sm:$0xff]  ;;  %v207_v16 = vld [vmem:[%s15055_s2 + $0x38] sm:$0xff] }
  0x17   :  { %10633 = vmatpush3.bf16.msra.mxu1 %v13004_v5  ;;  %v47_v13 = vld [vmem:[%s15053_s0] sm:$0xff]  ;;  %v13023_v14 = vpack.c.bf16 %v205_v11, %v204_v10  ;;  %v13037_v17 = vpack.c.bf16 %v207_v16, %v206_v15  ;;  %v209_v19 = vld [vmem:[%s15055_s2 + $0x48] sm:$0xff]  ;;  %v210_v21 = vld [vmem:[%s15055_s2 + $0x50] sm:$0xff] }
  0x18   :  { %10634 = vmatprep.subr.bf16.mxu1 %v12920_v0  ;;  %10630 = vmatpush3.bf16.msra.mxu0 %v10629_v12  ;;  %v208_v18 = vld [vmem:[%s15055_s2 + $0x40] sm:$0xff]  ;;  %v211_v22 = vld [vmem:[%s15055_s2 + $0x58] sm:$0xff]  ;;  %v213_v25 = vld [vmem:[%s15055_s2 + $0x68] sm:$0xff] }
  0x19   :  { %10655 = vmatprep.subr.bf16.mxu0 %v12920_v0  ;;  %v13047_v20 = vpack.c.bf16 %v209_v19, %v208_v18  ;;  %v13057_v23 = vpack.c.bf16 %v211_v22, %v210_v21  ;;  %v212_v24 = vld [vmem:[%s15055_s2 + $0x60] sm:$0xff]  ;;  %v214_v27 = vld [vmem:[%s15055_s2 + $0x70] sm:$0xff]  ;;  %v215_v28 = vld [vmem:[%s15055_s2 + $0x78] sm:$0xff] }
  0x1a   :  { %v13067_v26 = vpack.c.bf16 %v213_v25, %v212_v24  ;;  %v13077_v29 = vpack.c.bf16 %v215_v28, %v214_v27  ;;  %v321_v30 = vld [vmem:[%s15058_s5] sm:$0xff]  ;;  %v322_v31 = vld [vmem:[%s15058_s5 + $0x8] sm:$0xff]  ;;  %v323_v32 = vld [vmem:[%s15058_s5 + $0x10] sm:$0xff] }
  0x1b   :  { %10636 = vmatpush3.bf16.msra.mxu1 %v13010_v7  ;;  %7948 = vmatmul.mubr.msk.f32.vlgmr.msra.gmra.mrb[0].mxu0 %vm63_vm1, %v47_v13  ;;  %v13094_v33 = vpack.c.bf16 %v322_v31, %v321_v30  ;;  %v324_v34 = vld [vmem:[%s15058_s5 + $0x18] sm:$0xff]  ;;  %v48_v35 = vld [vmem:[%s15053_s0 + $0x8] sm:$0xff]  ;;  %v49_v37 = vld [vmem:[%s15053_s0 + $0x10] sm:$0xff] }
  0x1c   :  { %10637 = vmatprep.subr.bf16.mxu1 %v12920_v0  ;;  %7950 = vmatprep.mubr.msk.f32.mxu0 %vm12921_vm0, %v12922_v1  ;;  %v13104_v36 = vpack.c.bf16 %v324_v34, %v323_v32  ;;  %v325_v38 = vld [vmem:[%s15058_s5 + $0x20] sm:$0xff]  ;;  %v326_v39 = vld [vmem:[%s15058_s5 + $0x28] sm:$0xff]  ;;  %v327_v40 = vld [vmem:[%s15058_s5 + $0x30] sm:$0xff] }
  0x1d   :  { %10657 = vmatpush3.bf16.msra.mxu0 %v13094_v33  ;;  %v13123_v41 = vpack.c.bf16 %v326_v39, %v325_v38  ;;  %v50_v42 = vld [vmem:[%s15053_s0 + $0x18] sm:$0xff]  ;;  %v305_v43 = vld [vmem:[%s15057_s4] sm:$0xff]  ;;  %v306_v44 = vld [vmem:[%s15057_s4 + $0x8] sm:$0xff] }
  0x1e   :  { %10658 = vmatprep.subr.bf16.mxu0 %v12920_v0  ;;  %v328_v45 = vld [vmem:[%s15058_s5 + $0x38] sm:$0xff]  ;;  %v13140_v46 = vpack.c.bf16 %v306_v44, %v305_v43  ;;  %v307_v47 = vld [vmem:[%s15057_s4 + $0x10] sm:$0xff]  ;;  %v51_v51 = vld [vmem:[%s15053_s0 + $0x20] sm:$0xff] }
  0x1f   :  { %10639 = vmatpush3.bf16.msra.mxu1 %v13023_v14  ;;  %7951 = vmatmul.mubr.msk.f32.gmra.mrb[2].mxu0 %vm63_vm1, %v48_v35  ;;  %v308_v48 = vld [vmem:[%s15057_s4 + $0x18] sm:$0xff]  ;;  %v13153_v50 = vpack.c.bf16 %v328_v45, %v327_v40  ;;  %v309_v52 = vld [vmem:[%s15057_s4 + $0x20] sm:$0xff]  ;;  %v310_v53 = vld [vmem:[%s15057_s4 + $0x28] sm:$0xff] }
  0x20   :  { %10640 = vmatprep.subr.bf16.mxu1 %v12920_v0  ;;  %7953 = vmatprep.mubr.msk.f32.mxu0 %vm12921_vm0, %v12922_v1  ;;  %v13150_v49 = vpack.c.bf16 %v308_v48, %v307_v47  ;;  %v329_v54 = vld [vmem:[%s15058_s5 + $0x40] sm:$0xff]  ;;  %v330_v55 = vld [vmem:[%s15058_s5 + $0x48] sm:$0xff]  ;;  %v13176_v56 = vpack.c.bf16 %v310_v53, %v309_v52  ;;  %v331_v59 = vld [vmem:[%s15058_s5 + $0x50] sm:$0xff] }
  0x21   :  { %10660 = vmatpush3.bf16.msra.mxu0 %v13104_v36  ;;  %v13179_v57 = vpack.c.bf16 %v330_v55, %v329_v54  ;;  %v52_v58 = vld [vmem:[%s15053_s0 + $0x28] sm:$0xff]  ;;  %v332_v60 = vld [vmem:[%s15058_s5 + $0x58] sm:$0xff]  ;;  %v53_v62 = vld [vmem:[%s15053_s0 + $0x30] sm:$0x3]  ;;  %s12923_s0 = smov 32  }
  0x22   :  { %10661 = vmatprep.subr.bf16.mxu0 %v12920_v0  ;;  %v13197_v61 = vpack.c.bf16 %v332_v60, %v331_v59  ;;  %v333_v63 = vld [vmem:[%s15058_s5 + $0x60] sm:$0xff]  ;;  %v334_v2 = vld [vmem:[%s15058_s5 + $0x68] sm:$0xff]  ;;  %v335_v4 = vld [vmem:[%s15058_s5 + $0x70] sm:$0xff] }
  0x23   :  { %10642 = vmatpush3.bf16.msra.mxu1 %v13037_v17  ;;  %7954 = vmatmul.mubr.msk.f32.gmra.mrb[4].mxu0 %vm63_vm1, %v49_v37  ;;  %v13214_v3 = vpack.c.bf16 %v334_v2, %v333_v63  ;;  %v336_v6 = vld [vmem:[%s15058_s5 + $0x78] sm:$0xff]  ;;  %v13253_v9 = vld [vmem:[%s15056_s3] ss:$0 sm:$0xff]  ;;  %v311_v22 = vld [vmem:[%s15057_s4 + $0x30] sm:$0xff] }
  0x24   :  { %10643 = vmatprep.subr.bf16.mxu1 %v12920_v0  ;;  %7956 = vmatprep.mubr.msk.f32.mxu0 %vm12921_vm0, %v12922_v1  ;;  %v13226_v8 = vpack.c.bf16 %v336_v6, %v335_v4  ;;  %v312_v24 = vld [vmem:[%s15057_s4 + $0x38] sm:$0xff]  ;;  %v313_v28 = vld [vmem:[%s15057_s4 + $0x40] sm:$0xff]  ;;  %v314_v30 = vld [vmem:[%s15057_s4 + $0x48] sm:$0xff] }
  0x25   :  { %10663 = vmatpush3.bf16.msra.mxu0 %v13123_v41  ;;  %v13262_v27 = vpack.c.bf16 %v312_v24, %v311_v22  ;;  %v13272_v31 = vpack.c.bf16 %v314_v30, %v313_v28  ;;  %v315_v32 = vld [vmem:[%s15057_s4 + $0x50] sm:$0xff]  ;;  %v316_v34 = vld [vmem:[%s15057_s4 + $0x58] sm:$0xff]  ;;  %v317_v37 = vld [vmem:[%s15057_s4 + $0x60] sm:$0xff] }
  0x26   :  { %10664 = vmatprep.subr.bf16.mxu0 %v12920_v0  ;;  %v13282_v35 = vpack.c.bf16 %v316_v34, %v315_v32  ;;  %v318_v38 = vld [vmem:[%s15057_s4 + $0x68] sm:$0xff]  ;;  %v319_v40 = vld [vmem:[%s15057_s4 + $0x70] sm:$0xff] }
  0x27   :  { %10645 = vmatpush3.bf16.msra.mxu1 %v13047_v20  ;;  %7957 = vmatmul.mubr.msk.f32.gmra.mrb[6].mxu0 %vm63_vm1, %v50_v42  ;;  %v13291_v39 = vpack.c.bf16 %v318_v38, %v317_v37  ;;  %v320_v42 = vld [vmem:[%s15057_s4 + $0x78] sm:$0xff] }
  0x28   :  { %10646 = vmatprep.subr.bf16.mxu1 %v12920_v0  ;;  %7959 = vmatprep.mubr.msk.f32.mxu0 %vm12921_vm0, %v12922_v1  ;;  %v13303_v44 = vpack.c.bf16 %v320_v42, %v319_v40 }
  0x29   :  { %10666 = vmatpush3.bf16.msra.mxu0 %v13153_v50 }
  0x2a   :  { %10667 = vmatprep.subr.bf16.mxu0 %v12920_v0 }
  0x2b   :  { %10648 = vmatpush3.bf16.msra.mxu1 %v13057_v23  ;;  %7960 = vmatmul.mubr.msk.f32.gmra.mrb[8].mxu0 %vm63_vm1, %v51_v51 }
  0x2c   :  { %10649 = vmatprep.subr.bf16.mxu1 %v12920_v0  ;;  %7962 = vmatprep.mubr.msk.f32.mxu0 %vm12921_vm0, %v12922_v1 }
  0x2d   :  { %10669 = vmatpush3.bf16.msra.mxu0 %v13179_v57 }
  0x2e   :  { %10670 = vmatprep.subr.bf16.mxu0 %v12920_v0 }
  0x2f   :  { %10651 = vmatpush3.bf16.msra.mxu1 %v13067_v26  ;;  %7963 = vmatmul.mubr.msk.f32.gmra.mrb[10].mxu0 %vm63_vm1, %v52_v58 }
  0x30   :  { %10652 = vmatprep.subr.bf16.mxu1 %v12920_v0  ;;  %7965 = vmatprep.mubr.msk.f32.mxu0 %vm12921_vm0, %v12922_v1 }
  0x31   :  { %10672 = vmatpush3.bf16.msra.mxu0 %v13197_v61 }
  0x32   :  { %10673 = vmatprep.subr.bf16.mxu0 %v12920_v0 }
  0x33   :  { %10654 = vmatpush3.bf16.msra.mxu1 %v13077_v29  ;;  %7966 = vmatmul.mubr.msk.f32.gmra.mrb[12].mxu0 %vm63_vm1, %v53_v62 }
  0x34   :  { %10679 = vmatprep.subr.bf16.mxu1 %v12920_v0  ;;  %8035 = vmatprep.mubr.msk.f32.mxu0 %vm12921_vm0, %v12922_v1 }
  0x35   :  { %10675 = vmatpush3.bf16.msra.mxu0 %v13214_v3 }
  0x36   :  { %8001 = vmatmul.mubr.f32.vlgmr.msra.gmra.mrb[0].mxu1 %v12922_v1  ;;  %10676 = vmatprep.subr.bf16.mxu0 %v12920_v0 }
  0x37   :  { %8070 = vmatprep.mubr.msk.f32.mxu1 %vm12921_vm0, %v12922_v1  ;;  %10681 = vmatpush3.bf16.msra.mxu1 %v13140_v46 }
  0x38   :  { %10682 = vmatprep.subr.bf16.mxu1 %v12920_v0 }
  0x39   :  { %10678 = vmatpush3.bf16.msra.mxu0 %v13226_v8 }
  0x3a   :  { %10703 = vmatprep.subr.bf16.mxu0 %v12920_v0 }
  0x3b   :  { %10684 = vmatpush3.bf16.msra.mxu1 %v13150_v49 }
  0x3c   :  { %10685 = vmatprep.subr.bf16.mxu1 %v12920_v0  ;;  %8036 = vmatmul.mubr.f32.vlgmr.msra.gmra.mrb[14].mxu0 %v12922_v1 }
  0x3d   :  { %10705 = vmatpush3.bf16.msra.mxu0 %v13004_v5  ;;  %8105 = vmatprep.mubr.msk.f32.mxu0 %vm12921_vm0, %v12922_v1 }
  0x3e   :  { %10706 = vmatprep.subr.bf16.mxu0 %v12920_v0 }
  0x3f   :  { %10687 = vmatpush3.bf16.msra.mxu1 %v13176_v56 }
  0x40   :  { %10688 = vmatprep.subr.bf16.mxu1 %v12920_v0 }
  0x41   :  { %10708 = vmatpush3.bf16.msra.mxu0 %v13010_v7 }
  0x42   :  { %10709 = vmatprep.subr.bf16.mxu0 %v12920_v0 }
  0x43   :  { %10690 = vmatpush3.bf16.msra.mxu1 %v13262_v27 }
  0x44   :  { %10691 = vmatprep.subr.bf16.mxu1 %v12920_v0 }
  0x45   :  { %10711 = vmatpush3.bf16.msra.mxu0 %v13023_v14 }
  0x46   :  { %10712 = vmatprep.subr.bf16.mxu0 %v12920_v0 }
  0x47   :  { %10693 = vmatpush3.bf16.msra.mxu1 %v13272_v31 }
  0x48   :  { %10694 = vmatprep.subr.bf16.mxu1 %v12920_v0 }
  0x49   :  { %10714 = vmatpush3.bf16.msra.mxu0 %v13037_v17 }
  0x4a   :  { %10715 = vmatprep.subr.bf16.mxu0 %v12920_v0 }
  0x4b   :  { %10696 = vmatpush3.bf16.msra.mxu1 %v13282_v35 }
  0x4c   :  { %10697 = vmatprep.subr.bf16.mxu1 %v12920_v0 }
  0x4d   :  { %10717 = vmatpush3.bf16.msra.mxu0 %v13047_v20 }
  0x4e   :  { %10718 = vmatprep.subr.bf16.mxu0 %v12920_v0 }
  0x4f   :  { %10699 = vmatpush3.bf16.msra.mxu1 %v13291_v39 }
  0x50   :  { %10700 = vmatprep.subr.bf16.mxu1 %v12920_v0 }
  0x51   :  { %10720 = vmatpush3.bf16.msra.mxu0 %v13057_v23 }
  0x52   :  { %10721 = vmatprep.subr.bf16.mxu0 %v12920_v0 }
  0x53   :  { %10702 = vmatpush3.bf16.msra.mxu1 %v13303_v44 }
  0x54   :  { %10727 = vmatprep.subr.bf16.mxu1 %v12920_v0 }
  0x55   :  { %10723 = vmatpush3.bf16.msra.mxu0 %v13067_v26 }
  0x56   :  { %10724 = vmatprep.subr.bf16.mxu0 %v12920_v0 }
  0x59   :  { %10726 = vmatpush3.bf16.msra.mxu0 %v13077_v29 }
  0x5a   :  { %10751 = vmatprep.subr.bf16.mxu0 %v12920_v0 }
  0xee   :  { %v151_v10 = vpop.f32.mrb[0].mxu0 }
  0xef   :  { %v152_v11 = vadd.f32 %v13253_v9, %v151_v10  ;;  %v7949_v12 = vpop.f32.mrb[1].mxu0 }
  0xf1   :  { %185 = vst [vmem:[#allocation2] sm:$0xff] %v152_v11 }
  0xf2   :  { %v156_v47 = vpop.f32.mrb[2].mxu0 }
  0xf3   :  { %v157_v48 = vadd.f32 %v13253_v9, %v156_v47  ;;  %v7952_v51 = vpop.f32.mrb[3].mxu0 }
  0xf5   :  { %186 = vst [vmem:[#allocation2 + $0x8] sm:$0xff] %v157_v48 }
  0xf6   :  { %v161_v52 = vpop.f32.mrb[4].mxu0 }
  0xf7   :  { %v162_v53 = vadd.f32 %v13253_v9, %v161_v52  ;;  %v7955_v54 = vpop.f32.mrb[5].mxu0 }
  0xf8   :  { %v199_v13 = vld [vmem:[#allocation2] sm:$0x3]  ;;  %v496_v32 = vld [vmem:[#allocation2 + $0x2] sm:$0x3] }
  0xf9   :  { %187 = vst [vmem:[#allocation2 + $0x10] sm:$0xff] %v162_v53 }
  0xfa   :  { %v166_v55 = vpop.f32.mrb[6].mxu0 }
  0xfb   :  { %v167_v58 = vadd.f32 %v13253_v9, %v166_v55  ;;  %v7958_v59 = vpop.f32.mrb[7].mxu0 }
  0xfd   :  { %188 = vst [vmem:[#allocation2 + $0x18] sm:$0xff] %v167_v58 }
  0xfe   :  { %v171_v60 = vpop.f32.mrb[8].mxu0 }
  0xff   :  { %v172_v62 = vadd.f32 %v13253_v9, %v171_v60  ;;  %v7961_v63 = vpop.f32.mrb[9].mxu0 }
 0x101   :  { %189 = vst [vmem:[#allocation2 + $0x20] sm:$0xff] %v172_v62 }
 0x102   :  { %v176_v2 = vpop.f32.mrb[10].mxu0 }
 0x103   :  { %v177_v4 = vadd.f32 %v13253_v9, %v176_v2  ;;  %v7964_v6 = vpop.f32.mrb[11].mxu0 }
 0x105   :  { %190 = vst [vmem:[#allocation2 + $0x28] sm:$0xff] %v177_v4 }
 0x106   :  { %v181_v10 = vpop.f32.mrb[12].mxu0 }
 0x107   :  { %v182_v11 = vadd.f32 %v13253_v9, %v181_v10  ;;  %v7967_v12 = vpop.f32.mrb[13].mxu0  ;;  %v13357_v9 = vld [vmem:[%s15059_s6] ss:$0 sm:$0xff] }
 0x109   :  { %v282_v15 = vpop.f32.mrb[0].mxu1  ;;  %191 = vst [vmem:[#allocation2 + $0x30] sm:$0x3] %v182_v11 }
 0x10a   :  { %v286_v16 = vadd.f32 %v282_v15, %v199_v13  ;;  %v8002_v18 = vpop.f32.mrb[1].mxu1 }
 0x10c   :  { %v6591_v19 = vmul.f32 -1.442695, %v286_v16 }
 0x10e   :  { %12465 = vpow2.f32 %v6591_v19 }
 0x118   :  { %v12466_v21 = vpop.eup %12465 }
 0x119   :  { %v290_v25 = vadd.f32 1.0, %v12466_v21  ;;  %v403_v21 = vpop.f32.mrb[14].mxu0 }
 0x11a   :  { %v8037_v22 = vpop.f32.mrb[15].mxu0 }
 0x11b   :  { %12467 = vrcp.f32 %v290_v25 }
 0x11c   :  { %12469 = vtanh.f32 %v286_v16 }
 0x125   :  { %v12468_v43 = vpop.eup %12467 }
 0x126   :  { %298 = vrot.lane.b32.xlu1 %v12468_v43, %s12923_s0  ;;  %294 = vrot.lane.b32.xlu0 %v12468_v43, %s12924_s18  ;;  %v12470_v45 = vpop.eup %12469 }
 0x12a   :  { %296 = vrot.lane.b32.xlu0 %v12470_v45, %s12925_s19 }
 0x198   :  { %v295_v13 = vpop.permute.xlu0 %294  ;;  %v299_v25 = vpop.permute.xlu1 %298 }
 0x199   :  { %v300_v16 = vmul.f32 0.0, %v295_v13 }
 0x19c   :  { %v297_v15 = vpop.permute.xlu0 %296 }
 0x19d   :  { %v301_v18 = vmul.f32 %v12468_v43, %v297_v15 }
 0x19f   :  { %v13315_v19 = vadd.f32 %v301_v18, %v300_v16 }
 0x1a1   :  { %12471 = vtanh.f32 %v13315_v19 }
 0x1ab   :  { %v12472_v24 = vpop.eup %12471 }
 0x1ac   :  { %v304_v28 = vmul.f32 %v12472_v24, %v299_v25 }
 0x1ae   :  { %8071 = vmatmul.mubr.f32.vlgmr.msra.gmra.mrb[2].mxu1 %v304_v28  ;;  %8106 = vmatmul.mubr.f32.vlgmr.msra.gmra.mrb[16].mxu0 %v304_v28 }
 0x1af   :  { %10729 = vmatpush3.bf16.msra.mxu1 %v13094_v33  ;;  %10753 = vmatpush3.bf16.msra.mxu0 %v13140_v46 }
 0x1b0   :  { %10730 = vmatprep.subr.bf16.mxu1 %v12920_v0  ;;  %10754 = vmatprep.subr.bf16.mxu0 %v12920_v0 }
 0x1b1   :  { %8140 = vmatprep.mubr.msk.f32.mxu1 %vm12921_vm0, %v12922_v1  ;;  %8175 = vmatprep.mubr.msk.f32.mxu0 %vm12921_vm0, %v12922_v1 }
 0x1b3   :  { %10732 = vmatpush3.bf16.msra.mxu1 %v13104_v36  ;;  %10756 = vmatpush3.bf16.msra.mxu0 %v13150_v49 }
 0x1b4   :  { %10733 = vmatprep.subr.bf16.mxu1 %v12920_v0  ;;  %10757 = vmatprep.subr.bf16.mxu0 %v12920_v0 }
 0x1b7   :  { %10735 = vmatpush3.bf16.msra.mxu1 %v13123_v41  ;;  %10759 = vmatpush3.bf16.msra.mxu0 %v13176_v56 }
 0x1b8   :  { %10736 = vmatprep.subr.bf16.mxu1 %v12920_v0  ;;  %10760 = vmatprep.subr.bf16.mxu0 %v12920_v0 }
 0x1bb   :  { %10738 = vmatpush3.bf16.msra.mxu1 %v13153_v50  ;;  %10762 = vmatpush3.bf16.msra.mxu0 %v13262_v27 }
 0x1bc   :  { %10739 = vmatprep.subr.bf16.mxu1 %v12920_v0  ;;  %10763 = vmatprep.subr.bf16.mxu0 %v12920_v0 }
 0x1bf   :  { %10741 = vmatpush3.bf16.msra.mxu1 %v13179_v57  ;;  %10765 = vmatpush3.bf16.msra.mxu0 %v13272_v31 }
 0x1c0   :  { %10742 = vmatprep.subr.bf16.mxu1 %v12920_v0  ;;  %10766 = vmatprep.subr.bf16.mxu0 %v12920_v0 }
 0x1c3   :  { %10744 = vmatpush3.bf16.msra.mxu1 %v13197_v61  ;;  %10768 = vmatpush3.bf16.msra.mxu0 %v13282_v35 }
 0x1c4   :  { %10745 = vmatprep.subr.bf16.mxu1 %v12920_v0  ;;  %10769 = vmatprep.subr.bf16.mxu0 %v12920_v0 }
 0x1c7   :  { %10747 = vmatpush3.bf16.msra.mxu1 %v13214_v3  ;;  %10771 = vmatpush3.bf16.msra.mxu0 %v13291_v39 }
 0x1c8   :  { %10748 = vmatprep.subr.bf16.mxu1 %v12920_v0  ;;  %10772 = vmatprep.subr.bf16.mxu0 %v12920_v0 }
 0x1cb   :  { %10750 = vmatpush3.bf16.msra.mxu1 %v13226_v8  ;;  %10774 = vmatpush3.bf16.msra.mxu0 %v13303_v44 }
 0x1cc   :  { %10775 = vmatprep.subr.bf16.mxu1 %v12920_v0  ;;  %10799 = vmatprep.subr.bf16.mxu0 %v12920_v0 }
 0x281   :  { %v473_v30 = vpop.f32.mrb[2].mxu1  ;;  %v563_v34 = vpop.f32.mrb[16].mxu0 }
 0x282   :  { %v474_v37 = vadd.f32 %v473_v30, %v403_v21  ;;  %v567_v38 = vadd.f32 %v563_v34, %v496_v32  ;;  %v8072_v40 = vpop.f32.mrb[3].mxu1  ;;  %v8107_v42 = vpop.f32.mrb[17].mxu0 }
 0x284   :  { %v477_v43 = vadd.f32 %v13357_v9, %v474_v37  ;;  %v6593_v45 = vmul.f32 -1.442695, %v567_v38 }
 0x286   :  { %v6592_v47 = vmul.f32 -1.442695, %v477_v43  ;;  %12473 = vtanh.f32 %v477_v43  ;;  %v745_v43 = vld [vmem:[#allocation2 + $0x4] sm:$0x3] }
 0x287   :  { %12475 = vpow2.f32 %v6593_v45 }
 0x288   :  { %12477 = vpow2.f32 %v6592_v47 }
 0x290   :  { %v12474_v48 = vpop.eup %12473 }
 0x291   :  { %v12476_v51 = vpop.eup %12475  ;;  %487 = vrot.lane.b32.xlu0 %v12474_v48, %s12925_s19 }
 0x292   :  { %v12478_v52 = vpop.eup %12477  ;;  %v571_v53 = vadd.f32 1.0, %v12476_v51 }
 0x293   :  { %v481_v54 = vadd.f32 1.0, %v12478_v52 }
 0x294   :  { %12479 = vrcp.f32 %v571_v53 }
 0x295   :  { %12481 = vrcp.f32 %v481_v54 }
 0x296   :  { %12483 = vtanh.f32 %v567_v38 }
 0x29e   :  { %v12480_v55 = vpop.eup %12479 }
 0x29f   :  { %v12482_v58 = vpop.eup %12481  ;;  %575 = vrot.lane.b32.xlu0 %v12480_v55, %s12924_s18 }
 0x2a0   :  { %485 = vrot.lane.b32.xlu1 %v12482_v58, %s12924_s18  ;;  %v12484_v59 = vpop.eup %12483 }
 0x2a3   :  { %579 = vrot.lane.b32.xlu0 %v12480_v55, %s12923_s0 }
 0x2a4   :  { %489 = vrot.lane.b32.xlu1 %v12482_v58, %s12923_s0 }
 0x2a8   :  { %577 = vrot.lane.b32.xlu1 %v12484_v59, %s12925_s19 }
 0x303   :  { %v488_v60 = vpop.permute.xlu0 %487 }
 0x304   :  { %v492_v63 = vmul.f32 %v12482_v58, %v488_v60 }
 0x311   :  { %v576_v10 = vpop.permute.xlu0 %575 }
 0x312   :  { %v486_v62 = vpop.permute.xlu1 %485  ;;  %v581_v12 = vmul.f32 %v576_v10, %v13315_v19 }
 0x313   :  { %v491_v2 = vmul.f32 0.0, %v486_v62 }
 0x315   :  { %v13366_v4 = vadd.f32 %v492_v63, %v491_v2  ;;  %v580_v22 = vpop.permute.xlu0 %579 }
 0x316   :  { %v490_v6 = vpop.permute.xlu1 %489 }
 0x317   :  { %12485 = vtanh.f32 %v13366_v4 }
 0x31a   :  { %v578_v11 = vpop.permute.xlu1 %577 }
 0x31b   :  { %v582_v13 = vmul.f32 %v12480_v55, %v578_v11 }
 0x31d   :  { %v13370_v15 = vadd.f32 %v582_v13, %v581_v12 }
 0x31f   :  { %12487 = vtanh.f32 %v13370_v15 }
 0x321   :  { %v12486_v16 = vpop.eup %12485 }
 0x322   :  { %v495_v18 = vmul.f32 %v12486_v16, %v490_v6 }
 0x324   :  { %8141 = vmatmul.mubr.f32.vlgmr.msra.gmra.mrb[4].mxu1 %v495_v18 }
 0x325   :  { %10777 = vmatpush3.bf16.msra.mxu1 %v13004_v5  ;;  %8210 = vmatprep.mubr.msk.f32.mxu1 %vm12921_vm0, %v12922_v1 }
 0x326   :  { %10778 = vmatprep.subr.bf16.mxu1 %v12920_v0 }
 0x329   :  { %v12488_v21 = vpop.eup %12487  ;;  %10780 = vmatpush3.bf16.msra.mxu1 %v13010_v7 }
 0x32a   :  { %10781 = vmatprep.subr.bf16.mxu1 %v12920_v0  ;;  %v585_v19 = vmul.f32 %v12488_v21, %v580_v22 }
 0x32c   :  { %8176 = vmatmul.mubr.f32.vlgmr.msra.gmra.mrb[18].mxu0 %v585_v19 }
 0x32d   :  { %10783 = vmatpush3.bf16.msra.mxu1 %v13023_v14  ;;  %10801 = vmatpush3.bf16.msra.mxu0 %v13094_v33 }
 0x32e   :  { %10784 = vmatprep.subr.bf16.mxu1 %v12920_v0  ;;  %10802 = vmatprep.subr.bf16.mxu0 %v12920_v0 }
 0x32f   :  { %8245 = vmatprep.mubr.msk.f32.mxu0 %vm12921_vm0, %v12922_v1 }
 0x331   :  { %10786 = vmatpush3.bf16.msra.mxu1 %v13037_v17  ;;  %10804 = vmatpush3.bf16.msra.mxu0 %v13104_v36 }
 0x332   :  { %10787 = vmatprep.subr.bf16.mxu1 %v12920_v0  ;;  %10805 = vmatprep.subr.bf16.mxu0 %v12920_v0 }
 0x335   :  { %10789 = vmatpush3.bf16.msra.mxu1 %v13047_v20  ;;  %10807 = vmatpush3.bf16.msra.mxu0 %v13123_v41 }
 0x336   :  { %10790 = vmatprep.subr.bf16.mxu1 %v12920_v0  ;;  %10808 = vmatprep.subr.bf16.mxu0 %v12920_v0 }
 0x339   :  { %10792 = vmatpush3.bf16.msra.mxu1 %v13057_v23  ;;  %10810 = vmatpush3.bf16.msra.mxu0 %v13153_v50 }
 0x33a   :  { %10793 = vmatprep.subr.bf16.mxu1 %v12920_v0  ;;  %10811 = vmatprep.subr.bf16.mxu0 %v12920_v0 }
 0x33d   :  { %10795 = vmatpush3.bf16.msra.mxu1 %v13067_v26  ;;  %10813 = vmatpush3.bf16.msra.mxu0 %v13179_v57 }
 0x33e   :  { %10796 = vmatprep.subr.bf16.mxu1 %v12920_v0  ;;  %10814 = vmatprep.subr.bf16.mxu0 %v12920_v0 }
 0x341   :  { %10798 = vmatpush3.bf16.msra.mxu1 %v13077_v29  ;;  %10816 = vmatpush3.bf16.msra.mxu0 %v13197_v61 }
 0x342   :  { %10823 = vmatprep.subr.bf16.mxu1 %v12920_v0  ;;  %10817 = vmatprep.subr.bf16.mxu0 %v12920_v0 }
 0x344   :  { %8211 = vmatmul.mubr.f32.vlgmr.msra.gmra.mrb[6].mxu1 %v585_v19 }
 0x345   :  { %10825 = vmatpush3.bf16.msra.mxu1 %v13140_v46  ;;  %10819 = vmatpush3.bf16.msra.mxu0 %v13214_v3 }
 0x346   :  { %10826 = vmatprep.subr.bf16.mxu1 %v12920_v0  ;;  %10820 = vmatprep.subr.bf16.mxu0 %v12920_v0 }
 0x347   :  { %8280 = vmatprep.mubr.msk.f32.mxu1 %vm12921_vm0, %v12922_v1 }
 0x349   :  { %10828 = vmatpush3.bf16.msra.mxu1 %v13150_v49  ;;  %10822 = vmatpush3.bf16.msra.mxu0 %v13226_v8 }
 0x34a   :  { %10829 = vmatprep.subr.bf16.mxu1 %v12920_v0  ;;  %10847 = vmatprep.subr.bf16.mxu0 %v12920_v0 }
 0x34d   :  { %10831 = vmatpush3.bf16.msra.mxu1 %v13176_v56 }
 0x34e   :  { %10832 = vmatprep.subr.bf16.mxu1 %v12920_v0 }
 0x351   :  { %10834 = vmatpush3.bf16.msra.mxu1 %v13262_v27 }
 0x352   :  { %10835 = vmatprep.subr.bf16.mxu1 %v12920_v0 }
 0x355   :  { %10837 = vmatpush3.bf16.msra.mxu1 %v13272_v31 }
 0x356   :  { %10838 = vmatprep.subr.bf16.mxu1 %v12920_v0 }
 0x359   :  { %10840 = vmatpush3.bf16.msra.mxu1 %v13282_v35 }
 0x35a   :  { %10841 = vmatprep.subr.bf16.mxu1 %v12920_v0 }
 0x35d   :  { %10843 = vmatpush3.bf16.msra.mxu1 %v13291_v39 }
 0x35e   :  { %10844 = vmatprep.subr.bf16.mxu1 %v12920_v0 }
 0x361   :  { %10846 = vmatpush3.bf16.msra.mxu1 %v13303_v44 }
 0x362   :  { %10871 = vmatprep.subr.bf16.mxu1 %v12920_v0 }
 0x3f7   :  { %v652_v24 = vpop.f32.mrb[4].mxu1 }
 0x3f8   :  { %v8142_v25 = vpop.f32.mrb[5].mxu1 }
 0x3ff   :  { %v722_v28 = vpop.f32.mrb[18].mxu0 }
 0x400   :  { %v723_v30 = vadd.f32 %v722_v28, %v652_v24  ;;  %v8177_v32 = vpop.f32.mrb[19].mxu0 }
 0x402   :  { %v726_v34 = vadd.f32 %v13357_v9, %v723_v30 }
 0x404   :  { %v6594_v37 = vmul.f32 -1.442695, %v726_v34  ;;  %12489 = vtanh.f32 %v726_v34 }
 0x406   :  { %12491 = vpow2.f32 %v6594_v37 }
 0x40e   :  { %v12490_v38 = vpop.eup %12489 }
 0x40f   :  { %736 = vrot.lane.b32.xlu0 %v12490_v38, %s12925_s19 }
 0x410   :  { %v12492_v40 = vpop.eup %12491 }
 0x411   :  { %v730_v42 = vadd.f32 1.0, %v12492_v40 }
 0x413   :  { %12493 = vrcp.f32 %v730_v42  ;;  %v994_v42 = vld [vmem:[#allocation2 + $0x6] sm:$0x3] }
 0x417   :  { %v812_v45 = vpop.f32.mrb[6].mxu1 }
 0x418   :  { %v816_v47 = vadd.f32 %v812_v45, %v745_v43  ;;  %v8212_v48 = vpop.f32.mrb[7].mxu1 }
 0x41a   :  { %v6595_v51 = vmul.f32 -1.442695, %v816_v47  ;;  %12495 = vtanh.f32 %v816_v47 }
 0x41c   :  { %12497 = vpow2.f32 %v6595_v51 }
 0x41d   :  { %v12494_v52 = vpop.eup %12493 }
 0x41e   :  { %734 = vrot.lane.b32.xlu1 %v12494_v52, %s12924_s18 }
 0x424   :  { %v12496_v53 = vpop.eup %12495 }
 0x425   :  { %826 = vrot.lane.b32.xlu0 %v12496_v53, %s12925_s19 }
 0x426   :  { %v12498_v54 = vpop.eup %12497 }
 0x427   :  { %v820_v55 = vadd.f32 1.0, %v12498_v54 }
 0x429   :  { %12499 = vrcp.f32 %v820_v55 }
 0x433   :  { %v12500_v58 = vpop.eup %12499 }
 0x434   :  { %828 = vrot.lane.b32.xlu0 %v12500_v58, %s12923_s0  ;;  %824 = vrot.lane.b32.xlu1 %v12500_v58, %s12924_s18 }
 0x438   :  { %738 = vrot.lane.b32.xlu1 %v12494_v52, %s12923_s0 }
 0x481   :  { %v737_v60 = vpop.permute.xlu0 %736 }
 0x482   :  { %v741_v63 = vmul.f32 %v12494_v52, %v737_v60 }
 0x490   :  { %v735_v59 = vpop.permute.xlu1 %734 }
 0x491   :  { %v740_v62 = vmul.f32 %v735_v59, %v13366_v4 }
 0x493   :  { %v13435_v2 = vadd.f32 %v741_v63, %v740_v62 }
 0x495   :  { %12501 = vtanh.f32 %v13435_v2 }
 0x497   :  { %v827_v6 = vpop.permute.xlu0 %826 }
 0x498   :  { %v831_v11 = vmul.f32 %v12500_v58, %v827_v6 }
 0x49f   :  { %v12502_v16 = vpop.eup %12501 }
 0x4a6   :  { %v825_v10 = vpop.permute.xlu1 %824 }
 0x4a7   :  { %v830_v12 = vmul.f32 %v825_v10, %v13370_v15  ;;  %v829_v15 = vpop.permute.xlu0 %828 }
 0x4a9   :  { %v13439_v13 = vadd.f32 %v831_v11, %v830_v12 }
 0x4aa   :  { %v739_v18 = vpop.permute.xlu1 %738 }
 0x4ab   :  { %12503 = vtanh.f32 %v13439_v13  ;;  %v744_v21 = vmul.f32 %v12502_v16, %v739_v18 }
 0x4ad   :  { %8246 = vmatmul.mubr.f32.vlgmr.msra.gmra.mrb[20].mxu0 %v744_v21 }
 0x4ae   :  { %10849 = vmatpush3.bf16.msra.mxu0 %v13004_v5  ;;  %8315 = vmatprep.mubr.msk.f32.mxu0 %vm12921_vm0, %v12922_v1 }
 0x4af   :  { %10850 = vmatprep.subr.bf16.mxu0 %v12920_v0 }
 0x4b2   :  { %10852 = vmatpush3.bf16.msra.mxu0 %v13010_v7 }
 0x4b3   :  { %10853 = vmatprep.subr.bf16.mxu0 %v12920_v0 }
 0x4b5   :  { %v12504_v4 = vpop.eup %12503 }
 0x4b6   :  { %10855 = vmatpush3.bf16.msra.mxu0 %v13023_v14  ;;  %v834_v22 = vmul.f32 %v12504_v4, %v829_v15 }
 0x4b7   :  { %10856 = vmatprep.subr.bf16.mxu0 %v12920_v0 }
 0x4b8   :  { %8281 = vmatmul.mubr.f32.vlgmr.msra.gmra.mrb[8].mxu1 %v834_v22 }
 0x4b9   :  { %10873 = vmatpush3.bf16.msra.mxu1 %v13094_v33  ;;  %8350 = vmatprep.mubr.msk.f32.mxu1 %vm12921_vm0, %v12922_v1 }
 0x4ba   :  { %10858 = vmatpush3.bf16.msra.mxu0 %v13037_v17  ;;  %10874 = vmatprep.subr.bf16.mxu1 %v12920_v0 }
 0x4bb   :  { %10859 = vmatprep.subr.bf16.mxu0 %v12920_v0 }
 0x4bd   :  { %10876 = vmatpush3.bf16.msra.mxu1 %v13104_v36 }
 0x4be   :  { %10861 = vmatpush3.bf16.msra.mxu0 %v13047_v20  ;;  %10877 = vmatprep.subr.bf16.mxu1 %v12920_v0 }
 0x4bf   :  { %10862 = vmatprep.subr.bf16.mxu0 %v12920_v0 }
 0x4c1   :  { %10879 = vmatpush3.bf16.msra.mxu1 %v13123_v41 }
 0x4c2   :  { %10864 = vmatpush3.bf16.msra.mxu0 %v13057_v23  ;;  %10880 = vmatprep.subr.bf16.mxu1 %v12920_v0 }
 0x4c3   :  { %10865 = vmatprep.subr.bf16.mxu0 %v12920_v0 }
 0x4c5   :  { %10882 = vmatpush3.bf16.msra.mxu1 %v13153_v50 }
 0x4c6   :  { %10867 = vmatpush3.bf16.msra.mxu0 %v13067_v26  ;;  %10883 = vmatprep.subr.bf16.mxu1 %v12920_v0 }
 0x4c7   :  { %10868 = vmatprep.subr.bf16.mxu0 %v12920_v0 }
 0x4c9   :  { %10885 = vmatpush3.bf16.msra.mxu1 %v13179_v57 }
 0x4ca   :  { %10870 = vmatpush3.bf16.msra.mxu0 %v13077_v29  ;;  %10886 = vmatprep.subr.bf16.mxu1 %v12920_v0 }
 0x4cb   :  { %10895 = vmatprep.subr.bf16.mxu0 %v12920_v0 }
 0x4cd   :  { %8316 = vmatmul.mubr.f32.vlgmr.msra.gmra.mrb[22].mxu0 %v834_v22  ;;  %10888 = vmatpush3.bf16.msra.mxu1 %v13197_v61 }
 0x4ce   :  { %10897 = vmatpush3.bf16.msra.mxu0 %v13140_v46  ;;  %10889 = vmatprep.subr.bf16.mxu1 %v12920_v0 }
 0x4cf   :  { %10898 = vmatprep.subr.bf16.mxu0 %v12920_v0  ;;  %8385 = vmatprep.mubr.msk.f32.mxu0 %vm12921_vm0, %v12922_v1 }
 0x4d1   :  { %10891 = vmatpush3.bf16.msra.mxu1 %v13214_v3 }
 0x4d2   :  { %10900 = vmatpush3.bf16.msra.mxu0 %v13150_v49  ;;  %10892 = vmatprep.subr.bf16.mxu1 %v12920_v0 }
 0x4d3   :  { %10901 = vmatprep.subr.bf16.mxu0 %v12920_v0 }
 0x4d5   :  { %10894 = vmatpush3.bf16.msra.mxu1 %v13226_v8 }
 0x4d6   :  { %10903 = vmatpush3.bf16.msra.mxu0 %v13176_v56  ;;  %10919 = vmatprep.subr.bf16.mxu1 %v12920_v0 }
 0x4d7   :  { %10904 = vmatprep.subr.bf16.mxu0 %v12920_v0 }
 0x4da   :  { %10906 = vmatpush3.bf16.msra.mxu0 %v13262_v27 }
 0x4db   :  { %10907 = vmatprep.subr.bf16.mxu0 %v12920_v0 }
 0x4de   :  { %10909 = vmatpush3.bf16.msra.mxu0 %v13272_v31 }
 0x4df   :  { %10910 = vmatprep.subr.bf16.mxu0 %v12920_v0 }
 0x4e2   :  { %10912 = vmatpush3.bf16.msra.mxu0 %v13282_v35 }
 0x4e3   :  { %10913 = vmatprep.subr.bf16.mxu0 %v12920_v0 }
 0x4e6   :  { %10915 = vmatpush3.bf16.msra.mxu0 %v13291_v39 }
 0x4e7   :  { %10916 = vmatprep.subr.bf16.mxu0 %v12920_v0 }
 0x4ea   :  { %10918 = vmatpush3.bf16.msra.mxu0 %v13303_v44 }
 0x4eb   :  { %10943 = vmatprep.subr.bf16.mxu0 %v12920_v0 }
 0x580   :  { %v901_v19 = vpop.f32.mrb[20].mxu0 }
 0x581   :  { %v8247_v24 = vpop.f32.mrb[21].mxu0 }
 0x58b   :  { %v971_v25 = vpop.f32.mrb[8].mxu1 }
 0x58c   :  { %v972_v28 = vadd.f32 %v971_v25, %v901_v19  ;;  %v8282_v30 = vpop.f32.mrb[9].mxu1 }
 0x58e   :  { %v975_v32 = vadd.f32 %v13357_v9, %v972_v28 }
 0x590   :  { %v6596_v34 = vmul.f32 -1.442695, %v975_v32  ;;  %12505 = vtanh.f32 %v975_v32 }
 0x592   :  { %12507 = vpow2.f32 %v6596_v34  ;;  %v1243_v34 = vld [vmem:[#allocation2 + $0x8] sm:$0x3] }
 0x59a   :  { %v12506_v37 = vpop.eup %12505 }
 0x59b   :  { %985 = vrot.lane.b32.xlu0 %v12506_v37, %s12925_s19 }
 0x59c   :  { %v12508_v38 = vpop.eup %12507 }
 0x59d   :  { %v979_v40 = vadd.f32 1.0, %v12508_v38 }
 0x59f   :  { %12509 = vrcp.f32 %v979_v40 }
 0x5a0   :  { %v1061_v43 = vpop.f32.mrb[22].mxu0 }
 0x5a1   :  { %v1065_v45 = vadd.f32 %v1061_v43, %v994_v42  ;;  %v8317_v47 = vpop.f32.mrb[23].mxu0 }
 0x5a3   :  { %v6597_v48 = vmul.f32 -1.442695, %v1065_v45 }
 0x5a5   :  { %12511 = vpow2.f32 %v6597_v48 }
 0x5a6   :  { %12513 = vtanh.f32 %v1065_v45 }
 0x5a9   :  { %v12510_v51 = vpop.eup %12509 }
 0x5aa   :  { %983 = vrot.lane.b32.xlu1 %v12510_v51, %s12924_s18 }
 0x5ae   :  { %987 = vrot.lane.b32.xlu1 %v12510_v51, %s12923_s0 }
 0x5af   :  { %v12512_v52 = vpop.eup %12511 }
 0x5b0   :  { %v1069_v53 = vadd.f32 1.0, %v12512_v52  ;;  %v12514_v54 = vpop.eup %12513 }
 0x5b2   :  { %12515 = vrcp.f32 %v1069_v53  ;;  %1075 = vrot.lane.b32.xlu1 %v12514_v54, %s12925_s19 }
 0x5bc   :  { %v12516_v55 = vpop.eup %12515 }
 0x5bd   :  { %1073 = vrot.lane.b32.xlu0 %v12516_v55, %s12924_s18 }
 0x5c1   :  { %1077 = vrot.lane.b32.xlu0 %v12516_v55, %s12923_s0 }
 0x60d   :  { %v986_v58 = vpop.permute.xlu0 %985 }
 0x60e   :  { %v990_v60 = vmul.f32 %v12510_v51, %v986_v58 }
 0x61c   :  { %v984_v59 = vpop.permute.xlu1 %983 }
 0x61d   :  { %v989_v62 = vmul.f32 %v984_v59, %v13435_v2 }
 0x61f   :  { %v13504_v63 = vadd.f32 %v990_v60, %v989_v62 }
 0x620   :  { %v988_v6 = vpop.permute.xlu1 %987 }
 0x621   :  { %12517 = vtanh.f32 %v13504_v63 }
 0x624   :  { %v1076_v12 = vpop.permute.xlu1 %1075 }
 0x625   :  { %v1080_v18 = vmul.f32 %v12516_v55, %v1076_v12 }
 0x62b   :  { %v12518_v10 = vpop.eup %12517 }
 0x62c   :  { %v993_v11 = vmul.f32 %v12518_v10, %v988_v6 }
 0x62e   :  { %8351 = vmatmul.mubr.f32.vlgmr.msra.gmra.mrb[10].mxu1 %v993_v11 }
 0x62f   :  { %10921 = vmatpush3.bf16.msra.mxu1 %v13004_v5  ;;  %v1074_v16 = vpop.permute.xlu0 %1073  ;;  %8420 = vmatprep.mubr.msk.f32.mxu1 %vm12921_vm0, %v12922_v1 }
 0x630   :  { %v1079_v21 = vmul.f32 %v1074_v16, %v13439_v13  ;;  %10922 = vmatprep.subr.bf16.mxu1 %v12920_v0 }
 0x632   :  { %v13512_v2 = vadd.f32 %v1080_v18, %v1079_v21 }
 0x633   :  { %10924 = vmatpush3.bf16.msra.mxu1 %v13010_v7  ;;  %v1078_v13 = vpop.permute.xlu0 %1077 }
 0x634   :  { %12519 = vtanh.f32 %v13512_v2  ;;  %10925 = vmatprep.subr.bf16.mxu1 %v12920_v0 }
 0x637   :  { %10927 = vmatpush3.bf16.msra.mxu1 %v13023_v14 }
 0x638   :  { %10928 = vmatprep.subr.bf16.mxu1 %v12920_v0 }
 0x63b   :  { %10930 = vmatpush3.bf16.msra.mxu1 %v13037_v17 }
 0x63c   :  { %10931 = vmatprep.subr.bf16.mxu1 %v12920_v0 }
 0x63e   :  { %v12520_v4 = vpop.eup %12519 }
 0x63f   :  { %v1083_v15 = vmul.f32 %v12520_v4, %v1078_v13  ;;  %10933 = vmatpush3.bf16.msra.mxu1 %v13047_v20 }
 0x640   :  { %10934 = vmatprep.subr.bf16.mxu1 %v12920_v0 }
 0x641   :  { %8386 = vmatmul.mubr.f32.vlgmr.msra.gmra.mrb[24].mxu0 %v1083_v15 }
 0x642   :  { %10945 = vmatpush3.bf16.msra.mxu0 %v13094_v33  ;;  %8455 = vmatprep.mubr.msk.f32.mxu0 %vm12921_vm0, %v12922_v1 }
 0x643   :  { %10936 = vmatpush3.bf16.msra.mxu1 %v13057_v23  ;;  %10946 = vmatprep.subr.bf16.mxu0 %v12920_v0 }
 0x644   :  { %10937 = vmatprep.subr.bf16.mxu1 %v12920_v0 }
 0x646   :  { %10948 = vmatpush3.bf16.msra.mxu0 %v13104_v36 }
 0x647   :  { %10939 = vmatpush3.bf16.msra.mxu1 %v13067_v26  ;;  %10949 = vmatprep.subr.bf16.mxu0 %v12920_v0 }
 0x648   :  { %10940 = vmatprep.subr.bf16.mxu1 %v12920_v0 }
 0x64a   :  { %10951 = vmatpush3.bf16.msra.mxu0 %v13123_v41 }
 0x64b   :  { %10942 = vmatpush3.bf16.msra.mxu1 %v13077_v29  ;;  %10952 = vmatprep.subr.bf16.mxu0 %v12920_v0 }
 0x64c   :  { %10967 = vmatprep.subr.bf16.mxu1 %v12920_v0 }
 0x64e   :  { %8421 = vmatmul.mubr.f32.vlgmr.msra.gmra.mrb[12].mxu1 %v1083_v15  ;;  %10954 = vmatpush3.bf16.msra.mxu0 %v13153_v50 }
 0x64f   :  { %10969 = vmatpush3.bf16.msra.mxu1 %v13140_v46  ;;  %10955 = vmatprep.subr.bf16.mxu0 %v12920_v0 }
 0x650   :  { %10970 = vmatprep.subr.bf16.mxu1 %v12920_v0  ;;  %8490 = vmatprep.mubr.msk.f32.mxu1 %vm12921_vm0, %v12922_v1 }
 0x652   :  { %10957 = vmatpush3.bf16.msra.mxu0 %v13179_v57 }
 0x653   :  { %10972 = vmatpush3.bf16.msra.mxu1 %v13150_v49  ;;  %10958 = vmatprep.subr.bf16.mxu0 %v12920_v0 }
 0x654   :  { %10973 = vmatprep.subr.bf16.mxu1 %v12920_v0 }
 0x656   :  { %10960 = vmatpush3.bf16.msra.mxu0 %v13197_v61 }
 0x657   :  { %10975 = vmatpush3.bf16.msra.mxu1 %v13176_v56  ;;  %10961 = vmatprep.subr.bf16.mxu0 %v12920_v0 }
 0x658   :  { %10976 = vmatprep.subr.bf16.mxu1 %v12920_v0 }
 0x65a   :  { %10963 = vmatpush3.bf16.msra.mxu0 %v13214_v3 }
 0x65b   :  { %10978 = vmatpush3.bf16.msra.mxu1 %v13262_v27  ;;  %10964 = vmatprep.subr.bf16.mxu0 %v12920_v0 }
 0x65c   :  { %10979 = vmatprep.subr.bf16.mxu1 %v12920_v0 }
 0x65e   :  { %10966 = vmatpush3.bf16.msra.mxu0 %v13226_v8 }
 0x65f   :  { %10981 = vmatpush3.bf16.msra.mxu1 %v13272_v31  ;;  %10991 = vmatprep.subr.bf16.mxu0 %v12920_v0 }
 0x660   :  { %10982 = vmatprep.subr.bf16.mxu1 %v12920_v0 }
 0x663   :  { %10984 = vmatpush3.bf16.msra.mxu1 %v13282_v35 }
 0x664   :  { %10985 = vmatprep.subr.bf16.mxu1 %v12920_v0 }
 0x667   :  { %10987 = vmatpush3.bf16.msra.mxu1 %v13291_v39 }
 0x668   :  { %10988 = vmatprep.subr.bf16.mxu1 %v12920_v0 }
 0x66b   :  { %10990 = vmatpush3.bf16.msra.mxu1 %v13303_v44 }
 0x66c   :  { %11015 = vmatprep.subr.bf16.mxu1 %v12920_v0 }
 0x701   :  { %v1150_v22 = vpop.f32.mrb[10].mxu1 }
 0x702   :  { %v8352_v19 = vpop.f32.mrb[11].mxu1 }
 0x714   :  { %v1220_v24 = vpop.f32.mrb[24].mxu0 }
 0x715   :  { %v1221_v25 = vadd.f32 %v1220_v24, %v1150_v22  ;;  %v8387_v28 = vpop.f32.mrb[25].mxu0 }
 0x717   :  { %v1224_v30 = vadd.f32 %v13357_v9, %v1221_v25 }
 0x719   :  { %v6598_v32 = vmul.f32 -1.442695, %v1224_v30  ;;  %12521 = vtanh.f32 %v1224_v30 }
 0x71b   :  { %12523 = vpow2.f32 %v6598_v32 }
 0x721   :  { %v1310_v37 = vpop.f32.mrb[12].mxu1 }
 0x722   :  { %v1314_v38 = vadd.f32 %v1310_v37, %v1243_v34  ;;  %v8422_v40 = vpop.f32.mrb[13].mxu1 }
 0x723   :  { %v12522_v42 = vpop.eup %12521 }
 0x724   :  { %v6599_v43 = vmul.f32 -1.442695, %v1314_v38  ;;  %12525 = vtanh.f32 %v1314_v38  ;;  %1234 = vrot.lane.b32.xlu0 %v12522_v42, %s12925_s19  ;;  %v1492_v38 = vld [vmem:[#allocation2 + $0xa] sm:$0x3] }
 0x725   :  { %v12524_v45 = vpop.eup %12523 }
 0x726   :  { %v1228_v47 = vadd.f32 1.0, %v12524_v45  ;;  %12527 = vpow2.f32 %v6599_v43 }
 0x728   :  { %12529 = vrcp.f32 %v1228_v47 }
 0x72e   :  { %v12526_v48 = vpop.eup %12525 }
 0x72f   :  { %1324 = vrot.lane.b32.xlu0 %v12526_v48, %s12925_s19 }
 0x730   :  { %v12528_v51 = vpop.eup %12527 }
 0x731   :  { %v1318_v52 = vadd.f32 1.0, %v12528_v51 }
 0x732   :  { %v12530_v53 = vpop.eup %12529 }
 0x733   :  { %12531 = vrcp.f32 %v1318_v52  ;;  %1232 = vrot.lane.b32.xlu1 %v12530_v53, %s12924_s18 }
 0x73d   :  { %v12532_v54 = vpop.eup %12531 }
 0x73e   :  { %1326 = vrot.lane.b32.xlu0 %v12532_v54, %s12923_s0  ;;  %1322 = vrot.lane.b32.xlu1 %v12532_v54, %s12924_s18 }
 0x742   :  { %1236 = vrot.lane.b32.xlu1 %v12530_v53, %s12923_s0 }
 0x796   :  { %v1235_v55 = vpop.permute.xlu0 %1234 }
 0x797   :  { %v1239_v59 = vmul.f32 %v12530_v53, %v1235_v55 }
 0x7a1   :  { %v1325_v6 = vpop.permute.xlu0 %1324 }
 0x7a2   :  { %v1329_v11 = vmul.f32 %v12532_v54, %v1325_v6 }
 0x7a5   :  { %v1233_v58 = vpop.permute.xlu1 %1232 }
 0x7a6   :  { %v1238_v60 = vmul.f32 %v1233_v58, %v13504_v63 }
 0x7a8   :  { %v13573_v62 = vadd.f32 %v1239_v59, %v1238_v60 }
 0x7aa   :  { %12533 = vtanh.f32 %v13573_v62 }
 0x7b0   :  { %v1323_v10 = vpop.permute.xlu1 %1322 }
 0x7b1   :  { %v1328_v12 = vmul.f32 %v1323_v10, %v13512_v2  ;;  %v1327_v2 = vpop.permute.xlu0 %1326 }
 0x7b3   :  { %v13577_v16 = vadd.f32 %v1329_v11, %v1328_v12 }
 0x7b4   :  { %v12534_v18 = vpop.eup %12533  ;;  %v1237_v21 = vpop.permute.xlu1 %1236 }
 0x7b5   :  { %12535 = vtanh.f32 %v13577_v16  ;;  %v1242_v4 = vmul.f32 %v12534_v18, %v1237_v21 }
 0x7b7   :  { %8456 = vmatmul.mubr.f32.vlgmr.msra.gmra.mrb[26].mxu0 %v1242_v4 }
 0x7b8   :  { %10993 = vmatpush3.bf16.msra.mxu0 %v13004_v5  ;;  %8525 = vmatprep.mubr.msk.f32.mxu0 %vm12921_vm0, %v12922_v1 }
 0x7b9   :  { %10994 = vmatprep.subr.bf16.mxu0 %v12920_v0 }
 0x7bc   :  { %10996 = vmatpush3.bf16.msra.mxu0 %v13010_v7 }
 0x7bd   :  { %10997 = vmatprep.subr.bf16.mxu0 %v12920_v0 }
 0x7bf   :  { %v12536_v63 = vpop.eup %12535 }
 0x7c0   :  { %10999 = vmatpush3.bf16.msra.mxu0 %v13023_v14  ;;  %v1332_v13 = vmul.f32 %v12536_v63, %v1327_v2 }
 0x7c1   :  { %11000 = vmatprep.subr.bf16.mxu0 %v12920_v0 }
 0x7c2   :  { %8491 = vmatmul.mubr.f32.vlgmr.msra.gmra.mrb[14].mxu1 %v1332_v13 }
 0x7c3   :  { %11017 = vmatpush3.bf16.msra.mxu1 %v13094_v33  ;;  %8560 = vmatprep.mubr.msk.f32.mxu1 %vm12921_vm0, %v12922_v1 }
 0x7c4   :  { %11002 = vmatpush3.bf16.msra.mxu0 %v13037_v17  ;;  %11018 = vmatprep.subr.bf16.mxu1 %v12920_v0 }
 0x7c5   :  { %11003 = vmatprep.subr.bf16.mxu0 %v12920_v0 }
 0x7c7   :  { %11020 = vmatpush3.bf16.msra.mxu1 %v13104_v36 }
 0x7c8   :  { %11005 = vmatpush3.bf16.msra.mxu0 %v13047_v20  ;;  %11021 = vmatprep.subr.bf16.mxu1 %v12920_v0 }
 0x7c9   :  { %11006 = vmatprep.subr.bf16.mxu0 %v12920_v0 }
 0x7cb   :  { %11023 = vmatpush3.bf16.msra.mxu1 %v13123_v41 }
 0x7cc   :  { %11008 = vmatpush3.bf16.msra.mxu0 %v13057_v23  ;;  %11024 = vmatprep.subr.bf16.mxu1 %v12920_v0 }
 0x7cd   :  { %11009 = vmatprep.subr.bf16.mxu0 %v12920_v0 }
 0x7cf   :  { %11026 = vmatpush3.bf16.msra.mxu1 %v13153_v50 }
 0x7d0   :  { %11011 = vmatpush3.bf16.msra.mxu0 %v13067_v26  ;;  %11027 = vmatprep.subr.bf16.mxu1 %v12920_v0 }
 0x7d1   :  { %11012 = vmatprep.subr.bf16.mxu0 %v12920_v0 }
 0x7d3   :  { %11029 = vmatpush3.bf16.msra.mxu1 %v13179_v57 }
 0x7d4   :  { %11014 = vmatpush3.bf16.msra.mxu0 %v13077_v29  ;;  %11030 = vmatprep.subr.bf16.mxu1 %v12920_v0 }
 0x7d5   :  { %11039 = vmatprep.subr.bf16.mxu0 %v12920_v0 }
 0x7d7   :  { %8526 = vmatmul.mubr.f32.vlgmr.msra.gmra.mrb[28].mxu0 %v1332_v13  ;;  %11032 = vmatpush3.bf16.msra.mxu1 %v13197_v61 }
 0x7d8   :  { %11041 = vmatpush3.bf16.msra.mxu0 %v13140_v46  ;;  %11033 = vmatprep.subr.bf16.mxu1 %v12920_v0 }
 0x7d9   :  { %11042 = vmatprep.subr.bf16.mxu0 %v12920_v0  ;;  %8595 = vmatprep.mubr.msk.f32.mxu0 %vm12921_vm0, %v12922_v1 }
 0x7db   :  { %11035 = vmatpush3.bf16.msra.mxu1 %v13214_v3 }
 0x7dc   :  { %11044 = vmatpush3.bf16.msra.mxu0 %v13150_v49  ;;  %11036 = vmatprep.subr.bf16.mxu1 %v12920_v0 }
 0x7dd   :  { %11045 = vmatprep.subr.bf16.mxu0 %v12920_v0 }
 0x7df   :  { %11038 = vmatpush3.bf16.msra.mxu1 %v13226_v8 }
 0x7e0   :  { %11047 = vmatpush3.bf16.msra.mxu0 %v13176_v56  ;;  %11063 = vmatprep.subr.bf16.mxu1 %v12920_v0 }
 0x7e1   :  { %11048 = vmatprep.subr.bf16.mxu0 %v12920_v0 }
 0x7e4   :  { %11050 = vmatpush3.bf16.msra.mxu0 %v13262_v27 }
 0x7e5   :  { %11051 = vmatprep.subr.bf16.mxu0 %v12920_v0 }
 0x7e8   :  { %11053 = vmatpush3.bf16.msra.mxu0 %v13272_v31 }
 0x7e9   :  { %11054 = vmatprep.subr.bf16.mxu0 %v12920_v0 }
 0x7ec   :  { %11056 = vmatpush3.bf16.msra.mxu0 %v13282_v35 }
 0x7ed   :  { %11057 = vmatprep.subr.bf16.mxu0 %v12920_v0 }
 0x7f0   :  { %11059 = vmatpush3.bf16.msra.mxu0 %v13291_v39 }
 0x7f1   :  { %11060 = vmatprep.subr.bf16.mxu0 %v12920_v0 }
 0x7f4   :  { %11062 = vmatpush3.bf16.msra.mxu0 %v13303_v44 }
 0x7f5   :  { %11087 = vmatprep.subr.bf16.mxu0 %v12920_v0 }
 0x88a   :  { %v1399_v15 = vpop.f32.mrb[26].mxu0 }
 0x88b   :  { %v8457_v22 = vpop.f32.mrb[27].mxu0 }
 0x895   :  { %v1469_v19 = vpop.f32.mrb[14].mxu1 }
 0x896   :  { %v1470_v24 = vadd.f32 %v1469_v19, %v1399_v15  ;;  %v8492_v25 = vpop.f32.mrb[15].mxu1 }
 0x898   :  { %v1473_v28 = vadd.f32 %v13357_v9, %v1470_v24  ;;  %v13706_v24 = vld [vmem:[%s15059_s6] ss:$0 sm:$0xff] }
 0x89a   :  { %v6600_v30 = vmul.f32 -1.442695, %v1473_v28  ;;  %12537 = vtanh.f32 %v1473_v28 }
 0x89c   :  { %12539 = vpow2.f32 %v6600_v30  ;;  %v1741_v30 = vld [vmem:[#allocation2 + $0xc] sm:$0x3] }
 0x8a4   :  { %v12538_v32 = vpop.eup %12537 }
 0x8a5   :  { %1483 = vrot.lane.b32.xlu0 %v12538_v32, %s12925_s19 }
 0x8a6   :  { %v12540_v34 = vpop.eup %12539 }
 0x8a7   :  { %v1477_v37 = vadd.f32 1.0, %v12540_v34 }
 0x8a9   :  { %12541 = vrcp.f32 %v1477_v37 }
 0x8aa   :  { %v1559_v40 = vpop.f32.mrb[28].mxu0 }
 0x8ab   :  { %v1563_v42 = vadd.f32 %v1559_v40, %v1492_v38  ;;  %v8527_v43 = vpop.f32.mrb[29].mxu0 }
 0x8ad   :  { %v6601_v45 = vmul.f32 -1.442695, %v1563_v42 }
 0x8af   :  { %12543 = vpow2.f32 %v6601_v45 }
 0x8b0   :  { %12545 = vtanh.f32 %v1563_v42 }
 0x8b3   :  { %v12542_v47 = vpop.eup %12541 }
 0x8b4   :  { %1481 = vrot.lane.b32.xlu1 %v12542_v47, %s12924_s18 }
 0x8b8   :  { %1485 = vrot.lane.b32.xlu1 %v12542_v47, %s12923_s0 }
 0x8b9   :  { %v12544_v9 = vpop.eup %12543 }
 0x8ba   :  { %v1567_v48 = vadd.f32 1.0, %v12544_v9  ;;  %v12546_v51 = vpop.eup %12545 }
 0x8bc   :  { %12547 = vrcp.f32 %v1567_v48  ;;  %1573 = vrot.lane.b32.xlu1 %v12546_v51, %s12925_s19 }
 0x8c6   :  { %v12548_v52 = vpop.eup %12547 }
 0x8c7   :  { %1571 = vrot.lane.b32.xlu0 %v12548_v52, %s12924_s18 }
 0x8cb   :  { %1575 = vrot.lane.b32.xlu0 %v12548_v52, %s12923_s0 }
 0x917   :  { %v1484_v53 = vpop.permute.xlu0 %1483 }
 0x918   :  { %v1488_v55 = vmul.f32 %v12542_v47, %v1484_v53 }
 0x926   :  { %v1482_v54 = vpop.permute.xlu1 %1481 }
 0x927   :  { %v1487_v58 = vmul.f32 %v1482_v54, %v13573_v62 }
 0x929   :  { %v13642_v59 = vadd.f32 %v1488_v55, %v1487_v58 }
 0x92a   :  { %v1486_v60 = vpop.permute.xlu1 %1485 }
 0x92b   :  { %12549 = vtanh.f32 %v13642_v59 }
 0x92e   :  { %v1574_v11 = vpop.permute.xlu1 %1573 }
 0x92f   :  { %v1578_v18 = vmul.f32 %v12548_v52, %v1574_v11 }
 0x935   :  { %v12550_v6 = vpop.eup %12549 }
 0x936   :  { %v1491_v10 = vmul.f32 %v12550_v6, %v1486_v60 }
 0x938   :  { %8561 = vmatmul.mubr.f32.vlgmr.msra.gmra.mrb[16].mxu1 %v1491_v10 }
 0x939   :  { %11065 = vmatpush3.bf16.msra.mxu1 %v13004_v5  ;;  %v1572_v12 = vpop.permute.xlu0 %1571  ;;  %8630 = vmatprep.mubr.msk.f32.mxu1 %vm12921_vm0, %v12922_v1 }
 0x93a   :  { %v1577_v21 = vmul.f32 %v1572_v12, %v13577_v16  ;;  %11066 = vmatprep.subr.bf16.mxu1 %v12920_v0 }
 0x93c   :  { %v13650_v62 = vadd.f32 %v1578_v18, %v1577_v21 }
 0x93d   :  { %11068 = vmatpush3.bf16.msra.mxu1 %v13010_v7  ;;  %v1576_v16 = vpop.permute.xlu0 %1575 }
 0x93e   :  { %12551 = vtanh.f32 %v13650_v62  ;;  %11069 = vmatprep.subr.bf16.mxu1 %v12920_v0 }
 0x941   :  { %11071 = vmatpush3.bf16.msra.mxu1 %v13023_v14 }
 0x942   :  { %11072 = vmatprep.subr.bf16.mxu1 %v12920_v0 }
 0x945   :  { %11074 = vmatpush3.bf16.msra.mxu1 %v13037_v17 }
 0x946   :  { %11075 = vmatprep.subr.bf16.mxu1 %v12920_v0 }
 0x948   :  { %v12552_v4 = vpop.eup %12551 }
 0x949   :  { %v1581_v63 = vmul.f32 %v12552_v4, %v1576_v16  ;;  %11077 = vmatpush3.bf16.msra.mxu1 %v13047_v20 }
 0x94a   :  { %11078 = vmatprep.subr.bf16.mxu1 %v12920_v0 }
 0x94b   :  { %8596 = vmatmul.mubr.f32.vlgmr.msra.gmra.mrb[30].mxu0 %v1581_v63 }
 0x94c   :  { %11089 = vmatpush3.bf16.msra.mxu0 %v13094_v33  ;;  %8665 = vmatprep.mubr.msk.f32.mxu0 %vm12921_vm0, %v12922_v1 }
 0x94d   :  { %11080 = vmatpush3.bf16.msra.mxu1 %v13057_v23  ;;  %11090 = vmatprep.subr.bf16.mxu0 %v12920_v0 }
 0x94e   :  { %11081 = vmatprep.subr.bf16.mxu1 %v12920_v0 }
 0x950   :  { %11092 = vmatpush3.bf16.msra.mxu0 %v13104_v36 }
 0x951   :  { %11083 = vmatpush3.bf16.msra.mxu1 %v13067_v26  ;;  %11093 = vmatprep.subr.bf16.mxu0 %v12920_v0 }
 0x952   :  { %11084 = vmatprep.subr.bf16.mxu1 %v12920_v0 }
 0x954   :  { %11095 = vmatpush3.bf16.msra.mxu0 %v13123_v41 }
 0x955   :  { %11086 = vmatpush3.bf16.msra.mxu1 %v13077_v29  ;;  %11096 = vmatprep.subr.bf16.mxu0 %v12920_v0 }
 0x956   :  { %11111 = vmatprep.subr.bf16.mxu1 %v12920_v0 }
 0x958   :  { %8631 = vmatmul.mubr.f32.vlgmr.msra.gmra.mrb[18].mxu1 %v1581_v63  ;;  %11098 = vmatpush3.bf16.msra.mxu0 %v13153_v50 }
 0x959   :  { %11113 = vmatpush3.bf16.msra.mxu1 %v13140_v46  ;;  %11099 = vmatprep.subr.bf16.mxu0 %v12920_v0 }
 0x95a   :  { %11114 = vmatprep.subr.bf16.mxu1 %v12920_v0  ;;  %8700 = vmatprep.mubr.msk.f32.mxu1 %vm12921_vm0, %v12922_v1 }
 0x95c   :  { %11101 = vmatpush3.bf16.msra.mxu0 %v13179_v57 }
 0x95d   :  { %11116 = vmatpush3.bf16.msra.mxu1 %v13150_v49  ;;  %11102 = vmatprep.subr.bf16.mxu0 %v12920_v0 }
 0x95e   :  { %11117 = vmatprep.subr.bf16.mxu1 %v12920_v0 }
 0x960   :  { %11104 = vmatpush3.bf16.msra.mxu0 %v13197_v61 }
 0x961   :  { %11119 = vmatpush3.bf16.msra.mxu1 %v13176_v56  ;;  %11105 = vmatprep.subr.bf16.mxu0 %v12920_v0 }
 0x962   :  { %11120 = vmatprep.subr.bf16.mxu1 %v12920_v0 }
 0x964   :  { %11107 = vmatpush3.bf16.msra.mxu0 %v13214_v3 }
 0x965   :  { %11122 = vmatpush3.bf16.msra.mxu1 %v13262_v27  ;;  %11108 = vmatprep.subr.bf16.mxu0 %v12920_v0 }
 0x966   :  { %11123 = vmatprep.subr.bf16.mxu1 %v12920_v0 }
 0x968   :  { %11110 = vmatpush3.bf16.msra.mxu0 %v13226_v8 }
 0x969   :  { %11125 = vmatpush3.bf16.msra.mxu1 %v13272_v31  ;;  %11135 = vmatprep.subr.bf16.mxu0 %v12920_v0 }
 0x96a   :  { %11126 = vmatprep.subr.bf16.mxu1 %v12920_v0 }
 0x96d   :  { %11128 = vmatpush3.bf16.msra.mxu1 %v13282_v35 }
 0x96e   :  { %11129 = vmatprep.subr.bf16.mxu1 %v12920_v0 }
 0x971   :  { %11131 = vmatpush3.bf16.msra.mxu1 %v13291_v39 }
 0x972   :  { %11132 = vmatprep.subr.bf16.mxu1 %v12920_v0 }
 0x975   :  { %11134 = vmatpush3.bf16.msra.mxu1 %v13303_v44 }
 0x976   :  { %11159 = vmatprep.subr.bf16.mxu1 %v12920_v0 }
 0xa0b   :  { %v1648_v2 = vpop.f32.mrb[16].mxu1 }
 0xa0c   :  { %v8562_v13 = vpop.f32.mrb[17].mxu1 }
 0xa1e   :  { %v1718_v15 = vpop.f32.mrb[30].mxu0 }
 0xa1f   :  { %v1719_v22 = vadd.f32 %v1718_v15, %v1648_v2  ;;  %v8597_v19 = vpop.f32.mrb[31].mxu0 }
 0xa21   :  { %v1722_v25 = vadd.f32 %v13706_v24, %v1719_v22 }
 0xa23   :  { %v6602_v28 = vmul.f32 -1.442695, %v1722_v25  ;;  %12553 = vtanh.f32 %v1722_v25 }
 0xa25   :  { %12555 = vpow2.f32 %v6602_v28 }
 0xa2b   :  { %v1808_v32 = vpop.f32.mrb[18].mxu1 }
 0xa2c   :  { %v1812_v34 = vadd.f32 %v1808_v32, %v1741_v30  ;;  %v8632_v37 = vpop.f32.mrb[19].mxu1 }
 0xa2d   :  { %v12554_v38 = vpop.eup %12553 }
 0xa2e   :  { %v6603_v40 = vmul.f32 -1.442695, %v1812_v34  ;;  %12557 = vtanh.f32 %v1812_v34  ;;  %1732 = vrot.lane.b32.xlu0 %v12554_v38, %s12925_s19  ;;  %v1990_v34 = vld [vmem:[#allocation2 + $0xe] sm:$0x3] }
 0xa2f   :  { %v12556_v42 = vpop.eup %12555 }
 0xa30   :  { %v1726_v43 = vadd.f32 1.0, %v12556_v42  ;;  %12559 = vpow2.f32 %v6603_v40 }
 0xa32   :  { %12561 = vrcp.f32 %v1726_v43 }
 0xa38   :  { %v12558_v45 = vpop.eup %12557 }
 0xa39   :  { %1822 = vrot.lane.b32.xlu0 %v12558_v45, %s12925_s19 }
 0xa3a   :  { %v12560_v47 = vpop.eup %12559 }
 0xa3b   :  { %v1816_v9 = vadd.f32 1.0, %v12560_v47 }
 0xa3c   :  { %v12562_v48 = vpop.eup %12561 }
 0xa3d   :  { %12563 = vrcp.f32 %v1816_v9  ;;  %1730 = vrot.lane.b32.xlu1 %v12562_v48, %s12924_s18 }
 0xa47   :  { %v12564_v51 = vpop.eup %12563 }
 0xa48   :  { %1824 = vrot.lane.b32.xlu0 %v12564_v51, %s12923_s0  ;;  %1820 = vrot.lane.b32.xlu1 %v12564_v51, %s12924_s18 }
 0xa4c   :  { %1734 = vrot.lane.b32.xlu1 %v12562_v48, %s12923_s0 }
 0xaa0   :  { %v1733_v52 = vpop.permute.xlu0 %1732 }
 0xaa1   :  { %v1737_v54 = vmul.f32 %v12562_v48, %v1733_v52 }
 0xaab   :  { %v1823_v60 = vpop.permute.xlu0 %1822 }
 0xaac   :  { %v1827_v10 = vmul.f32 %v12564_v51, %v1823_v60 }
 0xaaf   :  { %v1731_v53 = vpop.permute.xlu1 %1730 }
 0xab0   :  { %v1736_v55 = vmul.f32 %v1731_v53, %v13642_v59 }
 0xab2   :  { %v13716_v58 = vadd.f32 %v1737_v54, %v1736_v55 }
 0xab4   :  { %12565 = vtanh.f32 %v13716_v58 }
 0xaba   :  { %v1821_v6 = vpop.permute.xlu1 %1820 }
 0xabb   :  { %v1826_v11 = vmul.f32 %v1821_v6, %v13650_v62  ;;  %v1825_v62 = vpop.permute.xlu0 %1824 }
 0xabd   :  { %v13720_v12 = vadd.f32 %v1827_v10, %v1826_v11 }
 0xabe   :  { %v12566_v18 = vpop.eup %12565  ;;  %v1735_v21 = vpop.permute.xlu1 %1734 }
 0xabf   :  { %12567 = vtanh.f32 %v13720_v12  ;;  %v1740_v4 = vmul.f32 %v12566_v18, %v1735_v21 }
 0xac1   :  { %8666 = vmatmul.mubr.f32.vlgmr.msra.gmra.mrb[32].mxu0 %v1740_v4 }
 0xac2   :  { %11137 = vmatpush3.bf16.msra.mxu0 %v13004_v5  ;;  %8735 = vmatprep.mubr.msk.f32.mxu0 %vm12921_vm0, %v12922_v1 }
 0xac3   :  { %11138 = vmatprep.subr.bf16.mxu0 %v12920_v0 }
 0xac6   :  { %11140 = vmatpush3.bf16.msra.mxu0 %v13010_v7 }
 0xac7   :  { %11141 = vmatprep.subr.bf16.mxu0 %v12920_v0 }
 0xac9   :  { %v12568_v59 = vpop.eup %12567 }
 0xaca   :  { %11143 = vmatpush3.bf16.msra.mxu0 %v13023_v14  ;;  %v1830_v16 = vmul.f32 %v12568_v59, %v1825_v62 }
 0xacb   :  { %11144 = vmatprep.subr.bf16.mxu0 %v12920_v0 }
 0xacc   :  { %8701 = vmatmul.mubr.f32.vlgmr.msra.gmra.mrb[20].mxu1 %v1830_v16 }
 0xacd   :  { %11161 = vmatpush3.bf16.msra.mxu1 %v13094_v33  ;;  %8770 = vmatprep.mubr.msk.f32.mxu1 %vm12921_vm0, %v12922_v1 }
 0xace   :  { %11146 = vmatpush3.bf16.msra.mxu0 %v13037_v17  ;;  %11162 = vmatprep.subr.bf16.mxu1 %v12920_v0 }
 0xacf   :  { %11147 = vmatprep.subr.bf16.mxu0 %v12920_v0 }
 0xad1   :  { %11164 = vmatpush3.bf16.msra.mxu1 %v13104_v36 }
 0xad2   :  { %11149 = vmatpush3.bf16.msra.mxu0 %v13047_v20  ;;  %11165 = vmatprep.subr.bf16.mxu1 %v12920_v0 }
 0xad3   :  { %11150 = vmatprep.subr.bf16.mxu0 %v12920_v0 }
 0xad5   :  { %11167 = vmatpush3.bf16.msra.mxu1 %v13123_v41 }
 0xad6   :  { %11152 = vmatpush3.bf16.msra.mxu0 %v13057_v23  ;;  %11168 = vmatprep.subr.bf16.mxu1 %v12920_v0 }
 0xad7   :  { %11153 = vmatprep.subr.bf16.mxu0 %v12920_v0 }
 0xad9   :  { %11170 = vmatpush3.bf16.msra.mxu1 %v13153_v50 }
 0xada   :  { %11155 = vmatpush3.bf16.msra.mxu0 %v13067_v26  ;;  %11171 = vmatprep.subr.bf16.mxu1 %v12920_v0 }
 0xadb   :  { %11156 = vmatprep.subr.bf16.mxu0 %v12920_v0 }
 0xadd   :  { %11173 = vmatpush3.bf16.msra.mxu1 %v13179_v57 }
 0xade   :  { %11158 = vmatpush3.bf16.msra.mxu0 %v13077_v29  ;;  %11174 = vmatprep.subr.bf16.mxu1 %v12920_v0 }
 0xadf   :  { %11183 = vmatprep.subr.bf16.mxu0 %v12920_v0 }
 0xae1   :  { %8736 = vmatmul.mubr.f32.vlgmr.msra.gmra.mrb[34].mxu0 %v1830_v16  ;;  %11176 = vmatpush3.bf16.msra.mxu1 %v13197_v61 }
 0xae2   :  { %11185 = vmatpush3.bf16.msra.mxu0 %v13140_v46  ;;  %11177 = vmatprep.subr.bf16.mxu1 %v12920_v0 }
 0xae3   :  { %11186 = vmatprep.subr.bf16.mxu0 %v12920_v0  ;;  %8805 = vmatprep.mubr.msk.f32.mxu0 %vm12921_vm0, %v12922_v1 }
 0xae5   :  { %11179 = vmatpush3.bf16.msra.mxu1 %v13214_v3 }
 0xae6   :  { %11188 = vmatpush3.bf16.msra.mxu0 %v13150_v49  ;;  %11180 = vmatprep.subr.bf16.mxu1 %v12920_v0 }
 0xae7   :  { %11189 = vmatprep.subr.bf16.mxu0 %v12920_v0 }
 0xae9   :  { %11182 = vmatpush3.bf16.msra.mxu1 %v13226_v8 }
 0xaea   :  { %11191 = vmatpush3.bf16.msra.mxu0 %v13176_v56  ;;  %11207 = vmatprep.subr.bf16.mxu1 %v12920_v0 }
 0xaeb   :  { %11192 = vmatprep.subr.bf16.mxu0 %v12920_v0 }
 0xaee   :  { %11194 = vmatpush3.bf16.msra.mxu0 %v13262_v27 }
 0xaef   :  { %11195 = vmatprep.subr.bf16.mxu0 %v12920_v0 }
 0xaf2   :  { %11197 = vmatpush3.bf16.msra.mxu0 %v13272_v31 }
 0xaf3   :  { %11198 = vmatprep.subr.bf16.mxu0 %v12920_v0 }
 0xaf6   :  { %11200 = vmatpush3.bf16.msra.mxu0 %v13282_v35 }
 0xaf7   :  { %11201 = vmatprep.subr.bf16.mxu0 %v12920_v0 }
 0xafa   :  { %11203 = vmatpush3.bf16.msra.mxu0 %v13291_v39 }
 0xafb   :  { %11204 = vmatprep.subr.bf16.mxu0 %v12920_v0 }
 0xafe   :  { %11206 = vmatpush3.bf16.msra.mxu0 %v13303_v44 }
 0xaff   :  { %11231 = vmatprep.subr.bf16.mxu0 %v12920_v0 }
 0xb94   :  { %v1897_v63 = vpop.f32.mrb[32].mxu0 }
 0xb95   :  { %v8667_v2 = vpop.f32.mrb[33].mxu0 }
 0xb9f   :  { %v1967_v13 = vpop.f32.mrb[20].mxu1 }
 0xba0   :  { %v1968_v15 = vadd.f32 %v1967_v13, %v1897_v63  ;;  %v8702_v22 = vpop.f32.mrb[21].mxu1 }
 0xba2   :  { %v1971_v19 = vadd.f32 %v13706_v24, %v1968_v15 }
 0xba4   :  { %v6604_v25 = vmul.f32 -1.442695, %v1971_v19  ;;  %12569 = vtanh.f32 %v1971_v19 }
 0xba6   :  { %12571 = vpow2.f32 %v6604_v25  ;;  %v2239_v25 = vld [vmem:[#allocation2 + $0x10] sm:$0x3] }
 0xbae   :  { %v12570_v28 = vpop.eup %12569 }
 0xbaf   :  { %1981 = vrot.lane.b32.xlu0 %v12570_v28, %s12925_s19 }
 0xbb0   :  { %v12572_v30 = vpop.eup %12571 }
 0xbb1   :  { %v1975_v32 = vadd.f32 1.0, %v12572_v30 }
 0xbb3   :  { %12573 = vrcp.f32 %v1975_v32 }
 0xbb4   :  { %v2057_v37 = vpop.f32.mrb[34].mxu0 }
 0xbb5   :  { %v2061_v38 = vadd.f32 %v2057_v37, %v1990_v34  ;;  %v8737_v40 = vpop.f32.mrb[35].mxu0 }
 0xbb7   :  { %v6605_v42 = vmul.f32 -1.442695, %v2061_v38 }
 0xbb9   :  { %12575 = vpow2.f32 %v6605_v42 }
 0xbba   :  { %12577 = vtanh.f32 %v2061_v38 }
 0xbbd   :  { %v12574_v43 = vpop.eup %12573 }
 0xbbe   :  { %1979 = vrot.lane.b32.xlu1 %v12574_v43, %s12924_s18 }
 0xbc2   :  { %1983 = vrot.lane.b32.xlu1 %v12574_v43, %s12923_s0 }
 0xbc3   :  { %v12576_v45 = vpop.eup %12575 }
 0xbc4   :  { %v2065_v47 = vadd.f32 1.0, %v12576_v45  ;;  %v12578_v9 = vpop.eup %12577 }
 0xbc6   :  { %12579 = vrcp.f32 %v2065_v47  ;;  %2071 = vrot.lane.b32.xlu1 %v12578_v9, %s12925_s19 }
 0xbd0   :  { %v12580_v48 = vpop.eup %12579 }
 0xbd1   :  { %2069 = vrot.lane.b32.xlu0 %v12580_v48, %s12924_s18 }
 0xbd5   :  { %2073 = vrot.lane.b32.xlu0 %v12580_v48, %s12923_s0 }
 0xc21   :  { %v1982_v51 = vpop.permute.xlu0 %1981 }
 0xc22   :  { %v1986_v53 = vmul.f32 %v12574_v43, %v1982_v51 }
 0xc30   :  { %v1980_v52 = vpop.permute.xlu1 %1979 }
 0xc31   :  { %v1985_v54 = vmul.f32 %v1980_v52, %v13716_v58 }
 0xc33   :  { %v13785_v55 = vadd.f32 %v1986_v53, %v1985_v54 }
 0xc34   :  { %v1984_v60 = vpop.permute.xlu1 %1983 }
 0xc35   :  { %12581 = vtanh.f32 %v13785_v55 }
 0xc38   :  { %v2072_v11 = vpop.permute.xlu1 %2071 }
 0xc39   :  { %v2076_v21 = vmul.f32 %v12580_v48, %v2072_v11 }
 0xc3f   :  { %v12582_v6 = vpop.eup %12581 }
 0xc40   :  { %v1989_v10 = vmul.f32 %v12582_v6, %v1984_v60 }
 0xc42   :  { %8771 = vmatmul.mubr.f32.vlgmr.msra.gmra.mrb[22].mxu1 %v1989_v10 }
 0xc43   :  { %11209 = vmatpush3.bf16.msra.mxu1 %v13004_v5  ;;  %v2070_v18 = vpop.permute.xlu0 %2069  ;;  %8840 = vmatprep.mubr.msk.f32.mxu1 %vm12921_vm0, %v12922_v1 }
 0xc44   :  { %v2075_v4 = vmul.f32 %v2070_v18, %v13720_v12  ;;  %11210 = vmatprep.subr.bf16.mxu1 %v12920_v0 }
 0xc46   :  { %v13793_v58 = vadd.f32 %v2076_v21, %v2075_v4 }
 0xc47   :  { %11212 = vmatpush3.bf16.msra.mxu1 %v13010_v7  ;;  %v2074_v12 = vpop.permute.xlu0 %2073 }
 0xc48   :  { %12583 = vtanh.f32 %v13793_v58  ;;  %11213 = vmatprep.subr.bf16.mxu1 %v12920_v0 }
 0xc4b   :  { %11215 = vmatpush3.bf16.msra.mxu1 %v13023_v14 }
 0xc4c   :  { %11216 = vmatprep.subr.bf16.mxu1 %v12920_v0 }
 0xc4f   :  { %11218 = vmatpush3.bf16.msra.mxu1 %v13037_v17 }
 0xc50   :  { %11219 = vmatprep.subr.bf16.mxu1 %v12920_v0 }
 0xc52   :  { %v12584_v59 = vpop.eup %12583 }
 0xc53   :  { %v2079_v62 = vmul.f32 %v12584_v59, %v2074_v12  ;;  %11221 = vmatpush3.bf16.msra.mxu1 %v13047_v20 }
 0xc54   :  { %11222 = vmatprep.subr.bf16.mxu1 %v12920_v0 }
 0xc55   :  { %8806 = vmatmul.mubr.f32.vlgmr.msra.gmra.mrb[36].mxu0 %v2079_v62 }
 0xc56   :  { %11233 = vmatpush3.bf16.msra.mxu0 %v13094_v33  ;;  %8875 = vmatprep.mubr.msk.f32.mxu0 %vm12921_vm0, %v12922_v1 }
 0xc57   :  { %11224 = vmatpush3.bf16.msra.mxu1 %v13057_v23  ;;  %11234 = vmatprep.subr.bf16.mxu0 %v12920_v0 }
 0xc58   :  { %11225 = vmatprep.subr.bf16.mxu1 %v12920_v0 }
 0xc5a   :  { %11236 = vmatpush3.bf16.msra.mxu0 %v13104_v36 }
 0xc5b   :  { %11227 = vmatpush3.bf16.msra.mxu1 %v13067_v26  ;;  %11237 = vmatprep.subr.bf16.mxu0 %v12920_v0 }
 0xc5c   :  { %11228 = vmatprep.subr.bf16.mxu1 %v12920_v0 }
 0xc5e   :  { %11239 = vmatpush3.bf16.msra.mxu0 %v13123_v41 }
 0xc5f   :  { %11230 = vmatpush3.bf16.msra.mxu1 %v13077_v29  ;;  %11240 = vmatprep.subr.bf16.mxu0 %v12920_v0 }
 0xc60   :  { %11255 = vmatprep.subr.bf16.mxu1 %v12920_v0 }
 0xc62   :  { %8841 = vmatmul.mubr.f32.vlgmr.msra.gmra.mrb[24].mxu1 %v2079_v62  ;;  %11242 = vmatpush3.bf16.msra.mxu0 %v13153_v50 }
 0xc63   :  { %11257 = vmatpush3.bf16.msra.mxu1 %v13140_v46  ;;  %11243 = vmatprep.subr.bf16.mxu0 %v12920_v0 }
 0xc64   :  { %11258 = vmatprep.subr.bf16.mxu1 %v12920_v0  ;;  %8910 = vmatprep.mubr.msk.f32.mxu1 %vm12921_vm0, %v12922_v1 }
 0xc66   :  { %11245 = vmatpush3.bf16.msra.mxu0 %v13179_v57 }
 0xc67   :  { %11260 = vmatpush3.bf16.msra.mxu1 %v13150_v49  ;;  %11246 = vmatprep.subr.bf16.mxu0 %v12920_v0 }
 0xc68   :  { %11261 = vmatprep.subr.bf16.mxu1 %v12920_v0 }
 0xc6a   :  { %11248 = vmatpush3.bf16.msra.mxu0 %v13197_v61 }
 0xc6b   :  { %11263 = vmatpush3.bf16.msra.mxu1 %v13176_v56  ;;  %11249 = vmatprep.subr.bf16.mxu0 %v12920_v0 }
 0xc6c   :  { %11264 = vmatprep.subr.bf16.mxu1 %v12920_v0 }
 0xc6e   :  { %11251 = vmatpush3.bf16.msra.mxu0 %v13214_v3 }
 0xc6f   :  { %11266 = vmatpush3.bf16.msra.mxu1 %v13262_v27  ;;  %11252 = vmatprep.subr.bf16.mxu0 %v12920_v0 }
 0xc70   :  { %11267 = vmatprep.subr.bf16.mxu1 %v12920_v0 }
 0xc72   :  { %11254 = vmatpush3.bf16.msra.mxu0 %v13226_v8 }
 0xc73   :  { %11269 = vmatpush3.bf16.msra.mxu1 %v13272_v31  ;;  %11279 = vmatprep.subr.bf16.mxu0 %v12920_v0 }
 0xc74   :  { %11270 = vmatprep.subr.bf16.mxu1 %v12920_v0 }
 0xc77   :  { %11272 = vmatpush3.bf16.msra.mxu1 %v13282_v35 }
 0xc78   :  { %11273 = vmatprep.subr.bf16.mxu1 %v12920_v0 }
 0xc7b   :  { %11275 = vmatpush3.bf16.msra.mxu1 %v13291_v39 }
 0xc7c   :  { %11276 = vmatprep.subr.bf16.mxu1 %v12920_v0 }
 0xc7f   :  { %11278 = vmatpush3.bf16.msra.mxu1 %v13303_v44 }
 0xc80   :  { %11303 = vmatprep.subr.bf16.mxu1 %v12920_v0 }
 0xd15   :  { %v2146_v16 = vpop.f32.mrb[22].mxu1 }
 0xd16   :  { %v8772_v63 = vpop.f32.mrb[23].mxu1 }
 0xd28   :  { %v2216_v2 = vpop.f32.mrb[36].mxu0 }
 0xd29   :  { %v2217_v13 = vadd.f32 %v2216_v2, %v2146_v16  ;;  %v8807_v15 = vpop.f32.mrb[37].mxu0 }
 0xd2b   :  { %v2220_v22 = vadd.f32 %v13706_v24, %v2217_v13 }
 0xd2d   :  { %v6606_v19 = vmul.f32 -1.442695, %v2220_v22  ;;  %12585 = vtanh.f32 %v2220_v22 }
 0xd2f   :  { %12587 = vpow2.f32 %v6606_v19 }
 0xd35   :  { %v2306_v28 = vpop.f32.mrb[24].mxu1 }
 0xd36   :  { %v2310_v30 = vadd.f32 %v2306_v28, %v2239_v25  ;;  %v8842_v32 = vpop.f32.mrb[25].mxu1 }
 0xd37   :  { %v12586_v34 = vpop.eup %12585 }
 0xd38   :  { %v6607_v37 = vmul.f32 -1.442695, %v2310_v30  ;;  %12589 = vtanh.f32 %v2310_v30  ;;  %2230 = vrot.lane.b32.xlu0 %v12586_v34, %s12925_s19  ;;  %v2488_v30 = vld [vmem:[#allocation2 + $0x12] sm:$0x3] }
 0xd39   :  { %v12588_v38 = vpop.eup %12587 }
 0xd3a   :  { %v2224_v40 = vadd.f32 1.0, %v12588_v38  ;;  %12591 = vpow2.f32 %v6607_v37 }
 0xd3c   :  { %12593 = vrcp.f32 %v2224_v40 }
 0xd42   :  { %v12590_v42 = vpop.eup %12589 }
 0xd43   :  { %2320 = vrot.lane.b32.xlu0 %v12590_v42, %s12925_s19 }
 0xd44   :  { %v12592_v43 = vpop.eup %12591 }
 0xd45   :  { %v2314_v45 = vadd.f32 1.0, %v12592_v43 }
 0xd46   :  { %v12594_v47 = vpop.eup %12593 }
 0xd47   :  { %12595 = vrcp.f32 %v2314_v45  ;;  %2228 = vrot.lane.b32.xlu1 %v12594_v47, %s12924_s18 }
 0xd51   :  { %v12596_v9 = vpop.eup %12595 }
 0xd52   :  { %2322 = vrot.lane.b32.xlu0 %v12596_v9, %s12923_s0  ;;  %2318 = vrot.lane.b32.xlu1 %v12596_v9, %s12924_s18 }
 0xd56   :  { %2232 = vrot.lane.b32.xlu1 %v12594_v47, %s12923_s0 }
 0xdaa   :  { %v2231_v48 = vpop.permute.xlu0 %2230 }
 0xdab   :  { %v2235_v52 = vmul.f32 %v12594_v47, %v2231_v48 }
 0xdb5   :  { %v2321_v60 = vpop.permute.xlu0 %2320 }
 0xdb6   :  { %v2325_v10 = vmul.f32 %v12596_v9, %v2321_v60 }
 0xdb9   :  { %v2229_v51 = vpop.permute.xlu1 %2228 }
 0xdba   :  { %v2234_v53 = vmul.f32 %v2229_v51, %v13785_v55 }
 0xdbc   :  { %v13854_v54 = vadd.f32 %v2235_v52, %v2234_v53 }
 0xdbe   :  { %12597 = vtanh.f32 %v13854_v54 }
 0xdc4   :  { %v2319_v6 = vpop.permute.xlu1 %2318 }
 0xdc5   :  { %v2324_v11 = vmul.f32 %v2319_v6, %v13793_v58  ;;  %v2323_v58 = vpop.permute.xlu0 %2322 }
 0xdc7   :  { %v13858_v18 = vadd.f32 %v2325_v10, %v2324_v11 }
 0xdc8   :  { %v12598_v21 = vpop.eup %12597  ;;  %v2233_v4 = vpop.permute.xlu1 %2232 }
 0xdc9   :  { %12599 = vtanh.f32 %v13858_v18  ;;  %v2238_v59 = vmul.f32 %v12598_v21, %v2233_v4 }
 0xdcb   :  { %8876 = vmatmul.mubr.f32.vlgmr.msra.gmra.mrb[38].mxu0 %v2238_v59 }
 0xdcc   :  { %11281 = vmatpush3.bf16.msra.mxu0 %v13004_v5  ;;  %8945 = vmatprep.mubr.msk.f32.mxu0 %vm12921_vm0, %v12922_v1 }
 0xdcd   :  { %11282 = vmatprep.subr.bf16.mxu0 %v12920_v0 }
 0xdd0   :  { %11284 = vmatpush3.bf16.msra.mxu0 %v13010_v7 }
 0xdd1   :  { %11285 = vmatprep.subr.bf16.mxu0 %v12920_v0 }
 0xdd3   :  { %v12600_v55 = vpop.eup %12599 }
 0xdd4   :  { %11287 = vmatpush3.bf16.msra.mxu0 %v13023_v14  ;;  %v2328_v12 = vmul.f32 %v12600_v55, %v2323_v58 }
 0xdd5   :  { %11288 = vmatprep.subr.bf16.mxu0 %v12920_v0 }
 0xdd6   :  { %8911 = vmatmul.mubr.f32.vlgmr.msra.gmra.mrb[26].mxu1 %v2328_v12 }
 0xdd7   :  { %11305 = vmatpush3.bf16.msra.mxu1 %v13094_v33  ;;  %8980 = vmatprep.mubr.msk.f32.mxu1 %vm12921_vm0, %v12922_v1 }
 0xdd8   :  { %11290 = vmatpush3.bf16.msra.mxu0 %v13037_v17  ;;  %11306 = vmatprep.subr.bf16.mxu1 %v12920_v0 }
 0xdd9   :  { %11291 = vmatprep.subr.bf16.mxu0 %v12920_v0 }
 0xddb   :  { %11308 = vmatpush3.bf16.msra.mxu1 %v13104_v36 }
 0xddc   :  { %11293 = vmatpush3.bf16.msra.mxu0 %v13047_v20  ;;  %11309 = vmatprep.subr.bf16.mxu1 %v12920_v0 }
 0xddd   :  { %11294 = vmatprep.subr.bf16.mxu0 %v12920_v0 }
 0xddf   :  { %11311 = vmatpush3.bf16.msra.mxu1 %v13123_v41 }
 0xde0   :  { %11296 = vmatpush3.bf16.msra.mxu0 %v13057_v23  ;;  %11312 = vmatprep.subr.bf16.mxu1 %v12920_v0 }
 0xde1   :  { %11297 = vmatprep.subr.bf16.mxu0 %v12920_v0 }
 0xde3   :  { %11314 = vmatpush3.bf16.msra.mxu1 %v13153_v50 }
 0xde4   :  { %11299 = vmatpush3.bf16.msra.mxu0 %v13067_v26  ;;  %11315 = vmatprep.subr.bf16.mxu1 %v12920_v0 }
 0xde5   :  { %11300 = vmatprep.subr.bf16.mxu0 %v12920_v0 }
 0xde7   :  { %11317 = vmatpush3.bf16.msra.mxu1 %v13179_v57 }
 0xde8   :  { %11302 = vmatpush3.bf16.msra.mxu0 %v13077_v29  ;;  %11318 = vmatprep.subr.bf16.mxu1 %v12920_v0 }
 0xde9   :  { %11327 = vmatprep.subr.bf16.mxu0 %v12920_v0 }
 0xdeb   :  { %8946 = vmatmul.mubr.f32.vlgmr.msra.gmra.mrb[40].mxu0 %v2328_v12  ;;  %11320 = vmatpush3.bf16.msra.mxu1 %v13197_v61 }
 0xdec   :  { %11329 = vmatpush3.bf16.msra.mxu0 %v13140_v46  ;;  %11321 = vmatprep.subr.bf16.mxu1 %v12920_v0 }
 0xded   :  { %11330 = vmatprep.subr.bf16.mxu0 %v12920_v0  ;;  %9015 = vmatprep.mubr.msk.f32.mxu0 %vm12921_vm0, %v12922_v1 }
 0xdef   :  { %11323 = vmatpush3.bf16.msra.mxu1 %v13214_v3 }
 0xdf0   :  { %11332 = vmatpush3.bf16.msra.mxu0 %v13150_v49  ;;  %11324 = vmatprep.subr.bf16.mxu1 %v12920_v0 }
 0xdf1   :  { %11333 = vmatprep.subr.bf16.mxu0 %v12920_v0 }
 0xdf3   :  { %11326 = vmatpush3.bf16.msra.mxu1 %v13226_v8 }
 0xdf4   :  { %11335 = vmatpush3.bf16.msra.mxu0 %v13176_v56  ;;  %11351 = vmatprep.subr.bf16.mxu1 %v12920_v0 }
 0xdf5   :  { %11336 = vmatprep.subr.bf16.mxu0 %v12920_v0 }
 0xdf8   :  { %11338 = vmatpush3.bf16.msra.mxu0 %v13262_v27 }
 0xdf9   :  { %11339 = vmatprep.subr.bf16.mxu0 %v12920_v0 }
 0xdfc   :  { %11341 = vmatpush3.bf16.msra.mxu0 %v13272_v31 }
 0xdfd   :  { %11342 = vmatprep.subr.bf16.mxu0 %v12920_v0 }
 0xe00   :  { %11344 = vmatpush3.bf16.msra.mxu0 %v13282_v35 }
 0xe01   :  { %11345 = vmatprep.subr.bf16.mxu0 %v12920_v0 }
 0xe04   :  { %11347 = vmatpush3.bf16.msra.mxu0 %v13291_v39 }
 0xe05   :  { %11348 = vmatprep.subr.bf16.mxu0 %v12920_v0 }
 0xe08   :  { %11350 = vmatpush3.bf16.msra.mxu0 %v13303_v44 }
 0xe09   :  { %11375 = vmatprep.subr.bf16.mxu0 %v12920_v0 }
 0xe9e   :  { %v2395_v62 = vpop.f32.mrb[38].mxu0 }
 0xe9f   :  { %v8877_v16 = vpop.f32.mrb[39].mxu0 }
 0xea9   :  { %v2465_v63 = vpop.f32.mrb[26].mxu1 }
 0xeaa   :  { %v2466_v2 = vadd.f32 %v2465_v63, %v2395_v62  ;;  %v8912_v13 = vpop.f32.mrb[27].mxu1 }
 0xeac   :  { %v2469_v15 = vadd.f32 %v13706_v24, %v2466_v2 }
 0xeae   :  { %v6608_v22 = vmul.f32 -1.442695, %v2469_v15  ;;  %12601 = vtanh.f32 %v2469_v15 }
 0xeb0   :  { %12603 = vpow2.f32 %v6608_v22  ;;  %v2737_v22 = vld [vmem:[#allocation2 + $0x14] sm:$0x3] }
 0xeb8   :  { %v12602_v19 = vpop.eup %12601 }
 0xeb9   :  { %2479 = vrot.lane.b32.xlu0 %v12602_v19, %s12925_s19 }
 0xeba   :  { %v12604_v25 = vpop.eup %12603 }
 0xebb   :  { %v2473_v28 = vadd.f32 1.0, %v12604_v25 }
 0xebd   :  { %12605 = vrcp.f32 %v2473_v28 }
 0xebe   :  { %v2555_v32 = vpop.f32.mrb[40].mxu0 }
 0xebf   :  { %v2559_v34 = vadd.f32 %v2555_v32, %v2488_v30  ;;  %v8947_v37 = vpop.f32.mrb[41].mxu0 }
 0xec1   :  { %v6609_v38 = vmul.f32 -1.442695, %v2559_v34 }
 0xec3   :  { %12607 = vpow2.f32 %v6609_v38 }
 0xec4   :  { %12609 = vtanh.f32 %v2559_v34 }
 0xec7   :  { %v12606_v40 = vpop.eup %12605 }
 0xec8   :  { %2477 = vrot.lane.b32.xlu1 %v12606_v40, %s12924_s18 }
 0xecc   :  { %2481 = vrot.lane.b32.xlu1 %v12606_v40, %s12923_s0 }
 0xecd   :  { %v12608_v42 = vpop.eup %12607 }
 0xece   :  { %v2563_v43 = vadd.f32 1.0, %v12608_v42  ;;  %v12610_v45 = vpop.eup %12609 }
 0xed0   :  { %12611 = vrcp.f32 %v2563_v43  ;;  %2569 = vrot.lane.b32.xlu1 %v12610_v45, %s12925_s19 }
 0xeda   :  { %v12612_v47 = vpop.eup %12611 }
 0xedb   :  { %2567 = vrot.lane.b32.xlu0 %v12612_v47, %s12924_s18 }
 0xedf   :  { %2571 = vrot.lane.b32.xlu0 %v12612_v47, %s12923_s0 }
 0xf2b   :  { %v2480_v9 = vpop.permute.xlu0 %2479 }
 0xf2c   :  { %v2484_v51 = vmul.f32 %v12606_v40, %v2480_v9 }
 0xf3a   :  { %v2478_v48 = vpop.permute.xlu1 %2477 }
 0xf3b   :  { %v2483_v52 = vmul.f32 %v2478_v48, %v13854_v54 }
 0xf3d   :  { %v13923_v53 = vadd.f32 %v2484_v51, %v2483_v52 }
 0xf3e   :  { %v2482_v60 = vpop.permute.xlu1 %2481 }
 0xf3f   :  { %12613 = vtanh.f32 %v13923_v53 }
 0xf42   :  { %v2570_v11 = vpop.permute.xlu1 %2569 }
 0xf43   :  { %v2574_v4 = vmul.f32 %v12612_v47, %v2570_v11 }
 0xf49   :  { %v12614_v6 = vpop.eup %12613 }
 0xf4a   :  { %v2487_v10 = vmul.f32 %v12614_v6, %v2482_v60 }
 0xf4c   :  { %8981 = vmatmul.mubr.f32.vlgmr.msra.gmra.mrb[28].mxu1 %v2487_v10 }
 0xf4d   :  { %11353 = vmatpush3.bf16.msra.mxu1 %v13004_v5  ;;  %v2568_v21 = vpop.permute.xlu0 %2567  ;;  %9050 = vmatprep.mubr.msk.f32.mxu1 %vm12921_vm0, %v12922_v1 }
 0xf4e   :  { %v2573_v59 = vmul.f32 %v2568_v21, %v13858_v18  ;;  %11354 = vmatprep.subr.bf16.mxu1 %v12920_v0 }
 0xf50   :  { %v13931_v54 = vadd.f32 %v2574_v4, %v2573_v59 }
 0xf51   :  { %11356 = vmatpush3.bf16.msra.mxu1 %v13010_v7  ;;  %v2572_v18 = vpop.permute.xlu0 %2571 }
 0xf52   :  { %12615 = vtanh.f32 %v13931_v54  ;;  %11357 = vmatprep.subr.bf16.mxu1 %v12920_v0 }
 0xf55   :  { %11359 = vmatpush3.bf16.msra.mxu1 %v13023_v14 }
 0xf56   :  { %11360 = vmatprep.subr.bf16.mxu1 %v12920_v0 }
 0xf59   :  { %11362 = vmatpush3.bf16.msra.mxu1 %v13037_v17 }
 0xf5a   :  { %11363 = vmatprep.subr.bf16.mxu1 %v12920_v0 }
 0xf5c   :  { %v12616_v55 = vpop.eup %12615 }
 0xf5d   :  { %v2577_v58 = vmul.f32 %v12616_v55, %v2572_v18  ;;  %11365 = vmatpush3.bf16.msra.mxu1 %v13047_v20 }
 0xf5e   :  { %11366 = vmatprep.subr.bf16.mxu1 %v12920_v0 }
 0xf5f   :  { %9016 = vmatmul.mubr.f32.vlgmr.msra.gmra.mrb[42].mxu0 %v2577_v58 }
 0xf60   :  { %11377 = vmatpush3.bf16.msra.mxu0 %v13094_v33  ;;  %9085 = vmatprep.mubr.msk.f32.mxu0 %vm12921_vm0, %v12922_v1 }
 0xf61   :  { %11368 = vmatpush3.bf16.msra.mxu1 %v13057_v23  ;;  %11378 = vmatprep.subr.bf16.mxu0 %v12920_v0 }
 0xf62   :  { %11369 = vmatprep.subr.bf16.mxu1 %v12920_v0 }
 0xf64   :  { %11380 = vmatpush3.bf16.msra.mxu0 %v13104_v36 }
 0xf65   :  { %11371 = vmatpush3.bf16.msra.mxu1 %v13067_v26  ;;  %11381 = vmatprep.subr.bf16.mxu0 %v12920_v0 }
 0xf66   :  { %11372 = vmatprep.subr.bf16.mxu1 %v12920_v0 }
 0xf68   :  { %11383 = vmatpush3.bf16.msra.mxu0 %v13123_v41 }
 0xf69   :  { %11374 = vmatpush3.bf16.msra.mxu1 %v13077_v29  ;;  %11384 = vmatprep.subr.bf16.mxu0 %v12920_v0 }
 0xf6a   :  { %11399 = vmatprep.subr.bf16.mxu1 %v12920_v0 }
 0xf6c   :  { %9051 = vmatmul.mubr.f32.vlgmr.msra.gmra.mrb[30].mxu1 %v2577_v58  ;;  %11386 = vmatpush3.bf16.msra.mxu0 %v13153_v50 }
 0xf6d   :  { %11401 = vmatpush3.bf16.msra.mxu1 %v13140_v46  ;;  %11387 = vmatprep.subr.bf16.mxu0 %v12920_v0 }
 0xf6e   :  { %11402 = vmatprep.subr.bf16.mxu1 %v12920_v0  ;;  %9120 = vmatprep.mubr.msk.f32.mxu1 %vm12921_vm0, %v12922_v1 }
 0xf70   :  { %11389 = vmatpush3.bf16.msra.mxu0 %v13179_v57 }
 0xf71   :  { %11404 = vmatpush3.bf16.msra.mxu1 %v13150_v49  ;;  %11390 = vmatprep.subr.bf16.mxu0 %v12920_v0 }
 0xf72   :  { %11405 = vmatprep.subr.bf16.mxu1 %v12920_v0 }
 0xf74   :  { %11392 = vmatpush3.bf16.msra.mxu0 %v13197_v61 }
 0xf75   :  { %11407 = vmatpush3.bf16.msra.mxu1 %v13176_v56  ;;  %11393 = vmatprep.subr.bf16.mxu0 %v12920_v0 }
 0xf76   :  { %11408 = vmatprep.subr.bf16.mxu1 %v12920_v0 }
 0xf78   :  { %11395 = vmatpush3.bf16.msra.mxu0 %v13214_v3 }
 0xf79   :  { %11410 = vmatpush3.bf16.msra.mxu1 %v13262_v27  ;;  %11396 = vmatprep.subr.bf16.mxu0 %v12920_v0 }
 0xf7a   :  { %11411 = vmatprep.subr.bf16.mxu1 %v12920_v0 }
 0xf7c   :  { %11398 = vmatpush3.bf16.msra.mxu0 %v13226_v8 }
 0xf7d   :  { %11413 = vmatpush3.bf16.msra.mxu1 %v13272_v31  ;;  %11423 = vmatprep.subr.bf16.mxu0 %v12920_v0 }
 0xf7e   :  { %11414 = vmatprep.subr.bf16.mxu1 %v12920_v0 }
 0xf81   :  { %11416 = vmatpush3.bf16.msra.mxu1 %v13282_v35 }
 0xf82   :  { %11417 = vmatprep.subr.bf16.mxu1 %v12920_v0 }
 0xf85   :  { %11419 = vmatpush3.bf16.msra.mxu1 %v13291_v39 }
 0xf86   :  { %11420 = vmatprep.subr.bf16.mxu1 %v12920_v0 }
 0xf89   :  { %11422 = vmatpush3.bf16.msra.mxu1 %v13303_v44 }
 0xf8a   :  { %11447 = vmatprep.subr.bf16.mxu1 %v12920_v0 }
0x101f   :  { %v2644_v12 = vpop.f32.mrb[28].mxu1 }
0x1020   :  { %v8982_v62 = vpop.f32.mrb[29].mxu1 }
0x1032   :  { %v2714_v16 = vpop.f32.mrb[42].mxu0 }
0x1033   :  { %v2715_v63 = vadd.f32 %v2714_v16, %v2644_v12  ;;  %v9017_v2 = vpop.f32.mrb[43].mxu0 }
0x1035   :  { %v2718_v13 = vadd.f32 %v13706_v24, %v2715_v63  ;;  %v14056_v63 = vld [vmem:[%s15059_s6] ss:$0 sm:$0xff] }
0x1037   :  { %v6610_v15 = vmul.f32 -1.442695, %v2718_v13  ;;  %12617 = vtanh.f32 %v2718_v13 }
0x1039   :  { %12619 = vpow2.f32 %v6610_v15 }
0x103f   :  { %v2804_v19 = vpop.f32.mrb[30].mxu1 }
0x1040   :  { %v2808_v25 = vadd.f32 %v2804_v19, %v2737_v22  ;;  %v9052_v28 = vpop.f32.mrb[31].mxu1 }
0x1041   :  { %v12618_v30 = vpop.eup %12617 }
0x1042   :  { %v6611_v32 = vmul.f32 -1.442695, %v2808_v25  ;;  %12621 = vtanh.f32 %v2808_v25  ;;  %2728 = vrot.lane.b32.xlu0 %v12618_v30, %s12925_s19  ;;  %v2986_v25 = vld [vmem:[#allocation2 + $0x16] sm:$0x3] }
0x1043   :  { %v12620_v34 = vpop.eup %12619 }
0x1044   :  { %v2722_v37 = vadd.f32 1.0, %v12620_v34  ;;  %12623 = vpow2.f32 %v6611_v32 }
0x1046   :  { %12625 = vrcp.f32 %v2722_v37 }
0x104c   :  { %v12622_v38 = vpop.eup %12621 }
0x104d   :  { %2818 = vrot.lane.b32.xlu0 %v12622_v38, %s12925_s19 }
0x104e   :  { %v12624_v24 = vpop.eup %12623 }
0x104f   :  { %v2812_v40 = vadd.f32 1.0, %v12624_v24 }
0x1050   :  { %v12626_v42 = vpop.eup %12625 }
0x1051   :  { %12627 = vrcp.f32 %v2812_v40  ;;  %2726 = vrot.lane.b32.xlu1 %v12626_v42, %s12924_s18 }
0x105b   :  { %v12628_v43 = vpop.eup %12627 }
0x105c   :  { %2820 = vrot.lane.b32.xlu0 %v12628_v43, %s12923_s0  ;;  %2816 = vrot.lane.b32.xlu1 %v12628_v43, %s12924_s18 }
0x1060   :  { %2730 = vrot.lane.b32.xlu1 %v12626_v42, %s12923_s0 }
0x10b4   :  { %v2729_v45 = vpop.permute.xlu0 %2728 }
0x10b5   :  { %v2733_v9 = vmul.f32 %v12626_v42, %v2729_v45 }
0x10bf   :  { %v2819_v52 = vpop.permute.xlu0 %2818 }
0x10c0   :  { %v2823_v6 = vmul.f32 %v12628_v43, %v2819_v52 }
0x10c3   :  { %v2727_v47 = vpop.permute.xlu1 %2726 }
0x10c4   :  { %v2732_v48 = vmul.f32 %v2727_v47, %v13923_v53 }
0x10c6   :  { %v13992_v51 = vadd.f32 %v2733_v9, %v2732_v48 }
0x10c8   :  { %12629 = vtanh.f32 %v13992_v51 }
0x10ce   :  { %v2817_v60 = vpop.permute.xlu1 %2816 }
0x10cf   :  { %v2822_v10 = vmul.f32 %v2817_v60, %v13931_v54  ;;  %v2821_v54 = vpop.permute.xlu0 %2820 }
0x10d1   :  { %v13996_v11 = vadd.f32 %v2823_v6, %v2822_v10 }
0x10d2   :  { %v12630_v21 = vpop.eup %12629  ;;  %v2731_v4 = vpop.permute.xlu1 %2730 }
0x10d3   :  { %12631 = vtanh.f32 %v13996_v11  ;;  %v2736_v59 = vmul.f32 %v12630_v21, %v2731_v4 }
0x10d5   :  { %9086 = vmatmul.mubr.f32.vlgmr.msra.gmra.mrb[44].mxu0 %v2736_v59 }
0x10d6   :  { %11425 = vmatpush3.bf16.msra.mxu0 %v13004_v5  ;;  %9155 = vmatprep.mubr.msk.f32.mxu0 %vm12921_vm0, %v12922_v1 }
0x10d7   :  { %11426 = vmatprep.subr.bf16.mxu0 %v12920_v0 }
0x10da   :  { %11428 = vmatpush3.bf16.msra.mxu0 %v13010_v7 }
0x10db   :  { %11429 = vmatprep.subr.bf16.mxu0 %v12920_v0 }
0x10dd   :  { %v12632_v53 = vpop.eup %12631 }
0x10de   :  { %11431 = vmatpush3.bf16.msra.mxu0 %v13023_v14  ;;  %v2826_v55 = vmul.f32 %v12632_v53, %v2821_v54 }
0x10df   :  { %11432 = vmatprep.subr.bf16.mxu0 %v12920_v0 }
0x10e0   :  { %9121 = vmatmul.mubr.f32.vlgmr.msra.gmra.mrb[32].mxu1 %v2826_v55 }
0x10e1   :  { %11449 = vmatpush3.bf16.msra.mxu1 %v13094_v33  ;;  %9190 = vmatprep.mubr.msk.f32.mxu1 %vm12921_vm0, %v12922_v1 }
0x10e2   :  { %11434 = vmatpush3.bf16.msra.mxu0 %v13037_v17  ;;  %11450 = vmatprep.subr.bf16.mxu1 %v12920_v0 }
0x10e3   :  { %11435 = vmatprep.subr.bf16.mxu0 %v12920_v0 }
0x10e5   :  { %11452 = vmatpush3.bf16.msra.mxu1 %v13104_v36 }
0x10e6   :  { %11437 = vmatpush3.bf16.msra.mxu0 %v13047_v20  ;;  %11453 = vmatprep.subr.bf16.mxu1 %v12920_v0 }
0x10e7   :  { %11438 = vmatprep.subr.bf16.mxu0 %v12920_v0 }
0x10e9   :  { %11455 = vmatpush3.bf16.msra.mxu1 %v13123_v41 }
0x10ea   :  { %11440 = vmatpush3.bf16.msra.mxu0 %v13057_v23  ;;  %11456 = vmatprep.subr.bf16.mxu1 %v12920_v0 }
0x10eb   :  { %11441 = vmatprep.subr.bf16.mxu0 %v12920_v0 }
0x10ed   :  { %11458 = vmatpush3.bf16.msra.mxu1 %v13153_v50 }
0x10ee   :  { %11443 = vmatpush3.bf16.msra.mxu0 %v13067_v26  ;;  %11459 = vmatprep.subr.bf16.mxu1 %v12920_v0 }
0x10ef   :  { %11444 = vmatprep.subr.bf16.mxu0 %v12920_v0 }
0x10f1   :  { %11461 = vmatpush3.bf16.msra.mxu1 %v13179_v57 }
0x10f2   :  { %11446 = vmatpush3.bf16.msra.mxu0 %v13077_v29  ;;  %11462 = vmatprep.subr.bf16.mxu1 %v12920_v0 }
0x10f3   :  { %11471 = vmatprep.subr.bf16.mxu0 %v12920_v0 }
0x10f5   :  { %9156 = vmatmul.mubr.f32.vlgmr.msra.gmra.mrb[46].mxu0 %v2826_v55  ;;  %11464 = vmatpush3.bf16.msra.mxu1 %v13197_v61 }
0x10f6   :  { %11473 = vmatpush3.bf16.msra.mxu0 %v13140_v46  ;;  %11465 = vmatprep.subr.bf16.mxu1 %v12920_v0 }
0x10f7   :  { %11474 = vmatprep.subr.bf16.mxu0 %v12920_v0  ;;  %9225 = vmatprep.mubr.msk.f32.mxu0 %vm12921_vm0, %v12922_v1 }
0x10f9   :  { %11467 = vmatpush3.bf16.msra.mxu1 %v13214_v3 }
0x10fa   :  { %11476 = vmatpush3.bf16.msra.mxu0 %v13150_v49  ;;  %11468 = vmatprep.subr.bf16.mxu1 %v12920_v0 }
0x10fb   :  { %11477 = vmatprep.subr.bf16.mxu0 %v12920_v0 }
0x10fd   :  { %11470 = vmatpush3.bf16.msra.mxu1 %v13226_v8 }
0x10fe   :  { %11479 = vmatpush3.bf16.msra.mxu0 %v13176_v56  ;;  %11495 = vmatprep.subr.bf16.mxu1 %v12920_v0 }
0x10ff   :  { %11480 = vmatprep.subr.bf16.mxu0 %v12920_v0 }
0x1102   :  { %11482 = vmatpush3.bf16.msra.mxu0 %v13262_v27 }
0x1103   :  { %11483 = vmatprep.subr.bf16.mxu0 %v12920_v0 }
0x1106   :  { %11485 = vmatpush3.bf16.msra.mxu0 %v13272_v31 }
0x1107   :  { %11486 = vmatprep.subr.bf16.mxu0 %v12920_v0 }
0x110a   :  { %11488 = vmatpush3.bf16.msra.mxu0 %v13282_v35 }
0x110b   :  { %11489 = vmatprep.subr.bf16.mxu0 %v12920_v0 }
0x110e   :  { %11491 = vmatpush3.bf16.msra.mxu0 %v13291_v39 }
0x110f   :  { %11492 = vmatprep.subr.bf16.mxu0 %v12920_v0 }
0x1112   :  { %11494 = vmatpush3.bf16.msra.mxu0 %v13303_v44 }
0x1113   :  { %11519 = vmatprep.subr.bf16.mxu0 %v12920_v0 }
0x11a8   :  { %v2893_v18 = vpop.f32.mrb[44].mxu0 }
0x11a9   :  { %v9087_v58 = vpop.f32.mrb[45].mxu0 }
0x11b3   :  { %v2963_v12 = vpop.f32.mrb[32].mxu1 }
0x11b4   :  { %v2964_v62 = vadd.f32 %v2963_v12, %v2893_v18  ;;  %v9122_v16 = vpop.f32.mrb[33].mxu1 }
0x11b6   :  { %v2967_v2 = vadd.f32 %v14056_v63, %v2964_v62 }
0x11b8   :  { %v6612_v13 = vmul.f32 -1.442695, %v2967_v2  ;;  %12633 = vtanh.f32 %v2967_v2 }
0x11ba   :  { %12635 = vpow2.f32 %v6612_v13  ;;  %v3235_v13 = vld [vmem:[#allocation2 + $0x18] sm:$0x3] }
0x11c2   :  { %v12634_v15 = vpop.eup %12633 }
0x11c3   :  { %2977 = vrot.lane.b32.xlu0 %v12634_v15, %s12925_s19 }
0x11c4   :  { %v12636_v22 = vpop.eup %12635 }
0x11c5   :  { %v2971_v19 = vadd.f32 1.0, %v12636_v22 }
0x11c7   :  { %12637 = vrcp.f32 %v2971_v19 }
0x11c8   :  { %v3053_v28 = vpop.f32.mrb[46].mxu0 }
0x11c9   :  { %v3057_v30 = vadd.f32 %v3053_v28, %v2986_v25  ;;  %v9157_v32 = vpop.f32.mrb[47].mxu0 }
0x11cb   :  { %v6613_v34 = vmul.f32 -1.442695, %v3057_v30 }
0x11cd   :  { %12639 = vpow2.f32 %v6613_v34 }
0x11ce   :  { %12641 = vtanh.f32 %v3057_v30 }
0x11d1   :  { %v12638_v37 = vpop.eup %12637 }
0x11d2   :  { %2975 = vrot.lane.b32.xlu1 %v12638_v37, %s12924_s18 }
0x11d6   :  { %2979 = vrot.lane.b32.xlu1 %v12638_v37, %s12923_s0 }
0x11d7   :  { %v12640_v38 = vpop.eup %12639 }
0x11d8   :  { %v3061_v24 = vadd.f32 1.0, %v12640_v38  ;;  %v12642_v40 = vpop.eup %12641 }
0x11da   :  { %12643 = vrcp.f32 %v3061_v24  ;;  %3067 = vrot.lane.b32.xlu1 %v12642_v40, %s12925_s19 }
0x11e4   :  { %v12644_v42 = vpop.eup %12643 }
0x11e5   :  { %3065 = vrot.lane.b32.xlu0 %v12644_v42, %s12924_s18 }
0x11e9   :  { %3069 = vrot.lane.b32.xlu0 %v12644_v42, %s12923_s0 }
0x1235   :  { %v2978_v43 = vpop.permute.xlu0 %2977 }
0x1236   :  { %v2982_v47 = vmul.f32 %v12638_v37, %v2978_v43 }
0x1244   :  { %v2976_v45 = vpop.permute.xlu1 %2975 }
0x1245   :  { %v2981_v9 = vmul.f32 %v2976_v45, %v13992_v51 }
0x1247   :  { %v14066_v48 = vadd.f32 %v2982_v47, %v2981_v9 }
0x1248   :  { %v2980_v52 = vpop.permute.xlu1 %2979 }
0x1249   :  { %12645 = vtanh.f32 %v14066_v48 }
0x124c   :  { %v3068_v10 = vpop.permute.xlu1 %3067 }
0x124d   :  { %v3072_v4 = vmul.f32 %v12644_v42, %v3068_v10 }
0x1253   :  { %v12646_v60 = vpop.eup %12645 }
0x1254   :  { %v2985_v6 = vmul.f32 %v12646_v60, %v2980_v52 }
0x1256   :  { %9191 = vmatmul.mubr.f32.vlgmr.msra.gmra.mrb[34].mxu1 %v2985_v6 }
0x1257   :  { %11497 = vmatpush3.bf16.msra.mxu1 %v13004_v5  ;;  %v3066_v21 = vpop.permute.xlu0 %3065  ;;  %9260 = vmatprep.mubr.msk.f32.mxu1 %vm12921_vm0, %v12922_v1 }
0x1258   :  { %v3071_v59 = vmul.f32 %v3066_v21, %v13996_v11  ;;  %11498 = vmatprep.subr.bf16.mxu1 %v12920_v0 }
0x125a   :  { %v14074_v51 = vadd.f32 %v3072_v4, %v3071_v59 }
0x125b   :  { %11500 = vmatpush3.bf16.msra.mxu1 %v13010_v7  ;;  %v3070_v11 = vpop.permute.xlu0 %3069 }
0x125c   :  { %12647 = vtanh.f32 %v14074_v51  ;;  %11501 = vmatprep.subr.bf16.mxu1 %v12920_v0 }
0x125f   :  { %11503 = vmatpush3.bf16.msra.mxu1 %v13023_v14 }
0x1260   :  { %11504 = vmatprep.subr.bf16.mxu1 %v12920_v0 }
0x1263   :  { %11506 = vmatpush3.bf16.msra.mxu1 %v13037_v17 }
0x1264   :  { %11507 = vmatprep.subr.bf16.mxu1 %v12920_v0 }
0x1266   :  { %v12648_v53 = vpop.eup %12647 }
0x1267   :  { %v3075_v54 = vmul.f32 %v12648_v53, %v3070_v11  ;;  %11509 = vmatpush3.bf16.msra.mxu1 %v13047_v20 }
0x1268   :  { %11510 = vmatprep.subr.bf16.mxu1 %v12920_v0 }
0x1269   :  { %9226 = vmatmul.mubr.f32.vlgmr.msra.gmra.mrb[48].mxu0 %v3075_v54 }
0x126a   :  { %11521 = vmatpush3.bf16.msra.mxu0 %v13094_v33  ;;  %9295 = vmatprep.mubr.msk.f32.mxu0 %vm12921_vm0, %v12922_v1 }
0x126b   :  { %11512 = vmatpush3.bf16.msra.mxu1 %v13057_v23  ;;  %11522 = vmatprep.subr.bf16.mxu0 %v12920_v0 }
0x126c   :  { %11513 = vmatprep.subr.bf16.mxu1 %v12920_v0 }
0x126e   :  { %11524 = vmatpush3.bf16.msra.mxu0 %v13104_v36 }
0x126f   :  { %11515 = vmatpush3.bf16.msra.mxu1 %v13067_v26  ;;  %11525 = vmatprep.subr.bf16.mxu0 %v12920_v0 }
0x1270   :  { %11516 = vmatprep.subr.bf16.mxu1 %v12920_v0 }
0x1272   :  { %11527 = vmatpush3.bf16.msra.mxu0 %v13123_v41 }
0x1273   :  { %11518 = vmatpush3.bf16.msra.mxu1 %v13077_v29  ;;  %11528 = vmatprep.subr.bf16.mxu0 %v12920_v0 }
0x1274   :  { %11543 = vmatprep.subr.bf16.mxu1 %v12920_v0 }
0x1276   :  { %9261 = vmatmul.mubr.f32.vlgmr.msra.gmra.mrb[36].mxu1 %v3075_v54  ;;  %11530 = vmatpush3.bf16.msra.mxu0 %v13153_v50 }
0x1277   :  { %11545 = vmatpush3.bf16.msra.mxu1 %v13140_v46  ;;  %11531 = vmatprep.subr.bf16.mxu0 %v12920_v0 }
0x1278   :  { %11546 = vmatprep.subr.bf16.mxu1 %v12920_v0  ;;  %9330 = vmatprep.mubr.msk.f32.mxu1 %vm12921_vm0, %v12922_v1 }
0x127a   :  { %11533 = vmatpush3.bf16.msra.mxu0 %v13179_v57 }
0x127b   :  { %11548 = vmatpush3.bf16.msra.mxu1 %v13150_v49  ;;  %11534 = vmatprep.subr.bf16.mxu0 %v12920_v0 }
0x127c   :  { %11549 = vmatprep.subr.bf16.mxu1 %v12920_v0 }
0x127e   :  { %11536 = vmatpush3.bf16.msra.mxu0 %v13197_v61 }
0x127f   :  { %11551 = vmatpush3.bf16.msra.mxu1 %v13176_v56  ;;  %11537 = vmatprep.subr.bf16.mxu0 %v12920_v0 }
0x1280   :  { %11552 = vmatprep.subr.bf16.mxu1 %v12920_v0 }
0x1282   :  { %11539 = vmatpush3.bf16.msra.mxu0 %v13214_v3 }
0x1283   :  { %11554 = vmatpush3.bf16.msra.mxu1 %v13262_v27  ;;  %11540 = vmatprep.subr.bf16.mxu0 %v12920_v0 }
0x1284   :  { %11555 = vmatprep.subr.bf16.mxu1 %v12920_v0 }
0x1286   :  { %11542 = vmatpush3.bf16.msra.mxu0 %v13226_v8 }
0x1287   :  { %11557 = vmatpush3.bf16.msra.mxu1 %v13272_v31  ;;  %11567 = vmatprep.subr.bf16.mxu0 %v12920_v0 }
0x1288   :  { %11558 = vmatprep.subr.bf16.mxu1 %v12920_v0 }
0x128b   :  { %11560 = vmatpush3.bf16.msra.mxu1 %v13282_v35 }
0x128c   :  { %11561 = vmatprep.subr.bf16.mxu1 %v12920_v0 }
0x128f   :  { %11563 = vmatpush3.bf16.msra.mxu1 %v13291_v39 }
0x1290   :  { %11564 = vmatprep.subr.bf16.mxu1 %v12920_v0 }
0x1293   :  { %11566 = vmatpush3.bf16.msra.mxu1 %v13303_v44 }
0x1294   :  { %11591 = vmatprep.subr.bf16.mxu1 %v12920_v0 }
0x1329   :  { %v3142_v55 = vpop.f32.mrb[34].mxu1 }
0x132a   :  { %v9192_v18 = vpop.f32.mrb[35].mxu1 }
0x133c   :  { %v3212_v58 = vpop.f32.mrb[48].mxu0 }
0x133d   :  { %v3213_v12 = vadd.f32 %v3212_v58, %v3142_v55  ;;  %v9227_v62 = vpop.f32.mrb[49].mxu0 }
0x133f   :  { %v3216_v16 = vadd.f32 %v14056_v63, %v3213_v12 }
0x1341   :  { %v6614_v2 = vmul.f32 -1.442695, %v3216_v16  ;;  %12649 = vtanh.f32 %v3216_v16 }
0x1343   :  { %12651 = vpow2.f32 %v6614_v2 }
0x1349   :  { %v3302_v15 = vpop.f32.mrb[36].mxu1 }
0x134a   :  { %v3306_v22 = vadd.f32 %v3302_v15, %v3235_v13  ;;  %v9262_v19 = vpop.f32.mrb[37].mxu1 }
0x134b   :  { %v12650_v25 = vpop.eup %12649 }
0x134c   :  { %v6615_v28 = vmul.f32 -1.442695, %v3306_v22  ;;  %12653 = vtanh.f32 %v3306_v22  ;;  %3226 = vrot.lane.b32.xlu0 %v12650_v25, %s12925_s19  ;;  %v3484_v22 = vld [vmem:[#allocation2 + $0x1a] sm:$0x3] }
0x134d   :  { %v12652_v30 = vpop.eup %12651 }
0x134e   :  { %v3220_v32 = vadd.f32 1.0, %v12652_v30  ;;  %12655 = vpow2.f32 %v6615_v28 }
0x1350   :  { %12657 = vrcp.f32 %v3220_v32 }
0x1356   :  { %v12654_v34 = vpop.eup %12653 }
0x1357   :  { %3316 = vrot.lane.b32.xlu0 %v12654_v34, %s12925_s19 }
0x1358   :  { %v12656_v37 = vpop.eup %12655 }
0x1359   :  { %v3310_v38 = vadd.f32 1.0, %v12656_v37 }
0x135a   :  { %v12658_v24 = vpop.eup %12657 }
0x135b   :  { %12659 = vrcp.f32 %v3310_v38  ;;  %3224 = vrot.lane.b32.xlu1 %v12658_v24, %s12924_s18 }
0x1365   :  { %v12660_v40 = vpop.eup %12659 }
0x1366   :  { %3318 = vrot.lane.b32.xlu0 %v12660_v40, %s12923_s0  ;;  %3314 = vrot.lane.b32.xlu1 %v12660_v40, %s12924_s18 }
0x136a   :  { %3228 = vrot.lane.b32.xlu1 %v12658_v24, %s12923_s0 }
0x13be   :  { %v3227_v42 = vpop.permute.xlu0 %3226 }
0x13bf   :  { %v3231_v45 = vmul.f32 %v12658_v24, %v3227_v42 }
0x13c9   :  { %v3317_v52 = vpop.permute.xlu0 %3316 }
0x13ca   :  { %v3321_v6 = vmul.f32 %v12660_v40, %v3317_v52 }
0x13cd   :  { %v3225_v43 = vpop.permute.xlu1 %3224 }
0x13ce   :  { %v3230_v47 = vmul.f32 %v3225_v43, %v14066_v48 }
0x13d0   :  { %v14135_v9 = vadd.f32 %v3231_v45, %v3230_v47 }
0x13d2   :  { %12661 = vtanh.f32 %v14135_v9 }
0x13d8   :  { %v3315_v60 = vpop.permute.xlu1 %3314 }
0x13d9   :  { %v3320_v10 = vmul.f32 %v3315_v60, %v14074_v51  ;;  %v3319_v51 = vpop.permute.xlu0 %3318 }
0x13db   :  { %v14139_v21 = vadd.f32 %v3321_v6, %v3320_v10 }
0x13dc   :  { %v12662_v4 = vpop.eup %12661  ;;  %v3229_v59 = vpop.permute.xlu1 %3228 }
0x13dd   :  { %12663 = vtanh.f32 %v14139_v21  ;;  %v3234_v53 = vmul.f32 %v12662_v4, %v3229_v59 }
0x13df   :  { %9296 = vmatmul.mubr.f32.vlgmr.msra.gmra.mrb[50].mxu0 %v3234_v53 }
0x13e0   :  { %11569 = vmatpush3.bf16.msra.mxu0 %v13004_v5  ;;  %9365 = vmatprep.mubr.msk.f32.mxu0 %vm12921_vm0, %v12922_v1 }
0x13e1   :  { %11570 = vmatprep.subr.bf16.mxu0 %v12920_v0 }
0x13e4   :  { %11572 = vmatpush3.bf16.msra.mxu0 %v13010_v7 }
0x13e5   :  { %11573 = vmatprep.subr.bf16.mxu0 %v12920_v0 }
0x13e7   :  { %v12664_v48 = vpop.eup %12663 }
0x13e8   :  { %11575 = vmatpush3.bf16.msra.mxu0 %v13023_v14  ;;  %v3324_v11 = vmul.f32 %v12664_v48, %v3319_v51 }
0x13e9   :  { %11576 = vmatprep.subr.bf16.mxu0 %v12920_v0 }
0x13ea   :  { %9331 = vmatmul.mubr.f32.vlgmr.msra.gmra.mrb[38].mxu1 %v3324_v11 }
0x13eb   :  { %11593 = vmatpush3.bf16.msra.mxu1 %v13094_v33  ;;  %9400 = vmatprep.mubr.msk.f32.mxu1 %vm12921_vm0, %v12922_v1 }
0x13ec   :  { %11578 = vmatpush3.bf16.msra.mxu0 %v13037_v17  ;;  %11594 = vmatprep.subr.bf16.mxu1 %v12920_v0 }
0x13ed   :  { %11579 = vmatprep.subr.bf16.mxu0 %v12920_v0 }
0x13ef   :  { %11596 = vmatpush3.bf16.msra.mxu1 %v13104_v36 }
0x13f0   :  { %11581 = vmatpush3.bf16.msra.mxu0 %v13047_v20  ;;  %11597 = vmatprep.subr.bf16.mxu1 %v12920_v0 }
0x13f1   :  { %11582 = vmatprep.subr.bf16.mxu0 %v12920_v0 }
0x13f3   :  { %11599 = vmatpush3.bf16.msra.mxu1 %v13123_v41 }
0x13f4   :  { %11584 = vmatpush3.bf16.msra.mxu0 %v13057_v23  ;;  %11600 = vmatprep.subr.bf16.mxu1 %v12920_v0 }
0x13f5   :  { %11585 = vmatprep.subr.bf16.mxu0 %v12920_v0 }
0x13f7   :  { %11602 = vmatpush3.bf16.msra.mxu1 %v13153_v50 }
0x13f8   :  { %11587 = vmatpush3.bf16.msra.mxu0 %v13067_v26  ;;  %11603 = vmatprep.subr.bf16.mxu1 %v12920_v0 }
0x13f9   :  { %11588 = vmatprep.subr.bf16.mxu0 %v12920_v0 }
0x13fb   :  { %11605 = vmatpush3.bf16.msra.mxu1 %v13179_v57 }
0x13fc   :  { %11590 = vmatpush3.bf16.msra.mxu0 %v13077_v29  ;;  %11606 = vmatprep.subr.bf16.mxu1 %v12920_v0 }
0x13fd   :  { %11615 = vmatprep.subr.bf16.mxu0 %v12920_v0 }
0x13ff   :  { %9366 = vmatmul.mubr.f32.vlgmr.msra.gmra.mrb[52].mxu0 %v3324_v11  ;;  %11608 = vmatpush3.bf16.msra.mxu1 %v13197_v61 }
0x1400   :  { %11617 = vmatpush3.bf16.msra.mxu0 %v13140_v46  ;;  %11609 = vmatprep.subr.bf16.mxu1 %v12920_v0 }
0x1401   :  { %11618 = vmatprep.subr.bf16.mxu0 %v12920_v0  ;;  %9435 = vmatprep.mubr.msk.f32.mxu0 %vm12921_vm0, %v12922_v1 }
0x1403   :  { %11611 = vmatpush3.bf16.msra.mxu1 %v13214_v3 }
0x1404   :  { %11620 = vmatpush3.bf16.msra.mxu0 %v13150_v49  ;;  %11612 = vmatprep.subr.bf16.mxu1 %v12920_v0 }
0x1405   :  { %11621 = vmatprep.subr.bf16.mxu0 %v12920_v0 }
0x1407   :  { %11614 = vmatpush3.bf16.msra.mxu1 %v13226_v8 }
0x1408   :  { %11623 = vmatpush3.bf16.msra.mxu0 %v13176_v56  ;;  %11639 = vmatprep.subr.bf16.mxu1 %v12920_v0 }
0x1409   :  { %11624 = vmatprep.subr.bf16.mxu0 %v12920_v0 }
0x140c   :  { %11626 = vmatpush3.bf16.msra.mxu0 %v13262_v27 }
0x140d   :  { %11627 = vmatprep.subr.bf16.mxu0 %v12920_v0 }
0x1410   :  { %11629 = vmatpush3.bf16.msra.mxu0 %v13272_v31 }
0x1411   :  { %11630 = vmatprep.subr.bf16.mxu0 %v12920_v0 }
0x1414   :  { %11632 = vmatpush3.bf16.msra.mxu0 %v13282_v35 }
0x1415   :  { %11633 = vmatprep.subr.bf16.mxu0 %v12920_v0 }
0x1418   :  { %11635 = vmatpush3.bf16.msra.mxu0 %v13291_v39 }
0x1419   :  { %11636 = vmatprep.subr.bf16.mxu0 %v12920_v0 }
0x141c   :  { %11638 = vmatpush3.bf16.msra.mxu0 %v13303_v44 }
0x141d   :  { %11663 = vmatprep.subr.bf16.mxu0 %v12920_v0 }
0x14b2   :  { %v3391_v54 = vpop.f32.mrb[50].mxu0 }
0x14b3   :  { %v9297_v55 = vpop.f32.mrb[51].mxu0 }
0x14bd   :  { %v3461_v18 = vpop.f32.mrb[38].mxu1 }
0x14be   :  { %v3462_v58 = vadd.f32 %v3461_v18, %v3391_v54  ;;  %v9332_v12 = vpop.f32.mrb[39].mxu1 }
0x14c0   :  { %v3465_v62 = vadd.f32 %v14056_v63, %v3462_v58 }
0x14c2   :  { %v6616_v16 = vmul.f32 -1.442695, %v3465_v62  ;;  %12665 = vtanh.f32 %v3465_v62 }
0x14c4   :  { %12667 = vpow2.f32 %v6616_v16  ;;  %v3733_v16 = vld [vmem:[#allocation2 + $0x1c] sm:$0x3] }
0x14cc   :  { %v12666_v2 = vpop.eup %12665 }
0x14cd   :  { %3475 = vrot.lane.b32.xlu0 %v12666_v2, %s12925_s19 }
0x14ce   :  { %v12668_v13 = vpop.eup %12667 }
0x14cf   :  { %v3469_v15 = vadd.f32 1.0, %v12668_v13 }
0x14d1   :  { %12669 = vrcp.f32 %v3469_v15 }
0x14d2   :  { %v3551_v19 = vpop.f32.mrb[52].mxu0 }
0x14d3   :  { %v3555_v25 = vadd.f32 %v3551_v19, %v3484_v22  ;;  %v9367_v28 = vpop.f32.mrb[53].mxu0 }
0x14d5   :  { %v6617_v30 = vmul.f32 -1.442695, %v3555_v25 }
0x14d7   :  { %12671 = vpow2.f32 %v6617_v30 }
0x14d8   :  { %12673 = vtanh.f32 %v3555_v25 }
0x14db   :  { %v12670_v32 = vpop.eup %12669 }
0x14dc   :  { %3473 = vrot.lane.b32.xlu1 %v12670_v32, %s12924_s18 }
0x14e0   :  { %3477 = vrot.lane.b32.xlu1 %v12670_v32, %s12923_s0 }
0x14e1   :  { %v12672_v34 = vpop.eup %12671 }
0x14e2   :  { %v3559_v37 = vadd.f32 1.0, %v12672_v34  ;;  %v12674_v38 = vpop.eup %12673 }
0x14e4   :  { %12675 = vrcp.f32 %v3559_v37  ;;  %3565 = vrot.lane.b32.xlu1 %v12674_v38, %s12925_s19 }
0x14ee   :  { %v12676_v24 = vpop.eup %12675 }
0x14ef   :  { %3563 = vrot.lane.b32.xlu0 %v12676_v24, %s12924_s18 }
0x14f3   :  { %3567 = vrot.lane.b32.xlu0 %v12676_v24, %s12923_s0 }
0x153f   :  { %v3476_v40 = vpop.permute.xlu0 %3475 }
0x1540   :  { %v3480_v43 = vmul.f32 %v12670_v32, %v3476_v40 }
0x154e   :  { %v3474_v42 = vpop.permute.xlu1 %3473 }
0x154f   :  { %v3479_v45 = vmul.f32 %v3474_v42, %v14135_v9 }
0x1551   :  { %v14204_v47 = vadd.f32 %v3480_v43, %v3479_v45 }
0x1552   :  { %v3478_v52 = vpop.permute.xlu1 %3477 }
0x1553   :  { %12677 = vtanh.f32 %v14204_v47 }
0x1556   :  { %v3566_v10 = vpop.permute.xlu1 %3565 }
0x1557   :  { %v3570_v59 = vmul.f32 %v12676_v24, %v3566_v10 }
0x155d   :  { %v12678_v60 = vpop.eup %12677 }
0x155e   :  { %v3483_v6 = vmul.f32 %v12678_v60, %v3478_v52 }
0x1560   :  { %9401 = vmatmul.mubr.f32.vlgmr.msra.gmra.mrb[40].mxu1 %v3483_v6 }
0x1561   :  { %11641 = vmatpush3.bf16.msra.mxu1 %v13004_v5  ;;  %v3564_v4 = vpop.permute.xlu0 %3563  ;;  %9470 = vmatprep.mubr.msk.f32.mxu1 %vm12921_vm0, %v12922_v1 }
0x1562   :  { %v3569_v53 = vmul.f32 %v3564_v4, %v14139_v21  ;;  %11642 = vmatprep.subr.bf16.mxu1 %v12920_v0 }
0x1564   :  { %v14212_v9 = vadd.f32 %v3570_v59, %v3569_v53 }
0x1565   :  { %11644 = vmatpush3.bf16.msra.mxu1 %v13010_v7  ;;  %v3568_v21 = vpop.permute.xlu0 %3567 }
0x1566   :  { %12679 = vtanh.f32 %v14212_v9  ;;  %11645 = vmatprep.subr.bf16.mxu1 %v12920_v0 }
0x1569   :  { %11647 = vmatpush3.bf16.msra.mxu1 %v13023_v14 }
0x156a   :  { %11648 = vmatprep.subr.bf16.mxu1 %v12920_v0 }
0x156d   :  { %11650 = vmatpush3.bf16.msra.mxu1 %v13037_v17 }
0x156e   :  { %11651 = vmatprep.subr.bf16.mxu1 %v12920_v0 }
0x1570   :  { %v12680_v48 = vpop.eup %12679 }
0x1571   :  { %v3573_v51 = vmul.f32 %v12680_v48, %v3568_v21  ;;  %11653 = vmatpush3.bf16.msra.mxu1 %v13047_v20 }
0x1572   :  { %11654 = vmatprep.subr.bf16.mxu1 %v12920_v0 }
0x1573   :  { %9436 = vmatmul.mubr.f32.vlgmr.msra.gmra.mrb[54].mxu0 %v3573_v51 }
0x1574   :  { %11665 = vmatpush3.bf16.msra.mxu0 %v13094_v33  ;;  %9505 = vmatprep.mubr.msk.f32.mxu0 %vm12921_vm0, %v12922_v1 }
0x1575   :  { %11656 = vmatpush3.bf16.msra.mxu1 %v13057_v23  ;;  %11666 = vmatprep.subr.bf16.mxu0 %v12920_v0 }
0x1576   :  { %11657 = vmatprep.subr.bf16.mxu1 %v12920_v0 }
0x1578   :  { %11668 = vmatpush3.bf16.msra.mxu0 %v13104_v36 }
0x1579   :  { %11659 = vmatpush3.bf16.msra.mxu1 %v13067_v26  ;;  %11669 = vmatprep.subr.bf16.mxu0 %v12920_v0 }
0x157a   :  { %11660 = vmatprep.subr.bf16.mxu1 %v12920_v0 }
0x157c   :  { %11671 = vmatpush3.bf16.msra.mxu0 %v13123_v41 }
0x157d   :  { %11662 = vmatpush3.bf16.msra.mxu1 %v13077_v29  ;;  %11672 = vmatprep.subr.bf16.mxu0 %v12920_v0 }
0x157e   :  { %11687 = vmatprep.subr.bf16.mxu1 %v12920_v0 }
0x1580   :  { %9471 = vmatmul.mubr.f32.vlgmr.msra.gmra.mrb[42].mxu1 %v3573_v51  ;;  %11674 = vmatpush3.bf16.msra.mxu0 %v13153_v50 }
0x1581   :  { %11689 = vmatpush3.bf16.msra.mxu1 %v13140_v46  ;;  %11675 = vmatprep.subr.bf16.mxu0 %v12920_v0 }
0x1582   :  { %11690 = vmatprep.subr.bf16.mxu1 %v12920_v0  ;;  %9540 = vmatprep.mubr.msk.f32.mxu1 %vm12921_vm0, %v12922_v1 }
0x1584   :  { %11677 = vmatpush3.bf16.msra.mxu0 %v13179_v57 }
0x1585   :  { %11692 = vmatpush3.bf16.msra.mxu1 %v13150_v49  ;;  %11678 = vmatprep.subr.bf16.mxu0 %v12920_v0 }
0x1586   :  { %11693 = vmatprep.subr.bf16.mxu1 %v12920_v0 }
0x1588   :  { %11680 = vmatpush3.bf16.msra.mxu0 %v13197_v61 }
0x1589   :  { %11695 = vmatpush3.bf16.msra.mxu1 %v13176_v56  ;;  %11681 = vmatprep.subr.bf16.mxu0 %v12920_v0 }
0x158a   :  { %11696 = vmatprep.subr.bf16.mxu1 %v12920_v0 }
0x158c   :  { %11683 = vmatpush3.bf16.msra.mxu0 %v13214_v3 }
0x158d   :  { %11698 = vmatpush3.bf16.msra.mxu1 %v13262_v27  ;;  %11684 = vmatprep.subr.bf16.mxu0 %v12920_v0 }
0x158e   :  { %11699 = vmatprep.subr.bf16.mxu1 %v12920_v0 }
0x1590   :  { %11686 = vmatpush3.bf16.msra.mxu0 %v13226_v8 }
0x1591   :  { %11701 = vmatpush3.bf16.msra.mxu1 %v13272_v31  ;;  %11711 = vmatprep.subr.bf16.mxu0 %v12920_v0 }
0x1592   :  { %11702 = vmatprep.subr.bf16.mxu1 %v12920_v0 }
0x1595   :  { %11704 = vmatpush3.bf16.msra.mxu1 %v13282_v35 }
0x1596   :  { %11705 = vmatprep.subr.bf16.mxu1 %v12920_v0 }
0x1599   :  { %11707 = vmatpush3.bf16.msra.mxu1 %v13291_v39 }
0x159a   :  { %11708 = vmatprep.subr.bf16.mxu1 %v12920_v0 }
0x159d   :  { %11710 = vmatpush3.bf16.msra.mxu1 %v13303_v44 }
0x159e   :  { %11735 = vmatprep.subr.bf16.mxu1 %v12920_v0 }
0x1633   :  { %v3640_v11 = vpop.f32.mrb[40].mxu1 }
0x1634   :  { %v9402_v54 = vpop.f32.mrb[41].mxu1 }
0x1646   :  { %v3710_v55 = vpop.f32.mrb[54].mxu0 }
0x1647   :  { %v3711_v18 = vadd.f32 %v3710_v55, %v3640_v11  ;;  %v9437_v58 = vpop.f32.mrb[55].mxu0 }
0x1649   :  { %v3714_v12 = vadd.f32 %v14056_v63, %v3711_v18 }
0x164b   :  { %v6618_v62 = vmul.f32 -1.442695, %v3714_v12  ;;  %12681 = vtanh.f32 %v3714_v12 }
0x164d   :  { %12683 = vpow2.f32 %v6618_v62 }
0x1653   :  { %v3800_v2 = vpop.f32.mrb[42].mxu1 }
0x1654   :  { %v3804_v13 = vadd.f32 %v3800_v2, %v3733_v16  ;;  %v9472_v15 = vpop.f32.mrb[43].mxu1 }
0x1655   :  { %v12682_v22 = vpop.eup %12681 }
0x1656   :  { %v6619_v19 = vmul.f32 -1.442695, %v3804_v13  ;;  %12685 = vtanh.f32 %v3804_v13  ;;  %3724 = vrot.lane.b32.xlu0 %v12682_v22, %s12925_s19  ;;  %v3982_v13 = vld [vmem:[#allocation2 + $0x1e] sm:$0x3] }
0x1657   :  { %v12684_v25 = vpop.eup %12683 }
0x1658   :  { %v3718_v28 = vadd.f32 1.0, %v12684_v25  ;;  %12687 = vpow2.f32 %v6619_v19 }
0x165a   :  { %12689 = vrcp.f32 %v3718_v28 }
0x1660   :  { %v12686_v30 = vpop.eup %12685 }
0x1661   :  { %3814 = vrot.lane.b32.xlu0 %v12686_v30, %s12925_s19 }
0x1662   :  { %v12688_v32 = vpop.eup %12687 }
0x1663   :  { %v3808_v34 = vadd.f32 1.0, %v12688_v32 }
0x1664   :  { %v12690_v37 = vpop.eup %12689 }
0x1665   :  { %12691 = vrcp.f32 %v3808_v34  ;;  %3722 = vrot.lane.b32.xlu1 %v12690_v37, %s12924_s18 }
0x166f   :  { %v12692_v38 = vpop.eup %12691 }
0x1670   :  { %3816 = vrot.lane.b32.xlu0 %v12692_v38, %s12923_s0  ;;  %3812 = vrot.lane.b32.xlu1 %v12692_v38, %s12924_s18 }
0x1674   :  { %3726 = vrot.lane.b32.xlu1 %v12690_v37, %s12923_s0 }
0x16c8   :  { %v3725_v24 = vpop.permute.xlu0 %3724 }
0x16c9   :  { %v3729_v42 = vmul.f32 %v12690_v37, %v3725_v24 }
0x16d3   :  { %v3815_v52 = vpop.permute.xlu0 %3814 }
0x16d4   :  { %v3819_v6 = vmul.f32 %v12692_v38, %v3815_v52 }
0x16d7   :  { %v3723_v40 = vpop.permute.xlu1 %3722 }
0x16d8   :  { %v3728_v43 = vmul.f32 %v3723_v40, %v14204_v47 }
0x16da   :  { %v14273_v45 = vadd.f32 %v3729_v42, %v3728_v43 }
0x16dc   :  { %12693 = vtanh.f32 %v14273_v45 }
0x16e2   :  { %v3813_v60 = vpop.permute.xlu1 %3812 }
0x16e3   :  { %v3818_v10 = vmul.f32 %v3813_v60, %v14212_v9  ;;  %v3817_v9 = vpop.permute.xlu0 %3816 }
0x16e5   :  { %v14277_v4 = vadd.f32 %v3819_v6, %v3818_v10 }
0x16e6   :  { %v12694_v59 = vpop.eup %12693  ;;  %v3727_v53 = vpop.permute.xlu1 %3726 }
0x16e7   :  { %12695 = vtanh.f32 %v14277_v4  ;;  %v3732_v48 = vmul.f32 %v12694_v59, %v3727_v53 }
0x16e9   :  { %9506 = vmatmul.mubr.f32.vlgmr.msra.gmra.mrb[56].mxu0 %v3732_v48 }
0x16ea   :  { %11713 = vmatpush3.bf16.msra.mxu0 %v13004_v5  ;;  %9575 = vmatprep.mubr.msk.f32.mxu0 %vm12921_vm0, %v12922_v1 }
0x16eb   :  { %11714 = vmatprep.subr.bf16.mxu0 %v12920_v0 }
0x16ee   :  { %11716 = vmatpush3.bf16.msra.mxu0 %v13010_v7 }
0x16ef   :  { %11717 = vmatprep.subr.bf16.mxu0 %v12920_v0 }
0x16f1   :  { %v12696_v47 = vpop.eup %12695 }
0x16f2   :  { %11719 = vmatpush3.bf16.msra.mxu0 %v13023_v14  ;;  %v3822_v21 = vmul.f32 %v12696_v47, %v3817_v9 }
0x16f3   :  { %11720 = vmatprep.subr.bf16.mxu0 %v12920_v0 }
0x16f4   :  { %9541 = vmatmul.mubr.f32.vlgmr.msra.gmra.mrb[44].mxu1 %v3822_v21 }
0x16f5   :  { %11737 = vmatpush3.bf16.msra.mxu1 %v13094_v33  ;;  %9610 = vmatprep.mubr.msk.f32.mxu1 %vm12921_vm0, %v12922_v1 }
0x16f6   :  { %11722 = vmatpush3.bf16.msra.mxu0 %v13037_v17  ;;  %11738 = vmatprep.subr.bf16.mxu1 %v12920_v0 }
0x16f7   :  { %11723 = vmatprep.subr.bf16.mxu0 %v12920_v0 }
0x16f9   :  { %11740 = vmatpush3.bf16.msra.mxu1 %v13104_v36 }
0x16fa   :  { %11725 = vmatpush3.bf16.msra.mxu0 %v13047_v20  ;;  %11741 = vmatprep.subr.bf16.mxu1 %v12920_v0 }
0x16fb   :  { %11726 = vmatprep.subr.bf16.mxu0 %v12920_v0 }
0x16fd   :  { %11743 = vmatpush3.bf16.msra.mxu1 %v13123_v41 }
0x16fe   :  { %11728 = vmatpush3.bf16.msra.mxu0 %v13057_v23  ;;  %11744 = vmatprep.subr.bf16.mxu1 %v12920_v0 }
0x16ff   :  { %11729 = vmatprep.subr.bf16.mxu0 %v12920_v0 }
0x1701   :  { %11746 = vmatpush3.bf16.msra.mxu1 %v13153_v50 }
0x1702   :  { %11731 = vmatpush3.bf16.msra.mxu0 %v13067_v26  ;;  %11747 = vmatprep.subr.bf16.mxu1 %v12920_v0 }
0x1703   :  { %11732 = vmatprep.subr.bf16.mxu0 %v12920_v0 }
0x1705   :  { %11749 = vmatpush3.bf16.msra.mxu1 %v13179_v57 }
0x1706   :  { %11734 = vmatpush3.bf16.msra.mxu0 %v13077_v29  ;;  %11750 = vmatprep.subr.bf16.mxu1 %v12920_v0 }
0x1707   :  { %11759 = vmatprep.subr.bf16.mxu0 %v12920_v0 }
0x1709   :  { %9576 = vmatmul.mubr.f32.vlgmr.msra.gmra.mrb[58].mxu0 %v3822_v21  ;;  %11752 = vmatpush3.bf16.msra.mxu1 %v13197_v61 }
0x170a   :  { %11761 = vmatpush3.bf16.msra.mxu0 %v13140_v46  ;;  %11753 = vmatprep.subr.bf16.mxu1 %v12920_v0 }
0x170b   :  { %11762 = vmatprep.subr.bf16.mxu0 %v12920_v0  ;;  %9645 = vmatprep.mubr.msk.f32.mxu0 %vm12921_vm0, %v12922_v1 }
0x170d   :  { %11755 = vmatpush3.bf16.msra.mxu1 %v13214_v3 }
0x170e   :  { %11764 = vmatpush3.bf16.msra.mxu0 %v13150_v49  ;;  %11756 = vmatprep.subr.bf16.mxu1 %v12920_v0 }
0x170f   :  { %11765 = vmatprep.subr.bf16.mxu0 %v12920_v0 }
0x1711   :  { %11758 = vmatpush3.bf16.msra.mxu1 %v13226_v8 }
0x1712   :  { %11767 = vmatpush3.bf16.msra.mxu0 %v13176_v56  ;;  %11783 = vmatprep.subr.bf16.mxu1 %v12920_v0 }
0x1713   :  { %11768 = vmatprep.subr.bf16.mxu0 %v12920_v0 }
0x1716   :  { %11770 = vmatpush3.bf16.msra.mxu0 %v13262_v27 }
0x1717   :  { %11771 = vmatprep.subr.bf16.mxu0 %v12920_v0 }
0x171a   :  { %11773 = vmatpush3.bf16.msra.mxu0 %v13272_v31 }
0x171b   :  { %11774 = vmatprep.subr.bf16.mxu0 %v12920_v0 }
0x171e   :  { %11776 = vmatpush3.bf16.msra.mxu0 %v13282_v35 }
0x171f   :  { %11777 = vmatprep.subr.bf16.mxu0 %v12920_v0 }
0x1722   :  { %11779 = vmatpush3.bf16.msra.mxu0 %v13291_v39 }
0x1723   :  { %11780 = vmatprep.subr.bf16.mxu0 %v12920_v0 }
0x1726   :  { %11782 = vmatpush3.bf16.msra.mxu0 %v13303_v44 }
0x1727   :  { %11807 = vmatprep.subr.bf16.mxu0 %v12920_v0 }
0x17bc   :  { %v3889_v51 = vpop.f32.mrb[56].mxu0 }
0x17bd   :  { %v9507_v11 = vpop.f32.mrb[57].mxu0 }
0x17c7   :  { %v3959_v54 = vpop.f32.mrb[44].mxu1 }
0x17c8   :  { %v3960_v55 = vadd.f32 %v3959_v54, %v3889_v51  ;;  %v9542_v18 = vpop.f32.mrb[45].mxu1 }
0x17ca   :  { %v3963_v58 = vadd.f32 %v14056_v63, %v3960_v55  ;;  %v14406_v55 = vld [vmem:[%s15059_s6] ss:$0 sm:$0xff] }
0x17cc   :  { %v6620_v12 = vmul.f32 -1.442695, %v3963_v58  ;;  %12697 = vtanh.f32 %v3963_v58 }
0x17ce   :  { %12699 = vpow2.f32 %v6620_v12  ;;  %v4231_v12 = vld [vmem:[#allocation2 + $0x20] sm:$0x3] }
0x17d6   :  { %v12698_v62 = vpop.eup %12697 }
0x17d7   :  { %3973 = vrot.lane.b32.xlu0 %v12698_v62, %s12925_s19 }
0x17d8   :  { %v12700_v16 = vpop.eup %12699 }
0x17d9   :  { %v3967_v2 = vadd.f32 1.0, %v12700_v16 }
0x17db   :  { %12701 = vrcp.f32 %v3967_v2 }
0x17dc   :  { %v4049_v15 = vpop.f32.mrb[58].mxu0 }
0x17dd   :  { %v4053_v22 = vadd.f32 %v4049_v15, %v3982_v13  ;;  %v9577_v19 = vpop.f32.mrb[59].mxu0 }
0x17df   :  { %v6621_v25 = vmul.f32 -1.442695, %v4053_v22 }
0x17e1   :  { %12703 = vpow2.f32 %v6621_v25 }
0x17e2   :  { %12705 = vtanh.f32 %v4053_v22 }
0x17e5   :  { %v12702_v28 = vpop.eup %12701 }
0x17e6   :  { %3971 = vrot.lane.b32.xlu1 %v12702_v28, %s12924_s18 }
0x17ea   :  { %3975 = vrot.lane.b32.xlu1 %v12702_v28, %s12923_s0 }
0x17eb   :  { %v12704_v63 = vpop.eup %12703 }
0x17ec   :  { %v4057_v30 = vadd.f32 1.0, %v12704_v63  ;;  %v12706_v32 = vpop.eup %12705 }
0x17ee   :  { %12707 = vrcp.f32 %v4057_v30  ;;  %4063 = vrot.lane.b32.xlu1 %v12706_v32, %s12925_s19 }
0x17f8   :  { %v12708_v34 = vpop.eup %12707 }
0x17f9   :  { %4061 = vrot.lane.b32.xlu0 %v12708_v34, %s12924_s18 }
0x17fd   :  { %4065 = vrot.lane.b32.xlu0 %v12708_v34, %s12923_s0 }
0x1849   :  { %v3974_v37 = vpop.permute.xlu0 %3973 }
0x184a   :  { %v3978_v24 = vmul.f32 %v12702_v28, %v3974_v37 }
0x1858   :  { %v3972_v38 = vpop.permute.xlu1 %3971 }
0x1859   :  { %v3977_v40 = vmul.f32 %v3972_v38, %v14273_v45 }
0x185b   :  { %v14342_v42 = vadd.f32 %v3978_v24, %v3977_v40 }
0x185c   :  { %v3976_v43 = vpop.permute.xlu1 %3975 }
0x185d   :  { %12709 = vtanh.f32 %v14342_v42 }
0x1860   :  { %v4064_v6 = vpop.permute.xlu1 %4063 }
0x1861   :  { %v4068_v59 = vmul.f32 %v12708_v34, %v4064_v6 }
0x1867   :  { %v12710_v52 = vpop.eup %12709 }
0x1868   :  { %v3981_v60 = vmul.f32 %v12710_v52, %v3976_v43 }
0x186a   :  { %9611 = vmatmul.mubr.f32.vlgmr.msra.gmra.mrb[46].mxu1 %v3981_v60 }
0x186b   :  { %11785 = vmatpush3.bf16.msra.mxu1 %v13004_v5  ;;  %v4062_v10 = vpop.permute.xlu0 %4061  ;;  %9680 = vmatprep.mubr.msk.f32.mxu1 %vm12921_vm0, %v12922_v1 }
0x186c   :  { %v4067_v53 = vmul.f32 %v4062_v10, %v14277_v4  ;;  %11786 = vmatprep.subr.bf16.mxu1 %v12920_v0 }
0x186e   :  { %v14350_v45 = vadd.f32 %v4068_v59, %v4067_v53 }
0x186f   :  { %11788 = vmatpush3.bf16.msra.mxu1 %v13010_v7  ;;  %v4066_v4 = vpop.permute.xlu0 %4065 }
0x1870   :  { %12711 = vtanh.f32 %v14350_v45  ;;  %11789 = vmatprep.subr.bf16.mxu1 %v12920_v0 }
0x1873   :  { %11791 = vmatpush3.bf16.msra.mxu1 %v13023_v14 }
0x1874   :  { %11792 = vmatprep.subr.bf16.mxu1 %v12920_v0 }
0x1877   :  { %11794 = vmatpush3.bf16.msra.mxu1 %v13037_v17 }
0x1878   :  { %11795 = vmatprep.subr.bf16.mxu1 %v12920_v0 }
0x187a   :  { %v12712_v48 = vpop.eup %12711 }
0x187b   :  { %v4071_v47 = vmul.f32 %v12712_v48, %v4066_v4  ;;  %11797 = vmatpush3.bf16.msra.mxu1 %v13047_v20 }
0x187c   :  { %11798 = vmatprep.subr.bf16.mxu1 %v12920_v0 }
0x187d   :  { %9646 = vmatmul.mubr.f32.vlgmr.msra.gmra.mrb[60].mxu0 %v4071_v47 }
0x187e   :  { %11809 = vmatpush3.bf16.msra.mxu0 %v13094_v33  ;;  %9715 = vmatprep.mubr.msk.f32.mxu0 %vm12921_vm0, %v12922_v1 }
0x187f   :  { %11800 = vmatpush3.bf16.msra.mxu1 %v13057_v23  ;;  %11810 = vmatprep.subr.bf16.mxu0 %v12920_v0 }
0x1880   :  { %11801 = vmatprep.subr.bf16.mxu1 %v12920_v0 }
0x1882   :  { %11812 = vmatpush3.bf16.msra.mxu0 %v13104_v36 }
0x1883   :  { %11803 = vmatpush3.bf16.msra.mxu1 %v13067_v26  ;;  %11813 = vmatprep.subr.bf16.mxu0 %v12920_v0 }
0x1884   :  { %11804 = vmatprep.subr.bf16.mxu1 %v12920_v0 }
0x1886   :  { %11815 = vmatpush3.bf16.msra.mxu0 %v13123_v41 }
0x1887   :  { %11806 = vmatpush3.bf16.msra.mxu1 %v13077_v29  ;;  %11816 = vmatprep.subr.bf16.mxu0 %v12920_v0 }
0x1888   :  { %11831 = vmatprep.subr.bf16.mxu1 %v12920_v0 }
0x188a   :  { %9681 = vmatmul.mubr.f32.vlgmr.msra.gmra.mrb[48].mxu1 %v4071_v47  ;;  %11818 = vmatpush3.bf16.msra.mxu0 %v13153_v50 }
0x188b   :  { %11833 = vmatpush3.bf16.msra.mxu1 %v13140_v46  ;;  %11819 = vmatprep.subr.bf16.mxu0 %v12920_v0 }
0x188c   :  { %11834 = vmatprep.subr.bf16.mxu1 %v12920_v0  ;;  %9750 = vmatprep.mubr.msk.f32.mxu1 %vm12921_vm0, %v12922_v1 }
0x188e   :  { %11821 = vmatpush3.bf16.msra.mxu0 %v13179_v57 }
0x188f   :  { %11836 = vmatpush3.bf16.msra.mxu1 %v13150_v49  ;;  %11822 = vmatprep.subr.bf16.mxu0 %v12920_v0 }
0x1890   :  { %11837 = vmatprep.subr.bf16.mxu1 %v12920_v0 }
0x1892   :  { %11824 = vmatpush3.bf16.msra.mxu0 %v13197_v61 }
0x1893   :  { %11839 = vmatpush3.bf16.msra.mxu1 %v13176_v56  ;;  %11825 = vmatprep.subr.bf16.mxu0 %v12920_v0 }
0x1894   :  { %11840 = vmatprep.subr.bf16.mxu1 %v12920_v0 }
0x1896   :  { %11827 = vmatpush3.bf16.msra.mxu0 %v13214_v3 }
0x1897   :  { %11842 = vmatpush3.bf16.msra.mxu1 %v13262_v27  ;;  %11828 = vmatprep.subr.bf16.mxu0 %v12920_v0 }
0x1898   :  { %11843 = vmatprep.subr.bf16.mxu1 %v12920_v0 }
0x189a   :  { %11830 = vmatpush3.bf16.msra.mxu0 %v13226_v8 }
0x189b   :  { %11845 = vmatpush3.bf16.msra.mxu1 %v13272_v31  ;;  %11855 = vmatprep.subr.bf16.mxu0 %v12920_v0 }
0x189c   :  { %11846 = vmatprep.subr.bf16.mxu1 %v12920_v0 }
0x189f   :  { %11848 = vmatpush3.bf16.msra.mxu1 %v13282_v35 }
0x18a0   :  { %11849 = vmatprep.subr.bf16.mxu1 %v12920_v0 }
0x18a3   :  { %11851 = vmatpush3.bf16.msra.mxu1 %v13291_v39 }
0x18a4   :  { %11852 = vmatprep.subr.bf16.mxu1 %v12920_v0 }
0x18a7   :  { %11854 = vmatpush3.bf16.msra.mxu1 %v13303_v44 }
0x18a8   :  { %11879 = vmatprep.subr.bf16.mxu1 %v12920_v0 }
0x193d   :  { %v4138_v9 = vpop.f32.mrb[46].mxu1 }
0x193e   :  { %v9612_v21 = vpop.f32.mrb[47].mxu1 }
0x1950   :  { %v4208_v51 = vpop.f32.mrb[60].mxu0 }
0x1951   :  { %v4209_v11 = vadd.f32 %v4208_v51, %v4138_v9  ;;  %v9647_v54 = vpop.f32.mrb[61].mxu0 }
0x1953   :  { %v4212_v18 = vadd.f32 %v14406_v55, %v4209_v11 }
0x1955   :  { %v6622_v58 = vmul.f32 -1.442695, %v4212_v18  ;;  %12713 = vtanh.f32 %v4212_v18 }
0x1957   :  { %12715 = vpow2.f32 %v6622_v58 }
0x195d   :  { %v4298_v62 = vpop.f32.mrb[48].mxu1 }
0x195e   :  { %v4302_v16 = vadd.f32 %v4298_v62, %v4231_v12  ;;  %v9682_v2 = vpop.f32.mrb[49].mxu1 }
0x195f   :  { %v12714_v13 = vpop.eup %12713 }
0x1960   :  { %v6623_v15 = vmul.f32 -1.442695, %v4302_v16  ;;  %12717 = vtanh.f32 %v4302_v16  ;;  %4222 = vrot.lane.b32.xlu0 %v12714_v13, %s12925_s19  ;;  %v4480_v16 = vld [vmem:[#allocation2 + $0x22] sm:$0x3] }
0x1961   :  { %v12716_v22 = vpop.eup %12715 }
0x1962   :  { %v4216_v19 = vadd.f32 1.0, %v12716_v22  ;;  %12719 = vpow2.f32 %v6623_v15 }
0x1964   :  { %12721 = vrcp.f32 %v4216_v19 }
0x196a   :  { %v12718_v25 = vpop.eup %12717 }
0x196b   :  { %4312 = vrot.lane.b32.xlu0 %v12718_v25, %s12925_s19 }
0x196c   :  { %v12720_v28 = vpop.eup %12719 }
0x196d   :  { %v4306_v63 = vadd.f32 1.0, %v12720_v28 }
0x196e   :  { %v12722_v30 = vpop.eup %12721 }
0x196f   :  { %12723 = vrcp.f32 %v4306_v63  ;;  %4220 = vrot.lane.b32.xlu1 %v12722_v30, %s12924_s18 }
0x1979   :  { %v12724_v32 = vpop.eup %12723 }
0x197a   :  { %4314 = vrot.lane.b32.xlu0 %v12724_v32, %s12923_s0  ;;  %4310 = vrot.lane.b32.xlu1 %v12724_v32, %s12924_s18 }
0x197e   :  { %4224 = vrot.lane.b32.xlu1 %v12722_v30, %s12923_s0 }
0x19d2   :  { %v4223_v34 = vpop.permute.xlu0 %4222 }
0x19d3   :  { %v4227_v38 = vmul.f32 %v12722_v30, %v4223_v34 }
0x19dd   :  { %v4313_v43 = vpop.permute.xlu0 %4312 }
0x19de   :  { %v4317_v60 = vmul.f32 %v12724_v32, %v4313_v43 }
0x19e1   :  { %v4221_v37 = vpop.permute.xlu1 %4220 }
0x19e2   :  { %v4226_v24 = vmul.f32 %v4221_v37, %v14342_v42 }
0x19e4   :  { %v14416_v40 = vadd.f32 %v4227_v38, %v4226_v24 }
0x19e6   :  { %12725 = vtanh.f32 %v14416_v40 }
0x19ec   :  { %v4311_v52 = vpop.permute.xlu1 %4310 }
0x19ed   :  { %v4316_v6 = vmul.f32 %v4311_v52, %v14350_v45  ;;  %v4315_v45 = vpop.permute.xlu0 %4314 }
0x19ef   :  { %v14420_v10 = vadd.f32 %v4317_v60, %v4316_v6 }
0x19f0   :  { %v12726_v59 = vpop.eup %12725  ;;  %v4225_v53 = vpop.permute.xlu1 %4224 }
0x19f1   :  { %12727 = vtanh.f32 %v14420_v10  ;;  %v4230_v48 = vmul.f32 %v12726_v59, %v4225_v53 }
0x19f3   :  { %9716 = vmatmul.mubr.f32.vlgmr.msra.gmra.mrb[62].mxu0 %v4230_v48 }
0x19f4   :  { %11857 = vmatpush3.bf16.msra.mxu0 %v13004_v5  ;;  %9785 = vmatprep.mubr.msk.f32.mxu0 %vm12921_vm0, %v12922_v1 }
0x19f5   :  { %11858 = vmatprep.subr.bf16.mxu0 %v12920_v0 }
0x19f8   :  { %11860 = vmatpush3.bf16.msra.mxu0 %v13010_v7 }
0x19f9   :  { %11861 = vmatprep.subr.bf16.mxu0 %v12920_v0 }
0x19fb   :  { %v12728_v42 = vpop.eup %12727 }
0x19fc   :  { %11863 = vmatpush3.bf16.msra.mxu0 %v13023_v14  ;;  %v4320_v4 = vmul.f32 %v12728_v42, %v4315_v45 }
0x19fd   :  { %11864 = vmatprep.subr.bf16.mxu0 %v12920_v0 }
0x19fe   :  { %9751 = vmatmul.mubr.f32.vlgmr.msra.gmra.mrb[50].mxu1 %v4320_v4 }
0x19ff   :  { %11881 = vmatpush3.bf16.msra.mxu1 %v13094_v33  ;;  %9820 = vmatprep.mubr.msk.f32.mxu1 %vm12921_vm0, %v12922_v1 }
0x1a00   :  { %11866 = vmatpush3.bf16.msra.mxu0 %v13037_v17  ;;  %11882 = vmatprep.subr.bf16.mxu1 %v12920_v0 }
0x1a01   :  { %11867 = vmatprep.subr.bf16.mxu0 %v12920_v0 }
0x1a03   :  { %11884 = vmatpush3.bf16.msra.mxu1 %v13104_v36 }
0x1a04   :  { %11869 = vmatpush3.bf16.msra.mxu0 %v13047_v20  ;;  %11885 = vmatprep.subr.bf16.mxu1 %v12920_v0 }
0x1a05   :  { %11870 = vmatprep.subr.bf16.mxu0 %v12920_v0 }
0x1a07   :  { %11887 = vmatpush3.bf16.msra.mxu1 %v13123_v41 }
0x1a08   :  { %11872 = vmatpush3.bf16.msra.mxu0 %v13057_v23  ;;  %11888 = vmatprep.subr.bf16.mxu1 %v12920_v0 }
0x1a09   :  { %11873 = vmatprep.subr.bf16.mxu0 %v12920_v0 }
0x1a0b   :  { %11890 = vmatpush3.bf16.msra.mxu1 %v13153_v50 }
0x1a0c   :  { %11875 = vmatpush3.bf16.msra.mxu0 %v13067_v26  ;;  %11891 = vmatprep.subr.bf16.mxu1 %v12920_v0 }
0x1a0d   :  { %11876 = vmatprep.subr.bf16.mxu0 %v12920_v0 }
0x1a0f   :  { %11893 = vmatpush3.bf16.msra.mxu1 %v13179_v57 }
0x1a10   :  { %11878 = vmatpush3.bf16.msra.mxu0 %v13077_v29  ;;  %11894 = vmatprep.subr.bf16.mxu1 %v12920_v0 }
0x1a11   :  { %11903 = vmatprep.subr.bf16.mxu0 %v12920_v0 }
0x1a13   :  { %9786 = vmatmul.mubr.f32.vlgmr.msra.gmra.mrb[64].mxu0 %v4320_v4  ;;  %11896 = vmatpush3.bf16.msra.mxu1 %v13197_v61 }
0x1a14   :  { %11905 = vmatpush3.bf16.msra.mxu0 %v13140_v46  ;;  %11897 = vmatprep.subr.bf16.mxu1 %v12920_v0 }
0x1a15   :  { %11906 = vmatprep.subr.bf16.mxu0 %v12920_v0  ;;  %9855 = vmatprep.mubr.msk.f32.mxu0 %vm12921_vm0, %v12922_v1 }
0x1a17   :  { %11899 = vmatpush3.bf16.msra.mxu1 %v13214_v3 }
0x1a18   :  { %11908 = vmatpush3.bf16.msra.mxu0 %v13150_v49  ;;  %11900 = vmatprep.subr.bf16.mxu1 %v12920_v0 }
0x1a19   :  { %11909 = vmatprep.subr.bf16.mxu0 %v12920_v0 }
0x1a1b   :  { %11902 = vmatpush3.bf16.msra.mxu1 %v13226_v8 }
0x1a1c   :  { %11911 = vmatpush3.bf16.msra.mxu0 %v13176_v56  ;;  %11927 = vmatprep.subr.bf16.mxu1 %v12920_v0 }
0x1a1d   :  { %11912 = vmatprep.subr.bf16.mxu0 %v12920_v0 }
0x1a20   :  { %11914 = vmatpush3.bf16.msra.mxu0 %v13262_v27 }
0x1a21   :  { %11915 = vmatprep.subr.bf16.mxu0 %v12920_v0 }
0x1a24   :  { %11917 = vmatpush3.bf16.msra.mxu0 %v13272_v31 }
0x1a25   :  { %11918 = vmatprep.subr.bf16.mxu0 %v12920_v0 }
0x1a28   :  { %11920 = vmatpush3.bf16.msra.mxu0 %v13282_v35 }
0x1a29   :  { %11921 = vmatprep.subr.bf16.mxu0 %v12920_v0 }
0x1a2c   :  { %11923 = vmatpush3.bf16.msra.mxu0 %v13291_v39 }
0x1a2d   :  { %11924 = vmatprep.subr.bf16.mxu0 %v12920_v0 }
0x1a30   :  { %11926 = vmatpush3.bf16.msra.mxu0 %v13303_v44 }
0x1a31   :  { %11951 = vmatprep.subr.bf16.mxu0 %v12920_v0 }
0x1ac6   :  { %v4387_v47 = vpop.f32.mrb[62].mxu0 }
0x1ac7   :  { %v9717_v9 = vpop.f32.mrb[63].mxu0 }
0x1ad1   :  { %v4457_v21 = vpop.f32.mrb[50].mxu1 }
0x1ad2   :  { %v4458_v51 = vadd.f32 %v4457_v21, %v4387_v47  ;;  %v9752_v11 = vpop.f32.mrb[51].mxu1 }
0x1ad4   :  { %v4461_v54 = vadd.f32 %v14406_v55, %v4458_v51 }
0x1ad6   :  { %v6624_v18 = vmul.f32 -1.442695, %v4461_v54  ;;  %12729 = vtanh.f32 %v4461_v54 }
0x1ad8   :  { %12731 = vpow2.f32 %v6624_v18  ;;  %v4729_v18 = vld [vmem:[#allocation2 + $0x24] sm:$0x3] }
0x1ae0   :  { %v12730_v58 = vpop.eup %12729 }
0x1ae1   :  { %4471 = vrot.lane.b32.xlu0 %v12730_v58, %s12925_s19 }
0x1ae2   :  { %v12732_v12 = vpop.eup %12731 }
0x1ae3   :  { %v4465_v62 = vadd.f32 1.0, %v12732_v12 }
0x1ae5   :  { %12733 = vrcp.f32 %v4465_v62 }
0x1ae6   :  { %v4547_v2 = vpop.f32.mrb[64].mxu0 }
0x1ae7   :  { %v4551_v13 = vadd.f32 %v4547_v2, %v4480_v16  ;;  %v9787_v15 = vpop.f32.mrb[65].mxu0 }
0x1ae9   :  { %v6625_v22 = vmul.f32 -1.442695, %v4551_v13 }
0x1aeb   :  { %12735 = vpow2.f32 %v6625_v22 }
0x1aec   :  { %12737 = vtanh.f32 %v4551_v13 }
0x1aef   :  { %v12734_v19 = vpop.eup %12733 }
0x1af0   :  { %4469 = vrot.lane.b32.xlu1 %v12734_v19, %s12924_s18 }
0x1af4   :  { %4473 = vrot.lane.b32.xlu1 %v12734_v19, %s12923_s0 }
0x1af5   :  { %v12736_v25 = vpop.eup %12735 }
0x1af6   :  { %v4555_v28 = vadd.f32 1.0, %v12736_v25  ;;  %v12738_v63 = vpop.eup %12737 }
0x1af8   :  { %12739 = vrcp.f32 %v4555_v28  ;;  %4561 = vrot.lane.b32.xlu1 %v12738_v63, %s12925_s19 }
0x1b02   :  { %v12740_v30 = vpop.eup %12739 }
0x1b03   :  { %4559 = vrot.lane.b32.xlu0 %v12740_v30, %s12924_s18 }
0x1b07   :  { %4563 = vrot.lane.b32.xlu0 %v12740_v30, %s12923_s0 }
0x1b53   :  { %v4472_v32 = vpop.permute.xlu0 %4471 }
0x1b54   :  { %v4476_v37 = vmul.f32 %v12734_v19, %v4472_v32 }
0x1b62   :  { %v4470_v34 = vpop.permute.xlu1 %4469 }
0x1b63   :  { %v4475_v38 = vmul.f32 %v4470_v34, %v14416_v40 }
0x1b65   :  { %v14485_v24 = vadd.f32 %v4476_v37, %v4475_v38 }
0x1b66   :  { %v4474_v43 = vpop.permute.xlu1 %4473 }
0x1b67   :  { %12741 = vtanh.f32 %v14485_v24 }
0x1b6a   :  { %v4562_v6 = vpop.permute.xlu1 %4561 }
0x1b6b   :  { %v4566_v53 = vmul.f32 %v12740_v30, %v4562_v6 }
0x1b71   :  { %v12742_v52 = vpop.eup %12741 }
0x1b72   :  { %v4479_v60 = vmul.f32 %v12742_v52, %v4474_v43 }
0x1b74   :  { %9821 = vmatmul.mubr.f32.vlgmr.msra.gmra.mrb[52].mxu1 %v4479_v60 }
0x1b75   :  { %11929 = vmatpush3.bf16.msra.mxu1 %v13004_v5  ;;  %v4560_v59 = vpop.permute.xlu0 %4559  ;;  %9890 = vmatprep.mubr.msk.f32.mxu1 %vm12921_vm0, %v12922_v1 }
0x1b76   :  { %v4565_v48 = vmul.f32 %v4560_v59, %v14420_v10  ;;  %11930 = vmatprep.subr.bf16.mxu1 %v12920_v0 }
0x1b78   :  { %v14493_v40 = vadd.f32 %v4566_v53, %v4565_v48 }
0x1b79   :  { %11932 = vmatpush3.bf16.msra.mxu1 %v13010_v7  ;;  %v4564_v10 = vpop.permute.xlu0 %4563 }
0x1b7a   :  { %12743 = vtanh.f32 %v14493_v40  ;;  %11933 = vmatprep.subr.bf16.mxu1 %v12920_v0 }
0x1b7d   :  { %11935 = vmatpush3.bf16.msra.mxu1 %v13023_v14 }
0x1b7e   :  { %11936 = vmatprep.subr.bf16.mxu1 %v12920_v0 }
0x1b81   :  { %11938 = vmatpush3.bf16.msra.mxu1 %v13037_v17 }
0x1b82   :  { %11939 = vmatprep.subr.bf16.mxu1 %v12920_v0 }
0x1b84   :  { %v12744_v42 = vpop.eup %12743 }
0x1b85   :  { %v4569_v45 = vmul.f32 %v12744_v42, %v4564_v10  ;;  %11941 = vmatpush3.bf16.msra.mxu1 %v13047_v20 }
0x1b86   :  { %11942 = vmatprep.subr.bf16.mxu1 %v12920_v0 }
0x1b87   :  { %9856 = vmatmul.mubr.f32.vlgmr.msra.gmra.mrb[66].mxu0 %v4569_v45 }
0x1b88   :  { %11953 = vmatpush3.bf16.msra.mxu0 %v13094_v33  ;;  %9925 = vmatprep.mubr.msk.f32.mxu0 %vm12921_vm0, %v12922_v1 }
0x1b89   :  { %11944 = vmatpush3.bf16.msra.mxu1 %v13057_v23  ;;  %11954 = vmatprep.subr.bf16.mxu0 %v12920_v0 }
0x1b8a   :  { %11945 = vmatprep.subr.bf16.mxu1 %v12920_v0 }
0x1b8c   :  { %11956 = vmatpush3.bf16.msra.mxu0 %v13104_v36 }
0x1b8d   :  { %11947 = vmatpush3.bf16.msra.mxu1 %v13067_v26  ;;  %11957 = vmatprep.subr.bf16.mxu0 %v12920_v0 }
0x1b8e   :  { %11948 = vmatprep.subr.bf16.mxu1 %v12920_v0 }
0x1b90   :  { %11959 = vmatpush3.bf16.msra.mxu0 %v13123_v41 }
0x1b91   :  { %11950 = vmatpush3.bf16.msra.mxu1 %v13077_v29  ;;  %11960 = vmatprep.subr.bf16.mxu0 %v12920_v0 }
0x1b92   :  { %11975 = vmatprep.subr.bf16.mxu1 %v12920_v0 }
0x1b94   :  { %9891 = vmatmul.mubr.f32.vlgmr.msra.gmra.mrb[54].mxu1 %v4569_v45  ;;  %11962 = vmatpush3.bf16.msra.mxu0 %v13153_v50 }
0x1b95   :  { %11977 = vmatpush3.bf16.msra.mxu1 %v13140_v46  ;;  %11963 = vmatprep.subr.bf16.mxu0 %v12920_v0 }
0x1b96   :  { %11978 = vmatprep.subr.bf16.mxu1 %v12920_v0  ;;  %9960 = vmatprep.mubr.msk.f32.mxu1 %vm12921_vm0, %v12922_v1 }
0x1b98   :  { %11965 = vmatpush3.bf16.msra.mxu0 %v13179_v57 }
0x1b99   :  { %11980 = vmatpush3.bf16.msra.mxu1 %v13150_v49  ;;  %11966 = vmatprep.subr.bf16.mxu0 %v12920_v0 }
0x1b9a   :  { %11981 = vmatprep.subr.bf16.mxu1 %v12920_v0 }
0x1b9c   :  { %11968 = vmatpush3.bf16.msra.mxu0 %v13197_v61 }
0x1b9d   :  { %11983 = vmatpush3.bf16.msra.mxu1 %v13176_v56  ;;  %11969 = vmatprep.subr.bf16.mxu0 %v12920_v0 }
0x1b9e   :  { %11984 = vmatprep.subr.bf16.mxu1 %v12920_v0 }
0x1ba0   :  { %11971 = vmatpush3.bf16.msra.mxu0 %v13214_v3 }
0x1ba1   :  { %11986 = vmatpush3.bf16.msra.mxu1 %v13262_v27  ;;  %11972 = vmatprep.subr.bf16.mxu0 %v12920_v0 }
0x1ba2   :  { %11987 = vmatprep.subr.bf16.mxu1 %v12920_v0 }
0x1ba4   :  { %11974 = vmatpush3.bf16.msra.mxu0 %v13226_v8 }
0x1ba5   :  { %11989 = vmatpush3.bf16.msra.mxu1 %v13272_v31  ;;  %11999 = vmatprep.subr.bf16.mxu0 %v12920_v0 }
0x1ba6   :  { %11990 = vmatprep.subr.bf16.mxu1 %v12920_v0 }
0x1ba9   :  { %11992 = vmatpush3.bf16.msra.mxu1 %v13282_v35 }
0x1baa   :  { %11993 = vmatprep.subr.bf16.mxu1 %v12920_v0 }
0x1bad   :  { %11995 = vmatpush3.bf16.msra.mxu1 %v13291_v39 }
0x1bae   :  { %11996 = vmatprep.subr.bf16.mxu1 %v12920_v0 }
0x1bb1   :  { %11998 = vmatpush3.bf16.msra.mxu1 %v13303_v44 }
0x1bb2   :  { %12023 = vmatprep.subr.bf16.mxu1 %v12920_v0 }
0x1c47   :  { %v4636_v4 = vpop.f32.mrb[52].mxu1 }
0x1c48   :  { %v9822_v47 = vpop.f32.mrb[53].mxu1 }
0x1c5a   :  { %v4706_v9 = vpop.f32.mrb[66].mxu0 }
0x1c5b   :  { %v4707_v21 = vadd.f32 %v4706_v9, %v4636_v4  ;;  %v9857_v51 = vpop.f32.mrb[67].mxu0 }
0x1c5d   :  { %v4710_v11 = vadd.f32 %v14406_v55, %v4707_v21 }
0x1c5f   :  { %v6626_v54 = vmul.f32 -1.442695, %v4710_v11  ;;  %12745 = vtanh.f32 %v4710_v11 }
0x1c61   :  { %12747 = vpow2.f32 %v6626_v54 }
0x1c67   :  { %v4796_v58 = vpop.f32.mrb[54].mxu1 }
0x1c68   :  { %v4800_v12 = vadd.f32 %v4796_v58, %v4729_v18  ;;  %v9892_v62 = vpop.f32.mrb[55].mxu1 }
0x1c69   :  { %v12746_v16 = vpop.eup %12745 }
0x1c6a   :  { %v6627_v2 = vmul.f32 -1.442695, %v4800_v12  ;;  %12749 = vtanh.f32 %v4800_v12  ;;  %4720 = vrot.lane.b32.xlu0 %v12746_v16, %s12925_s19  ;;  %v4978_v12 = vld [vmem:[#allocation2 + $0x26] sm:$0x3] }
0x1c6b   :  { %v12748_v13 = vpop.eup %12747 }
0x1c6c   :  { %v4714_v15 = vadd.f32 1.0, %v12748_v13  ;;  %12751 = vpow2.f32 %v6627_v2 }
0x1c6e   :  { %12753 = vrcp.f32 %v4714_v15 }
0x1c74   :  { %v12750_v22 = vpop.eup %12749 }
0x1c75   :  { %4810 = vrot.lane.b32.xlu0 %v12750_v22, %s12925_s19 }
0x1c76   :  { %v12752_v19 = vpop.eup %12751 }
0x1c77   :  { %v4804_v25 = vadd.f32 1.0, %v12752_v19 }
0x1c78   :  { %v12754_v28 = vpop.eup %12753 }
0x1c79   :  { %12755 = vrcp.f32 %v4804_v25  ;;  %4718 = vrot.lane.b32.xlu1 %v12754_v28, %s12924_s18 }
0x1c83   :  { %v12756_v63 = vpop.eup %12755 }
0x1c84   :  { %4812 = vrot.lane.b32.xlu0 %v12756_v63, %s12923_s0  ;;  %4808 = vrot.lane.b32.xlu1 %v12756_v63, %s12924_s18 }
0x1c88   :  { %4722 = vrot.lane.b32.xlu1 %v12754_v28, %s12923_s0 }
0x1cdc   :  { %v4721_v30 = vpop.permute.xlu0 %4720 }
0x1cdd   :  { %v4725_v34 = vmul.f32 %v12754_v28, %v4721_v30 }
0x1ce7   :  { %v4811_v43 = vpop.permute.xlu0 %4810 }
0x1ce8   :  { %v4815_v60 = vmul.f32 %v12756_v63, %v4811_v43 }
0x1ceb   :  { %v4719_v32 = vpop.permute.xlu1 %4718 }
0x1cec   :  { %v4724_v37 = vmul.f32 %v4719_v32, %v14485_v24 }
0x1cee   :  { %v14554_v38 = vadd.f32 %v4725_v34, %v4724_v37 }
0x1cf0   :  { %12757 = vtanh.f32 %v14554_v38 }
0x1cf6   :  { %v4809_v52 = vpop.permute.xlu1 %4808 }
0x1cf7   :  { %v4814_v6 = vmul.f32 %v4809_v52, %v14493_v40  ;;  %v4813_v40 = vpop.permute.xlu0 %4812 }
0x1cf9   :  { %v14558_v59 = vadd.f32 %v4815_v60, %v4814_v6 }
0x1cfa   :  { %v12758_v53 = vpop.eup %12757  ;;  %v4723_v48 = vpop.permute.xlu1 %4722 }
0x1cfb   :  { %12759 = vtanh.f32 %v14558_v59  ;;  %v4728_v42 = vmul.f32 %v12758_v53, %v4723_v48 }
0x1cfd   :  { %9926 = vmatmul.mubr.f32.vlgmr.msra.gmra.mrb[68].mxu0 %v4728_v42 }
0x1cfe   :  { %12001 = vmatpush3.bf16.msra.mxu0 %v13004_v5  ;;  %9995 = vmatprep.mubr.msk.f32.mxu0 %vm12921_vm0, %v12922_v1 }
0x1cff   :  { %12002 = vmatprep.subr.bf16.mxu0 %v12920_v0 }
0x1d02   :  { %12004 = vmatpush3.bf16.msra.mxu0 %v13010_v7 }
0x1d03   :  { %12005 = vmatprep.subr.bf16.mxu0 %v12920_v0 }
0x1d05   :  { %v12760_v24 = vpop.eup %12759 }
0x1d06   :  { %12007 = vmatpush3.bf16.msra.mxu0 %v13023_v14  ;;  %v4818_v10 = vmul.f32 %v12760_v24, %v4813_v40 }
0x1d07   :  { %12008 = vmatprep.subr.bf16.mxu0 %v12920_v0 }
0x1d08   :  { %9961 = vmatmul.mubr.f32.vlgmr.msra.gmra.mrb[56].mxu1 %v4818_v10 }
0x1d09   :  { %12025 = vmatpush3.bf16.msra.mxu1 %v13094_v33  ;;  %10030 = vmatprep.mubr.msk.f32.mxu1 %vm12921_vm0, %v12922_v1 }
0x1d0a   :  { %12010 = vmatpush3.bf16.msra.mxu0 %v13037_v17  ;;  %12026 = vmatprep.subr.bf16.mxu1 %v12920_v0 }
0x1d0b   :  { %12011 = vmatprep.subr.bf16.mxu0 %v12920_v0 }
0x1d0d   :  { %12028 = vmatpush3.bf16.msra.mxu1 %v13104_v36 }
0x1d0e   :  { %12013 = vmatpush3.bf16.msra.mxu0 %v13047_v20  ;;  %12029 = vmatprep.subr.bf16.mxu1 %v12920_v0 }
0x1d0f   :  { %12014 = vmatprep.subr.bf16.mxu0 %v12920_v0 }
0x1d11   :  { %12031 = vmatpush3.bf16.msra.mxu1 %v13123_v41 }
0x1d12   :  { %12016 = vmatpush3.bf16.msra.mxu0 %v13057_v23  ;;  %12032 = vmatprep.subr.bf16.mxu1 %v12920_v0 }
0x1d13   :  { %12017 = vmatprep.subr.bf16.mxu0 %v12920_v0 }
0x1d15   :  { %12034 = vmatpush3.bf16.msra.mxu1 %v13153_v50 }
0x1d16   :  { %12019 = vmatpush3.bf16.msra.mxu0 %v13067_v26  ;;  %12035 = vmatprep.subr.bf16.mxu1 %v12920_v0 }
0x1d17   :  { %12020 = vmatprep.subr.bf16.mxu0 %v12920_v0 }
0x1d19   :  { %12037 = vmatpush3.bf16.msra.mxu1 %v13179_v57 }
0x1d1a   :  { %12022 = vmatpush3.bf16.msra.mxu0 %v13077_v29  ;;  %12038 = vmatprep.subr.bf16.mxu1 %v12920_v0 }
0x1d1b   :  { %12047 = vmatprep.subr.bf16.mxu0 %v12920_v0 }
0x1d1d   :  { %9996 = vmatmul.mubr.f32.vlgmr.msra.gmra.mrb[70].mxu0 %v4818_v10  ;;  %12040 = vmatpush3.bf16.msra.mxu1 %v13197_v61 }
0x1d1e   :  { %12049 = vmatpush3.bf16.msra.mxu0 %v13140_v46  ;;  %12041 = vmatprep.subr.bf16.mxu1 %v12920_v0 }
0x1d1f   :  { %12050 = vmatprep.subr.bf16.mxu0 %v12920_v0  ;;  %10065 = vmatprep.mubr.msk.f32.mxu0 %vm12921_vm0, %v12922_v1 }
0x1d21   :  { %12043 = vmatpush3.bf16.msra.mxu1 %v13214_v3 }
0x1d22   :  { %12052 = vmatpush3.bf16.msra.mxu0 %v13150_v49  ;;  %12044 = vmatprep.subr.bf16.mxu1 %v12920_v0 }
0x1d23   :  { %12053 = vmatprep.subr.bf16.mxu0 %v12920_v0 }
0x1d25   :  { %12046 = vmatpush3.bf16.msra.mxu1 %v13226_v8 }
0x1d26   :  { %12055 = vmatpush3.bf16.msra.mxu0 %v13176_v56  ;;  %12071 = vmatprep.subr.bf16.mxu1 %v12920_v0 }
0x1d27   :  { %12056 = vmatprep.subr.bf16.mxu0 %v12920_v0 }
0x1d2a   :  { %12058 = vmatpush3.bf16.msra.mxu0 %v13262_v27 }
0x1d2b   :  { %12059 = vmatprep.subr.bf16.mxu0 %v12920_v0 }
0x1d2e   :  { %12061 = vmatpush3.bf16.msra.mxu0 %v13272_v31 }
0x1d2f   :  { %12062 = vmatprep.subr.bf16.mxu0 %v12920_v0 }
0x1d32   :  { %12064 = vmatpush3.bf16.msra.mxu0 %v13282_v35 }
0x1d33   :  { %12065 = vmatprep.subr.bf16.mxu0 %v12920_v0 }
0x1d36   :  { %12067 = vmatpush3.bf16.msra.mxu0 %v13291_v39 }
0x1d37   :  { %12068 = vmatprep.subr.bf16.mxu0 %v12920_v0 }
0x1d3a   :  { %12070 = vmatpush3.bf16.msra.mxu0 %v13303_v44 }
0x1d3b   :  { %12095 = vmatprep.subr.bf16.mxu0 %v12920_v0 }
0x1dd0   :  { %v4885_v45 = vpop.f32.mrb[68].mxu0 }
0x1dd1   :  { %v9927_v4 = vpop.f32.mrb[69].mxu0 }
0x1ddb   :  { %v4955_v47 = vpop.f32.mrb[56].mxu1 }
0x1ddc   :  { %v4956_v9 = vadd.f32 %v4955_v47, %v4885_v45  ;;  %v9962_v21 = vpop.f32.mrb[57].mxu1 }
0x1dde   :  { %v4959_v51 = vadd.f32 %v14406_v55, %v4956_v9 }
0x1de0   :  { %v6628_v11 = vmul.f32 -1.442695, %v4959_v51  ;;  %12761 = vtanh.f32 %v4959_v51 }
0x1de2   :  { %12763 = vpow2.f32 %v6628_v11  ;;  %v5227_v11 = vld [vmem:[#allocation2 + $0x28] sm:$0x3] }
0x1dea   :  { %v12762_v54 = vpop.eup %12761 }
0x1deb   :  { %4969 = vrot.lane.b32.xlu0 %v12762_v54, %s12925_s19 }
0x1dec   :  { %v12764_v18 = vpop.eup %12763 }
0x1ded   :  { %v4963_v58 = vadd.f32 1.0, %v12764_v18 }
0x1def   :  { %12765 = vrcp.f32 %v4963_v58 }
0x1df0   :  { %v5045_v62 = vpop.f32.mrb[70].mxu0 }
0x1df1   :  { %v5049_v16 = vadd.f32 %v5045_v62, %v4978_v12  ;;  %v9997_v2 = vpop.f32.mrb[71].mxu0 }
0x1df3   :  { %v6629_v13 = vmul.f32 -1.442695, %v5049_v16 }
0x1df5   :  { %12767 = vpow2.f32 %v6629_v13 }
0x1df6   :  { %12769 = vtanh.f32 %v5049_v16 }
0x1df9   :  { %v12766_v15 = vpop.eup %12765 }
0x1dfa   :  { %4967 = vrot.lane.b32.xlu1 %v12766_v15, %s12924_s18 }
0x1dfe   :  { %4971 = vrot.lane.b32.xlu1 %v12766_v15, %s12923_s0 }
0x1dff   :  { %v12768_v22 = vpop.eup %12767 }
0x1e00   :  { %v5053_v19 = vadd.f32 1.0, %v12768_v22  ;;  %v12770_v25 = vpop.eup %12769 }
0x1e02   :  { %12771 = vrcp.f32 %v5053_v19  ;;  %5059 = vrot.lane.b32.xlu1 %v12770_v25, %s12925_s19 }
0x1e0c   :  { %v12772_v28 = vpop.eup %12771 }
0x1e0d   :  { %5057 = vrot.lane.b32.xlu0 %v12772_v28, %s12924_s18 }
0x1e11   :  { %5061 = vrot.lane.b32.xlu0 %v12772_v28, %s12923_s0 }
0x1e5d   :  { %v4970_v63 = vpop.permute.xlu0 %4969 }
0x1e5e   :  { %v4974_v32 = vmul.f32 %v12766_v15, %v4970_v63 }
0x1e6c   :  { %v4968_v30 = vpop.permute.xlu1 %4967 }
0x1e6d   :  { %v4973_v34 = vmul.f32 %v4968_v30, %v14554_v38 }
0x1e6f   :  { %v14623_v37 = vadd.f32 %v4974_v32, %v4973_v34 }
0x1e70   :  { %v4972_v43 = vpop.permute.xlu1 %4971 }
0x1e71   :  { %12773 = vtanh.f32 %v14623_v37 }
0x1e74   :  { %v5060_v6 = vpop.permute.xlu1 %5059 }
0x1e75   :  { %v5064_v48 = vmul.f32 %v12772_v28, %v5060_v6 }
0x1e7b   :  { %v12774_v52 = vpop.eup %12773 }
0x1e7c   :  { %v4977_v60 = vmul.f32 %v12774_v52, %v4972_v43 }
0x1e7e   :  { %10031 = vmatmul.mubr.f32.vlgmr.msra.gmra.mrb[58].mxu1 %v4977_v60 }
0x1e7f   :  { %12073 = vmatpush3.bf16.msra.mxu1 %v13004_v5  ;;  %v5058_v53 = vpop.permute.xlu0 %5057  ;;  %10100 = vmatprep.mubr.msk.f32.mxu1 %vm12921_vm0, %v12922_v1 }
0x1e80   :  { %v5063_v42 = vmul.f32 %v5058_v53, %v14558_v59  ;;  %12074 = vmatprep.subr.bf16.mxu1 %v12920_v0 }
0x1e82   :  { %v14631_v38 = vadd.f32 %v5064_v48, %v5063_v42 }
0x1e83   :  { %12076 = vmatpush3.bf16.msra.mxu1 %v13010_v7  ;;  %v5062_v59 = vpop.permute.xlu0 %5061 }
0x1e84   :  { %12775 = vtanh.f32 %v14631_v38  ;;  %12077 = vmatprep.subr.bf16.mxu1 %v12920_v0 }
0x1e87   :  { %12079 = vmatpush3.bf16.msra.mxu1 %v13023_v14 }
0x1e88   :  { %12080 = vmatprep.subr.bf16.mxu1 %v12920_v0 }
0x1e8b   :  { %12082 = vmatpush3.bf16.msra.mxu1 %v13037_v17 }
0x1e8c   :  { %12083 = vmatprep.subr.bf16.mxu1 %v12920_v0 }
0x1e8e   :  { %v12776_v24 = vpop.eup %12775 }
0x1e8f   :  { %v5067_v40 = vmul.f32 %v12776_v24, %v5062_v59  ;;  %12085 = vmatpush3.bf16.msra.mxu1 %v13047_v20 }
0x1e90   :  { %12086 = vmatprep.subr.bf16.mxu1 %v12920_v0 }
0x1e91   :  { %10066 = vmatmul.mubr.f32.vlgmr.msra.gmra.mrb[72].mxu0 %v5067_v40 }
0x1e92   :  { %12097 = vmatpush3.bf16.msra.mxu0 %v13094_v33  ;;  %10135 = vmatprep.mubr.msk.f32.mxu0 %vm12921_vm0, %v12922_v1 }
0x1e93   :  { %12088 = vmatpush3.bf16.msra.mxu1 %v13057_v23  ;;  %12098 = vmatprep.subr.bf16.mxu0 %v12920_v0 }
0x1e94   :  { %12089 = vmatprep.subr.bf16.mxu1 %v12920_v0 }
0x1e96   :  { %12100 = vmatpush3.bf16.msra.mxu0 %v13104_v36 }
0x1e97   :  { %12091 = vmatpush3.bf16.msra.mxu1 %v13067_v26  ;;  %12101 = vmatprep.subr.bf16.mxu0 %v12920_v0 }
0x1e98   :  { %12092 = vmatprep.subr.bf16.mxu1 %v12920_v0 }
0x1e9a   :  { %12103 = vmatpush3.bf16.msra.mxu0 %v13123_v41 }
0x1e9b   :  { %12094 = vmatpush3.bf16.msra.mxu1 %v13077_v29  ;;  %12104 = vmatprep.subr.bf16.mxu0 %v12920_v0 }
0x1e9c   :  { %12119 = vmatprep.subr.bf16.mxu1 %v12920_v0 }
0x1e9e   :  { %10101 = vmatmul.mubr.f32.vlgmr.msra.gmra.mrb[60].mxu1 %v5067_v40  ;;  %12106 = vmatpush3.bf16.msra.mxu0 %v13153_v50 }
0x1e9f   :  { %12121 = vmatpush3.bf16.msra.mxu1 %v13140_v46  ;;  %12107 = vmatprep.subr.bf16.mxu0 %v12920_v0 }
0x1ea0   :  { %12122 = vmatprep.subr.bf16.mxu1 %v12920_v0  ;;  %10170 = vmatprep.mubr.msk.f32.mxu1 %vm12921_vm0, %v12922_v1 }
0x1ea2   :  { %12109 = vmatpush3.bf16.msra.mxu0 %v13179_v57 }
0x1ea3   :  { %12124 = vmatpush3.bf16.msra.mxu1 %v13150_v49  ;;  %12110 = vmatprep.subr.bf16.mxu0 %v12920_v0 }
0x1ea4   :  { %12125 = vmatprep.subr.bf16.mxu1 %v12920_v0 }
0x1ea6   :  { %12112 = vmatpush3.bf16.msra.mxu0 %v13197_v61 }
0x1ea7   :  { %12127 = vmatpush3.bf16.msra.mxu1 %v13176_v56  ;;  %12113 = vmatprep.subr.bf16.mxu0 %v12920_v0 }
0x1ea8   :  { %12128 = vmatprep.subr.bf16.mxu1 %v12920_v0 }
0x1eaa   :  { %12115 = vmatpush3.bf16.msra.mxu0 %v13214_v3 }
0x1eab   :  { %12130 = vmatpush3.bf16.msra.mxu1 %v13262_v27  ;;  %12116 = vmatprep.subr.bf16.mxu0 %v12920_v0 }
0x1eac   :  { %12131 = vmatprep.subr.bf16.mxu1 %v12920_v0 }
0x1eae   :  { %12118 = vmatpush3.bf16.msra.mxu0 %v13226_v8 }
0x1eaf   :  { %12133 = vmatpush3.bf16.msra.mxu1 %v13272_v31  ;;  %12143 = vmatprep.subr.bf16.mxu0 %v12920_v0 }
0x1eb0   :  { %12134 = vmatprep.subr.bf16.mxu1 %v12920_v0 }
0x1eb3   :  { %12136 = vmatpush3.bf16.msra.mxu1 %v13282_v35 }
0x1eb4   :  { %12137 = vmatprep.subr.bf16.mxu1 %v12920_v0 }
0x1eb7   :  { %12139 = vmatpush3.bf16.msra.mxu1 %v13291_v39 }
0x1eb8   :  { %12140 = vmatprep.subr.bf16.mxu1 %v12920_v0 }
0x1ebb   :  { %12142 = vmatpush3.bf16.msra.mxu1 %v13303_v44 }
0x1ebc   :  { %12167 = vmatprep.subr.bf16.mxu1 %v12920_v0 }
0x1f51   :  { %v5134_v10 = vpop.f32.mrb[58].mxu1 }
0x1f52   :  { %v10032_v45 = vpop.f32.mrb[59].mxu1 }
0x1f64   :  { %v5204_v4 = vpop.f32.mrb[72].mxu0 }
0x1f65   :  { %v5205_v47 = vadd.f32 %v5204_v4, %v5134_v10  ;;  %v10067_v9 = vpop.f32.mrb[73].mxu0 }
0x1f67   :  { %v5208_v21 = vadd.f32 %v14406_v55, %v5205_v47  ;;  %v14756_v47 = vld [vmem:[%s15059_s6] ss:$0 sm:$0xff] }
0x1f69   :  { %v6630_v51 = vmul.f32 -1.442695, %v5208_v21  ;;  %12777 = vtanh.f32 %v5208_v21 }
0x1f6b   :  { %12779 = vpow2.f32 %v6630_v51 }
0x1f71   :  { %v5294_v54 = vpop.f32.mrb[60].mxu1 }
0x1f72   :  { %v5298_v18 = vadd.f32 %v5294_v54, %v5227_v11  ;;  %v10102_v58 = vpop.f32.mrb[61].mxu1 }
0x1f73   :  { %v12778_v12 = vpop.eup %12777 }
0x1f74   :  { %v6631_v62 = vmul.f32 -1.442695, %v5298_v18  ;;  %12781 = vtanh.f32 %v5298_v18  ;;  %5218 = vrot.lane.b32.xlu0 %v12778_v12, %s12925_s19  ;;  %v5476_v18 = vld [vmem:[#allocation2 + $0x2a] sm:$0x3] }
0x1f75   :  { %v12780_v16 = vpop.eup %12779 }
0x1f76   :  { %v5212_v2 = vadd.f32 1.0, %v12780_v16  ;;  %12783 = vpow2.f32 %v6631_v62 }
0x1f78   :  { %12785 = vrcp.f32 %v5212_v2 }
0x1f7e   :  { %v12782_v13 = vpop.eup %12781 }
0x1f7f   :  { %5308 = vrot.lane.b32.xlu0 %v12782_v13, %s12925_s19 }
0x1f80   :  { %v12784_v55 = vpop.eup %12783 }
0x1f81   :  { %v5302_v15 = vadd.f32 1.0, %v12784_v55 }
0x1f82   :  { %v12786_v22 = vpop.eup %12785 }
0x1f83   :  { %12787 = vrcp.f32 %v5302_v15  ;;  %5216 = vrot.lane.b32.xlu1 %v12786_v22, %s12924_s18 }
0x1f8d   :  { %v12788_v19 = vpop.eup %12787 }
0x1f8e   :  { %5310 = vrot.lane.b32.xlu0 %v12788_v19, %s12923_s0  ;;  %5306 = vrot.lane.b32.xlu1 %v12788_v19, %s12924_s18 }
0x1f92   :  { %5220 = vrot.lane.b32.xlu1 %v12786_v22, %s12923_s0 }
0x1fe6   :  { %v5219_v25 = vpop.permute.xlu0 %5218 }
0x1fe7   :  { %v5223_v63 = vmul.f32 %v12786_v22, %v5219_v25 }
0x1ff1   :  { %v5309_v34 = vpop.permute.xlu0 %5308 }
0x1ff2   :  { %v5313_v52 = vmul.f32 %v12788_v19, %v5309_v34 }
0x1ff5   :  { %v5217_v28 = vpop.permute.xlu1 %5216 }
0x1ff6   :  { %v5222_v30 = vmul.f32 %v5217_v28, %v14623_v37 }
0x1ff8   :  { %v14692_v32 = vadd.f32 %v5223_v63, %v5222_v30 }
0x1ffa   :  { %12789 = vtanh.f32 %v14692_v32 }
0x2000   :  { %v5307_v43 = vpop.permute.xlu1 %5306 }
0x2001   :  { %v5312_v60 = vmul.f32 %v5307_v43, %v14631_v38  ;;  %v5311_v38 = vpop.permute.xlu0 %5310 }
0x2003   :  { %v14696_v6 = vadd.f32 %v5313_v52, %v5312_v60 }
0x2004   :  { %v12790_v53 = vpop.eup %12789  ;;  %v5221_v48 = vpop.permute.xlu1 %5220 }
0x2005   :  { %12791 = vtanh.f32 %v14696_v6  ;;  %v5226_v42 = vmul.f32 %v12790_v53, %v5221_v48 }
0x2007   :  { %10136 = vmatmul.mubr.f32.vlgmr.msra.gmra.mrb[74].mxu0 %v5226_v42 }
0x2008   :  { %12145 = vmatpush3.bf16.msra.mxu0 %v13004_v5  ;;  %10205 = vmatprep.mubr.msk.f32.mxu0 %vm12921_vm0, %v12922_v1 }
0x2009   :  { %12146 = vmatprep.subr.bf16.mxu0 %v12920_v0 }
0x200c   :  { %12148 = vmatpush3.bf16.msra.mxu0 %v13010_v7 }
0x200d   :  { %12149 = vmatprep.subr.bf16.mxu0 %v12920_v0 }
0x200f   :  { %v12792_v37 = vpop.eup %12791 }
0x2010   :  { %12151 = vmatpush3.bf16.msra.mxu0 %v13023_v14  ;;  %v5316_v24 = vmul.f32 %v12792_v37, %v5311_v38 }
0x2011   :  { %12152 = vmatprep.subr.bf16.mxu0 %v12920_v0 }
0x2012   :  { %10171 = vmatmul.mubr.f32.vlgmr.msra.gmra.mrb[62].mxu1 %v5316_v24 }
0x2013   :  { %12169 = vmatpush3.bf16.msra.mxu1 %v13094_v33  ;;  %10240 = vmatprep.mubr.msk.f32.mxu1 %vm12921_vm0, %v12922_v1 }
0x2014   :  { %12154 = vmatpush3.bf16.msra.mxu0 %v13037_v17  ;;  %12170 = vmatprep.subr.bf16.mxu1 %v12920_v0 }
0x2015   :  { %12155 = vmatprep.subr.bf16.mxu0 %v12920_v0 }
0x2017   :  { %12172 = vmatpush3.bf16.msra.mxu1 %v13104_v36 }
0x2018   :  { %12157 = vmatpush3.bf16.msra.mxu0 %v13047_v20  ;;  %12173 = vmatprep.subr.bf16.mxu1 %v12920_v0 }
0x2019   :  { %12158 = vmatprep.subr.bf16.mxu0 %v12920_v0 }
0x201b   :  { %12175 = vmatpush3.bf16.msra.mxu1 %v13123_v41 }
0x201c   :  { %12160 = vmatpush3.bf16.msra.mxu0 %v13057_v23  ;;  %12176 = vmatprep.subr.bf16.mxu1 %v12920_v0 }
0x201d   :  { %12161 = vmatprep.subr.bf16.mxu0 %v12920_v0 }
0x201f   :  { %12178 = vmatpush3.bf16.msra.mxu1 %v13153_v50 }
0x2020   :  { %12163 = vmatpush3.bf16.msra.mxu0 %v13067_v26  ;;  %12179 = vmatprep.subr.bf16.mxu1 %v12920_v0 }
0x2021   :  { %12164 = vmatprep.subr.bf16.mxu0 %v12920_v0 }
0x2023   :  { %12181 = vmatpush3.bf16.msra.mxu1 %v13179_v57 }
0x2024   :  { %12166 = vmatpush3.bf16.msra.mxu0 %v13077_v29  ;;  %12182 = vmatprep.subr.bf16.mxu1 %v12920_v0 }
0x2025   :  { %12191 = vmatprep.subr.bf16.mxu0 %v12920_v0 }
0x2027   :  { %10206 = vmatmul.mubr.f32.vlgmr.msra.gmra.mrb[76].mxu0 %v5316_v24  ;;  %12184 = vmatpush3.bf16.msra.mxu1 %v13197_v61 }
0x2028   :  { %12193 = vmatpush3.bf16.msra.mxu0 %v13140_v46  ;;  %12185 = vmatprep.subr.bf16.mxu1 %v12920_v0 }
0x2029   :  { %12194 = vmatprep.subr.bf16.mxu0 %v12920_v0  ;;  %10275 = vmatprep.mubr.msk.f32.mxu0 %vm12921_vm0, %v12922_v1 }
0x202b   :  { %12187 = vmatpush3.bf16.msra.mxu1 %v13214_v3 }
0x202c   :  { %12196 = vmatpush3.bf16.msra.mxu0 %v13150_v49  ;;  %12188 = vmatprep.subr.bf16.mxu1 %v12920_v0 }
0x202d   :  { %12197 = vmatprep.subr.bf16.mxu0 %v12920_v0 }
0x202f   :  { %12190 = vmatpush3.bf16.msra.mxu1 %v13226_v8 }
0x2030   :  { %12199 = vmatpush3.bf16.msra.mxu0 %v13176_v56  ;;  %12215 = vmatprep.subr.bf16.mxu1 %v12920_v0 }
0x2031   :  { %12200 = vmatprep.subr.bf16.mxu0 %v12920_v0 }
0x2034   :  { %12202 = vmatpush3.bf16.msra.mxu0 %v13262_v27 }
0x2035   :  { %12203 = vmatprep.subr.bf16.mxu0 %v12920_v0 }
0x2038   :  { %12205 = vmatpush3.bf16.msra.mxu0 %v13272_v31 }
0x2039   :  { %12206 = vmatprep.subr.bf16.mxu0 %v12920_v0 }
0x203c   :  { %12208 = vmatpush3.bf16.msra.mxu0 %v13282_v35 }
0x203d   :  { %12209 = vmatprep.subr.bf16.mxu0 %v12920_v0 }
0x2040   :  { %12211 = vmatpush3.bf16.msra.mxu0 %v13291_v39 }
0x2041   :  { %12212 = vmatprep.subr.bf16.mxu0 %v12920_v0 }
0x2044   :  { %12214 = vmatpush3.bf16.msra.mxu0 %v13303_v44 }
0x2045   :  { %12239 = vmatprep.subr.bf16.mxu0 %v12920_v0 }
0x20da   :  { %v5383_v59 = vpop.f32.mrb[74].mxu0 }
0x20db   :  { %v10137_v40 = vpop.f32.mrb[75].mxu0 }
0x20e5   :  { %v5453_v10 = vpop.f32.mrb[62].mxu1 }
0x20e6   :  { %v5454_v45 = vadd.f32 %v5453_v10, %v5383_v59  ;;  %v10172_v4 = vpop.f32.mrb[63].mxu1 }
0x20e8   :  { %v5457_v9 = vadd.f32 %v14756_v47, %v5454_v45 }
0x20ea   :  { %v6632_v21 = vmul.f32 -1.442695, %v5457_v9  ;;  %12793 = vtanh.f32 %v5457_v9 }
0x20ec   :  { %12795 = vpow2.f32 %v6632_v21  ;;  %v5725_v21 = vld [vmem:[#allocation2 + $0x2c] sm:$0x3] }
0x20f4   :  { %v12794_v51 = vpop.eup %12793 }
0x20f5   :  { %5467 = vrot.lane.b32.xlu0 %v12794_v51, %s12925_s19 }
0x20f6   :  { %v12796_v11 = vpop.eup %12795 }
0x20f7   :  { %v5461_v54 = vadd.f32 1.0, %v12796_v11 }
0x20f9   :  { %12797 = vrcp.f32 %v5461_v54 }
0x20fa   :  { %v5543_v58 = vpop.f32.mrb[76].mxu0 }
0x20fb   :  { %v5547_v12 = vadd.f32 %v5543_v58, %v5476_v18  ;;  %v10207_v62 = vpop.f32.mrb[77].mxu0 }
0x20fd   :  { %v6633_v16 = vmul.f32 -1.442695, %v5547_v12 }
0x20ff   :  { %12799 = vpow2.f32 %v6633_v16 }
0x2100   :  { %12801 = vtanh.f32 %v5547_v12 }
0x2103   :  { %v12798_v2 = vpop.eup %12797 }
0x2104   :  { %5465 = vrot.lane.b32.xlu1 %v12798_v2, %s12924_s18 }
0x2108   :  { %5469 = vrot.lane.b32.xlu1 %v12798_v2, %s12923_s0 }
0x2109   :  { %v12800_v13 = vpop.eup %12799 }
0x210a   :  { %v5551_v55 = vadd.f32 1.0, %v12800_v13  ;;  %v12802_v15 = vpop.eup %12801 }
0x210c   :  { %12803 = vrcp.f32 %v5551_v55  ;;  %5557 = vrot.lane.b32.xlu1 %v12802_v15, %s12925_s19 }
0x2116   :  { %v12804_v22 = vpop.eup %12803 }
0x2117   :  { %5555 = vrot.lane.b32.xlu0 %v12804_v22, %s12924_s18 }
0x211b   :  { %5559 = vrot.lane.b32.xlu0 %v12804_v22, %s12923_s0 }
0x2167   :  { %v5468_v19 = vpop.permute.xlu0 %5467 }
0x2168   :  { %v5472_v28 = vmul.f32 %v12798_v2, %v5468_v19 }
0x2176   :  { %v5466_v25 = vpop.permute.xlu1 %5465 }
0x2177   :  { %v5471_v63 = vmul.f32 %v5466_v25, %v14692_v32 }
0x2179   :  { %v14766_v30 = vadd.f32 %v5472_v28, %v5471_v63 }
0x217a   :  { %v5470_v34 = vpop.permute.xlu1 %5469 }
0x217b   :  { %12805 = vtanh.f32 %v14766_v30 }
0x217e   :  { %v5558_v60 = vpop.permute.xlu1 %5557 }
0x217f   :  { %v5562_v48 = vmul.f32 %v12804_v22, %v5558_v60 }
0x2185   :  { %v12806_v43 = vpop.eup %12805 }
0x2186   :  { %v5475_v52 = vmul.f32 %v12806_v43, %v5470_v34 }
0x2188   :  { %10241 = vmatmul.mubr.f32.vlgmr.msra.gmra.mrb[64].mxu1 %v5475_v52 }
0x2189   :  { %12217 = vmatpush3.bf16.msra.mxu1 %v13004_v5  ;;  %v5556_v53 = vpop.permute.xlu0 %5555  ;;  %10310 = vmatprep.mubr.msk.f32.mxu1 %vm12921_vm0, %v12922_v1 }
0x218a   :  { %v5561_v42 = vmul.f32 %v5556_v53, %v14696_v6  ;;  %12218 = vmatprep.subr.bf16.mxu1 %v12920_v0 }
0x218c   :  { %v14774_v32 = vadd.f32 %v5562_v48, %v5561_v42 }
0x218d   :  { %12220 = vmatpush3.bf16.msra.mxu1 %v13010_v7  ;;  %v5560_v6 = vpop.permute.xlu0 %5559 }
0x218e   :  { %12807 = vtanh.f32 %v14774_v32  ;;  %12221 = vmatprep.subr.bf16.mxu1 %v12920_v0 }
0x2191   :  { %12223 = vmatpush3.bf16.msra.mxu1 %v13023_v14 }
0x2192   :  { %12224 = vmatprep.subr.bf16.mxu1 %v12920_v0 }
0x2195   :  { %12226 = vmatpush3.bf16.msra.mxu1 %v13037_v17 }
0x2196   :  { %12227 = vmatprep.subr.bf16.mxu1 %v12920_v0 }
0x2198   :  { %v12808_v37 = vpop.eup %12807 }
0x2199   :  { %v5565_v38 = vmul.f32 %v12808_v37, %v5560_v6  ;;  %12229 = vmatpush3.bf16.msra.mxu1 %v13047_v20 }
0x219a   :  { %12230 = vmatprep.subr.bf16.mxu1 %v12920_v0 }
0x219b   :  { %10276 = vmatmul.mubr.f32.vlgmr.msra.gmra.mrb[78].mxu0 %v5565_v38 }
0x219c   :  { %12241 = vmatpush3.bf16.msra.mxu0 %v13094_v33  ;;  %10345 = vmatprep.mubr.msk.f32.mxu0 %vm12921_vm0, %v12922_v1 }
0x219d   :  { %12232 = vmatpush3.bf16.msra.mxu1 %v13057_v23  ;;  %12242 = vmatprep.subr.bf16.mxu0 %v12920_v0 }
0x219e   :  { %12233 = vmatprep.subr.bf16.mxu1 %v12920_v0 }
0x21a0   :  { %12244 = vmatpush3.bf16.msra.mxu0 %v13104_v36 }
0x21a1   :  { %12235 = vmatpush3.bf16.msra.mxu1 %v13067_v26  ;;  %12245 = vmatprep.subr.bf16.mxu0 %v12920_v0 }
0x21a2   :  { %12236 = vmatprep.subr.bf16.mxu1 %v12920_v0 }
0x21a4   :  { %12247 = vmatpush3.bf16.msra.mxu0 %v13123_v41 }
0x21a5   :  { %12238 = vmatpush3.bf16.msra.mxu1 %v13077_v29  ;;  %12248 = vmatprep.subr.bf16.mxu0 %v12920_v0 }
0x21a6   :  { %12263 = vmatprep.subr.bf16.mxu1 %v12920_v0 }
0x21a8   :  { %10311 = vmatmul.mubr.f32.vlgmr.msra.gmra.mrb[66].mxu1 %v5565_v38  ;;  %12250 = vmatpush3.bf16.msra.mxu0 %v13153_v50 }
0x21a9   :  { %12265 = vmatpush3.bf16.msra.mxu1 %v13140_v46  ;;  %12251 = vmatprep.subr.bf16.mxu0 %v12920_v0 }
0x21aa   :  { %12266 = vmatprep.subr.bf16.mxu1 %v12920_v0  ;;  %10380 = vmatprep.mubr.msk.f32.mxu1 %vm12921_vm0, %v12922_v1 }
0x21ac   :  { %12253 = vmatpush3.bf16.msra.mxu0 %v13179_v57 }
0x21ad   :  { %12268 = vmatpush3.bf16.msra.mxu1 %v13150_v49  ;;  %12254 = vmatprep.subr.bf16.mxu0 %v12920_v0 }
0x21ae   :  { %12269 = vmatprep.subr.bf16.mxu1 %v12920_v0 }
0x21b0   :  { %12256 = vmatpush3.bf16.msra.mxu0 %v13197_v61 }
0x21b1   :  { %12271 = vmatpush3.bf16.msra.mxu1 %v13176_v56  ;;  %12257 = vmatprep.subr.bf16.mxu0 %v12920_v0 }
0x21b2   :  { %12272 = vmatprep.subr.bf16.mxu1 %v12920_v0 }
0x21b4   :  { %12259 = vmatpush3.bf16.msra.mxu0 %v13214_v3 }
0x21b5   :  { %12274 = vmatpush3.bf16.msra.mxu1 %v13262_v27  ;;  %12260 = vmatprep.subr.bf16.mxu0 %v12920_v0 }
0x21b6   :  { %12275 = vmatprep.subr.bf16.mxu1 %v12920_v0 }
0x21b8   :  { %12262 = vmatpush3.bf16.msra.mxu0 %v13226_v8 }
0x21b9   :  { %12277 = vmatpush3.bf16.msra.mxu1 %v13272_v31  ;;  %12287 = vmatprep.subr.bf16.mxu0 %v12920_v0 }
0x21ba   :  { %12278 = vmatprep.subr.bf16.mxu1 %v12920_v0 }
0x21bd   :  { %12280 = vmatpush3.bf16.msra.mxu1 %v13282_v35 }
0x21be   :  { %12281 = vmatprep.subr.bf16.mxu1 %v12920_v0 }
0x21c1   :  { %12283 = vmatpush3.bf16.msra.mxu1 %v13291_v39 }
0x21c2   :  { %12284 = vmatprep.subr.bf16.mxu1 %v12920_v0 }
0x21c5   :  { %12286 = vmatpush3.bf16.msra.mxu1 %v13303_v44 }
0x21c6   :  { %12311 = vmatprep.subr.bf16.mxu1 %v12920_v0 }
0x225b   :  { %v5632_v24 = vpop.f32.mrb[64].mxu1 }
0x225c   :  { %v10242_v59 = vpop.f32.mrb[65].mxu1 }
0x226e   :  { %v5702_v40 = vpop.f32.mrb[78].mxu0 }
0x226f   :  { %v5703_v10 = vadd.f32 %v5702_v40, %v5632_v24  ;;  %v10277_v45 = vpop.f32.mrb[79].mxu0 }
0x2271   :  { %v5706_v4 = vadd.f32 %v14756_v47, %v5703_v10 }
0x2273   :  { %v6634_v9 = vmul.f32 -1.442695, %v5706_v4  ;;  %12809 = vtanh.f32 %v5706_v4 }
0x2275   :  { %12811 = vpow2.f32 %v6634_v9 }
0x227b   :  { %v5792_v51 = vpop.f32.mrb[66].mxu1 }
0x227c   :  { %v5796_v11 = vadd.f32 %v5792_v51, %v5725_v21  ;;  %v10312_v54 = vpop.f32.mrb[67].mxu1 }
0x227d   :  { %v12810_v18 = vpop.eup %12809 }
0x227e   :  { %v6635_v58 = vmul.f32 -1.442695, %v5796_v11  ;;  %12813 = vtanh.f32 %v5796_v11  ;;  %5716 = vrot.lane.b32.xlu0 %v12810_v18, %s12925_s19  ;;  %v5974_v11 = vld [vmem:[#allocation2 + $0x2e] sm:$0x3] }
0x227f   :  { %v12812_v12 = vpop.eup %12811 }
0x2280   :  { %v5710_v62 = vadd.f32 1.0, %v12812_v12  ;;  %12815 = vpow2.f32 %v6635_v58 }
0x2282   :  { %12817 = vrcp.f32 %v5710_v62 }
0x2288   :  { %v12814_v16 = vpop.eup %12813 }
0x2289   :  { %5806 = vrot.lane.b32.xlu0 %v12814_v16, %s12925_s19 }
0x228a   :  { %v12816_v2 = vpop.eup %12815 }
0x228b   :  { %v5800_v13 = vadd.f32 1.0, %v12816_v2 }
0x228c   :  { %v12818_v55 = vpop.eup %12817 }
0x228d   :  { %12819 = vrcp.f32 %v5800_v13  ;;  %5714 = vrot.lane.b32.xlu1 %v12818_v55, %s12924_s18 }
0x2297   :  { %v12820_v15 = vpop.eup %12819 }
0x2298   :  { %5808 = vrot.lane.b32.xlu0 %v12820_v15, %s12923_s0  ;;  %5804 = vrot.lane.b32.xlu1 %v12820_v15, %s12924_s18 }
0x229c   :  { %5718 = vrot.lane.b32.xlu1 %v12818_v55, %s12923_s0 }
0x22f0   :  { %v5717_v22 = vpop.permute.xlu0 %5716 }
0x22f1   :  { %v5721_v25 = vmul.f32 %v12818_v55, %v5717_v22 }
0x22fb   :  { %v5807_v34 = vpop.permute.xlu0 %5806 }
0x22fc   :  { %v5811_v52 = vmul.f32 %v12820_v15, %v5807_v34 }
0x22ff   :  { %v5715_v19 = vpop.permute.xlu1 %5714 }
0x2300   :  { %v5720_v28 = vmul.f32 %v5715_v19, %v14766_v30 }
0x2302   :  { %v14835_v63 = vadd.f32 %v5721_v25, %v5720_v28 }
0x2304   :  { %12821 = vtanh.f32 %v14835_v63 }
0x230a   :  { %v5805_v43 = vpop.permute.xlu1 %5804 }
0x230b   :  { %v5810_v60 = vmul.f32 %v5805_v43, %v14774_v32  ;;  %v5809_v32 = vpop.permute.xlu0 %5808 }
0x230d   :  { %v14839_v53 = vadd.f32 %v5811_v52, %v5810_v60 }
0x230e   :  { %v12822_v48 = vpop.eup %12821  ;;  %v5719_v42 = vpop.permute.xlu1 %5718 }
0x230f   :  { %12823 = vtanh.f32 %v14839_v53  ;;  %v5724_v37 = vmul.f32 %v12822_v48, %v5719_v42 }
0x2311   :  { %10346 = vmatmul.mubr.f32.vlgmr.msra.gmra.mrb[80].mxu0 %v5724_v37 }
0x2312   :  { %12289 = vmatpush3.bf16.msra.mxu0 %v13004_v5  ;;  %10415 = vmatprep.mubr.msk.f32.mxu0 %vm12921_vm0, %v12922_v1 }
0x2313   :  { %12290 = vmatprep.subr.bf16.mxu0 %v12920_v0 }
0x2316   :  { %12292 = vmatpush3.bf16.msra.mxu0 %v13010_v7 }
0x2317   :  { %12293 = vmatprep.subr.bf16.mxu0 %v12920_v0 }
0x2319   :  { %v12824_v30 = vpop.eup %12823 }
0x231a   :  { %12295 = vmatpush3.bf16.msra.mxu0 %v13023_v14  ;;  %v5814_v6 = vmul.f32 %v12824_v30, %v5809_v32 }
0x231b   :  { %12296 = vmatprep.subr.bf16.mxu0 %v12920_v0 }
0x231c   :  { %10381 = vmatmul.mubr.f32.vlgmr.msra.gmra.mrb[68].mxu1 %v5814_v6 }
0x231d   :  { %12313 = vmatpush3.bf16.msra.mxu1 %v13094_v33  ;;  %10450 = vmatprep.mubr.msk.f32.mxu1 %vm12921_vm0, %v12922_v1 }
0x231e   :  { %12298 = vmatpush3.bf16.msra.mxu0 %v13037_v17  ;;  %12314 = vmatprep.subr.bf16.mxu1 %v12920_v0 }
0x231f   :  { %12299 = vmatprep.subr.bf16.mxu0 %v12920_v0 }
0x2321   :  { %12316 = vmatpush3.bf16.msra.mxu1 %v13104_v36 }
0x2322   :  { %12301 = vmatpush3.bf16.msra.mxu0 %v13047_v20  ;;  %12317 = vmatprep.subr.bf16.mxu1 %v12920_v0 }
0x2323   :  { %12302 = vmatprep.subr.bf16.mxu0 %v12920_v0 }
0x2325   :  { %12319 = vmatpush3.bf16.msra.mxu1 %v13123_v41 }
0x2326   :  { %12304 = vmatpush3.bf16.msra.mxu0 %v13057_v23  ;;  %12320 = vmatprep.subr.bf16.mxu1 %v12920_v0 }
0x2327   :  { %12305 = vmatprep.subr.bf16.mxu0 %v12920_v0 }
0x2329   :  { %12322 = vmatpush3.bf16.msra.mxu1 %v13153_v50 }
0x232a   :  { %12307 = vmatpush3.bf16.msra.mxu0 %v13067_v26  ;;  %12323 = vmatprep.subr.bf16.mxu1 %v12920_v0 }
0x232b   :  { %12308 = vmatprep.subr.bf16.mxu0 %v12920_v0 }
0x232d   :  { %12325 = vmatpush3.bf16.msra.mxu1 %v13179_v57 }
0x232e   :  { %12310 = vmatpush3.bf16.msra.mxu0 %v13077_v29  ;;  %12326 = vmatprep.subr.bf16.mxu1 %v12920_v0 }
0x232f   :  { %12335 = vmatprep.subr.bf16.mxu0 %v12920_v0 }
0x2331   :  { %10416 = vmatmul.mubr.f32.vlgmr.msra.gmra.mrb[82].mxu0 %v5814_v6  ;;  %12328 = vmatpush3.bf16.msra.mxu1 %v13197_v61 }
0x2332   :  { %12337 = vmatpush3.bf16.msra.mxu0 %v13140_v46  ;;  %12329 = vmatprep.subr.bf16.mxu1 %v12920_v0 }
0x2333   :  { %12338 = vmatprep.subr.bf16.mxu0 %v12920_v0  ;;  %10485 = vmatprep.mubr.msk.f32.mxu0 %vm12921_vm0, %v12922_v1 }
0x2335   :  { %12331 = vmatpush3.bf16.msra.mxu1 %v13214_v3 }
0x2336   :  { %12340 = vmatpush3.bf16.msra.mxu0 %v13150_v49  ;;  %12332 = vmatprep.subr.bf16.mxu1 %v12920_v0 }
0x2337   :  { %12341 = vmatprep.subr.bf16.mxu0 %v12920_v0 }
0x2339   :  { %12334 = vmatpush3.bf16.msra.mxu1 %v13226_v8 }
0x233a   :  { %12343 = vmatpush3.bf16.msra.mxu0 %v13176_v56  ;;  %12359 = vmatprep.subr.bf16.mxu1 %v12920_v0 }
0x233b   :  { %12344 = vmatprep.subr.bf16.mxu0 %v12920_v0 }
0x233e   :  { %12346 = vmatpush3.bf16.msra.mxu0 %v13262_v27 }
0x233f   :  { %12347 = vmatprep.subr.bf16.mxu0 %v12920_v0 }
0x2342   :  { %12349 = vmatpush3.bf16.msra.mxu0 %v13272_v31 }
0x2343   :  { %12350 = vmatprep.subr.bf16.mxu0 %v12920_v0 }
0x2346   :  { %12352 = vmatpush3.bf16.msra.mxu0 %v13282_v35 }
0x2347   :  { %12353 = vmatprep.subr.bf16.mxu0 %v12920_v0 }
0x234a   :  { %12355 = vmatpush3.bf16.msra.mxu0 %v13291_v39 }
0x234b   :  { %12356 = vmatprep.subr.bf16.mxu0 %v12920_v0 }
0x234e   :  { %12358 = vmatpush3.bf16.msra.mxu0 %v13303_v44 }
0x234f   :  { %12383 = vmatprep.subr.bf16.mxu0 %v12920_v0 }
0x23e4   :  { %v5881_v38 = vpop.f32.mrb[80].mxu0 }
0x23e5   :  { %v10347_v24 = vpop.f32.mrb[81].mxu0 }
0x23ef   :  { %v5951_v59 = vpop.f32.mrb[68].mxu1 }
0x23f0   :  { %v5952_v40 = vadd.f32 %v5951_v59, %v5881_v38  ;;  %v10382_v10 = vpop.f32.mrb[69].mxu1 }
0x23f2   :  { %v5955_v45 = vadd.f32 %v14756_v47, %v5952_v40 }
0x23f4   :  { %v6636_v4 = vmul.f32 -1.442695, %v5955_v45  ;;  %12825 = vtanh.f32 %v5955_v45 }
0x23f6   :  { %12827 = vpow2.f32 %v6636_v4 }
0x23fe   :  { %v12826_v9 = vpop.eup %12825 }
0x23ff   :  { %5965 = vrot.lane.b32.xlu0 %v12826_v9, %s12925_s19 }
0x2400   :  { %v12828_v21 = vpop.eup %12827 }
0x2401   :  { %v5959_v51 = vadd.f32 1.0, %v12828_v21 }
0x2403   :  { %12829 = vrcp.f32 %v5959_v51 }
0x2404   :  { %v6041_v54 = vpop.f32.mrb[82].mxu0 }
0x2405   :  { %v6045_v18 = vadd.f32 %v6041_v54, %v5974_v11  ;;  %v10417_v58 = vpop.f32.mrb[83].mxu0 }
0x2407   :  { %v6637_v12 = vmul.f32 -1.442695, %v6045_v18 }
0x2409   :  { %12831 = vpow2.f32 %v6637_v12 }
0x240a   :  { %12833 = vtanh.f32 %v6045_v18 }
0x240d   :  { %v12830_v62 = vpop.eup %12829 }
0x240e   :  { %5963 = vrot.lane.b32.xlu1 %v12830_v62, %s12924_s18 }
0x2412   :  { %5967 = vrot.lane.b32.xlu1 %v12830_v62, %s12923_s0 }
0x2413   :  { %v12832_v16 = vpop.eup %12831 }
0x2414   :  { %v6049_v2 = vadd.f32 1.0, %v12832_v16  ;;  %v12834_v13 = vpop.eup %12833  ;;  %v6472_v16 = vld [vmem:[%s15060_s7] sm:$0xff] }
0x2416   :  { %12835 = vrcp.f32 %v6049_v2  ;;  %6055 = vrot.lane.b32.xlu1 %v12834_v13, %s12925_s19  ;;  %v6473_v2 = vld [vmem:[%s15060_s7 + $0x8] sm:$0xff] }
0x2417   :  { %v12432_v13 = vpack.c.bf16 %v6473_v2, %v6472_v16 }
0x2420   :  { %v12836_v55 = vpop.eup %12835 }
0x2421   :  { %6053 = vrot.lane.b32.xlu0 %v12836_v55, %s12924_s18 }
0x2425   :  { %6057 = vrot.lane.b32.xlu0 %v12836_v55, %s12923_s0 }
0x2471   :  { %v5966_v15 = vpop.permute.xlu0 %5965 }
0x2472   :  { %v5970_v19 = vmul.f32 %v12830_v62, %v5966_v15  ;;  %v6475_v15 = vld [vmem:[%s15060_s7 + $0x18] sm:$0xff] }
0x2480   :  { %v5964_v22 = vpop.permute.xlu1 %5963 }
0x2481   :  { %v5969_v25 = vmul.f32 %v5964_v22, %v14835_v63 }
0x2483   :  { %v14904_v28 = vadd.f32 %v5970_v19, %v5969_v25  ;;  %v6476_v25 = vld [vmem:[%s15060_s7 + $0x20] sm:$0xff] }
0x2484   :  { %v5968_v34 = vpop.permute.xlu1 %5967 }
0x2485   :  { %12837 = vtanh.f32 %v14904_v28 }
0x2488   :  { %v6056_v60 = vpop.permute.xlu1 %6055 }
0x2489   :  { %v6060_v42 = vmul.f32 %v12836_v55, %v6056_v60  ;;  %v6474_v55 = vld [vmem:[%s15060_s7 + $0x10] sm:$0xff] }
0x248a   :  { %v12435_v22 = vpack.c.bf16 %v6475_v15, %v6474_v55 }
0x248f   :  { %v12838_v43 = vpop.eup %12837 }
0x2490   :  { %v5973_v52 = vmul.f32 %v12838_v43, %v5968_v34  ;;  %v6478_v34 = vld [vmem:[%s15060_s7 + $0x30] sm:$0xff]  ;;  %v6479_v43 = vld [vmem:[%s15060_s7 + $0x38] sm:$0xff] }
0x2492   :  { %10451 = vmatmul.mubr.f32.vlgmr.msra.gmra.mrb[70].mxu1 %v5973_v52  ;;  %v12441_v52 = vpack.c.bf16 %v6479_v43, %v6478_v34 }
0x2493   :  { %12361 = vmatpush3.bf16.msra.mxu1 %v13004_v5  ;;  %v6054_v48 = vpop.permute.xlu0 %6053  ;;  %10520 = vmatprep.mubr.msk.f32.mxu1 %vm12921_vm0, %v12922_v1 }
0x2494   :  { %v6059_v37 = vmul.f32 %v6054_v48, %v14839_v53  ;;  %12362 = vmatprep.subr.bf16.mxu1 %v12920_v0 }
0x2496   :  { %v14912_v63 = vadd.f32 %v6060_v42, %v6059_v37  ;;  %v6480_v42 = vld [vmem:[%s15060_s7 + $0x40] sm:$0xff]  ;;  %v6481_v37 = vld [vmem:[%s15060_s7 + $0x48] sm:$0xff] }
0x2497   :  { %12364 = vmatpush3.bf16.msra.mxu1 %v13010_v7  ;;  %v6058_v53 = vpop.permute.xlu0 %6057 }
0x2498   :  { %12839 = vtanh.f32 %v14912_v63  ;;  %12365 = vmatprep.subr.bf16.mxu1 %v12920_v0 }
0x249b   :  { %12367 = vmatpush3.bf16.msra.mxu1 %v13023_v14 }
0x249c   :  { %12368 = vmatprep.subr.bf16.mxu1 %v12920_v0 }
0x249f   :  { %12370 = vmatpush3.bf16.msra.mxu1 %v13037_v17 }
0x24a0   :  { %12371 = vmatprep.subr.bf16.mxu1 %v12920_v0 }
0x24a2   :  { %v12840_v5 = vpop.eup %12839 }
0x24a3   :  { %v6063_v30 = vmul.f32 %v12840_v5, %v6058_v53  ;;  %12373 = vmatpush3.bf16.msra.mxu1 %v13047_v20  ;;  %v12444_v5 = vpack.c.bf16 %v6481_v37, %v6480_v42  ;;  %v6482_v53 = vld [vmem:[%s15060_s7 + $0x50] sm:$0xff] }
0x24a4   :  { %12374 = vmatprep.subr.bf16.mxu1 %v12920_v0 }
0x24a5   :  { %10486 = vmatmul.mubr.f32.vlgmr.msra.gmra.mrb[84].mxu0 %v6063_v30 }
0x24a6   :  { %12385 = vmatpush3.bf16.msra.mxu0 %v13094_v33  ;;  %10555 = vmatprep.mubr.msk.f32.mxu0 %vm12921_vm0, %v12922_v1  ;;  %v6223_v33 = vld [vmem:[#allocation2 + $0x30] sm:$0x3] }
0x24a7   :  { %12376 = vmatpush3.bf16.msra.mxu1 %v13057_v23  ;;  %12386 = vmatprep.subr.bf16.mxu0 %v12920_v0 }
0x24a8   :  { %12377 = vmatprep.subr.bf16.mxu1 %v12920_v0 }
0x24aa   :  { %12388 = vmatpush3.bf16.msra.mxu0 %v13104_v36 }
0x24ab   :  { %12379 = vmatpush3.bf16.msra.mxu1 %v13067_v26  ;;  %12389 = vmatprep.subr.bf16.mxu0 %v12920_v0 }
0x24ac   :  { %12380 = vmatprep.subr.bf16.mxu1 %v12920_v0 }
0x24ae   :  { %12391 = vmatpush3.bf16.msra.mxu0 %v13123_v41 }
0x24af   :  { %12382 = vmatpush3.bf16.msra.mxu1 %v13077_v29  ;;  %12392 = vmatprep.subr.bf16.mxu0 %v12920_v0 }
0x24b0   :  { %12407 = vmatprep.subr.bf16.mxu1 %v12920_v0 }
0x24b2   :  { %10521 = vmatmul.mubr.f32.vlgmr.msra.gmra.mrb[72].mxu1 %v6063_v30  ;;  %12394 = vmatpush3.bf16.msra.mxu0 %v13153_v50  ;;  %v6483_v30 = vld [vmem:[%s15060_s7 + $0x58] sm:$0xff] }
0x24b3   :  { %12409 = vmatpush3.bf16.msra.mxu1 %v13140_v46  ;;  %12395 = vmatprep.subr.bf16.mxu0 %v12920_v0 }
0x24b4   :  { %12410 = vmatprep.subr.bf16.mxu1 %v12920_v0  ;;  %10590 = vmatprep.mubr.msk.f32.mxu1 %vm12921_vm0, %v12922_v1 }
0x24b6   :  { %12397 = vmatpush3.bf16.msra.mxu0 %v13179_v57 }
0x24b7   :  { %12412 = vmatpush3.bf16.msra.mxu1 %v13150_v49  ;;  %12398 = vmatprep.subr.bf16.mxu0 %v12920_v0 }
0x24b8   :  { %12413 = vmatprep.subr.bf16.mxu1 %v12920_v0 }
0x24ba   :  { %12400 = vmatpush3.bf16.msra.mxu0 %v13197_v61 }
0x24bb   :  { %12415 = vmatpush3.bf16.msra.mxu1 %v13176_v56  ;;  %12401 = vmatprep.subr.bf16.mxu0 %v12920_v0 }
0x24bc   :  { %12416 = vmatprep.subr.bf16.mxu1 %v12920_v0 }
0x24be   :  { %12403 = vmatpush3.bf16.msra.mxu0 %v13214_v3 }
0x24bf   :  { %12418 = vmatpush3.bf16.msra.mxu1 %v13262_v27  ;;  %12404 = vmatprep.subr.bf16.mxu0 %v12920_v0 }
0x24c0   :  { %12419 = vmatprep.subr.bf16.mxu1 %v12920_v0 }
0x24c2   :  { %12406 = vmatpush3.bf16.msra.mxu0 %v13226_v8 }
0x24c3   :  { %12421 = vmatpush3.bf16.msra.mxu1 %v13272_v31  ;;  %12431 = vmatprep.subr.bf16.mxu0 %v12920_v0 }
0x24c4   :  { %12422 = vmatprep.subr.bf16.mxu1 %v12920_v0 }
0x24c7   :  { %12424 = vmatpush3.bf16.msra.mxu1 %v13282_v35 }
0x24c8   :  { %12425 = vmatprep.subr.bf16.mxu1 %v12920_v0 }
0x24cb   :  { %12427 = vmatpush3.bf16.msra.mxu1 %v13291_v39 }
0x24cc   :  { %12428 = vmatprep.subr.bf16.mxu1 %v12920_v0 }
0x24cf   :  { %12430 = vmatpush3.bf16.msra.mxu1 %v13303_v44 }
0x2565   :  { %v6130_v7 = vpop.f32.mrb[70].mxu1 }
0x2566   :  { %v10452_v14 = vpop.f32.mrb[71].mxu1 }
0x2567   :  { %v6484_v14 = vld [vmem:[%s15060_s7 + $0x60] sm:$0xff] }
0x2578   :  { %v6200_v17 = vpop.f32.mrb[84].mxu0 }
0x2579   :  { %v6201_v20 = vadd.f32 %v6200_v17, %v6130_v7  ;;  %v10487_v23 = vpop.f32.mrb[85].mxu0  ;;  %v12447_v7 = vpack.c.bf16 %v6483_v30, %v6482_v53  ;;  %v6485_v17 = vld [vmem:[%s15060_s7 + $0x68] sm:$0xff] }
0x257a   :  { %v6486_v23 = vld [vmem:[%s15060_s7 + $0x70] sm:$0xff] }
0x257b   :  { %v6204_v26 = vadd.f32 %v14756_v47, %v6201_v20  ;;  %v12450_v20 = vpack.c.bf16 %v6485_v17, %v6484_v14 }
0x257d   :  { %v6638_v29 = vmul.f32 -1.442695, %v6204_v26  ;;  %12841 = vtanh.f32 %v6204_v26  ;;  %v6487_v26 = vld [vmem:[%s15060_s7 + $0x78] sm:$0xff] }
0x257f   :  { %12843 = vpow2.f32 %v6638_v29 }
0x2585   :  { %v6290_v36 = vpop.f32.mrb[72].mxu1 }
0x2586   :  { %v6294_v41 = vadd.f32 %v6290_v36, %v6223_v33  ;;  %v10522_v46 = vpop.f32.mrb[73].mxu1  ;;  %v12453_v33 = vpack.c.bf16 %v6487_v26, %v6486_v23 }
0x2587   :  { %v12842_v49 = vpop.eup %12841 }
0x2588   :  { %v6639_v50 = vmul.f32 -1.442695, %v6294_v41  ;;  %12845 = vtanh.f32 %v6294_v41  ;;  %6214 = vrot.lane.b32.xlu0 %v12842_v49, %s12925_s19 }
0x2589   :  { %v12844_v56 = vpop.eup %12843 }
0x258a   :  { %v6208_v57 = vadd.f32 1.0, %v12844_v56  ;;  %12847 = vpow2.f32 %v6639_v50 }
0x258c   :  { %12849 = vrcp.f32 %v6208_v57 }
0x2592   :  { %v12846_v61 = vpop.eup %12845 }
0x2593   :  { %6304 = vrot.lane.b32.xlu0 %v12846_v61, %s12925_s19  ;;  %v6641_v61 = vld [vmem:[%s15061_s8] ss:$0 sm:$0xff] }
0x2594   :  { %v12848_v3 = vpop.eup %12847 }
0x2595   :  { %v6298_v8 = vadd.f32 1.0, %v12848_v3 }
0x2596   :  { %v12850_v27 = vpop.eup %12849 }
0x2597   :  { %12851 = vrcp.f32 %v6298_v8  ;;  %6212 = vrot.lane.b32.xlu1 %v12850_v27, %s12924_s18 }
0x25a1   :  { %v12852_v31 = vpop.eup %12851 }
0x25a2   :  { %6306 = vrot.lane.b32.xlu0 %v12852_v31, %s12923_s0  ;;  %6302 = vrot.lane.b32.xlu1 %v12852_v31, %s12924_s18 }
0x25a6   :  { %6216 = vrot.lane.b32.xlu1 %v12850_v27, %s12923_s0 }
0x25fa   :  { %v6215_v35 = vpop.permute.xlu0 %6214 }
0x25fb   :  { %v6219_v44 = vmul.f32 %v12850_v27, %v6215_v35 }
0x2605   :  { %v6305_v38 = vpop.permute.xlu0 %6304 }
0x2606   :  { %v6309_v59 = vmul.f32 %v12852_v31, %v6305_v38 }
0x2609   :  { %v6213_v39 = vpop.permute.xlu1 %6212 }
0x260a   :  { %v6218_v32 = vmul.f32 %v6213_v39, %v14904_v28 }
0x260c   :  { %v14972_v6 = vadd.f32 %v6219_v44, %v6218_v32 }
0x260e   :  { %12853 = vtanh.f32 %v14972_v6 }
0x2614   :  { %v6303_v24 = vpop.permute.xlu1 %6302  ;;  %v6307_v51 = vpop.permute.xlu0 %6306 }
0x2615   :  { %v6308_v40 = vmul.f32 %v6303_v24, %v14912_v63 }
0x2617   :  { %v6310_v10 = vadd.f32 %v6309_v59, %v6308_v40 }
0x2618   :  { %v12854_v45 = vpop.eup %12853  ;;  %v6217_v4 = vpop.permute.xlu1 %6216 }
0x2619   :  { %12855 = vtanh.f32 %v6310_v10  ;;  %v6222_v9 = vmul.f32 %v12854_v45, %v6217_v4 }
0x261b   :  { %10556 = vmatmul.mubr.f32.vlgmr.msra.gmra.mrb[86].mxu0 %v6222_v9 }
0x261c   :  { %10625 = vmatprep.mubr.msk.f32.mxu0 %vm12921_vm0, %v12922_v1  ;;  %12433 = vmatpush3.bf16.msra.mxu0 %v12432_v13 }
0x261d   :  { %12434 = vmatprep.subr.bf16.mxu0 %v12920_v0 }
0x2620   :  { %12436 = vmatpush3.bf16.msra.mxu0 %v12435_v22 }
0x2621   :  { %12437 = vmatprep.subr.bf16.mxu0 %v12920_v0 }
0x2623   :  { %v12856_v21 = vpop.eup %12855 }
0x2624   :  { %v6312_v11 = vmul.f32 %v12856_v21, %v6307_v51 }
0x2626   :  { %10591 = vmatmul.mubr.f32.vlgmr.msra.gmra.mrb[74].mxu1 %v6312_v11 }
0x26ee   :  { %v6379_v54 = vpop.f32.mrb[86].mxu0 }
0x26ef   :  { %v10557_v18 = vpop.f32.mrb[87].mxu0 }
0x26f9   :  { %v6449_v58 = vpop.f32.mrb[74].mxu1 }
0x26fa   :  { %v6450_v12 = vadd.f32 %v6449_v58, %v6379_v54  ;;  %v10592_v62 = vpop.f32.mrb[75].mxu1 }
0x26fc   :  { %v6453_v1 = vadd.f32 %v14756_v47, %v6450_v12  ;;  %v6477_v47 = vld [vmem:[%s15060_s7 + $0x28] sm:$0xff] }
0x26fd   :  { %v12438_v28 = vpack.c.bf16 %v6477_v47, %v6476_v25 }
0x26fe   :  { %v6640_v19 = vmul.f32 -1.442695, %v6453_v1  ;;  %12857 = vtanh.f32 %v6453_v1 }
0x26ff   :  { %12439 = vmatpush3.bf16.msra.mxu0 %v12438_v28 }
0x2700   :  { %12859 = vpow2.f32 %v6640_v19  ;;  %12440 = vmatprep.subr.bf16.mxu0 %v12920_v0 }
0x2703   :  { %12442 = vmatpush3.bf16.msra.mxu0 %v12441_v52 }
0x2704   :  { %12443 = vmatprep.subr.bf16.mxu0 %v12920_v0 }
0x2707   :  { %12445 = vmatpush3.bf16.msra.mxu0 %v12444_v5 }
0x2708   :  { %v12858_v60 = vpop.eup %12857  ;;  %12446 = vmatprep.subr.bf16.mxu0 %v12920_v0 }
0x2709   :  { %6463 = vrot.lane.b32.xlu0 %v12858_v60, %s12925_s19 }
0x270a   :  { %v12860_v48 = vpop.eup %12859 }
0x270b   :  { %v6457_v63 = vadd.f32 1.0, %v12860_v48  ;;  %12448 = vmatpush3.bf16.msra.mxu0 %v12447_v7 }
0x270c   :  { %12449 = vmatprep.subr.bf16.mxu0 %v12920_v0 }
0x270d   :  { %12861 = vrcp.f32 %v6457_v63 }
0x270f   :  { %12451 = vmatpush3.bf16.msra.mxu0 %v12450_v20 }
0x2710   :  { %12452 = vmatprep.subr.bf16.mxu0 %v12920_v0 }
0x2713   :  { %12454 = vmatpush3.bf16.msra.mxu0 %v12453_v33 }
0x2717   :  { %v12862_v29 = vpop.eup %12861 }
0x2718   :  { %6461 = vrot.lane.b32.xlu1 %v12862_v29, %s12924_s18  ;;  %s6573_s18 = sshll.u32 %s12926_s11, 4  ;;  %s6574_s18 = int_to_ptr.vmem [resolvable:$true] %s6573_s18 }
0x2719   :  { %p12896_p9 = scmp.lt.s32.totalorder %s6574_s18, %s6574_s18 }
0x271c   :  { %6465 = vrot.lane.b32.xlu1 %v12862_v29, %s12923_s0  ;;  %s12891_s0 = scalar_lea.vmem %s6574_s18, 32 }
0x271d   :  { %p12892_p8 = scmp.ne.s32.totalorder %s6574_s18, %s12891_s0  ;;  %p12897_p10 = scmp.lt.s32.totalorder %s12891_s0, %s12891_s0 }
0x271f   :  { %p12898_p11 = por %p12897_p10, %p12896_p9 }
0x2721   :  { %p12899_p12 = pnand %p12898_p11, %p12892_p8 }
0x277b   :  { %v6464_v36 = vpop.permute.xlu0 %6463 }
0x277c   :  { %v6468_v46 = vmul.f32 %v12862_v29, %v6464_v36 }
0x278a   :  { %v6462_v41 = vpop.permute.xlu1 %6461 }
0x278b   :  { %v6467_v0 = vmul.f32 %v6462_v41, %v14972_v6 }
0x278d   :  { %v6469_v49 = vadd.f32 %v6468_v46, %v6467_v0 }
0x278e   :  { %v6466_v56 = vpop.permute.xlu1 %6465 }
0x278f   :  { %12863 = vtanh.f32 %v6469_v49 }
0x2799   :  { %v12864_v50 = vpop.eup %12863 }
0x279a   :  { %v6471_v57 = vmul.f32 %v12864_v50, %v6466_v56 }
0x279c   :  { %10626 = vmatmul.mubr.f32.vlgmr.msra.gmra.mrb[88].mxu0 %v6471_v57 }
0x286f   :  { %v6561_v3 = vpop.f32.mrb[88].mxu0 }
0x2870   :  { %v6562_v8 = vadd.f32 %v6641_v61, %v6561_v3  ;;  %v10627_v27 = vpop.f32.mrb[89].mxu0 }
0x2872   :  { %6566 = vst.msk [vmem:[#allocation6] sm:$0x3] %vm6565_vm2, %v6562_v8 }
0x2873   :  { %12902 = shalt.err (!%p12899_p12)
}
0x2874   :  { %s12903_s14 = scalar_lea.hbm %s15062_s9, 32 }
0x2875   :  { %p12904_p13 = scmp.ne.s32.totalorder %s15062_s9, %s12903_s14  ;;  %p12907_p0 = scmp.lt.u32.totalorder %s12903_s14, %s15062_s9 }
0x2877   :  { %p12909_p1 = pnand %p12907_p0, %p12904_p13 }
0x2879   :  { %12912 = shalt.err (!%p12909_p1)
}
0x287a   :  { %6576 = dma.vmem_to_hbm [thread:$0]  %s6574_s18, 32, %s15062_s9, [#allocation5]  }
0x287b   :  { %12915 = dma.done.wait [#allocation5], 32  }
0x287c   :  { %12916 = vsyncadd [#allocation5], 4294967264 }
0x287d   :  { %6580 = vsyncpa [#allocation4], 1 }
0x287e   :  { %6581 = vsyncpa [#allocation5], 1 }

</bundles_post_ra>
